<compile_context>
chip_gen: v7x
topology: tpu7x:2x2x1
jax: 0.10.0
libtpu: 0.0.40
codegen_flags: <defaults>
</compile_context>

<pallas_src>
import math
import functools

import jax
import jax.numpy as jnp
from jax.experimental import pallas as pl
from jax.experimental.pallas import tpu as pltpu


# ----------------------------------------------------------------------------
# Helpers
# ----------------------------------------------------------------------------
def _round_up(n, m):
    return (n + m - 1) // m * m


def _num_tensorcores():
    """Best-effort TensorCore count per chip (v7x has 2, earlier chips 1)."""
    try:
        kind = (getattr(jax.devices()[0], "device_kind", "") or "").lower()
    except Exception:
        return 1
    return 2 if ("v7" in kind or "7x" in kind) else 1


def _matmul_tiles(K, N, num_tc=1):
    """Choose (pK, pN, tk, tn) for a (M,K)x(K,N) matmul.

    pK / pN (padded extents) are independent of num_tc, so prepare_params()
    and the hot path always agree on padding.
    """
    pN = _round_up(N, 128)
    if num_tc >= 2 and pN == 256:
        tn = 128                      # give the second TC an N block to chew on
    elif pN % 256 == 0:
        tn = 256                      # fill the 2x256x256 MXU
    else:
        tn = 128
    if K <= 1024:
        # Single full-extent K block: no K padding (e.g. conv1 K=147), 1 K step.
        tk, pK = K, K
    elif K % 256 == 0:
        tk, pK = 256, K
    elif K % 128 == 0:
        tk, pK = 128, K
    else:
        tk, pK = 128, _round_up(K, 128)
    return pK, pN, tk, tn


def _m_tiles(M, num_tc=1):
    """Bounded M tile (<=512).  On multi-TC chips split M into >=2 parallel
    tiles whenever there is enough work so both cores are busy."""
    pM8 = _round_up(M, 8)
    max_tm = 512
    if num_tc >= 2 and pM8 >= 16:
        tm = min(max_tm, _round_up((pM8 + 1) // 2, 8))
    else:
        tm = min(max_tm, pM8)
    pM = _round_up(pM8, tm)
    return tm, pM


# ----------------------------------------------------------------------------
# Pallas matmul kernel (the hot path for every conv and the projector)
# ----------------------------------------------------------------------------
def _matmul_kernel(relu, has_res):
    """Y = (X @ W) * scale + bias [+ residual], optional ReLU.
    Grid = (M tiles, N tiles, K tiles); K is the reduction (last, arbitrary).
    Epilogue math stays f32; only the final store casts (bf16-friendly on all
    generations, and v5e has no bf16 VPU)."""
    def kernel(*refs):
        if has_res:
            x_ref, w_ref, s_ref, b_ref, r_ref, o_ref, acc_ref = refs
        else:
            x_ref, w_ref, s_ref, b_ref, o_ref, acc_ref = refs
            r_ref = None

        @pl.when(pl.program_id(2) == 0)
        def _():
            acc_ref[...] = jnp.zeros_like(acc_ref)

        acc_ref[...] += jnp.dot(
            x_ref[...], w_ref[...], preferred_element_type=jnp.float32
        )

        @pl.when(pl.program_id(2) == pl.num_programs(2) - 1)
        def _():
            y = acc_ref[...] * s_ref[...] + b_ref[...]
            if has_res:
                y = y + r_ref[...].astype(jnp.float32)
            if relu:
                y = jnp.maximum(y, 0.0)
            o_ref[...] = y.astype(o_ref.dtype)

    return kernel


def matmul_scale_bias(x, w_p, scale_p, bias_p, K, N, relu,
                      residual=None, out_dtype=jnp.float32, num_tc=1):
    """x: (M, K); w_p: (pK, pN) bf16 pre-padded; scale/bias: (1, pN) f32.
    residual (optional): (M, N) bf16/f32, fused into the epilogue before ReLU.
    Returns (M, N) in out_dtype."""
    M = x.shape[0]
    pK, pN, tk, tn = _matmul_tiles(K, N, num_tc)
    tm, pM = _m_tiles(M, num_tc)

    xp = x.astype(jnp.bfloat16)          # no-op when activations already bf16
    if pM != M or pK != K:
        xp = jnp.pad(xp, ((0, pM - M), (0, pK - K)))

    in_specs = [
        pl.BlockSpec((tm, tk), lambda i, j, k: (i, k)),
        pl.BlockSpec((tk, tn), lambda i, j, k: (k, j)),
        pl.BlockSpec((1, tn), lambda i, j, k: (0, j)),
        pl.BlockSpec((1, tn), lambda i, j, k: (0, j)),
    ]
    args = [xp, w_p, scale_p, bias_p]
    if residual is not None:
        # Residual tile is small (tm x tn bf16); it is VMEM-resident across the
        # K steps but only consumed in the last-K epilogue (acceptable here).
        rp = residual.astype(jnp.bfloat16)
        if rp.shape != (pM, pN):
            rp = jnp.pad(rp, ((0, pM - rp.shape[0]), (0, pN - rp.shape[1])))
        in_specs.append(pl.BlockSpec((tm, tn), lambda i, j, k: (i, j)))
        args.append(rp)

    out_bytes = jnp.dtype(out_dtype).itemsize
    bytes_accessed = (pM * pK * 2 + pK * pN * 2 + pM * pN * out_bytes
                      + (pM * pN * 2 if residual is not None else 0))
    cost = pl.CostEstimate(flops=int(2 * pM * pN * pK),
                           transcendentals=0,
                           bytes_accessed=int(bytes_accessed))

    out = pl.pallas_call(
        _matmul_kernel(relu, residual is not None),
        out_shape=jax.ShapeDtypeStruct((pM, pN), out_dtype),
        grid_spec=pltpu.PrefetchScalarGridSpec(
            num_scalar_prefetch=0,
            grid=(pM // tm, pN // tn, pK // tk),
            in_specs=in_specs,
            out_specs=pl.BlockSpec((tm, tn), lambda i, j, k: (i, j)),
            scratch_shapes=[pltpu.VMEM((tm, tn), jnp.float32)],
        ),
        compiler_params=pltpu.CompilerParams(
            dimension_semantics=("parallel", "parallel", "arbitrary"),
            vmem_limit_bytes=32 * 1024 * 1024,   # safe on v5e/v6e (128 MiB) and v7x (64 MiB)
        ),
        cost_estimate=cost,
    )(*args)
    return out[:M, :N]


# ----------------------------------------------------------------------------
# Pooling (XLA-fused, per perf review: no Pallas launch / no 9x HBM temp)
# ----------------------------------------------------------------------------
def maxpool_3x3_s2_p1(x):
    """MaxPool2d(kernel=3, stride=2, padding=1) on NHWC, fused max-tree."""
    B, H, W, C = x.shape
    xp = jnp.pad(x, ((0, 0), (1, 1), (1, 1), (0, 0)),
                 constant_values=-jnp.inf)
    oh = (H + 2 - 3) // 2 + 1
    ow = (W + 2 - 3) // 2 + 1
    taps = [xp[:, i:i + 2 * (oh - 1) + 1:2, j:j + 2 * (ow - 1) + 1:2, :]
            for i in range(3) for j in range(3)]
    while len(taps) > 1:                      # log-tree of pairwise maxima
        nxt = [jnp.maximum(taps[k], taps[k + 1])
               for k in range(0, len(taps) - 1, 2)]
        if len(taps) % 2:
            nxt.append(taps[-1])
        taps = nxt
    return taps[0]


# ----------------------------------------------------------------------------
# Conv (im2col glue + Pallas matmul hot path)
# ----------------------------------------------------------------------------
def _im2col(x, kh, kw, stride, pad):
    """x: NHWC -> patches (B*oh*ow, kh*kw*C), patch order (kh, kw, C)."""
    if pad > 0:
        x = jnp.pad(x, ((0, 0), (pad, pad), (pad, pad), (0, 0)))
    B, Hp, Wp, C = x.shape
    oh = (Hp - kh) // stride + 1
    ow = (Wp - kw) // stride + 1
    cols = []
    for i in range(kh):
        for j in range(kw):
            cols.append(
                x[:, i:i + stride * (oh - 1) + 1:stride,
                  j:j + stride * (ow - 1) + 1:stride, :]
            )
    patches = jnp.stack(cols, axis=3)            # (B, oh, ow, kh*kw, C)
    return patches.reshape(B * oh * ow, kh * kw * C), (B, oh, ow)


def conv_bn(x, arr, meta, stride, pad, relu, residual=None, num_tc=1):
    """x: NHWC bf16; arr: prepared arrays (bf16 weights, folded BN);
    meta: static ints {K, N, kh, kw}.  Output is bf16 NHWC."""
    kh, kw = meta["kh"], meta["kw"]
    patches, (B, oh, ow) = _im2col(x, kh, kw, stride, pad)
    res2 = None
    if residual is not None:
        res2 = residual.reshape(B * oh * ow, meta["N"])
    y = matmul_scale_bias(patches, arr["w"], arr["scale"], arr["bias"],
                          meta["K"], meta["N"], relu, residual=res2,
                          out_dtype=jnp.bfloat16, num_tc=num_tc)
    return y.reshape(B, oh, ow, meta["N"])


# ----------------------------------------------------------------------------
# ResNet18 + projector: deterministic synthetic parameters (PyTorch layout)
# ----------------------------------------------------------------------------
_LAYER_CFG = ((64, 1), (128, 2), (256, 2), (512, 2))  # (out_channels, stride)


def init_params(key, output_dim):
    keys = list(jax.random.split(key, 256))
    it = iter(keys)

    def nk():
        return next(it)

    def conv_w(cout, cin, k):
        fan = cin * k * k
        return jax.random.normal(nk(), (cout, cin, k, k),
                                 jnp.float32) / math.sqrt(fan)

    def bn_fold(c):
        gamma = 1.0 + 0.1 * jax.random.normal(nk(), (c,), jnp.float32)
        beta = 0.1 * jax.random.normal(nk(), (c,), jnp.float32)
        mean = 0.1 * jax.random.normal(nk(), (c,), jnp.float32)
        var = 0.5 + jax.random.uniform(nk(), (c,), jnp.float32)
        scale = gamma / jnp.sqrt(var + 1e-5)
        bias = beta - mean * scale
        return scale, bias

    params = {
        "conv1_w": conv_w(64, 3, 7),
        "bn1": bn_fold(64),
        "layers": [],
        "proj_w": jax.random.normal(nk(), (512, output_dim),
                                    jnp.float32) / math.sqrt(512),
        "proj_b": 0.01 * jax.random.normal(nk(), (output_dim,), jnp.float32),
    }

    cin = 64
    for cout, stride in _LAYER_CFG:
        blocks = []
        for bidx in range(2):
            s = stride if bidx == 0 else 1
            bcin = cin if bidx == 0 else cout
            blk = {
                "conv1_w": conv_w(cout, bcin, 3),
                "bn1": bn_fold(cout),
                "conv2_w": conv_w(cout, cout, 3),
                "bn2": bn_fold(cout),
            }
            if s != 1 or bcin != cout:
                blk["down_w"] = conv_w(cout, bcin, 1)
                blk["dbn"] = bn_fold(cout)
            blocks.append(blk)
        params["layers"].append(blocks)
        cin = cout
    return params


# ----------------------------------------------------------------------------
# One-time weight preparation.  Returns TWO parallel trees:
#   arrays: only jnp arrays (traced jit args)
#   meta:   only Python ints (bound statically via functools.partial)
# ----------------------------------------------------------------------------
def _prep_conv(w, bn):
    cout, cin, kh, kw = w.shape
    K = kh * kw * cin
    pK, pN, _, _ = _matmul_tiles(K, cout)
    wmat = jnp.transpose(w, (2, 3, 1, 0)).reshape(K, cout)
    wmat = jnp.pad(wmat, ((0, pK - K), (0, pN - cout))).astype(jnp.bfloat16)
    scale, bias = bn
    sp = jnp.pad(scale, (0, pN - cout)).reshape(1, pN).astype(jnp.float32)
    bp = jnp.pad(bias, (0, pN - cout)).reshape(1, pN).astype(jnp.float32)
    return ({"w": wmat, "scale": sp, "bias": bp},
            {"K": K, "N": cout, "kh": kh, "kw": kw})


def _prep_linear(w, b):
    K, N = w.shape
    pK, pN, _, _ = _matmul_tiles(K, N)
    wp = jnp.pad(w, ((0, pK - K), (0, pN - N))).astype(jnp.bfloat16)
    sp = jnp.ones((1, pN), jnp.float32)
    bp = jnp.pad(b, (0, pN - N)).reshape(1, pN).astype(jnp.float32)
    return ({"w": wp, "scale": sp, "bias": bp}, {"K": K, "N": N})


def prepare_params(params):
    conv1_a, conv1_m = _prep_conv(params["conv1_w"], params["bn1"])
    proj_a, proj_m = _prep_linear(params["proj_w"], params["proj_b"])
    arrays = {"conv1": conv1_a, "layers": [], "proj": proj_a}
    meta = {"conv1": conv1_m, "layers": [], "proj": proj_m}
    for blocks in params["layers"]:
        a_blocks, m_blocks = [], []
        for blk in blocks:
            a, m = {}, {}
            a["c1"], m["c1"] = _prep_conv(blk["conv1_w"], blk["bn1"])
            a["c2"], m["c2"] = _prep_conv(blk["conv2_w"], blk["bn2"])
            if "down_w" in blk:
                a["down"], m["down"] = _prep_conv(blk["down_w"], blk["dbn"])
            a_blocks.append(a)
            m_blocks.append(m)
        arrays["layers"].append(a_blocks)
        meta["layers"].append(m_blocks)
    return arrays, meta


# ----------------------------------------------------------------------------
# Forward
# ----------------------------------------------------------------------------
def basic_block(x, arr, meta, stride, num_tc):
    if "down" in arr:
        identity = conv_bn(x, arr["down"], meta["down"], stride=stride, pad=0,
                           relu=False, num_tc=num_tc)
    else:
        identity = x
    out = conv_bn(x, arr["c1"], meta["c1"], stride=stride, pad=1, relu=True,
                  num_tc=num_tc)
    # residual add + ReLU fused into the second conv's matmul epilogue
    out = conv_bn(out, arr["c2"], meta["c2"], stride=1, pad=1, relu=True,
                  residual=identity, num_tc=num_tc)
    return out


def pretrained_cnn_forward(x_nchw, arrays, meta, num_tc):
    """x_nchw: (B, 3, H, W) float32 -> (B, output_dim) float32."""
    # NCHW -> NHWC; single up-front bf16 cast, every conv emits bf16 directly.
    x = jnp.transpose(x_nchw, (0, 2, 3, 1)).astype(jnp.bfloat16)
    h = conv_bn(x, arrays["conv1"], meta["conv1"], stride=2, pad=3, relu=True,
                num_tc=num_tc)
    h = maxpool_3x3_s2_p1(h)
    for li, (a_blocks, m_blocks) in enumerate(zip(arrays["layers"],
                                                  meta["layers"])):
        for bi, (ba, bm) in enumerate(zip(a_blocks, m_blocks)):
            s = _LAYER_CFG[li][1] if bi == 0 else 1
            h = basic_block(h, ba, bm, s, num_tc)
    # AdaptiveAvgPool2d((1,1)) + flatten: tiny tensor, XLA mean beats a launch.
    feat = jnp.mean(h.astype(jnp.float32), axis=(1, 2))          # (B, 512)
    pa, pm = arrays["proj"], meta["proj"]
    return matmul_scale_bias(feat, pa["w"], pa["scale"], pa["bias"],
                             pm["K"], pm["N"], relu=False,
                             out_dtype=jnp.float32, num_tc=num_tc)


# ----------------------------------------------------------------------------
if __name__ == "__main__":
    key = jax.random.PRNGKey(0)
    k_params, k_x = jax.random.split(key)

    OUTPUT_DIM = 32
    num_tc = _num_tensorcores()
    params = init_params(k_params, OUTPUT_DIM)
    arrays, meta = prepare_params(params)   # one-time transpose / pad / bf16 cast

    # Small image consistent with the forward: (B, 3, H, W)
    x = jax.random.normal(k_x, (2, 3, 32, 32), jnp.float32)

    # meta (Python ints) and num_tc are bound statically; only x and the weight
    # arrays are traced -> kh/kw/K/N stay concrete (fixes TracerIntegerConversionError).
    forward = jax.jit(functools.partial(pretrained_cnn_forward,
                                        meta=meta, num_tc=num_tc))
    y = forward(x, arrays)
    y = jax.block_until_ready(y)

    assert y.shape == (2, OUTPUT_DIM), y.shape
    assert y.dtype == jnp.float32
    assert bool(jnp.all(jnp.isfinite(y)))
    print("KERNEL_OK")
</pallas_src>

<mosaic_0001>
module attributes {stable_mosaic.version = 11 : i64} {
  func.func @kernel(%arg0: i32, %arg1: i32, %arg2: i32, %arg3: memref<512x147xbf16, #tpu.memory_space<vmem>>, %arg4: memref<147x128xbf16, #tpu.memory_space<vmem>>, %arg5: memref<1x128xf32, #tpu.memory_space<vmem>>, %arg6: memref<1x128xf32, #tpu.memory_space<vmem>>, %arg7: memref<512x128xbf16, #tpu.memory_space<vmem>>, %arg8: memref<512x128xf32, #tpu.memory_space<vmem>>) attributes {dimension_semantics = [#tpu.dimension_semantics<parallel>, #tpu.dimension_semantics<parallel>, #tpu.dimension_semantics<arbitrary>], iteration_bounds = array<i64: 1, 1, 1>, scalar_prefetch = 0 : i64, scratch_operands = 1 : i64, tpu.core_type = #tpu.core_type<tc>, window_params = [{transform_indices = @transform_0, window_bounds = array<i64: 512, 147>}, {transform_indices = @transform_1, window_bounds = array<i64: 147, 128>}, {transform_indices = @transform_2, window_bounds = array<i64: 1, 128>}, {transform_indices = @transform_3, window_bounds = array<i64: 1, 128>}, {transform_indices = @transform_4, window_bounds = array<i64: 512, 128>}]} {
    %c0_i32 = arith.constant 0 : i32
    %0 = arith.cmpi eq, %arg2, %c0_i32 : i32
    %1 = arith.extui %0 : i1 to i32
    %c0_i32_0 = arith.constant 0 : i32
    %2 = arith.cmpi ne, %1, %c0_i32_0 : i32
    scf.if %2 {
      %cst_10 = arith.constant 0.000000e+00 : f32
      %12 = vector.broadcast %cst_10 : f32 to vector<512x128xf32>
      %c0_11 = arith.constant 0 : index
      %c0_12 = arith.constant 0 : index
      %13 = vector.load %arg8[%c0_11, %c0_12] : memref<512x128xf32, #tpu.memory_space<vmem>>, vector<512x128xf32>
      tpu.vector_store %arg8[%c0_11, %c0_12], %12 {strides = array<i32>} : memref<512x128xf32, #tpu.memory_space<vmem>>, vector<512x128xf32>,
    } else {
    }
    %c0 = arith.constant 0 : index
    %c0_1 = arith.constant 0 : index
    %3 = vector.load %arg8[%c0, %c0_1] : memref<512x128xf32, #tpu.memory_space<vmem>>, vector<512x128xf32>
    %c0_2 = arith.constant 0 : index
    %c0_3 = arith.constant 0 : index
    %4 = vector.load %arg3[%c0_2, %c0_3] : memref<512x147xbf16, #tpu.memory_space<vmem>>, vector<512x147xbf16>
    %c0_4 = arith.constant 0 : index
    %c0_5 = arith.constant 0 : index
    %5 = vector.load %arg4[%c0_4, %c0_5] : memref<147x128xbf16, #tpu.memory_space<vmem>>, vector<147x128xbf16>
    %cst = arith.constant dense<0.000000e+00> : vector<512x128xf32>
    %6 = tpu.matmul %4, %5, %cst {dimension_numbers = #tpu.dot_dimension_numbers<[1], [0], [0], [1], [0, 0, 1, 1], [], []>} : vector<512x147xbf16>, vector<147x128xbf16>, vector<512x128xf32> -> vector<512x128xf32>
    %7 = arith.addf %3, %6 : vector<512x128xf32>
    %c0_6 = arith.constant 0 : index
    %c0_7 = arith.constant 0 : index
    %8 = vector.load %arg8[%c0_6, %c0_7] : memref<512x128xf32, #tpu.memory_space<vmem>>, vector<512x128xf32>
    tpu.vector_store %arg8[%c0_6, %c0_7], %7 {strides = array<i32>} : memref<512x128xf32, #tpu.memory_space<vmem>>, vector<512x128xf32>,
    %c0_i32_8 = arith.constant 0 : i32
    %9 = arith.cmpi eq, %arg2, %c0_i32_8 : i32
    %10 = arith.extui %9 : i1 to i32
    %c0_i32_9 = arith.constant 0 : i32
    %11 = arith.cmpi ne, %10, %c0_i32_9 : i32
    scf.if %11 {
      %c0_10 = arith.constant 0 : index
      %c0_11 = arith.constant 0 : index
      %12 = vector.load %arg8[%c0_10, %c0_11] : memref<512x128xf32, #tpu.memory_space<vmem>>, vector<512x128xf32>
      %c0_12 = arith.constant 0 : index
      %c0_13 = arith.constant 0 : index
      %13 = vector.load %arg5[%c0_12, %c0_13] : memref<1x128xf32, #tpu.memory_space<vmem>>, vector<1x128xf32>
      %14 = vector.broadcast %13 : vector<1x128xf32> to vector<512x128xf32>
      %15 = arith.mulf %12, %14 : vector<512x128xf32>
      %c0_14 = arith.constant 0 : index
      %c0_15 = arith.constant 0 : index
      %16 = vector.load %arg6[%c0_14, %c0_15] : memref<1x128xf32, #tpu.memory_space<vmem>>, vector<1x128xf32>
      %17 = vector.broadcast %16 : vector<1x128xf32> to vector<512x128xf32>
      %18 = arith.addf %15, %17 : vector<512x128xf32>
      %cst_16 = arith.constant 0.000000e+00 : f32
      %19 = vector.broadcast %cst_16 : f32 to vector<512x128xf32>
      %20 = arith.maximumf %18, %19 : vector<512x128xf32>
      %21 = arith.truncf %20 : vector<512x128xf32> to vector<512x128xbf16>
      %c0_17 = arith.constant 0 : index
      %c0_18 = arith.constant 0 : index
      %22 = vector.load %arg7[%c0_17, %c0_18] : memref<512x128xbf16, #tpu.memory_space<vmem>>, vector<512x128xbf16>
      tpu.vector_store %arg7[%c0_17, %c0_18], %21 {strides = array<i32>} : memref<512x128xbf16, #tpu.memory_space<vmem>>, vector<512x128xbf16>,
    } else {
    }
    return
  }
  func.func @transform_0(%arg0: i32, %arg1: i32, %arg2: i32) -> (i32, i32) {
    %c0_i32 = arith.constant 0 : i32
    return %arg0, %arg2 : i32, i32
  }
  func.func @transform_1(%arg0: i32, %arg1: i32, %arg2: i32) -> (i32, i32) {
    %c0_i32 = arith.constant 0 : i32
    return %arg2, %arg1 : i32, i32
  }
  func.func @transform_2(%arg0: i32, %arg1: i32, %arg2: i32) -> (i32, i32) {
    %c0_i32 = arith.constant 0 : i32
    %c0_i32_0 = arith.constant 0 : i32
    return %c0_i32, %arg1 : i32, i32
  }
  func.func @transform_3(%arg0: i32, %arg1: i32, %arg2: i32) -> (i32, i32) {
    %c0_i32 = arith.constant 0 : i32
    %c0_i32_0 = arith.constant 0 : i32
    return %c0_i32, %arg1 : i32, i32
  }
  func.func @transform_4(%arg0: i32, %arg1: i32, %arg2: i32) -> (i32, i32) {
    %c0_i32 = arith.constant 0 : i32
    return %arg0, %arg1 : i32, i32
  }
}

module attributes {stable_mosaic.version = 11 : i64} {
  func.func @kernel(%arg0: i32, %arg1: i32, %arg2: i32, %arg3: memref<128x576xbf16, #tpu.memory_space<vmem>>, %arg4: memref<576x128xbf16, #tpu.memory_space<vmem>>, %arg5: memref<1x128xf32, #tpu.memory_space<vmem>>, %arg6: memref<1x128xf32, #tpu.memory_space<vmem>>, %arg7: memref<128x128xbf16, #tpu.memory_space<vmem>>, %arg8: memref<128x128xf32, #tpu.memory_space<vmem>>) attributes {dimension_semantics = [#tpu.dimension_semantics<parallel>, #tpu.dimension_semantics<parallel>, #tpu.dimension_semantics<arbitrary>], iteration_bounds = array<i64: 1, 1, 1>, scalar_prefetch = 0 : i64, scratch_operands = 1 : i64, tpu.core_type = #tpu.core_type<tc>, window_params = [{transform_indices = @transform_0, window_bounds = array<i64: 128, 576>}, {transform_indices = @transform_1, window_bounds = array<i64: 576, 128>}, {transform_indices = @transform_2, window_bounds = array<i64: 1, 128>}, {transform_indices = @transform_3, window_bounds = array<i64: 1, 128>}, {transform_indices = @transform_4, window_bounds = array<i64: 128, 128>}]} {
    %c0_i32 = arith.constant 0 : i32
    %0 = arith.cmpi eq, %arg2, %c0_i32 : i32
    %1 = arith.extui %0 : i1 to i32
    %c0_i32_0 = arith.constant 0 : i32
    %2 = arith.cmpi ne, %1, %c0_i32_0 : i32
    scf.if %2 {
      %cst_10 = arith.constant 0.000000e+00 : f32
      %12 = vector.broadcast %cst_10 : f32 to vector<128x128xf32>
      %c0_11 = arith.constant 0 : index
      %c0_12 = arith.constant 0 : index
      %13 = vector.load %arg8[%c0_11, %c0_12] : memref<128x128xf32, #tpu.memory_space<vmem>>, vector<128x128xf32>
      tpu.vector_store %arg8[%c0_11, %c0_12], %12 {strides = array<i32>} : memref<128x128xf32, #tpu.memory_space<vmem>>, vector<128x128xf32>,
    } else {
    }
    %c0 = arith.constant 0 : index
    %c0_1 = arith.constant 0 : index
    %3 = vector.load %arg8[%c0, %c0_1] : memref<128x128xf32, #tpu.memory_space<vmem>>, vector<128x128xf32>
    %c0_2 = arith.constant 0 : index
    %c0_3 = arith.constant 0 : index
    %4 = vector.load %arg3[%c0_2, %c0_3] : memref<128x576xbf16, #tpu.memory_space<vmem>>, vector<128x576xbf16>
    %c0_4 = arith.constant 0 : index
    %c0_5 = arith.constant 0 : index
    %5 = vector.load %arg4[%c0_4, %c0_5] : memref<576x128xbf16, #tpu.memory_space<vmem>>, vector<576x128xbf16>
    %cst = arith.constant dense<0.000000e+00> : vector<128x128xf32>
    %6 = tpu.matmul %4, %5, %cst {dimension_numbers = #tpu.dot_dimension_numbers<[1], [0], [0], [1], [0, 0, 1, 1], [], []>} : vector<128x576xbf16>, vector<576x128xbf16>, vector<128x128xf32> -> vector<128x128xf32>
    %7 = arith.addf %3, %6 : vector<128x128xf32>
    %c0_6 = arith.constant 0 : index
    %c0_7 = arith.constant 0 : index
    %8 = vector.load %arg8[%c0_6, %c0_7] : memref<128x128xf32, #tpu.memory_space<vmem>>, vector<128x128xf32>
    tpu.vector_store %arg8[%c0_6, %c0_7], %7 {strides = array<i32>} : memref<128x128xf32, #tpu.memory_space<vmem>>, vector<128x128xf32>,
    %c0_i32_8 = arith.constant 0 : i32
    %9 = arith.cmpi eq, %arg2, %c0_i32_8 : i32
    %10 = arith.extui %9 : i1 to i32
    %c0_i32_9 = arith.constant 0 : i32
    %11 = arith.cmpi ne, %10, %c0_i32_9 : i32
    scf.if %11 {
      %c0_10 = arith.constant 0 : index
      %c0_11 = arith.constant 0 : index
      %12 = vector.load %arg8[%c0_10, %c0_11] : memref<128x128xf32, #tpu.memory_space<vmem>>, vector<128x128xf32>
      %c0_12 = arith.constant 0 : index
      %c0_13 = arith.constant 0 : index
      %13 = vector.load %arg5[%c0_12, %c0_13] : memref<1x128xf32, #tpu.memory_space<vmem>>, vector<1x128xf32>
      %14 = vector.broadcast %13 : vector<1x128xf32> to vector<128x128xf32>
      %15 = arith.mulf %12, %14 : vector<128x128xf32>
      %c0_14 = arith.constant 0 : index
      %c0_15 = arith.constant 0 : index
      %16 = vector.load %arg6[%c0_14, %c0_15] : memref<1x128xf32, #tpu.memory_space<vmem>>, vector<1x128xf32>
      %17 = vector.broadcast %16 : vector<1x128xf32> to vector<128x128xf32>
      %18 = arith.addf %15, %17 : vector<128x128xf32>
      %cst_16 = arith.constant 0.000000e+00 : f32
      %19 = vector.broadcast %cst_16 : f32 to vector<128x128xf32>
      %20 = arith.maximumf %18, %19 : vector<128x128xf32>
      %21 = arith.truncf %20 : vector<128x128xf32> to vector<128x128xbf16>
      %c0_17 = arith.constant 0 : index
      %c0_18 = arith.constant 0 : index
      %22 = vector.load %arg7[%c0_17, %c0_18] : memref<128x128xbf16, #tpu.memory_space<vmem>>, vector<128x128xbf16>
      tpu.vector_store %arg7[%c0_17, %c0_18], %21 {strides = array<i32>} : memref<128x128xbf16, #tpu.memory_space<vmem>>, vector<128x128xbf16>,
    } else {
    }
    return
  }
  func.func @transform_0(%arg0: i32, %arg1: i32, %arg2: i32) -> (i32, i32) {
    %c0_i32 = arith.constant 0 : i32
    return %arg0, %arg2 : i32, i32
  }
  func.func @transform_1(%arg0: i32, %arg1: i32, %arg2: i32) -> (i32, i32) {
    %c0_i32 = arith.constant 0 : i32
    return %arg2, %arg1 : i32, i32
  }
  func.func @transform_2(%arg0: i32, %arg1: i32, %arg2: i32) -> (i32, i32) {
    %c0_i32 = arith.constant 0 : i32
    %c0_i32_0 = arith.constant 0 : i32
    return %c0_i32, %arg1 : i32, i32
  }
  func.func @transform_3(%arg0: i32, %arg1: i32, %arg2: i32) -> (i32, i32) {
    %c0_i32 = arith.constant 0 : i32
    %c0_i32_0 = arith.constant 0 : i32
    return %c0_i32, %arg1 : i32, i32
  }
  func.func @transform_4(%arg0: i32, %arg1: i32, %arg2: i32) -> (i32, i32) {
    %c0_i32 = arith.constant 0 : i32
    return %arg0, %arg1 : i32, i32
  }
}

module attributes {stable_mosaic.version = 11 : i64} {
  func.func @kernel(%arg0: i32, %arg1: i32, %arg2: i32, %arg3: memref<128x576xbf16, #tpu.memory_space<vmem>>, %arg4: memref<576x128xbf16, #tpu.memory_space<vmem>>, %arg5: memref<1x128xf32, #tpu.memory_space<vmem>>, %arg6: memref<1x128xf32, #tpu.memory_space<vmem>>, %arg7: memref<128x128xbf16, #tpu.memory_space<vmem>>, %arg8: memref<128x128xbf16, #tpu.memory_space<vmem>>, %arg9: memref<128x128xf32, #tpu.memory_space<vmem>>) attributes {dimension_semantics = [#tpu.dimension_semantics<parallel>, #tpu.dimension_semantics<parallel>, #tpu.dimension_semantics<arbitrary>], iteration_bounds = array<i64: 1, 1, 1>, scalar_prefetch = 0 : i64, scratch_operands = 1 : i64, tpu.core_type = #tpu.core_type<tc>, window_params = [{transform_indices = @transform_0, window_bounds = array<i64: 128, 576>}, {transform_indices = @transform_1, window_bounds = array<i64: 576, 128>}, {transform_indices = @transform_2, window_bounds = array<i64: 1, 128>}, {transform_indices = @transform_3, window_bounds = array<i64: 1, 128>}, {transform_indices = @transform_4, window_bounds = array<i64: 128, 128>}, {transform_indices = @transform_5, window_bounds = array<i64: 128, 128>}]} {
    %c0_i32 = arith.constant 0 : i32
    %0 = arith.cmpi eq, %arg2, %c0_i32 : i32
    %1 = arith.extui %0 : i1 to i32
    %c0_i32_0 = arith.constant 0 : i32
    %2 = arith.cmpi ne, %1, %c0_i32_0 : i32
    scf.if %2 {
      %cst_10 = arith.constant 0.000000e+00 : f32
      %12 = vector.broadcast %cst_10 : f32 to vector<128x128xf32>
      %c0_11 = arith.constant 0 : index
      %c0_12 = arith.constant 0 : index
      %13 = vector.load %arg9[%c0_11, %c0_12] : memref<128x128xf32, #tpu.memory_space<vmem>>, vector<128x128xf32>
      tpu.vector_store %arg9[%c0_11, %c0_12], %12 {strides = array<i32>} : memref<128x128xf32, #tpu.memory_space<vmem>>, vector<128x128xf32>,
    } else {
    }
    %c0 = arith.constant 0 : index
    %c0_1 = arith.constant 0 : index
    %3 = vector.load %arg9[%c0, %c0_1] : memref<128x128xf32, #tpu.memory_space<vmem>>, vector<128x128xf32>
    %c0_2 = arith.constant 0 : index
    %c0_3 = arith.constant 0 : index
    %4 = vector.load %arg3[%c0_2, %c0_3] : memref<128x576xbf16, #tpu.memory_space<vmem>>, vector<128x576xbf16>
    %c0_4 = arith.constant 0 : index
    %c0_5 = arith.constant 0 : index
    %5 = vector.load %arg4[%c0_4, %c0_5] : memref<576x128xbf16, #tpu.memory_space<vmem>>, vector<576x128xbf16>
    %cst = arith.constant dense<0.000000e+00> : vector<128x128xf32>
    %6 = tpu.matmul %4, %5, %cst {dimension_numbers = #tpu.dot_dimension_numbers<[1], [0], [0], [1], [0, 0, 1, 1], [], []>} : vector<128x576xbf16>, vector<576x128xbf16>, vector<128x128xf32> -> vector<128x128xf32>
    %7 = arith.addf %3, %6 : vector<128x128xf32>
    %c0_6 = arith.constant 0 : index
    %c0_7 = arith.constant 0 : index
    %8 = vector.load %arg9[%c0_6, %c0_7] : memref<128x128xf32, #tpu.memory_space<vmem>>, vector<128x128xf32>
    tpu.vector_store %arg9[%c0_6, %c0_7], %7 {strides = array<i32>} : memref<128x128xf32, #tpu.memory_space<vmem>>, vector<128x128xf32>,
    %c0_i32_8 = arith.constant 0 : i32
    %9 = arith.cmpi eq, %arg2, %c0_i32_8 : i32
    %10 = arith.extui %9 : i1 to i32
    %c0_i32_9 = arith.constant 0 : i32
    %11 = arith.cmpi ne, %10, %c0_i32_9 : i32
    scf.if %11 {
      %c0_10 = arith.constant 0 : index
      %c0_11 = arith.constant 0 : index
      %12 = vector.load %arg9[%c0_10, %c0_11] : memref<128x128xf32, #tpu.memory_space<vmem>>, vector<128x128xf32>
      %c0_12 = arith.constant 0 : index
      %c0_13 = arith.constant 0 : index
      %13 = vector.load %arg5[%c0_12, %c0_13] : memref<1x128xf32, #tpu.memory_space<vmem>>, vector<1x128xf32>
      %14 = vector.broadcast %13 : vector<1x128xf32> to vector<128x128xf32>
      %15 = arith.mulf %12, %14 : vector<128x128xf32>
      %c0_14 = arith.constant 0 : index
      %c0_15 = arith.constant 0 : index
      %16 = vector.load %arg6[%c0_14, %c0_15] : memref<1x128xf32, #tpu.memory_space<vmem>>, vector<1x128xf32>
      %17 = vector.broadcast %16 : vector<1x128xf32> to vector<128x128xf32>
      %18 = arith.addf %15, %17 : vector<128x128xf32>
      %c0_16 = arith.constant 0 : index
      %c0_17 = arith.constant 0 : index
      %19 = vector.load %arg7[%c0_16, %c0_17] : memref<128x128xbf16, #tpu.memory_space<vmem>>, vector<128x128xbf16>
      %20 = arith.extf %19 : vector<128x128xbf16> to vector<128x128xf32>
      %21 = arith.addf %18, %20 : vector<128x128xf32>
      %cst_18 = arith.constant 0.000000e+00 : f32
      %22 = vector.broadcast %cst_18 : f32 to vector<128x128xf32>
      %23 = arith.maximumf %21, %22 : vector<128x128xf32>
      %24 = arith.truncf %23 : vector<128x128xf32> to vector<128x128xbf16>
      %c0_19 = arith.constant 0 : index
      %c0_20 = arith.constant 0 : index
      %25 = vector.load %arg8[%c0_19, %c0_20] : memref<128x128xbf16, #tpu.memory_space<vmem>>, vector<128x128xbf16>
      tpu.vector_store %arg8[%c0_19, %c0_20], %24 {strides = array<i32>} : memref<128x128xbf16, #tpu.memory_space<vmem>>, vector<128x128xbf16>,
    } else {
    }
    return
  }
  func.func @transform_0(%arg0: i32, %arg1: i32, %arg2: i32) -> (i32, i32) {
    %c0_i32 = arith.constant 0 : i32
    return %arg0, %arg2 : i32, i32
  }
  func.func @transform_1(%arg0: i32, %arg1: i32, %arg2: i32) -> (i32, i32) {
    %c0_i32 = arith.constant 0 : i32
    return %arg2, %arg1 : i32, i32
  }
  func.func @transform_2(%arg0: i32, %arg1: i32, %arg2: i32) -> (i32, i32) {
    %c0_i32 = arith.constant 0 : i32
    %c0_i32_0 = arith.constant 0 : i32
    return %c0_i32, %arg1 : i32, i32
  }
  func.func @transform_3(%arg0: i32, %arg1: i32, %arg2: i32) -> (i32, i32) {
    %c0_i32 = arith.constant 0 : i32
    %c0_i32_0 = arith.constant 0 : i32
    return %c0_i32, %arg1 : i32, i32
  }
  func.func @transform_4(%arg0: i32, %arg1: i32, %arg2: i32) -> (i32, i32) {
    %c0_i32 = arith.constant 0 : i32
    return %arg0, %arg1 : i32, i32
  }
  func.func @transform_5(%arg0: i32, %arg1: i32, %arg2: i32) -> (i32, i32) {
    %c0_i32 = arith.constant 0 : i32
    return %arg0, %arg1 : i32, i32
  }
}

module attributes {stable_mosaic.version = 11 : i64} {
  func.func @kernel(%arg0: i32, %arg1: i32, %arg2: i32, %arg3: memref<32x576xbf16, #tpu.memory_space<vmem>>, %arg4: memref<576x128xbf16, #tpu.memory_space<vmem>>, %arg5: memref<1x128xf32, #tpu.memory_space<vmem>>, %arg6: memref<1x128xf32, #tpu.memory_space<vmem>>, %arg7: memref<32x128xbf16, #tpu.memory_space<vmem>>, %arg8: memref<32x128xf32, #tpu.memory_space<vmem>>) attributes {dimension_semantics = [#tpu.dimension_semantics<parallel>, #tpu.dimension_semantics<parallel>, #tpu.dimension_semantics<arbitrary>], iteration_bounds = array<i64: 1, 1, 1>, scalar_prefetch = 0 : i64, scratch_operands = 1 : i64, tpu.core_type = #tpu.core_type<tc>, window_params = [{transform_indices = @transform_0, window_bounds = array<i64: 32, 576>}, {transform_indices = @transform_1, window_bounds = array<i64: 576, 128>}, {transform_indices = @transform_2, window_bounds = array<i64: 1, 128>}, {transform_indices = @transform_3, window_bounds = array<i64: 1, 128>}, {transform_indices = @transform_4, window_bounds = array<i64: 32, 128>}]} {
    %c0_i32 = arith.constant 0 : i32
    %0 = arith.cmpi eq, %arg2, %c0_i32 : i32
    %1 = arith.extui %0 : i1 to i32
    %c0_i32_0 = arith.constant 0 : i32
    %2 = arith.cmpi ne, %1, %c0_i32_0 : i32
    scf.if %2 {
      %cst_10 = arith.constant 0.000000e+00 : f32
      %12 = vector.broadcast %cst_10 : f32 to vector<32x128xf32>
      %c0_11 = arith.constant 0 : index
      %c0_12 = arith.constant 0 : index
      %13 = vector.load %arg8[%c0_11, %c0_12] : memref<32x128xf32, #tpu.memory_space<vmem>>, vector<32x128xf32>
      tpu.vector_store %arg8[%c0_11, %c0_12], %12 {strides = array<i32>} : memref<32x128xf32, #tpu.memory_space<vmem>>, vector<32x128xf32>,
    } else {
    }
    %c0 = arith.constant 0 : index
    %c0_1 = arith.constant 0 : index
    %3 = vector.load %arg8[%c0, %c0_1] : memref<32x128xf32, #tpu.memory_space<vmem>>, vector<32x128xf32>
    %c0_2 = arith.constant 0 : index
    %c0_3 = arith.constant 0 : index
    %4 = vector.load %arg3[%c0_2, %c0_3] : memref<32x576xbf16, #tpu.memory_space<vmem>>, vector<32x576xbf16>
    %c0_4 = arith.constant 0 : index
    %c0_5 = arith.constant 0 : index
    %5 = vector.load %arg4[%c0_4, %c0_5] : memref<576x128xbf16, #tpu.memory_space<vmem>>, vector<576x128xbf16>
    %cst = arith.constant dense<0.000000e+00> : vector<32x128xf32>
    %6 = tpu.matmul %4, %5, %cst {dimension_numbers = #tpu.dot_dimension_numbers<[1], [0], [0], [1], [0, 0, 1, 1], [], []>} : vector<32x576xbf16>, vector<576x128xbf16>, vector<32x128xf32> -> vector<32x128xf32>
    %7 = arith.addf %3, %6 : vector<32x128xf32>
    %c0_6 = arith.constant 0 : index
    %c0_7 = arith.constant 0 : index
    %8 = vector.load %arg8[%c0_6, %c0_7] : memref<32x128xf32, #tpu.memory_space<vmem>>, vector<32x128xf32>
    tpu.vector_store %arg8[%c0_6, %c0_7], %7 {strides = array<i32>} : memref<32x128xf32, #tpu.memory_space<vmem>>, vector<32x128xf32>,
    %c0_i32_8 = arith.constant 0 : i32
    %9 = arith.cmpi eq, %arg2, %c0_i32_8 : i32
    %10 = arith.extui %9 : i1 to i32
    %c0_i32_9 = arith.constant 0 : i32
    %11 = arith.cmpi ne, %10, %c0_i32_9 : i32
    scf.if %11 {
      %c0_10 = arith.constant 0 : index
      %c0_11 = arith.constant 0 : index
      %12 = vector.load %arg8[%c0_10, %c0_11] : memref<32x128xf32, #tpu.memory_space<vmem>>, vector<32x128xf32>
      %c0_12 = arith.constant 0 : index
      %c0_13 = arith.constant 0 : index
      %13 = vector.load %arg5[%c0_12, %c0_13] : memref<1x128xf32, #tpu.memory_space<vmem>>, vector<1x128xf32>
      %14 = vector.broadcast %13 : vector<1x128xf32> to vector<32x128xf32>
      %15 = arith.mulf %12, %14 : vector<32x128xf32>
      %c0_14 = arith.constant 0 : index
      %c0_15 = arith.constant 0 : index
      %16 = vector.load %arg6[%c0_14, %c0_15] : memref<1x128xf32, #tpu.memory_space<vmem>>, vector<1x128xf32>
      %17 = vector.broadcast %16 : vector<1x128xf32> to vector<32x128xf32>
      %18 = arith.addf %15, %17 : vector<32x128xf32>
      %cst_16 = arith.constant 0.000000e+00 : f32
      %19 = vector.broadcast %cst_16 : f32 to vector<32x128xf32>
      %20 = arith.maximumf %18, %19 : vector<32x128xf32>
      %21 = arith.truncf %20 : vector<32x128xf32> to vector<32x128xbf16>
      %c0_17 = arith.constant 0 : index
      %c0_18 = arith.constant 0 : index
      %22 = vector.load %arg7[%c0_17, %c0_18] : memref<32x128xbf16, #tpu.memory_space<vmem>>, vector<32x128xbf16>
      tpu.vector_store %arg7[%c0_17, %c0_18], %21 {strides = array<i32>} : memref<32x128xbf16, #tpu.memory_space<vmem>>, vector<32x128xbf16>,
    } else {
    }
    return
  }
  func.func @transform_0(%arg0: i32, %arg1: i32, %arg2: i32) -> (i32, i32) {
    %c0_i32 = arith.constant 0 : i32
    return %arg0, %arg2 : i32, i32
  }
  func.func @transform_1(%arg0: i32, %arg1: i32, %arg2: i32) -> (i32, i32) {
    %c0_i32 = arith.constant 0 : i32
    return %arg2, %arg1 : i32, i32
  }
  func.func @transform_2(%arg0: i32, %arg1: i32, %arg2: i32) -> (i32, i32) {
    %c0_i32 = arith.constant 0 : i32
    %c0_i32_0 = arith.constant 0 : i32
    return %c0_i32, %arg1 : i32, i32
  }
  func.func @transform_3(%arg0: i32, %arg1: i32, %arg2: i32) -> (i32, i32) {
    %c0_i32 = arith.constant 0 : i32
    %c0_i32_0 = arith.constant 0 : i32
    return %c0_i32, %arg1 : i32, i32
  }
  func.func @transform_4(%arg0: i32, %arg1: i32, %arg2: i32) -> (i32, i32) {
    %c0_i32 = arith.constant 0 : i32
    return %arg0, %arg1 : i32, i32
  }
}

module attributes {stable_mosaic.version = 11 : i64} {
  func.func @kernel(%arg0: i32, %arg1: i32, %arg2: i32, %arg3: memref<32x128xbf16, #tpu.memory_space<vmem>>, %arg4: memref<128x128xbf16, #tpu.memory_space<vmem>>, %arg5: memref<1x128xf32, #tpu.memory_space<vmem>>, %arg6: memref<1x128xf32, #tpu.memory_space<vmem>>, %arg7: memref<32x128xbf16, #tpu.memory_space<vmem>>, %arg8: memref<32x128xbf16, #tpu.memory_space<vmem>>, %arg9: memref<32x128xf32, #tpu.memory_space<vmem>>) attributes {dimension_semantics = [#tpu.dimension_semantics<parallel>, #tpu.dimension_semantics<parallel>, #tpu.dimension_semantics<arbitrary>], iteration_bounds = array<i64: 1, 1, 9>, scalar_prefetch = 0 : i64, scratch_operands = 1 : i64, tpu.core_type = #tpu.core_type<tc>, window_params = [{transform_indices = @transform_0, window_bounds = array<i64: 32, 128>}, {transform_indices = @transform_1, window_bounds = array<i64: 128, 128>}, {transform_indices = @transform_2, window_bounds = array<i64: 1, 128>}, {transform_indices = @transform_3, window_bounds = array<i64: 1, 128>}, {transform_indices = @transform_4, window_bounds = array<i64: 32, 128>}, {transform_indices = @transform_5, window_bounds = array<i64: 32, 128>}]} {
    %c0_i32 = arith.constant 0 : i32
    %0 = arith.cmpi eq, %arg2, %c0_i32 : i32
    %1 = arith.extui %0 : i1 to i32
    %c0_i32_0 = arith.constant 0 : i32
    %2 = arith.cmpi ne, %1, %c0_i32_0 : i32
    scf.if %2 {
      %cst_9 = arith.constant 0.000000e+00 : f32
      %12 = vector.broadcast %cst_9 : f32 to vector<32x128xf32>
      %c0_10 = arith.constant 0 : index
      %c0_11 = arith.constant 0 : index
      %13 = vector.load %arg9[%c0_10, %c0_11] : memref<32x128xf32, #tpu.memory_space<vmem>>, vector<32x128xf32>
      tpu.vector_store %arg9[%c0_10, %c0_11], %12 {strides = array<i32>} : memref<32x128xf32, #tpu.memory_space<vmem>>, vector<32x128xf32>,
    } else {
    }
    %c0 = arith.constant 0 : index
    %c0_1 = arith.constant 0 : index
    %3 = vector.load %arg9[%c0, %c0_1] : memref<32x128xf32, #tpu.memory_space<vmem>>, vector<32x128xf32>
    %c0_2 = arith.constant 0 : index
    %c0_3 = arith.constant 0 : index
    %4 = vector.load %arg3[%c0_2, %c0_3] : memref<32x128xbf16, #tpu.memory_space<vmem>>, vector<32x128xbf16>
    %c0_4 = arith.constant 0 : index
    %c0_5 = arith.constant 0 : index
    %5 = vector.load %arg4[%c0_4, %c0_5] : memref<128x128xbf16, #tpu.memory_space<vmem>>, vector<128x128xbf16>
    %cst = arith.constant dense<0.000000e+00> : vector<32x128xf32>
    %6 = tpu.matmul %4, %5, %cst {dimension_numbers = #tpu.dot_dimension_numbers<[1], [0], [0], [1], [0, 0, 1, 1], [], []>} : vector<32x128xbf16>, vector<128x128xbf16>, vector<32x128xf32> -> vector<32x128xf32>
    %7 = arith.addf %3, %6 : vector<32x128xf32>
    %c0_6 = arith.constant 0 : index
    %c0_7 = arith.constant 0 : index
    %8 = vector.load %arg9[%c0_6, %c0_7] : memref<32x128xf32, #tpu.memory_space<vmem>>, vector<32x128xf32>
    tpu.vector_store %arg9[%c0_6, %c0_7], %7 {strides = array<i32>} : memref<32x128xf32, #tpu.memory_space<vmem>>, vector<32x128xf32>,
    %c8_i32 = arith.constant 8 : i32
    %9 = arith.cmpi eq, %arg2, %c8_i32 : i32
    %10 = arith.extui %9 : i1 to i32
    %c0_i32_8 = arith.constant 0 : i32
    %11 = arith.cmpi ne, %10, %c0_i32_8 : i32
    scf.if %11 {
      %c0_9 = arith.constant 0 : index
      %c0_10 = arith.constant 0 : index
      %12 = vector.load %arg9[%c0_9, %c0_10] : memref<32x128xf32, #tpu.memory_space<vmem>>, vector<32x128xf32>
      %c0_11 = arith.constant 0 : index
      %c0_12 = arith.constant 0 : index
      %13 = vector.load %arg5[%c0_11, %c0_12] : memref<1x128xf32, #tpu.memory_space<vmem>>, vector<1x128xf32>
      %14 = vector.broadcast %13 : vector<1x128xf32> to vector<32x128xf32>
      %15 = arith.mulf %12, %14 : vector<32x128xf32>
      %c0_13 = arith.constant 0 : index
      %c0_14 = arith.constant 0 : index
      %16 = vector.load %arg6[%c0_13, %c0_14] : memref<1x128xf32, #tpu.memory_space<vmem>>, vector<1x128xf32>
      %17 = vector.broadcast %16 : vector<1x128xf32> to vector<32x128xf32>
      %18 = arith.addf %15, %17 : vector<32x128xf32>
      %c0_15 = arith.constant 0 : index
      %c0_16 = arith.constant 0 : index
      %19 = vector.load %arg7[%c0_15, %c0_16] : memref<32x128xbf16, #tpu.memory_space<vmem>>, vector<32x128xbf16>
      %20 = arith.extf %19 : vector<32x128xbf16> to vector<32x128xf32>
      %21 = arith.addf %18, %20 : vector<32x128xf32>
      %cst_17 = arith.constant 0.000000e+00 : f32
      %22 = vector.broadcast %cst_17 : f32 to vector<32x128xf32>
      %23 = arith.maximumf %21, %22 : vector<32x128xf32>
      %24 = arith.truncf %23 : vector<32x128xf32> to vector<32x128xbf16>
      %c0_18 = arith.constant 0 : index
      %c0_19 = arith.constant 0 : index
      %25 = vector.load %arg8[%c0_18, %c0_19] : memref<32x128xbf16, #tpu.memory_space<vmem>>, vector<32x128xbf16>
      tpu.vector_store %arg8[%c0_18, %c0_19], %24 {strides = array<i32>} : memref<32x128xbf16, #tpu.memory_space<vmem>>, vector<32x128xbf16>,
    } else {
    }
    return
  }
  func.func @transform_0(%arg0: i32, %arg1: i32, %arg2: i32) -> (i32, i32) {
    %c0_i32 = arith.constant 0 : i32
    return %arg0, %arg2 : i32, i32
  }
  func.func @transform_1(%arg0: i32, %arg1: i32, %arg2: i32) -> (i32, i32) {
    %c0_i32 = arith.constant 0 : i32
    return %arg2, %arg1 : i32, i32
  }
  func.func @transform_2(%arg0: i32, %arg1: i32, %arg2: i32) -> (i32, i32) {
    %c0_i32 = arith.constant 0 : i32
    %c0_i32_0 = arith.constant 0 : i32
    return %c0_i32, %arg1 : i32, i32
  }
  func.func @transform_3(%arg0: i32, %arg1: i32, %arg2: i32) -> (i32, i32) {
    %c0_i32 = arith.constant 0 : i32
    %c0_i32_0 = arith.constant 0 : i32
    return %c0_i32, %arg1 : i32, i32
  }
  func.func @transform_4(%arg0: i32, %arg1: i32, %arg2: i32) -> (i32, i32) {
    %c0_i32 = arith.constant 0 : i32
    return %arg0, %arg1 : i32, i32
  }
  func.func @transform_5(%arg0: i32, %arg1: i32, %arg2: i32) -> (i32, i32) {
    %c0_i32 = arith.constant 0 : i32
    return %arg0, %arg1 : i32, i32
  }
}

module attributes {stable_mosaic.version = 11 : i64} {
  func.func @kernel(%arg0: i32, %arg1: i32, %arg2: i32, %arg3: memref<32x64xbf16, #tpu.memory_space<vmem>>, %arg4: memref<64x128xbf16, #tpu.memory_space<vmem>>, %arg5: memref<1x128xf32, #tpu.memory_space<vmem>>, %arg6: memref<1x128xf32, #tpu.memory_space<vmem>>, %arg7: memref<32x128xbf16, #tpu.memory_space<vmem>>, %arg8: memref<32x128xf32, #tpu.memory_space<vmem>>) attributes {dimension_semantics = [#tpu.dimension_semantics<parallel>, #tpu.dimension_semantics<parallel>, #tpu.dimension_semantics<arbitrary>], iteration_bounds = array<i64: 1, 1, 1>, scalar_prefetch = 0 : i64, scratch_operands = 1 : i64, tpu.core_type = #tpu.core_type<tc>, window_params = [{transform_indices = @transform_0, window_bounds = array<i64: 32, 64>}, {transform_indices = @transform_1, window_bounds = array<i64: 64, 128>}, {transform_indices = @transform_2, window_bounds = array<i64: 1, 128>}, {transform_indices = @transform_3, window_bounds = array<i64: 1, 128>}, {transform_indices = @transform_4, window_bounds = array<i64: 32, 128>}]} {
    %c0_i32 = arith.constant 0 : i32
    %0 = arith.cmpi eq, %arg2, %c0_i32 : i32
    %1 = arith.extui %0 : i1 to i32
    %c0_i32_0 = arith.constant 0 : i32
    %2 = arith.cmpi ne, %1, %c0_i32_0 : i32
    scf.if %2 {
      %cst_10 = arith.constant 0.000000e+00 : f32
      %12 = vector.broadcast %cst_10 : f32 to vector<32x128xf32>
      %c0_11 = arith.constant 0 : index
      %c0_12 = arith.constant 0 : index
      %13 = vector.load %arg8[%c0_11, %c0_12] : memref<32x128xf32, #tpu.memory_space<vmem>>, vector<32x128xf32>
      tpu.vector_store %arg8[%c0_11, %c0_12], %12 {strides = array<i32>} : memref<32x128xf32, #tpu.memory_space<vmem>>, vector<32x128xf32>,
    } else {
    }
    %c0 = arith.constant 0 : index
    %c0_1 = arith.constant 0 : index
    %3 = vector.load %arg8[%c0, %c0_1] : memref<32x128xf32, #tpu.memory_space<vmem>>, vector<32x128xf32>
    %c0_2 = arith.constant 0 : index
    %c0_3 = arith.constant 0 : index
    %4 = vector.load %arg3[%c0_2, %c0_3] : memref<32x64xbf16, #tpu.memory_space<vmem>>, vector<32x64xbf16>
    %c0_4 = arith.constant 0 : index
    %c0_5 = arith.constant 0 : index
    %5 = vector.load %arg4[%c0_4, %c0_5] : memref<64x128xbf16, #tpu.memory_space<vmem>>, vector<64x128xbf16>
    %cst = arith.constant dense<0.000000e+00> : vector<32x128xf32>
    %6 = tpu.matmul %4, %5, %cst {dimension_numbers = #tpu.dot_dimension_numbers<[1], [0], [0], [1], [0, 0, 1, 1], [], []>} : vector<32x64xbf16>, vector<64x128xbf16>, vector<32x128xf32> -> vector<32x128xf32>
    %7 = arith.addf %3, %6 : vector<32x128xf32>
    %c0_6 = arith.constant 0 : index
    %c0_7 = arith.constant 0 : index
    %8 = vector.load %arg8[%c0_6, %c0_7] : memref<32x128xf32, #tpu.memory_space<vmem>>, vector<32x128xf32>
    tpu.vector_store %arg8[%c0_6, %c0_7], %7 {strides = array<i32>} : memref<32x128xf32, #tpu.memory_space<vmem>>, vector<32x128xf32>,
    %c0_i32_8 = arith.constant 0 : i32
    %9 = arith.cmpi eq, %arg2, %c0_i32_8 : i32
    %10 = arith.extui %9 : i1 to i32
    %c0_i32_9 = arith.constant 0 : i32
    %11 = arith.cmpi ne, %10, %c0_i32_9 : i32
    scf.if %11 {
      %c0_10 = arith.constant 0 : index
      %c0_11 = arith.constant 0 : index
      %12 = vector.load %arg8[%c0_10, %c0_11] : memref<32x128xf32, #tpu.memory_space<vmem>>, vector<32x128xf32>
      %c0_12 = arith.constant 0 : index
      %c0_13 = arith.constant 0 : index
      %13 = vector.load %arg5[%c0_12, %c0_13] : memref<1x128xf32, #tpu.memory_space<vmem>>, vector<1x128xf32>
      %14 = vector.broadcast %13 : vector<1x128xf32> to vector<32x128xf32>
      %15 = arith.mulf %12, %14 : vector<32x128xf32>
      %c0_14 = arith.constant 0 : index
      %c0_15 = arith.constant 0 : index
      %16 = vector.load %arg6[%c0_14, %c0_15] : memref<1x128xf32, #tpu.memory_space<vmem>>, vector<1x128xf32>
      %17 = vector.broadcast %16 : vector<1x128xf32> to vector<32x128xf32>
      %18 = arith.addf %15, %17 : vector<32x128xf32>
      %19 = arith.truncf %18 : vector<32x128xf32> to vector<32x128xbf16>
      %c0_16 = arith.constant 0 : index
      %c0_17 = arith.constant 0 : index
      %20 = vector.load %arg7[%c0_16, %c0_17] : memref<32x128xbf16, #tpu.memory_space<vmem>>, vector<32x128xbf16>
      tpu.vector_store %arg7[%c0_16, %c0_17], %19 {strides = array<i32>} : memref<32x128xbf16, #tpu.memory_space<vmem>>, vector<32x128xbf16>,
    } else {
    }
    return
  }
  func.func @transform_0(%arg0: i32, %arg1: i32, %arg2: i32) -> (i32, i32) {
    %c0_i32 = arith.constant 0 : i32
    return %arg0, %arg2 : i32, i32
  }
  func.func @transform_1(%arg0: i32, %arg1: i32, %arg2: i32) -> (i32, i32) {
    %c0_i32 = arith.constant 0 : i32
    return %arg2, %arg1 : i32, i32
  }
  func.func @transform_2(%arg0: i32, %arg1: i32, %arg2: i32) -> (i32, i32) {
    %c0_i32 = arith.constant 0 : i32
    %c0_i32_0 = arith.constant 0 : i32
    return %c0_i32, %arg1 : i32, i32
  }
  func.func @transform_3(%arg0: i32, %arg1: i32, %arg2: i32) -> (i32, i32) {
    %c0_i32 = arith.constant 0 : i32
    %c0_i32_0 = arith.constant 0 : i32
    return %c0_i32, %arg1 : i32, i32
  }
  func.func @transform_4(%arg0: i32, %arg1: i32, %arg2: i32) -> (i32, i32) {
    %c0_i32 = arith.constant 0 : i32
    return %arg0, %arg1 : i32, i32
  }
}

module attributes {stable_mosaic.version = 11 : i64} {
  func.func @kernel(%arg0: i32, %arg1: i32, %arg2: i32, %arg3: memref<32x128xbf16, #tpu.memory_space<vmem>>, %arg4: memref<128x128xbf16, #tpu.memory_space<vmem>>, %arg5: memref<1x128xf32, #tpu.memory_space<vmem>>, %arg6: memref<1x128xf32, #tpu.memory_space<vmem>>, %arg7: memref<32x128xbf16, #tpu.memory_space<vmem>>, %arg8: memref<32x128xf32, #tpu.memory_space<vmem>>) attributes {dimension_semantics = [#tpu.dimension_semantics<parallel>, #tpu.dimension_semantics<parallel>, #tpu.dimension_semantics<arbitrary>], iteration_bounds = array<i64: 1, 1, 9>, scalar_prefetch = 0 : i64, scratch_operands = 1 : i64, tpu.core_type = #tpu.core_type<tc>, window_params = [{transform_indices = @transform_0, window_bounds = array<i64: 32, 128>}, {transform_indices = @transform_1, window_bounds = array<i64: 128, 128>}, {transform_indices = @transform_2, window_bounds = array<i64: 1, 128>}, {transform_indices = @transform_3, window_bounds = array<i64: 1, 128>}, {transform_indices = @transform_4, window_bounds = array<i64: 32, 128>}]} {
    %c0_i32 = arith.constant 0 : i32
    %0 = arith.cmpi eq, %arg2, %c0_i32 : i32
    %1 = arith.extui %0 : i1 to i32
    %c0_i32_0 = arith.constant 0 : i32
    %2 = arith.cmpi ne, %1, %c0_i32_0 : i32
    scf.if %2 {
      %cst_9 = arith.constant 0.000000e+00 : f32
      %12 = vector.broadcast %cst_9 : f32 to vector<32x128xf32>
      %c0_10 = arith.constant 0 : index
      %c0_11 = arith.constant 0 : index
      %13 = vector.load %arg8[%c0_10, %c0_11] : memref<32x128xf32, #tpu.memory_space<vmem>>, vector<32x128xf32>
      tpu.vector_store %arg8[%c0_10, %c0_11], %12 {strides = array<i32>} : memref<32x128xf32, #tpu.memory_space<vmem>>, vector<32x128xf32>,
    } else {
    }
    %c0 = arith.constant 0 : index
    %c0_1 = arith.constant 0 : index
    %3 = vector.load %arg8[%c0, %c0_1] : memref<32x128xf32, #tpu.memory_space<vmem>>, vector<32x128xf32>
    %c0_2 = arith.constant 0 : index
    %c0_3 = arith.constant 0 : index
    %4 = vector.load %arg3[%c0_2, %c0_3] : memref<32x128xbf16, #tpu.memory_space<vmem>>, vector<32x128xbf16>
    %c0_4 = arith.constant 0 : index
    %c0_5 = arith.constant 0 : index
    %5 = vector.load %arg4[%c0_4, %c0_5] : memref<128x128xbf16, #tpu.memory_space<vmem>>, vector<128x128xbf16>
    %cst = arith.constant dense<0.000000e+00> : vector<32x128xf32>
    %6 = tpu.matmul %4, %5, %cst {dimension_numbers = #tpu.dot_dimension_numbers<[1], [0], [0], [1], [0, 0, 1, 1], [], []>} : vector<32x128xbf16>, vector<128x128xbf16>, vector<32x128xf32> -> vector<32x128xf32>
    %7 = arith.addf %3, %6 : vector<32x128xf32>
    %c0_6 = arith.constant 0 : index
    %c0_7 = arith.constant 0 : index
    %8 = vector.load %arg8[%c0_6, %c0_7] : memref<32x128xf32, #tpu.memory_space<vmem>>, vector<32x128xf32>
    tpu.vector_store %arg8[%c0_6, %c0_7], %7 {strides = array<i32>} : memref<32x128xf32, #tpu.memory_space<vmem>>, vector<32x128xf32>,
    %c8_i32 = arith.constant 8 : i32
    %9 = arith.cmpi eq, %arg2, %c8_i32 : i32
    %10 = arith.extui %9 : i1 to i32
    %c0_i32_8 = arith.constant 0 : i32
    %11 = arith.cmpi ne, %10, %c0_i32_8 : i32
    scf.if %11 {
      %c0_9 = arith.constant 0 : index
      %c0_10 = arith.constant 0 : index
      %12 = vector.load %arg8[%c0_9, %c0_10] : memref<32x128xf32, #tpu.memory_space<vmem>>, vector<32x128xf32>
      %c0_11 = arith.constant 0 : index
      %c0_12 = arith.constant 0 : index
      %13 = vector.load %arg5[%c0_11, %c0_12] : memref<1x128xf32, #tpu.memory_space<vmem>>, vector<1x128xf32>
      %14 = vector.broadcast %13 : vector<1x128xf32> to vector<32x128xf32>
      %15 = arith.mulf %12, %14 : vector<32x128xf32>
      %c0_13 = arith.constant 0 : index
      %c0_14 = arith.constant 0 : index
      %16 = vector.load %arg6[%c0_13, %c0_14] : memref<1x128xf32, #tpu.memory_space<vmem>>, vector<1x128xf32>
      %17 = vector.broadcast %16 : vector<1x128xf32> to vector<32x128xf32>
      %18 = arith.addf %15, %17 : vector<32x128xf32>
      %cst_15 = arith.constant 0.000000e+00 : f32
      %19 = vector.broadcast %cst_15 : f32 to vector<32x128xf32>
      %20 = arith.maximumf %18, %19 : vector<32x128xf32>
      %21 = arith.truncf %20 : vector<32x128xf32> to vector<32x128xbf16>
      %c0_16 = arith.constant 0 : index
      %c0_17 = arith.constant 0 : index
      %22 = vector.load %arg7[%c0_16, %c0_17] : memref<32x128xbf16, #tpu.memory_space<vmem>>, vector<32x128xbf16>
      tpu.vector_store %arg7[%c0_16, %c0_17], %21 {strides = array<i32>} : memref<32x128xbf16, #tpu.memory_space<vmem>>, vector<32x128xbf16>,
    } else {
    }
    return
  }
  func.func @transform_0(%arg0: i32, %arg1: i32, %arg2: i32) -> (i32, i32) {
    %c0_i32 = arith.constant 0 : i32
    return %arg0, %arg2 : i32, i32
  }
  func.func @transform_1(%arg0: i32, %arg1: i32, %arg2: i32) -> (i32, i32) {
    %c0_i32 = arith.constant 0 : i32
    return %arg2, %arg1 : i32, i32
  }
  func.func @transform_2(%arg0: i32, %arg1: i32, %arg2: i32) -> (i32, i32) {
    %c0_i32 = arith.constant 0 : i32
    %c0_i32_0 = arith.constant 0 : i32
    return %c0_i32, %arg1 : i32, i32
  }
  func.func @transform_3(%arg0: i32, %arg1: i32, %arg2: i32) -> (i32, i32) {
    %c0_i32 = arith.constant 0 : i32
    %c0_i32_0 = arith.constant 0 : i32
    return %c0_i32, %arg1 : i32, i32
  }
  func.func @transform_4(%arg0: i32, %arg1: i32, %arg2: i32) -> (i32, i32) {
    %c0_i32 = arith.constant 0 : i32
    return %arg0, %arg1 : i32, i32
  }
}

module attributes {stable_mosaic.version = 11 : i64} {
  func.func @kernel(%arg0: i32, %arg1: i32, %arg2: i32, %arg3: memref<8x128xbf16, #tpu.memory_space<vmem>>, %arg4: memref<128x256xbf16, #tpu.memory_space<vmem>>, %arg5: memref<1x256xf32, #tpu.memory_space<vmem>>, %arg6: memref<1x256xf32, #tpu.memory_space<vmem>>, %arg7: memref<8x256xbf16, #tpu.memory_space<vmem>>, %arg8: memref<8x256xf32, #tpu.memory_space<vmem>>) attributes {dimension_semantics = [#tpu.dimension_semantics<parallel>, #tpu.dimension_semantics<parallel>, #tpu.dimension_semantics<arbitrary>], iteration_bounds = array<i64: 1, 1, 9>, scalar_prefetch = 0 : i64, scratch_operands = 1 : i64, tpu.core_type = #tpu.core_type<tc>, window_params = [{transform_indices = @transform_0, window_bounds = array<i64: 8, 128>}, {transform_indices = @transform_1, window_bounds = array<i64: 128, 256>}, {transform_indices = @transform_2, window_bounds = array<i64: 1, 256>}, {transform_indices = @transform_3, window_bounds = array<i64: 1, 256>}, {transform_indices = @transform_4, window_bounds = array<i64: 8, 256>}]} {
    %c0_i32 = arith.constant 0 : i32
    %0 = arith.cmpi eq, %arg2, %c0_i32 : i32
    %1 = arith.extui %0 : i1 to i32
    %c0_i32_0 = arith.constant 0 : i32
    %2 = arith.cmpi ne, %1, %c0_i32_0 : i32
    scf.if %2 {
      %cst_9 = arith.constant 0.000000e+00 : f32
      %12 = vector.broadcast %cst_9 : f32 to vector<8x256xf32>
      %c0_10 = arith.constant 0 : index
      %c0_11 = arith.constant 0 : index
      %13 = vector.load %arg8[%c0_10, %c0_11] : memref<8x256xf32, #tpu.memory_space<vmem>>, vector<8x256xf32>
      tpu.vector_store %arg8[%c0_10, %c0_11], %12 {strides = array<i32>} : memref<8x256xf32, #tpu.memory_space<vmem>>, vector<8x256xf32>,
    } else {
    }
    %c0 = arith.constant 0 : index
    %c0_1 = arith.constant 0 : index
    %3 = vector.load %arg8[%c0, %c0_1] : memref<8x256xf32, #tpu.memory_space<vmem>>, vector<8x256xf32>
    %c0_2 = arith.constant 0 : index
    %c0_3 = arith.constant 0 : index
    %4 = vector.load %arg3[%c0_2, %c0_3] : memref<8x128xbf16, #tpu.memory_space<vmem>>, vector<8x128xbf16>
    %c0_4 = arith.constant 0 : index
    %c0_5 = arith.constant 0 : index
    %5 = vector.load %arg4[%c0_4, %c0_5] : memref<128x256xbf16, #tpu.memory_space<vmem>>, vector<128x256xbf16>
    %cst = arith.constant dense<0.000000e+00> : vector<8x256xf32>
    %6 = tpu.matmul %4, %5, %cst {dimension_numbers = #tpu.dot_dimension_numbers<[1], [0], [0], [1], [0, 0, 1, 1], [], []>} : vector<8x128xbf16>, vector<128x256xbf16>, vector<8x256xf32> -> vector<8x256xf32>
    %7 = arith.addf %3, %6 : vector<8x256xf32>
    %c0_6 = arith.constant 0 : index
    %c0_7 = arith.constant 0 : index
    %8 = vector.load %arg8[%c0_6, %c0_7] : memref<8x256xf32, #tpu.memory_space<vmem>>, vector<8x256xf32>
    tpu.vector_store %arg8[%c0_6, %c0_7], %7 {strides = array<i32>} : memref<8x256xf32, #tpu.memory_space<vmem>>, vector<8x256xf32>,
    %c8_i32 = arith.constant 8 : i32
    %9 = arith.cmpi eq, %arg2, %c8_i32 : i32
    %10 = arith.extui %9 : i1 to i32
    %c0_i32_8 = arith.constant 0 : i32
    %11 = arith.cmpi ne, %10, %c0_i32_8 : i32
    scf.if %11 {
      %c0_9 = arith.constant 0 : index
      %c0_10 = arith.constant 0 : index
      %12 = vector.load %arg8[%c0_9, %c0_10] : memref<8x256xf32, #tpu.memory_space<vmem>>, vector<8x256xf32>
      %c0_11 = arith.constant 0 : index
      %c0_12 = arith.constant 0 : index
      %13 = vector.load %arg5[%c0_11, %c0_12] : memref<1x256xf32, #tpu.memory_space<vmem>>, vector<1x256xf32>
      %14 = vector.broadcast %13 : vector<1x256xf32> to vector<8x256xf32>
      %15 = arith.mulf %12, %14 : vector<8x256xf32>
      %c0_13 = arith.constant 0 : index
      %c0_14 = arith.constant 0 : index
      %16 = vector.load %arg6[%c0_13, %c0_14] : memref<1x256xf32, #tpu.memory_space<vmem>>, vector<1x256xf32>
      %17 = vector.broadcast %16 : vector<1x256xf32> to vector<8x256xf32>
      %18 = arith.addf %15, %17 : vector<8x256xf32>
      %cst_15 = arith.constant 0.000000e+00 : f32
      %19 = vector.broadcast %cst_15 : f32 to vector<8x256xf32>
      %20 = arith.maximumf %18, %19 : vector<8x256xf32>
      %21 = arith.truncf %20 : vector<8x256xf32> to vector<8x256xbf16>
      %c0_16 = arith.constant 0 : index
      %c0_17 = arith.constant 0 : index
      %22 = vector.load %arg7[%c0_16, %c0_17] : memref<8x256xbf16, #tpu.memory_space<vmem>>, vector<8x256xbf16>
      tpu.vector_store %arg7[%c0_16, %c0_17], %21 {strides = array<i32>} : memref<8x256xbf16, #tpu.memory_space<vmem>>, vector<8x256xbf16>,
    } else {
    }
    return
  }
  func.func @transform_0(%arg0: i32, %arg1: i32, %arg2: i32) -> (i32, i32) {
    %c0_i32 = arith.constant 0 : i32
    return %arg0, %arg2 : i32, i32
  }
  func.func @transform_1(%arg0: i32, %arg1: i32, %arg2: i32) -> (i32, i32) {
    %c0_i32 = arith.constant 0 : i32
    return %arg2, %arg1 : i32, i32
  }
  func.func @transform_2(%arg0: i32, %arg1: i32, %arg2: i32) -> (i32, i32) {
    %c0_i32 = arith.constant 0 : i32
    %c0_i32_0 = arith.constant 0 : i32
    return %c0_i32, %arg1 : i32, i32
  }
  func.func @transform_3(%arg0: i32, %arg1: i32, %arg2: i32) -> (i32, i32) {
    %c0_i32 = arith.constant 0 : i32
    %c0_i32_0 = arith.constant 0 : i32
    return %c0_i32, %arg1 : i32, i32
  }
  func.func @transform_4(%arg0: i32, %arg1: i32, %arg2: i32) -> (i32, i32) {
    %c0_i32 = arith.constant 0 : i32
    return %arg0, %arg1 : i32, i32
  }
}

module attributes {stable_mosaic.version = 11 : i64} {
  func.func @kernel(%arg0: i32, %arg1: i32, %arg2: i32, %arg3: memref<8x256xbf16, #tpu.memory_space<vmem>>, %arg4: memref<256x256xbf16, #tpu.memory_space<vmem>>, %arg5: memref<1x256xf32, #tpu.memory_space<vmem>>, %arg6: memref<1x256xf32, #tpu.memory_space<vmem>>, %arg7: memref<8x256xbf16, #tpu.memory_space<vmem>>, %arg8: memref<8x256xbf16, #tpu.memory_space<vmem>>, %arg9: memref<8x256xf32, #tpu.memory_space<vmem>>) attributes {dimension_semantics = [#tpu.dimension_semantics<parallel>, #tpu.dimension_semantics<parallel>, #tpu.dimension_semantics<arbitrary>], iteration_bounds = array<i64: 1, 1, 9>, scalar_prefetch = 0 : i64, scratch_operands = 1 : i64, tpu.core_type = #tpu.core_type<tc>, window_params = [{transform_indices = @transform_0, window_bounds = array<i64: 8, 256>}, {transform_indices = @transform_1, window_bounds = array<i64: 256, 256>}, {transform_indices = @transform_2, window_bounds = array<i64: 1, 256>}, {transform_indices = @transform_3, window_bounds = array<i64: 1, 256>}, {transform_indices = @transform_4, window_bounds = array<i64: 8, 256>}, {transform_indices = @transform_5, window_bounds = array<i64: 8, 256>}]} {
    %c0_i32 = arith.constant 0 : i32
    %0 = arith.cmpi eq, %arg2, %c0_i32 : i32
    %1 = arith.extui %0 : i1 to i32
    %c0_i32_0 = arith.constant 0 : i32
    %2 = arith.cmpi ne, %1, %c0_i32_0 : i32
    scf.if %2 {
      %cst_9 = arith.constant 0.000000e+00 : f32
      %12 = vector.broadcast %cst_9 : f32 to vector<8x256xf32>
      %c0_10 = arith.constant 0 : index
      %c0_11 = arith.constant 0 : index
      %13 = vector.load %arg9[%c0_10, %c0_11] : memref<8x256xf32, #tpu.memory_space<vmem>>, vector<8x256xf32>
      tpu.vector_store %arg9[%c0_10, %c0_11], %12 {strides = array<i32>} : memref<8x256xf32, #tpu.memory_space<vmem>>, vector<8x256xf32>,
    } else {
    }
    %c0 = arith.constant 0 : index
    %c0_1 = arith.constant 0 : index
    %3 = vector.load %arg9[%c0, %c0_1] : memref<8x256xf32, #tpu.memory_space<vmem>>, vector<8x256xf32>
    %c0_2 = arith.constant 0 : index
    %c0_3 = arith.constant 0 : index
    %4 = vector.load %arg3[%c0_2, %c0_3] : memref<8x256xbf16, #tpu.memory_space<vmem>>, vector<8x256xbf16>
    %c0_4 = arith.constant 0 : index
    %c0_5 = arith.constant 0 : index
    %5 = vector.load %arg4[%c0_4, %c0_5] : memref<256x256xbf16, #tpu.memory_space<vmem>>, vector<256x256xbf16>
    %cst = arith.constant dense<0.000000e+00> : vector<8x256xf32>
    %6 = tpu.matmul %4, %5, %cst {dimension_numbers = #tpu.dot_dimension_numbers<[1], [0], [0], [1], [0, 0, 1, 1], [], []>} : vector<8x256xbf16>, vector<256x256xbf16>, vector<8x256xf32> -> vector<8x256xf32>
    %7 = arith.addf %3, %6 : vector<8x256xf32>
    %c0_6 = arith.constant 0 : index
    %c0_7 = arith.constant 0 : index
    %8 = vector.load %arg9[%c0_6, %c0_7] : memref<8x256xf32, #tpu.memory_space<vmem>>, vector<8x256xf32>
    tpu.vector_store %arg9[%c0_6, %c0_7], %7 {strides = array<i32>} : memref<8x256xf32, #tpu.memory_space<vmem>>, vector<8x256xf32>,
    %c8_i32 = arith.constant 8 : i32
    %9 = arith.cmpi eq, %arg2, %c8_i32 : i32
    %10 = arith.extui %9 : i1 to i32
    %c0_i32_8 = arith.constant 0 : i32
    %11 = arith.cmpi ne, %10, %c0_i32_8 : i32
    scf.if %11 {
      %c0_9 = arith.constant 0 : index
      %c0_10 = arith.constant 0 : index
      %12 = vector.load %arg9[%c0_9, %c0_10] : memref<8x256xf32, #tpu.memory_space<vmem>>, vector<8x256xf32>
      %c0_11 = arith.constant 0 : index
      %c0_12 = arith.constant 0 : index
      %13 = vector.load %arg5[%c0_11, %c0_12] : memref<1x256xf32, #tpu.memory_space<vmem>>, vector<1x256xf32>
      %14 = vector.broadcast %13 : vector<1x256xf32> to vector<8x256xf32>
      %15 = arith.mulf %12, %14 : vector<8x256xf32>
      %c0_13 = arith.constant 0 : index
      %c0_14 = arith.constant 0 : index
      %16 = vector.load %arg6[%c0_13, %c0_14] : memref<1x256xf32, #tpu.memory_space<vmem>>, vector<1x256xf32>
      %17 = vector.broadcast %16 : vector<1x256xf32> to vector<8x256xf32>
      %18 = arith.addf %15, %17 : vector<8x256xf32>
      %c0_15 = arith.constant 0 : index
      %c0_16 = arith.constant 0 : index
      %19 = vector.load %arg7[%c0_15, %c0_16] : memref<8x256xbf16, #tpu.memory_space<vmem>>, vector<8x256xbf16>
      %20 = arith.extf %19 : vector<8x256xbf16> to vector<8x256xf32>
      %21 = arith.addf %18, %20 : vector<8x256xf32>
      %cst_17 = arith.constant 0.000000e+00 : f32
      %22 = vector.broadcast %cst_17 : f32 to vector<8x256xf32>
      %23 = arith.maximumf %21, %22 : vector<8x256xf32>
      %24 = arith.truncf %23 : vector<8x256xf32> to vector<8x256xbf16>
      %c0_18 = arith.constant 0 : index
      %c0_19 = arith.constant 0 : index
      %25 = vector.load %arg8[%c0_18, %c0_19] : memref<8x256xbf16, #tpu.memory_space<vmem>>, vector<8x256xbf16>
      tpu.vector_store %arg8[%c0_18, %c0_19], %24 {strides = array<i32>} : memref<8x256xbf16, #tpu.memory_space<vmem>>, vector<8x256xbf16>,
    } else {
    }
    return
  }
  func.func @transform_0(%arg0: i32, %arg1: i32, %arg2: i32) -> (i32, i32) {
    %c0_i32 = arith.constant 0 : i32
    return %arg0, %arg2 : i32, i32
  }
  func.func @transform_1(%arg0: i32, %arg1: i32, %arg2: i32) -> (i32, i32) {
    %c0_i32 = arith.constant 0 : i32
    return %arg2, %arg1 : i32, i32
  }
  func.func @transform_2(%arg0: i32, %arg1: i32, %arg2: i32) -> (i32, i32) {
    %c0_i32 = arith.constant 0 : i32
    %c0_i32_0 = arith.constant 0 : i32
    return %c0_i32, %arg1 : i32, i32
  }
  func.func @transform_3(%arg0: i32, %arg1: i32, %arg2: i32) -> (i32, i32) {
    %c0_i32 = arith.constant 0 : i32
    %c0_i32_0 = arith.constant 0 : i32
    return %c0_i32, %arg1 : i32, i32
  }
  func.func @transform_4(%arg0: i32, %arg1: i32, %arg2: i32) -> (i32, i32) {
    %c0_i32 = arith.constant 0 : i32
    return %arg0, %arg1 : i32, i32
  }
  func.func @transform_5(%arg0: i32, %arg1: i32, %arg2: i32) -> (i32, i32) {
    %c0_i32 = arith.constant 0 : i32
    return %arg0, %arg1 : i32, i32
  }
}

module attributes {stable_mosaic.version = 11 : i64} {
  func.func @kernel(%arg0: i32, %arg1: i32, %arg2: i32, %arg3: memref<8x128xbf16, #tpu.memory_space<vmem>>, %arg4: memref<128x256xbf16, #tpu.memory_space<vmem>>, %arg5: memref<1x256xf32, #tpu.memory_space<vmem>>, %arg6: memref<1x256xf32, #tpu.memory_space<vmem>>, %arg7: memref<8x256xbf16, #tpu.memory_space<vmem>>, %arg8: memref<8x256xf32, #tpu.memory_space<vmem>>) attributes {dimension_semantics = [#tpu.dimension_semantics<parallel>, #tpu.dimension_semantics<parallel>, #tpu.dimension_semantics<arbitrary>], iteration_bounds = array<i64: 1, 1, 1>, scalar_prefetch = 0 : i64, scratch_operands = 1 : i64, tpu.core_type = #tpu.core_type<tc>, window_params = [{transform_indices = @transform_0, window_bounds = array<i64: 8, 128>}, {transform_indices = @transform_1, window_bounds = array<i64: 128, 256>}, {transform_indices = @transform_2, window_bounds = array<i64: 1, 256>}, {transform_indices = @transform_3, window_bounds = array<i64: 1, 256>}, {transform_indices = @transform_4, window_bounds = array<i64: 8, 256>}]} {
    %c0_i32 = arith.constant 0 : i32
    %0 = arith.cmpi eq, %arg2, %c0_i32 : i32
    %1 = arith.extui %0 : i1 to i32
    %c0_i32_0 = arith.constant 0 : i32
    %2 = arith.cmpi ne, %1, %c0_i32_0 : i32
    scf.if %2 {
      %cst_10 = arith.constant 0.000000e+00 : f32
      %12 = vector.broadcast %cst_10 : f32 to vector<8x256xf32>
      %c0_11 = arith.constant 0 : index
      %c0_12 = arith.constant 0 : index
      %13 = vector.load %arg8[%c0_11, %c0_12] : memref<8x256xf32, #tpu.memory_space<vmem>>, vector<8x256xf32>
      tpu.vector_store %arg8[%c0_11, %c0_12], %12 {strides = array<i32>} : memref<8x256xf32, #tpu.memory_space<vmem>>, vector<8x256xf32>,
    } else {
    }
    %c0 = arith.constant 0 : index
    %c0_1 = arith.constant 0 : index
    %3 = vector.load %arg8[%c0, %c0_1] : memref<8x256xf32, #tpu.memory_space<vmem>>, vector<8x256xf32>
    %c0_2 = arith.constant 0 : index
    %c0_3 = arith.constant 0 : index
    %4 = vector.load %arg3[%c0_2, %c0_3] : memref<8x128xbf16, #tpu.memory_space<vmem>>, vector<8x128xbf16>
    %c0_4 = arith.constant 0 : index
    %c0_5 = arith.constant 0 : index
    %5 = vector.load %arg4[%c0_4, %c0_5] : memref<128x256xbf16, #tpu.memory_space<vmem>>, vector<128x256xbf16>
    %cst = arith.constant dense<0.000000e+00> : vector<8x256xf32>
    %6 = tpu.matmul %4, %5, %cst {dimension_numbers = #tpu.dot_dimension_numbers<[1], [0], [0], [1], [0, 0, 1, 1], [], []>} : vector<8x128xbf16>, vector<128x256xbf16>, vector<8x256xf32> -> vector<8x256xf32>
    %7 = arith.addf %3, %6 : vector<8x256xf32>
    %c0_6 = arith.constant 0 : index
    %c0_7 = arith.constant 0 : index
    %8 = vector.load %arg8[%c0_6, %c0_7] : memref<8x256xf32, #tpu.memory_space<vmem>>, vector<8x256xf32>
    tpu.vector_store %arg8[%c0_6, %c0_7], %7 {strides = array<i32>} : memref<8x256xf32, #tpu.memory_space<vmem>>, vector<8x256xf32>,
    %c0_i32_8 = arith.constant 0 : i32
    %9 = arith.cmpi eq, %arg2, %c0_i32_8 : i32
    %10 = arith.extui %9 : i1 to i32
    %c0_i32_9 = arith.constant 0 : i32
    %11 = arith.cmpi ne, %10, %c0_i32_9 : i32
    scf.if %11 {
      %c0_10 = arith.constant 0 : index
      %c0_11 = arith.constant 0 : index
      %12 = vector.load %arg8[%c0_10, %c0_11] : memref<8x256xf32, #tpu.memory_space<vmem>>, vector<8x256xf32>
      %c0_12 = arith.constant 0 : index
      %c0_13 = arith.constant 0 : index
      %13 = vector.load %arg5[%c0_12, %c0_13] : memref<1x256xf32, #tpu.memory_space<vmem>>, vector<1x256xf32>
      %14 = vector.broadcast %13 : vector<1x256xf32> to vector<8x256xf32>
      %15 = arith.mulf %12, %14 : vector<8x256xf32>
      %c0_14 = arith.constant 0 : index
      %c0_15 = arith.constant 0 : index
      %16 = vector.load %arg6[%c0_14, %c0_15] : memref<1x256xf32, #tpu.memory_space<vmem>>, vector<1x256xf32>
      %17 = vector.broadcast %16 : vector<1x256xf32> to vector<8x256xf32>
      %18 = arith.addf %15, %17 : vector<8x256xf32>
      %19 = arith.truncf %18 : vector<8x256xf32> to vector<8x256xbf16>
      %c0_16 = arith.constant 0 : index
      %c0_17 = arith.constant 0 : index
      %20 = vector.load %arg7[%c0_16, %c0_17] : memref<8x256xbf16, #tpu.memory_space<vmem>>, vector<8x256xbf16>
      tpu.vector_store %arg7[%c0_16, %c0_17], %19 {strides = array<i32>} : memref<8x256xbf16, #tpu.memory_space<vmem>>, vector<8x256xbf16>,
    } else {
    }
    return
  }
  func.func @transform_0(%arg0: i32, %arg1: i32, %arg2: i32) -> (i32, i32) {
    %c0_i32 = arith.constant 0 : i32
    return %arg0, %arg2 : i32, i32
  }
  func.func @transform_1(%arg0: i32, %arg1: i32, %arg2: i32) -> (i32, i32) {
    %c0_i32 = arith.constant 0 : i32
    return %arg2, %arg1 : i32, i32
  }
  func.func @transform_2(%arg0: i32, %arg1: i32, %arg2: i32) -> (i32, i32) {
    %c0_i32 = arith.constant 0 : i32
    %c0_i32_0 = arith.constant 0 : i32
    return %c0_i32, %arg1 : i32, i32
  }
  func.func @transform_3(%arg0: i32, %arg1: i32, %arg2: i32) -> (i32, i32) {
    %c0_i32 = arith.constant 0 : i32
    %c0_i32_0 = arith.constant 0 : i32
    return %c0_i32, %arg1 : i32, i32
  }
  func.func @transform_4(%arg0: i32, %arg1: i32, %arg2: i32) -> (i32, i32) {
    %c0_i32 = arith.constant 0 : i32
    return %arg0, %arg1 : i32, i32
  }
}

module attributes {stable_mosaic.version = 11 : i64} {
  func.func @kernel(%arg0: i32, %arg1: i32, %arg2: i32, %arg3: memref<8x256xbf16, #tpu.memory_space<vmem>>, %arg4: memref<256x256xbf16, #tpu.memory_space<vmem>>, %arg5: memref<1x256xf32, #tpu.memory_space<vmem>>, %arg6: memref<1x256xf32, #tpu.memory_space<vmem>>, %arg7: memref<8x256xbf16, #tpu.memory_space<vmem>>, %arg8: memref<8x256xf32, #tpu.memory_space<vmem>>) attributes {dimension_semantics = [#tpu.dimension_semantics<parallel>, #tpu.dimension_semantics<parallel>, #tpu.dimension_semantics<arbitrary>], iteration_bounds = array<i64: 1, 1, 9>, scalar_prefetch = 0 : i64, scratch_operands = 1 : i64, tpu.core_type = #tpu.core_type<tc>, window_params = [{transform_indices = @transform_0, window_bounds = array<i64: 8, 256>}, {transform_indices = @transform_1, window_bounds = array<i64: 256, 256>}, {transform_indices = @transform_2, window_bounds = array<i64: 1, 256>}, {transform_indices = @transform_3, window_bounds = array<i64: 1, 256>}, {transform_indices = @transform_4, window_bounds = array<i64: 8, 256>}]} {
    %c0_i32 = arith.constant 0 : i32
    %0 = arith.cmpi eq, %arg2, %c0_i32 : i32
    %1 = arith.extui %0 : i1 to i32
    %c0_i32_0 = arith.constant 0 : i32
    %2 = arith.cmpi ne, %1, %c0_i32_0 : i32
    scf.if %2 {
      %cst_9 = arith.constant 0.000000e+00 : f32
      %12 = vector.broadcast %cst_9 : f32 to vector<8x256xf32>
      %c0_10 = arith.constant 0 : index
      %c0_11 = arith.constant 0 : index
      %13 = vector.load %arg8[%c0_10, %c0_11] : memref<8x256xf32, #tpu.memory_space<vmem>>, vector<8x256xf32>
      tpu.vector_store %arg8[%c0_10, %c0_11], %12 {strides = array<i32>} : memref<8x256xf32, #tpu.memory_space<vmem>>, vector<8x256xf32>,
    } else {
    }
    %c0 = arith.constant 0 : index
    %c0_1 = arith.constant 0 : index
    %3 = vector.load %arg8[%c0, %c0_1] : memref<8x256xf32, #tpu.memory_space<vmem>>, vector<8x256xf32>
    %c0_2 = arith.constant 0 : index
    %c0_3 = arith.constant 0 : index
    %4 = vector.load %arg3[%c0_2, %c0_3] : memref<8x256xbf16, #tpu.memory_space<vmem>>, vector<8x256xbf16>
    %c0_4 = arith.constant 0 : index
    %c0_5 = arith.constant 0 : index
    %5 = vector.load %arg4[%c0_4, %c0_5] : memref<256x256xbf16, #tpu.memory_space<vmem>>, vector<256x256xbf16>
    %cst = arith.constant dense<0.000000e+00> : vector<8x256xf32>
    %6 = tpu.matmul %4, %5, %cst {dimension_numbers = #tpu.dot_dimension_numbers<[1], [0], [0], [1], [0, 0, 1, 1], [], []>} : vector<8x256xbf16>, vector<256x256xbf16>, vector<8x256xf32> -> vector<8x256xf32>
    %7 = arith.addf %3, %6 : vector<8x256xf32>
    %c0_6 = arith.constant 0 : index
    %c0_7 = arith.constant 0 : index
    %8 = vector.load %arg8[%c0_6, %c0_7] : memref<8x256xf32, #tpu.memory_space<vmem>>, vector<8x256xf32>
    tpu.vector_store %arg8[%c0_6, %c0_7], %7 {strides = array<i32>} : memref<8x256xf32, #tpu.memory_space<vmem>>, vector<8x256xf32>,
    %c8_i32 = arith.constant 8 : i32
    %9 = arith.cmpi eq, %arg2, %c8_i32 : i32
    %10 = arith.extui %9 : i1 to i32
    %c0_i32_8 = arith.constant 0 : i32
    %11 = arith.cmpi ne, %10, %c0_i32_8 : i32
    scf.if %11 {
      %c0_9 = arith.constant 0 : index
      %c0_10 = arith.constant 0 : index
      %12 = vector.load %arg8[%c0_9, %c0_10] : memref<8x256xf32, #tpu.memory_space<vmem>>, vector<8x256xf32>
      %c0_11 = arith.constant 0 : index
      %c0_12 = arith.constant 0 : index
      %13 = vector.load %arg5[%c0_11, %c0_12] : memref<1x256xf32, #tpu.memory_space<vmem>>, vector<1x256xf32>
      %14 = vector.broadcast %13 : vector<1x256xf32> to vector<8x256xf32>
      %15 = arith.mulf %12, %14 : vector<8x256xf32>
      %c0_13 = arith.constant 0 : index
      %c0_14 = arith.constant 0 : index
      %16 = vector.load %arg6[%c0_13, %c0_14] : memref<1x256xf32, #tpu.memory_space<vmem>>, vector<1x256xf32>
      %17 = vector.broadcast %16 : vector<1x256xf32> to vector<8x256xf32>
      %18 = arith.addf %15, %17 : vector<8x256xf32>
      %cst_15 = arith.constant 0.000000e+00 : f32
      %19 = vector.broadcast %cst_15 : f32 to vector<8x256xf32>
      %20 = arith.maximumf %18, %19 : vector<8x256xf32>
      %21 = arith.truncf %20 : vector<8x256xf32> to vector<8x256xbf16>
      %c0_16 = arith.constant 0 : index
      %c0_17 = arith.constant 0 : index
      %22 = vector.load %arg7[%c0_16, %c0_17] : memref<8x256xbf16, #tpu.memory_space<vmem>>, vector<8x256xbf16>
      tpu.vector_store %arg7[%c0_16, %c0_17], %21 {strides = array<i32>} : memref<8x256xbf16, #tpu.memory_space<vmem>>, vector<8x256xbf16>,
    } else {
    }
    return
  }
  func.func @transform_0(%arg0: i32, %arg1: i32, %arg2: i32) -> (i32, i32) {
    %c0_i32 = arith.constant 0 : i32
    return %arg0, %arg2 : i32, i32
  }
  func.func @transform_1(%arg0: i32, %arg1: i32, %arg2: i32) -> (i32, i32) {
    %c0_i32 = arith.constant 0 : i32
    return %arg2, %arg1 : i32, i32
  }
  func.func @transform_2(%arg0: i32, %arg1: i32, %arg2: i32) -> (i32, i32) {
    %c0_i32 = arith.constant 0 : i32
    %c0_i32_0 = arith.constant 0 : i32
    return %c0_i32, %arg1 : i32, i32
  }
  func.func @transform_3(%arg0: i32, %arg1: i32, %arg2: i32) -> (i32, i32) {
    %c0_i32 = arith.constant 0 : i32
    %c0_i32_0 = arith.constant 0 : i32
    return %c0_i32, %arg1 : i32, i32
  }
  func.func @transform_4(%arg0: i32, %arg1: i32, %arg2: i32) -> (i32, i32) {
    %c0_i32 = arith.constant 0 : i32
    return %arg0, %arg1 : i32, i32
  }
}

module attributes {stable_mosaic.version = 11 : i64} {
  func.func @kernel(%arg0: i32, %arg1: i32, %arg2: i32, %arg3: memref<8x256xbf16, #tpu.memory_space<vmem>>, %arg4: memref<256x256xbf16, #tpu.memory_space<vmem>>, %arg5: memref<1x256xf32, #tpu.memory_space<vmem>>, %arg6: memref<1x256xf32, #tpu.memory_space<vmem>>, %arg7: memref<8x256xbf16, #tpu.memory_space<vmem>>, %arg8: memref<8x256xf32, #tpu.memory_space<vmem>>) attributes {dimension_semantics = [#tpu.dimension_semantics<parallel>, #tpu.dimension_semantics<parallel>, #tpu.dimension_semantics<arbitrary>], iteration_bounds = array<i64: 1, 2, 9>, scalar_prefetch = 0 : i64, scratch_operands = 1 : i64, tpu.core_type = #tpu.core_type<tc>, window_params = [{transform_indices = @transform_0, window_bounds = array<i64: 8, 256>}, {transform_indices = @transform_1, window_bounds = array<i64: 256, 256>}, {transform_indices = @transform_2, window_bounds = array<i64: 1, 256>}, {transform_indices = @transform_3, window_bounds = array<i64: 1, 256>}, {transform_indices = @transform_4, window_bounds = array<i64: 8, 256>}]} {
    %c0_i32 = arith.constant 0 : i32
    %0 = arith.cmpi eq, %arg2, %c0_i32 : i32
    %1 = arith.extui %0 : i1 to i32
    %c0_i32_0 = arith.constant 0 : i32
    %2 = arith.cmpi ne, %1, %c0_i32_0 : i32
    scf.if %2 {
      %cst_9 = arith.constant 0.000000e+00 : f32
      %12 = vector.broadcast %cst_9 : f32 to vector<8x256xf32>
      %c0_10 = arith.constant 0 : index
      %c0_11 = arith.constant 0 : index
      %13 = vector.load %arg8[%c0_10, %c0_11] : memref<8x256xf32, #tpu.memory_space<vmem>>, vector<8x256xf32>
      tpu.vector_store %arg8[%c0_10, %c0_11], %12 {strides = array<i32>} : memref<8x256xf32, #tpu.memory_space<vmem>>, vector<8x256xf32>,
    } else {
    }
    %c0 = arith.constant 0 : index
    %c0_1 = arith.constant 0 : index
    %3 = vector.load %arg8[%c0, %c0_1] : memref<8x256xf32, #tpu.memory_space<vmem>>, vector<8x256xf32>
    %c0_2 = arith.constant 0 : index
    %c0_3 = arith.constant 0 : index
    %4 = vector.load %arg3[%c0_2, %c0_3] : memref<8x256xbf16, #tpu.memory_space<vmem>>, vector<8x256xbf16>
    %c0_4 = arith.constant 0 : index
    %c0_5 = arith.constant 0 : index
    %5 = vector.load %arg4[%c0_4, %c0_5] : memref<256x256xbf16, #tpu.memory_space<vmem>>, vector<256x256xbf16>
    %cst = arith.constant dense<0.000000e+00> : vector<8x256xf32>
    %6 = tpu.matmul %4, %5, %cst {dimension_numbers = #tpu.dot_dimension_numbers<[1], [0], [0], [1], [0, 0, 1, 1], [], []>} : vector<8x256xbf16>, vector<256x256xbf16>, vector<8x256xf32> -> vector<8x256xf32>
    %7 = arith.addf %3, %6 : vector<8x256xf32>
    %c0_6 = arith.constant 0 : index
    %c0_7 = arith.constant 0 : index
    %8 = vector.load %arg8[%c0_6, %c0_7] : memref<8x256xf32, #tpu.memory_space<vmem>>, vector<8x256xf32>
    tpu.vector_store %arg8[%c0_6, %c0_7], %7 {strides = array<i32>} : memref<8x256xf32, #tpu.memory_space<vmem>>, vector<8x256xf32>,
    %c8_i32 = arith.constant 8 : i32
    %9 = arith.cmpi eq, %arg2, %c8_i32 : i32
    %10 = arith.extui %9 : i1 to i32
    %c0_i32_8 = arith.constant 0 : i32
    %11 = arith.cmpi ne, %10, %c0_i32_8 : i32
    scf.if %11 {
      %c0_9 = arith.constant 0 : index
      %c0_10 = arith.constant 0 : index
      %12 = vector.load %arg8[%c0_9, %c0_10] : memref<8x256xf32, #tpu.memory_space<vmem>>, vector<8x256xf32>
      %c0_11 = arith.constant 0 : index
      %c0_12 = arith.constant 0 : index
      %13 = vector.load %arg5[%c0_11, %c0_12] : memref<1x256xf32, #tpu.memory_space<vmem>>, vector<1x256xf32>
      %14 = vector.broadcast %13 : vector<1x256xf32> to vector<8x256xf32>
      %15 = arith.mulf %12, %14 : vector<8x256xf32>
      %c0_13 = arith.constant 0 : index
      %c0_14 = arith.constant 0 : index
      %16 = vector.load %arg6[%c0_13, %c0_14] : memref<1x256xf32, #tpu.memory_space<vmem>>, vector<1x256xf32>
      %17 = vector.broadcast %16 : vector<1x256xf32> to vector<8x256xf32>
      %18 = arith.addf %15, %17 : vector<8x256xf32>
      %cst_15 = arith.constant 0.000000e+00 : f32
      %19 = vector.broadcast %cst_15 : f32 to vector<8x256xf32>
      %20 = arith.maximumf %18, %19 : vector<8x256xf32>
      %21 = arith.truncf %20 : vector<8x256xf32> to vector<8x256xbf16>
      %c0_16 = arith.constant 0 : index
      %c0_17 = arith.constant 0 : index
      %22 = vector.load %arg7[%c0_16, %c0_17] : memref<8x256xbf16, #tpu.memory_space<vmem>>, vector<8x256xbf16>
      tpu.vector_store %arg7[%c0_16, %c0_17], %21 {strides = array<i32>} : memref<8x256xbf16, #tpu.memory_space<vmem>>, vector<8x256xbf16>,
    } else {
    }
    return
  }
  func.func @transform_0(%arg0: i32, %arg1: i32, %arg2: i32) -> (i32, i32) {
    %c0_i32 = arith.constant 0 : i32
    return %arg0, %arg2 : i32, i32
  }
  func.func @transform_1(%arg0: i32, %arg1: i32, %arg2: i32) -> (i32, i32) {
    %c0_i32 = arith.constant 0 : i32
    return %arg2, %arg1 : i32, i32
  }
  func.func @transform_2(%arg0: i32, %arg1: i32, %arg2: i32) -> (i32, i32) {
    %c0_i32 = arith.constant 0 : i32
    %c0_i32_0 = arith.constant 0 : i32
    return %c0_i32, %arg1 : i32, i32
  }
  func.func @transform_3(%arg0: i32, %arg1: i32, %arg2: i32) -> (i32, i32) {
    %c0_i32 = arith.constant 0 : i32
    %c0_i32_0 = arith.constant 0 : i32
    return %c0_i32, %arg1 : i32, i32
  }
  func.func @transform_4(%arg0: i32, %arg1: i32, %arg2: i32) -> (i32, i32) {
    %c0_i32 = arith.constant 0 : i32
    return %arg0, %arg1 : i32, i32
  }
}

module attributes {stable_mosaic.version = 11 : i64} {
  func.func @kernel(%arg0: i32, %arg1: i32, %arg2: i32, %arg3: memref<8x256xbf16, #tpu.memory_space<vmem>>, %arg4: memref<256x256xbf16, #tpu.memory_space<vmem>>, %arg5: memref<1x256xf32, #tpu.memory_space<vmem>>, %arg6: memref<1x256xf32, #tpu.memory_space<vmem>>, %arg7: memref<8x256xbf16, #tpu.memory_space<vmem>>, %arg8: memref<8x256xf32, #tpu.memory_space<vmem>>) attributes {dimension_semantics = [#tpu.dimension_semantics<parallel>, #tpu.dimension_semantics<parallel>, #tpu.dimension_semantics<arbitrary>], iteration_bounds = array<i64: 1, 2, 1>, scalar_prefetch = 0 : i64, scratch_operands = 1 : i64, tpu.core_type = #tpu.core_type<tc>, window_params = [{transform_indices = @transform_0, window_bounds = array<i64: 8, 256>}, {transform_indices = @transform_1, window_bounds = array<i64: 256, 256>}, {transform_indices = @transform_2, window_bounds = array<i64: 1, 256>}, {transform_indices = @transform_3, window_bounds = array<i64: 1, 256>}, {transform_indices = @transform_4, window_bounds = array<i64: 8, 256>}]} {
    %c0_i32 = arith.constant 0 : i32
    %0 = arith.cmpi eq, %arg2, %c0_i32 : i32
    %1 = arith.extui %0 : i1 to i32
    %c0_i32_0 = arith.constant 0 : i32
    %2 = arith.cmpi ne, %1, %c0_i32_0 : i32
    scf.if %2 {
      %cst_10 = arith.constant 0.000000e+00 : f32
      %12 = vector.broadcast %cst_10 : f32 to vector<8x256xf32>
      %c0_11 = arith.constant 0 : index
      %c0_12 = arith.constant 0 : index
      %13 = vector.load %arg8[%c0_11, %c0_12] : memref<8x256xf32, #tpu.memory_space<vmem>>, vector<8x256xf32>
      tpu.vector_store %arg8[%c0_11, %c0_12], %12 {strides = array<i32>} : memref<8x256xf32, #tpu.memory_space<vmem>>, vector<8x256xf32>,
    } else {
    }
    %c0 = arith.constant 0 : index
    %c0_1 = arith.constant 0 : index
    %3 = vector.load %arg8[%c0, %c0_1] : memref<8x256xf32, #tpu.memory_space<vmem>>, vector<8x256xf32>
    %c0_2 = arith.constant 0 : index
    %c0_3 = arith.constant 0 : index
    %4 = vector.load %arg3[%c0_2, %c0_3] : memref<8x256xbf16, #tpu.memory_space<vmem>>, vector<8x256xbf16>
    %c0_4 = arith.constant 0 : index
    %c0_5 = arith.constant 0 : index
    %5 = vector.load %arg4[%c0_4, %c0_5] : memref<256x256xbf16, #tpu.memory_space<vmem>>, vector<256x256xbf16>
    %cst = arith.constant dense<0.000000e+00> : vector<8x256xf32>
    %6 = tpu.matmul %4, %5, %cst {dimension_numbers = #tpu.dot_dimension_numbers<[1], [0], [0], [1], [0, 0, 1, 1], [], []>} : vector<8x256xbf16>, vector<256x256xbf16>, vector<8x256xf32> -> vector<8x256xf32>
    %7 = arith.addf %3, %6 : vector<8x256xf32>
    %c0_6 = arith.constant 0 : index
    %c0_7 = arith.constant 0 : index
    %8 = vector.load %arg8[%c0_6, %c0_7] : memref<8x256xf32, #tpu.memory_space<vmem>>, vector<8x256xf32>
    tpu.vector_store %arg8[%c0_6, %c0_7], %7 {strides = array<i32>} : memref<8x256xf32, #tpu.memory_space<vmem>>, vector<8x256xf32>,
    %c0_i32_8 = arith.constant 0 : i32
    %9 = arith.cmpi eq, %arg2, %c0_i32_8 : i32
    %10 = arith.extui %9 : i1 to i32
    %c0_i32_9 = arith.constant 0 : i32
    %11 = arith.cmpi ne, %10, %c0_i32_9 : i32
    scf.if %11 {
      %c0_10 = arith.constant 0 : index
      %c0_11 = arith.constant 0 : index
      %12 = vector.load %arg8[%c0_10, %c0_11] : memref<8x256xf32, #tpu.memory_space<vmem>>, vector<8x256xf32>
      %c0_12 = arith.constant 0 : index
      %c0_13 = arith.constant 0 : index
      %13 = vector.load %arg5[%c0_12, %c0_13] : memref<1x256xf32, #tpu.memory_space<vmem>>, vector<1x256xf32>
      %14 = vector.broadcast %13 : vector<1x256xf32> to vector<8x256xf32>
      %15 = arith.mulf %12, %14 : vector<8x256xf32>
      %c0_14 = arith.constant 0 : index
      %c0_15 = arith.constant 0 : index
      %16 = vector.load %arg6[%c0_14, %c0_15] : memref<1x256xf32, #tpu.memory_space<vmem>>, vector<1x256xf32>
      %17 = vector.broadcast %16 : vector<1x256xf32> to vector<8x256xf32>
      %18 = arith.addf %15, %17 : vector<8x256xf32>
      %19 = arith.truncf %18 : vector<8x256xf32> to vector<8x256xbf16>
      %c0_16 = arith.constant 0 : index
      %c0_17 = arith.constant 0 : index
      %20 = vector.load %arg7[%c0_16, %c0_17] : memref<8x256xbf16, #tpu.memory_space<vmem>>, vector<8x256xbf16>
      tpu.vector_store %arg7[%c0_16, %c0_17], %19 {strides = array<i32>} : memref<8x256xbf16, #tpu.memory_space<vmem>>, vector<8x256xbf16>,
    } else {
    }
    return
  }
  func.func @transform_0(%arg0: i32, %arg1: i32, %arg2: i32) -> (i32, i32) {
    %c0_i32 = arith.constant 0 : i32
    return %arg0, %arg2 : i32, i32
  }
  func.func @transform_1(%arg0: i32, %arg1: i32, %arg2: i32) -> (i32, i32) {
    %c0_i32 = arith.constant 0 : i32
    return %arg2, %arg1 : i32, i32
  }
  func.func @transform_2(%arg0: i32, %arg1: i32, %arg2: i32) -> (i32, i32) {
    %c0_i32 = arith.constant 0 : i32
    %c0_i32_0 = arith.constant 0 : i32
    return %c0_i32, %arg1 : i32, i32
  }
  func.func @transform_3(%arg0: i32, %arg1: i32, %arg2: i32) -> (i32, i32) {
    %c0_i32 = arith.constant 0 : i32
    %c0_i32_0 = arith.constant 0 : i32
    return %c0_i32, %arg1 : i32, i32
  }
  func.func @transform_4(%arg0: i32, %arg1: i32, %arg2: i32) -> (i32, i32) {
    %c0_i32 = arith.constant 0 : i32
    return %arg0, %arg1 : i32, i32
  }
}

module attributes {stable_mosaic.version = 11 : i64} {
  func.func @kernel(%arg0: i32, %arg1: i32, %arg2: i32, %arg3: memref<8x256xbf16, #tpu.memory_space<vmem>>, %arg4: memref<256x256xbf16, #tpu.memory_space<vmem>>, %arg5: memref<1x256xf32, #tpu.memory_space<vmem>>, %arg6: memref<1x256xf32, #tpu.memory_space<vmem>>, %arg7: memref<8x256xbf16, #tpu.memory_space<vmem>>, %arg8: memref<8x256xbf16, #tpu.memory_space<vmem>>, %arg9: memref<8x256xf32, #tpu.memory_space<vmem>>) attributes {dimension_semantics = [#tpu.dimension_semantics<parallel>, #tpu.dimension_semantics<parallel>, #tpu.dimension_semantics<arbitrary>], iteration_bounds = array<i64: 1, 2, 18>, scalar_prefetch = 0 : i64, scratch_operands = 1 : i64, tpu.core_type = #tpu.core_type<tc>, window_params = [{transform_indices = @transform_0, window_bounds = array<i64: 8, 256>}, {transform_indices = @transform_1, window_bounds = array<i64: 256, 256>}, {transform_indices = @transform_2, window_bounds = array<i64: 1, 256>}, {transform_indices = @transform_3, window_bounds = array<i64: 1, 256>}, {transform_indices = @transform_4, window_bounds = array<i64: 8, 256>}, {transform_indices = @transform_5, window_bounds = array<i64: 8, 256>}]} {
    %c0_i32 = arith.constant 0 : i32
    %0 = arith.cmpi eq, %arg2, %c0_i32 : i32
    %1 = arith.extui %0 : i1 to i32
    %c0_i32_0 = arith.constant 0 : i32
    %2 = arith.cmpi ne, %1, %c0_i32_0 : i32
    scf.if %2 {
      %cst_9 = arith.constant 0.000000e+00 : f32
      %12 = vector.broadcast %cst_9 : f32 to vector<8x256xf32>
      %c0_10 = arith.constant 0 : index
      %c0_11 = arith.constant 0 : index
      %13 = vector.load %arg9[%c0_10, %c0_11] : memref<8x256xf32, #tpu.memory_space<vmem>>, vector<8x256xf32>
      tpu.vector_store %arg9[%c0_10, %c0_11], %12 {strides = array<i32>} : memref<8x256xf32, #tpu.memory_space<vmem>>, vector<8x256xf32>,
    } else {
    }
    %c0 = arith.constant 0 : index
    %c0_1 = arith.constant 0 : index
    %3 = vector.load %arg9[%c0, %c0_1] : memref<8x256xf32, #tpu.memory_space<vmem>>, vector<8x256xf32>
    %c0_2 = arith.constant 0 : index
    %c0_3 = arith.constant 0 : index
    %4 = vector.load %arg3[%c0_2, %c0_3] : memref<8x256xbf16, #tpu.memory_space<vmem>>, vector<8x256xbf16>
    %c0_4 = arith.constant 0 : index
    %c0_5 = arith.constant 0 : index
    %5 = vector.load %arg4[%c0_4, %c0_5] : memref<256x256xbf16, #tpu.memory_space<vmem>>, vector<256x256xbf16>
    %cst = arith.constant dense<0.000000e+00> : vector<8x256xf32>
    %6 = tpu.matmul %4, %5, %cst {dimension_numbers = #tpu.dot_dimension_numbers<[1], [0], [0], [1], [0, 0, 1, 1], [], []>} : vector<8x256xbf16>, vector<256x256xbf16>, vector<8x256xf32> -> vector<8x256xf32>
    %7 = arith.addf %3, %6 : vector<8x256xf32>
    %c0_6 = arith.constant 0 : index
    %c0_7 = arith.constant 0 : index
    %8 = vector.load %arg9[%c0_6, %c0_7] : memref<8x256xf32, #tpu.memory_space<vmem>>, vector<8x256xf32>
    tpu.vector_store %arg9[%c0_6, %c0_7], %7 {strides = array<i32>} : memref<8x256xf32, #tpu.memory_space<vmem>>, vector<8x256xf32>,
    %c17_i32 = arith.constant 17 : i32
    %9 = arith.cmpi eq, %arg2, %c17_i32 : i32
    %10 = arith.extui %9 : i1 to i32
    %c0_i32_8 = arith.constant 0 : i32
    %11 = arith.cmpi ne, %10, %c0_i32_8 : i32
    scf.if %11 {
      %c0_9 = arith.constant 0 : index
      %c0_10 = arith.constant 0 : index
      %12 = vector.load %arg9[%c0_9, %c0_10] : memref<8x256xf32, #tpu.memory_space<vmem>>, vector<8x256xf32>
      %c0_11 = arith.constant 0 : index
      %c0_12 = arith.constant 0 : index
      %13 = vector.load %arg5[%c0_11, %c0_12] : memref<1x256xf32, #tpu.memory_space<vmem>>, vector<1x256xf32>
      %14 = vector.broadcast %13 : vector<1x256xf32> to vector<8x256xf32>
      %15 = arith.mulf %12, %14 : vector<8x256xf32>
      %c0_13 = arith.constant 0 : index
      %c0_14 = arith.constant 0 : index
      %16 = vector.load %arg6[%c0_13, %c0_14] : memref<1x256xf32, #tpu.memory_space<vmem>>, vector<1x256xf32>
      %17 = vector.broadcast %16 : vector<1x256xf32> to vector<8x256xf32>
      %18 = arith.addf %15, %17 : vector<8x256xf32>
      %c0_15 = arith.constant 0 : index
      %c0_16 = arith.constant 0 : index
      %19 = vector.load %arg7[%c0_15, %c0_16] : memref<8x256xbf16, #tpu.memory_space<vmem>>, vector<8x256xbf16>
      %20 = arith.extf %19 : vector<8x256xbf16> to vector<8x256xf32>
      %21 = arith.addf %18, %20 : vector<8x256xf32>
      %cst_17 = arith.constant 0.000000e+00 : f32
      %22 = vector.broadcast %cst_17 : f32 to vector<8x256xf32>
      %23 = arith.maximumf %21, %22 : vector<8x256xf32>
      %24 = arith.truncf %23 : vector<8x256xf32> to vector<8x256xbf16>
      %c0_18 = arith.constant 0 : index
      %c0_19 = arith.constant 0 : index
      %25 = vector.load %arg8[%c0_18, %c0_19] : memref<8x256xbf16, #tpu.memory_space<vmem>>, vector<8x256xbf16>
      tpu.vector_store %arg8[%c0_18, %c0_19], %24 {strides = array<i32>} : memref<8x256xbf16, #tpu.memory_space<vmem>>, vector<8x256xbf16>,
    } else {
    }
    return
  }
  func.func @transform_0(%arg0: i32, %arg1: i32, %arg2: i32) -> (i32, i32) {
    %c0_i32 = arith.constant 0 : i32
    return %arg0, %arg2 : i32, i32
  }
  func.func @transform_1(%arg0: i32, %arg1: i32, %arg2: i32) -> (i32, i32) {
    %c0_i32 = arith.constant 0 : i32
    return %arg2, %arg1 : i32, i32
  }
  func.func @transform_2(%arg0: i32, %arg1: i32, %arg2: i32) -> (i32, i32) {
    %c0_i32 = arith.constant 0 : i32
    %c0_i32_0 = arith.constant 0 : i32
    return %c0_i32, %arg1 : i32, i32
  }
  func.func @transform_3(%arg0: i32, %arg1: i32, %arg2: i32) -> (i32, i32) {
    %c0_i32 = arith.constant 0 : i32
    %c0_i32_0 = arith.constant 0 : i32
    return %c0_i32, %arg1 : i32, i32
  }
  func.func @transform_4(%arg0: i32, %arg1: i32, %arg2: i32) -> (i32, i32) {
    %c0_i32 = arith.constant 0 : i32
    return %arg0, %arg1 : i32, i32
  }
  func.func @transform_5(%arg0: i32, %arg1: i32, %arg2: i32) -> (i32, i32) {
    %c0_i32 = arith.constant 0 : i32
    return %arg0, %arg1 : i32, i32
  }
}

module attributes {stable_mosaic.version = 11 : i64} {
  func.func @kernel(%arg0: i32, %arg1: i32, %arg2: i32, %arg3: memref<8x256xbf16, #tpu.memory_space<vmem>>, %arg4: memref<256x256xbf16, #tpu.memory_space<vmem>>, %arg5: memref<1x256xf32, #tpu.memory_space<vmem>>, %arg6: memref<1x256xf32, #tpu.memory_space<vmem>>, %arg7: memref<8x256xbf16, #tpu.memory_space<vmem>>, %arg8: memref<8x256xf32, #tpu.memory_space<vmem>>) attributes {dimension_semantics = [#tpu.dimension_semantics<parallel>, #tpu.dimension_semantics<parallel>, #tpu.dimension_semantics<arbitrary>], iteration_bounds = array<i64: 1, 2, 18>, scalar_prefetch = 0 : i64, scratch_operands = 1 : i64, tpu.core_type = #tpu.core_type<tc>, window_params = [{transform_indices = @transform_0, window_bounds = array<i64: 8, 256>}, {transform_indices = @transform_1, window_bounds = array<i64: 256, 256>}, {transform_indices = @transform_2, window_bounds = array<i64: 1, 256>}, {transform_indices = @transform_3, window_bounds = array<i64: 1, 256>}, {transform_indices = @transform_4, window_bounds = array<i64: 8, 256>}]} {
    %c0_i32 = arith.constant 0 : i32
    %0 = arith.cmpi eq, %arg2, %c0_i32 : i32
    %1 = arith.extui %0 : i1 to i32
    %c0_i32_0 = arith.constant 0 : i32
    %2 = arith.cmpi ne, %1, %c0_i32_0 : i32
    scf.if %2 {
      %cst_9 = arith.constant 0.000000e+00 : f32
      %12 = vector.broadcast %cst_9 : f32 to vector<8x256xf32>
      %c0_10 = arith.constant 0 : index
      %c0_11 = arith.constant 0 : index
      %13 = vector.load %arg8[%c0_10, %c0_11] : memref<8x256xf32, #tpu.memory_space<vmem>>, vector<8x256xf32>
      tpu.vector_store %arg8[%c0_10, %c0_11], %12 {strides = array<i32>} : memref<8x256xf32, #tpu.memory_space<vmem>>, vector<8x256xf32>,
    } else {
    }
    %c0 = arith.constant 0 : index
    %c0_1 = arith.constant 0 : index
    %3 = vector.load %arg8[%c0, %c0_1] : memref<8x256xf32, #tpu.memory_space<vmem>>, vector<8x256xf32>
    %c0_2 = arith.constant 0 : index
    %c0_3 = arith.constant 0 : index
    %4 = vector.load %arg3[%c0_2, %c0_3] : memref<8x256xbf16, #tpu.memory_space<vmem>>, vector<8x256xbf16>
    %c0_4 = arith.constant 0 : index
    %c0_5 = arith.constant 0 : index
    %5 = vector.load %arg4[%c0_4, %c0_5] : memref<256x256xbf16, #tpu.memory_space<vmem>>, vector<256x256xbf16>
    %cst = arith.constant dense<0.000000e+00> : vector<8x256xf32>
    %6 = tpu.matmul %4, %5, %cst {dimension_numbers = #tpu.dot_dimension_numbers<[1], [0], [0], [1], [0, 0, 1, 1], [], []>} : vector<8x256xbf16>, vector<256x256xbf16>, vector<8x256xf32> -> vector<8x256xf32>
    %7 = arith.addf %3, %6 : vector<8x256xf32>
    %c0_6 = arith.constant 0 : index
    %c0_7 = arith.constant 0 : index
    %8 = vector.load %arg8[%c0_6, %c0_7] : memref<8x256xf32, #tpu.memory_space<vmem>>, vector<8x256xf32>
    tpu.vector_store %arg8[%c0_6, %c0_7], %7 {strides = array<i32>} : memref<8x256xf32, #tpu.memory_space<vmem>>, vector<8x256xf32>,
    %c17_i32 = arith.constant 17 : i32
    %9 = arith.cmpi eq, %arg2, %c17_i32 : i32
    %10 = arith.extui %9 : i1 to i32
    %c0_i32_8 = arith.constant 0 : i32
    %11 = arith.cmpi ne, %10, %c0_i32_8 : i32
    scf.if %11 {
      %c0_9 = arith.constant 0 : index
      %c0_10 = arith.constant 0 : index
      %12 = vector.load %arg8[%c0_9, %c0_10] : memref<8x256xf32, #tpu.memory_space<vmem>>, vector<8x256xf32>
      %c0_11 = arith.constant 0 : index
      %c0_12 = arith.constant 0 : index
      %13 = vector.load %arg5[%c0_11, %c0_12] : memref<1x256xf32, #tpu.memory_space<vmem>>, vector<1x256xf32>
      %14 = vector.broadcast %13 : vector<1x256xf32> to vector<8x256xf32>
      %15 = arith.mulf %12, %14 : vector<8x256xf32>
      %c0_13 = arith.constant 0 : index
      %c0_14 = arith.constant 0 : index
      %16 = vector.load %arg6[%c0_13, %c0_14] : memref<1x256xf32, #tpu.memory_space<vmem>>, vector<1x256xf32>
      %17 = vector.broadcast %16 : vector<1x256xf32> to vector<8x256xf32>
      %18 = arith.addf %15, %17 : vector<8x256xf32>
      %cst_15 = arith.constant 0.000000e+00 : f32
      %19 = vector.broadcast %cst_15 : f32 to vector<8x256xf32>
      %20 = arith.maximumf %18, %19 : vector<8x256xf32>
      %21 = arith.truncf %20 : vector<8x256xf32> to vector<8x256xbf16>
      %c0_16 = arith.constant 0 : index
      %c0_17 = arith.constant 0 : index
      %22 = vector.load %arg7[%c0_16, %c0_17] : memref<8x256xbf16, #tpu.memory_space<vmem>>, vector<8x256xbf16>
      tpu.vector_store %arg7[%c0_16, %c0_17], %21 {strides = array<i32>} : memref<8x256xbf16, #tpu.memory_space<vmem>>, vector<8x256xbf16>,
    } else {
    }
    return
  }
  func.func @transform_0(%arg0: i32, %arg1: i32, %arg2: i32) -> (i32, i32) {
    %c0_i32 = arith.constant 0 : i32
    return %arg0, %arg2 : i32, i32
  }
  func.func @transform_1(%arg0: i32, %arg1: i32, %arg2: i32) -> (i32, i32) {
    %c0_i32 = arith.constant 0 : i32
    return %arg2, %arg1 : i32, i32
  }
  func.func @transform_2(%arg0: i32, %arg1: i32, %arg2: i32) -> (i32, i32) {
    %c0_i32 = arith.constant 0 : i32
    %c0_i32_0 = arith.constant 0 : i32
    return %c0_i32, %arg1 : i32, i32
  }
  func.func @transform_3(%arg0: i32, %arg1: i32, %arg2: i32) -> (i32, i32) {
    %c0_i32 = arith.constant 0 : i32
    %c0_i32_0 = arith.constant 0 : i32
    return %c0_i32, %arg1 : i32, i32
  }
  func.func @transform_4(%arg0: i32, %arg1: i32, %arg2: i32) -> (i32, i32) {
    %c0_i32 = arith.constant 0 : i32
    return %arg0, %arg1 : i32, i32
  }
}

module attributes {stable_mosaic.version = 11 : i64} {
  func.func @kernel(%arg0: i32, %arg1: i32, %arg2: i32, %arg3: memref<8x512xbf16, #tpu.memory_space<vmem>>, %arg4: memref<512x128xbf16, #tpu.memory_space<vmem>>, %arg5: memref<1x128xf32, #tpu.memory_space<vmem>>, %arg6: memref<1x128xf32, #tpu.memory_space<vmem>>, %arg7: memref<8x128xf32, #tpu.memory_space<vmem>>, %arg8: memref<8x128xf32, #tpu.memory_space<vmem>>) attributes {dimension_semantics = [#tpu.dimension_semantics<parallel>, #tpu.dimension_semantics<parallel>, #tpu.dimension_semantics<arbitrary>], iteration_bounds = array<i64: 1, 1, 1>, scalar_prefetch = 0 : i64, scratch_operands = 1 : i64, tpu.core_type = #tpu.core_type<tc>, window_params = [{transform_indices = @transform_0, window_bounds = array<i64: 8, 512>}, {transform_indices = @transform_1, window_bounds = array<i64: 512, 128>}, {transform_indices = @transform_2, window_bounds = array<i64: 1, 128>}, {transform_indices = @transform_3, window_bounds = array<i64: 1, 128>}, {transform_indices = @transform_4, window_bounds = array<i64: 8, 128>}]} {
    %c0_i32 = arith.constant 0 : i32
    %0 = arith.cmpi eq, %arg2, %c0_i32 : i32
    %1 = arith.extui %0 : i1 to i32
    %c0_i32_0 = arith.constant 0 : i32
    %2 = arith.cmpi ne, %1, %c0_i32_0 : i32
    scf.if %2 {
      %cst_10 = arith.constant 0.000000e+00 : f32
      %12 = vector.broadcast %cst_10 : f32 to vector<8x128xf32>
      %c0_11 = arith.constant 0 : index
      %c0_12 = arith.constant 0 : index
      %13 = vector.load %arg8[%c0_11, %c0_12] : memref<8x128xf32, #tpu.memory_space<vmem>>, vector<8x128xf32>
      tpu.vector_store %arg8[%c0_11, %c0_12], %12 {strides = array<i32>} : memref<8x128xf32, #tpu.memory_space<vmem>>, vector<8x128xf32>,
    } else {
    }
    %c0 = arith.constant 0 : index
    %c0_1 = arith.constant 0 : index
    %3 = vector.load %arg8[%c0, %c0_1] : memref<8x128xf32, #tpu.memory_space<vmem>>, vector<8x128xf32>
    %c0_2 = arith.constant 0 : index
    %c0_3 = arith.constant 0 : index
    %4 = vector.load %arg3[%c0_2, %c0_3] : memref<8x512xbf16, #tpu.memory_space<vmem>>, vector<8x512xbf16>
    %c0_4 = arith.constant 0 : index
    %c0_5 = arith.constant 0 : index
    %5 = vector.load %arg4[%c0_4, %c0_5] : memref<512x128xbf16, #tpu.memory_space<vmem>>, vector<512x128xbf16>
    %cst = arith.constant dense<0.000000e+00> : vector<8x128xf32>
    %6 = tpu.matmul %4, %5, %cst {dimension_numbers = #tpu.dot_dimension_numbers<[1], [0], [0], [1], [0, 0, 1, 1], [], []>} : vector<8x512xbf16>, vector<512x128xbf16>, vector<8x128xf32> -> vector<8x128xf32>
    %7 = arith.addf %3, %6 : vector<8x128xf32>
    %c0_6 = arith.constant 0 : index
    %c0_7 = arith.constant 0 : index
    %8 = vector.load %arg8[%c0_6, %c0_7] : memref<8x128xf32, #tpu.memory_space<vmem>>, vector<8x128xf32>
    tpu.vector_store %arg8[%c0_6, %c0_7], %7 {strides = array<i32>} : memref<8x128xf32, #tpu.memory_space<vmem>>, vector<8x128xf32>,
    %c0_i32_8 = arith.constant 0 : i32
    %9 = arith.cmpi eq, %arg2, %c0_i32_8 : i32
    %10 = arith.extui %9 : i1 to i32
    %c0_i32_9 = arith.constant 0 : i32
    %11 = arith.cmpi ne, %10, %c0_i32_9 : i32
    scf.if %11 {
      %c0_10 = arith.constant 0 : index
      %c0_11 = arith.constant 0 : index
      %12 = vector.load %arg8[%c0_10, %c0_11] : memref<8x128xf32, #tpu.memory_space<vmem>>, vector<8x128xf32>
      %c0_12 = arith.constant 0 : index
      %c0_13 = arith.constant 0 : index
      %13 = vector.load %arg5[%c0_12, %c0_13] : memref<1x128xf32, #tpu.memory_space<vmem>>, vector<1x128xf32>
      %14 = vector.broadcast %13 : vector<1x128xf32> to vector<8x128xf32>
      %15 = arith.mulf %12, %14 : vector<8x128xf32>
      %c0_14 = arith.constant 0 : index
      %c0_15 = arith.constant 0 : index
      %16 = vector.load %arg6[%c0_14, %c0_15] : memref<1x128xf32, #tpu.memory_space<vmem>>, vector<1x128xf32>
      %17 = vector.broadcast %16 : vector<1x128xf32> to vector<8x128xf32>
      %18 = arith.addf %15, %17 : vector<8x128xf32>
      %c0_16 = arith.constant 0 : index
      %c0_17 = arith.constant 0 : index
      %19 = vector.load %arg7[%c0_16, %c0_17] : memref<8x128xf32, #tpu.memory_space<vmem>>, vector<8x128xf32>
      tpu.vector_store %arg7[%c0_16, %c0_17], %18 {strides = array<i32>} : memref<8x128xf32, #tpu.memory_space<vmem>>, vector<8x128xf32>,
    } else {
    }
    return
  }
  func.func @transform_0(%arg0: i32, %arg1: i32, %arg2: i32) -> (i32, i32) {
    %c0_i32 = arith.constant 0 : i32
    return %arg0, %arg2 : i32, i32
  }
  func.func @transform_1(%arg0: i32, %arg1: i32, %arg2: i32) -> (i32, i32) {
    %c0_i32 = arith.constant 0 : i32
    return %arg2, %arg1 : i32, i32
  }
  func.func @transform_2(%arg0: i32, %arg1: i32, %arg2: i32) -> (i32, i32) {
    %c0_i32 = arith.constant 0 : i32
    %c0_i32_0 = arith.constant 0 : i32
    return %c0_i32, %arg1 : i32, i32
  }
  func.func @transform_3(%arg0: i32, %arg1: i32, %arg2: i32) -> (i32, i32) {
    %c0_i32 = arith.constant 0 : i32
    %c0_i32_0 = arith.constant 0 : i32
    return %c0_i32, %arg1 : i32, i32
  }
  func.func @transform_4(%arg0: i32, %arg1: i32, %arg2: i32) -> (i32, i32) {
    %c0_i32 = arith.constant 0 : i32
    return %arg0, %arg1 : i32, i32
  }
}

</mosaic_0001>

<bundles_post_ra>
// kernel: pretrained_cnn_forward.21
= control target key start
LH: loop header
LB: loop body
LE: loop exit
PB: predicated region body
PF: predicated region fallthrough
CT: control target
= control target key end

     0   :  { %v2251_v0 = vmov 0   ;;  %vm578_vm0 = vcmask 154624   ;;  %vm675_vm1 = vcmask 1040384   ;;  %vm676_vm2 = vcmask 1041408   ;;  %s2766_s1 = inlined_call_operand.vmem [shape: bf16[147,128], index: 1, kind: input, shape index: {}]   ;;  %s2767_s0 = inlined_call_operand.vmem [shape: bf16[512,147], index: 0, kind: input, shape index: {}]   ;;  %s2768_s2 = inlined_call_operand.vmem [shape: f32[1,128], index: 2, kind: input, shape index: {}]   ;;  %s2769_s3 = inlined_call_operand.vmem [shape: f32[1,128], index: 3, kind: input, shape index: {}]   ;;  %s2770_s4 = inlined_call_operand.vmem [shape: bf16[512,128], index: 4, kind: output, shape index: {}]  }
   0x1   :  { %682 = vmatprep.subr.bf16.mxu0 %v2251_v0  ;;  %2123 = vmatprep.subr.bf16.mxu1 %v2251_v0  ;;  %v2145_v1 = vld [vmem:[%s2766_s1] sm:$0xff]   ;;  %v2146_v2 = vld [vmem:[%s2766_s1 + $0x8] sm:$0xff]   ;;  %v2147_v3 = vld [vmem:[%s2766_s1 + $0x10] sm:$0xff]   ;;  %v2252_v11 = vmov 65535  }
   0x2   :  { %683 = vmatpush1.bf16.msra.mxu0 %v2145_v1  ;;  %2133 = vmatpush1.bf16.msra.mxu1 %v2145_v1  ;;  %v2148_v4 = vld [vmem:[%s2766_s1 + $0x18] sm:$0xff]   ;;  %v2157_v5 = vld [vmem:[%s2767_s0 + $0x4] ss:$8 sps:$4 sm:$0xff]   ;;  %v2151_v9 = vld [vmem:[%s2766_s1 + $0x30] sm:$0xff]   ;;  %v677_v12 = vsel %vm675_vm1, 4294967295, %v2252_v11 }
   0x3   :  { %684 = vmatprep.subr.bf16.mxu0 %v2251_v0  ;;  %2124 = vmatprep.subr.bf16.mxu1 %v2251_v0  ;;  %v2160_v6 = vld [vmem:[%s2767_s0 + $0x104] ss:$8 sps:$4 sm:$0xff]   ;;  %v2152_v10 = vld [vmem:[%s2766_s1 + $0x38] sm:$0xff]   ;;  %v2154_v14 = vld [vmem:[%s2766_s1 + $0x48] ss:$0 sps:$4 sm:$0x33]  }
   0x4   :  { %1770 = vmatprep.mubr.msk.bf16.mxu0 %vm578_vm0, %v2157_v5  ;;  %v2149_v7 = vld [vmem:[%s2766_s1 + $0x20] sm:$0xff]   ;;  %1786 = vmatprep.mubr.msk.bf16.mxu1 %vm578_vm0, %v2160_v6  ;;  %v2150_v8 = vld [vmem:[%s2766_s1 + $0x28] sm:$0xff]   ;;  %v678_v15 = vsel %vm676_vm2, %v677_v12, 0  ;;  %v2161_v19 = vld [vmem:[%s2767_s0 + $0x14] ss:$8 sps:$4 sm:$0xff]  }
   0x5   :  { %v2153_v13 = vld [vmem:[%s2766_s1 + $0x40] sm:$0xff]   ;;  %v680_v16 = vand.u32 %v2154_v14, %v678_v15  ;;  %v2163_v20 = vld [vmem:[%s2767_s0 + $0x114] ss:$8 sps:$4 sm:$0xff]   ;;  %v2165_v21 = vld [vmem:[%s2767_s0 + $0x10] ss:$8 sps:$4 sm:$0xff]  }
   0x6   :  { %685 = vmatpush1.bf16.msra.mxu0 %v2146_v2  ;;  %2134 = vmatpush1.bf16.msra.mxu1 %v2146_v2  ;;  %v2155_v17 = vld [vmem:[%s2767_s0] ss:$8 sps:$4 sm:$0xff]   ;;  %v2166_v22 = vld [vmem:[%s2767_s0 + $0x110] ss:$8 sps:$4 sm:$0xff]   ;;  %v2167_v23 = vld [vmem:[%s2767_s0 + $0x24] ss:$8 sps:$4 sm:$0xff]  }
   0x7   :  { %686 = vmatprep.subr.bf16.mxu0 %v2251_v0  ;;  %2125 = vmatprep.subr.bf16.mxu1 %v2251_v0  ;;  %v2158_v18 = vld [vmem:[%s2767_s0 + $0x100] ss:$8 sps:$4 sm:$0xff]   ;;  %v2169_v24 = vld [vmem:[%s2767_s0 + $0x124] ss:$8 sps:$4 sm:$0xff]   ;;  %v2173_v27 = vld [vmem:[%s2767_s0 + $0x34] ss:$8 sps:$4 sm:$0xff]  }
   0x8   :  { %v2171_v25 = vld [vmem:[%s2767_s0 + $0x20] ss:$8 sps:$4 sm:$0xff]   ;;  %v2175_v28 = vld [vmem:[%s2767_s0 + $0x134] ss:$8 sps:$4 sm:$0xff]   ;;  %v2177_v29 = vld [vmem:[%s2767_s0 + $0x30] ss:$8 sps:$4 sm:$0xff]  }
   0x9   :  { %v2172_v26 = vld [vmem:[%s2767_s0 + $0x120] ss:$8 sps:$4 sm:$0xff]   ;;  %v2178_v30 = vld [vmem:[%s2767_s0 + $0x130] ss:$8 sps:$4 sm:$0xff]   ;;  %v2179_v31 = vld [vmem:[%s2767_s0 + $0x44] ss:$8 sps:$4 sm:$0xff]  }
   0xa   :  { %687 = vmatpush1.bf16.msra.mxu0 %v2147_v3  ;;  %2135 = vmatpush1.bf16.msra.mxu1 %v2147_v3  ;;  %v2181_v32 = vld [vmem:[%s2767_s0 + $0x144] ss:$8 sps:$4 sm:$0xff]   ;;  %v2183_v33 = vld [vmem:[%s2767_s0 + $0x40] ss:$8 sps:$4 sm:$0xff]   ;;  %v2185_v35 = vld [vmem:[%s2767_s0 + $0x54] ss:$8 sps:$4 sm:$0xff]  }
   0xb   :  { %688 = vmatprep.subr.bf16.mxu0 %v2251_v0  ;;  %2126 = vmatprep.subr.bf16.mxu1 %v2251_v0  ;;  %v2184_v34 = vld [vmem:[%s2767_s0 + $0x140] ss:$8 sps:$4 sm:$0xff]   ;;  %v2187_v36 = vld [vmem:[%s2767_s0 + $0x154] ss:$8 sps:$4 sm:$0xff]   ;;  %v2189_v37 = vld [vmem:[%s2767_s0 + $0x50] ss:$8 sps:$4 sm:$0xff]  }
   0xc   :  { %v2190_v38 = vld [vmem:[%s2767_s0 + $0x150] ss:$8 sps:$4 sm:$0xff]   ;;  %v2191_v39 = vld [vmem:[%s2767_s0 + $0x64] ss:$8 sps:$4 sm:$0xff]   ;;  %v2195_v41 = vld [vmem:[%s2767_s0 + $0x60] ss:$8 sps:$4 sm:$0xff]  }
   0xd   :  { %v2193_v40 = vld [vmem:[%s2767_s0 + $0x164] ss:$8 sps:$4 sm:$0xff]   ;;  %v2196_v42 = vld [vmem:[%s2767_s0 + $0x160] ss:$8 sps:$4 sm:$0xff]   ;;  %v2197_v43 = vld [vmem:[%s2767_s0 + $0x74] ss:$8 sps:$4 sm:$0xff]  }
   0xe   :  { %689 = vmatpush1.bf16.msra.mxu0 %v2148_v4  ;;  %2136 = vmatpush1.bf16.msra.mxu1 %v2148_v4  ;;  %v2199_v44 = vld [vmem:[%s2767_s0 + $0x174] ss:$8 sps:$4 sm:$0xff]   ;;  %v2201_v45 = vld [vmem:[%s2767_s0 + $0x70] ss:$8 sps:$4 sm:$0xff]   ;;  %v2203_v47 = vld [vmem:[%s2767_s0 + $0x84] ss:$8 sps:$4 sm:$0xff]  }
   0xf   :  { %690 = vmatprep.subr.bf16.mxu0 %v2251_v0  ;;  %2127 = vmatprep.subr.bf16.mxu1 %v2251_v0  ;;  %v2202_v46 = vld [vmem:[%s2767_s0 + $0x170] ss:$8 sps:$4 sm:$0xff]   ;;  %v2205_v48 = vld [vmem:[%s2767_s0 + $0x184] ss:$8 sps:$4 sm:$0xff]   ;;  %v2207_v49 = vld [vmem:[%s2767_s0 + $0x80] ss:$8 sps:$4 sm:$0xff]  }
  0x10   :  { %v2208_v50 = vld [vmem:[%s2767_s0 + $0x180] ss:$8 sps:$4 sm:$0xff]   ;;  %v2209_v51 = vld [vmem:[%s2767_s0 + $0x94] ss:$8 sps:$4 sm:$0xff]   ;;  %v2213_v53 = vld [vmem:[%s2767_s0 + $0x90] ss:$8 sps:$4 sm:$0xff]  }
  0x11   :  { %v2211_v52 = vld [vmem:[%s2767_s0 + $0x194] ss:$8 sps:$4 sm:$0xff]   ;;  %v2214_v54 = vld [vmem:[%s2767_s0 + $0x190] ss:$8 sps:$4 sm:$0xff]   ;;  %v2215_v55 = vld [vmem:[%s2767_s0 + $0xa4] ss:$8 sps:$4 sm:$0xff]  }
  0x12   :  { %691 = vmatpush1.bf16.msra.mxu0 %v2149_v7  ;;  %2137 = vmatpush1.bf16.msra.mxu1 %v2149_v7  ;;  %v2217_v56 = vld [vmem:[%s2767_s0 + $0x1a4] ss:$8 sps:$4 sm:$0xff]   ;;  %v2219_v57 = vld [vmem:[%s2767_s0 + $0xa0] ss:$8 sps:$4 sm:$0xff]   ;;  %v2221_v59 = vld [vmem:[%s2767_s0 + $0xb4] ss:$8 sps:$4 sm:$0xff]  }
  0x13   :  { %692 = vmatprep.subr.bf16.mxu0 %v2251_v0  ;;  %2128 = vmatprep.subr.bf16.mxu1 %v2251_v0  ;;  %v2220_v58 = vld [vmem:[%s2767_s0 + $0x1a0] ss:$8 sps:$4 sm:$0xff]   ;;  %v2223_v60 = vld [vmem:[%s2767_s0 + $0x1b4] ss:$8 sps:$4 sm:$0xff]   ;;  %v2225_v61 = vld [vmem:[%s2767_s0 + $0xb0] ss:$8 sps:$4 sm:$0xff]  }
  0x14   :  { %v2226_v62 = vld [vmem:[%s2767_s0 + $0x1b0] ss:$8 sps:$4 sm:$0xff]   ;;  %v2227_v63 = vld [vmem:[%s2767_s0 + $0xc4] ss:$8 sps:$4 sm:$0xff]   ;;  %v2231_v1 = vld [vmem:[%s2767_s0 + $0xc0] ss:$8 sps:$4 sm:$0xff]  }
  0x15   :  { %v2232_v2 = vld [vmem:[%s2767_s0 + $0x1c0] ss:$8 sps:$4 sm:$0xff]   ;;  %v2233_v3 = vld [vmem:[%s2767_s0 + $0xd4] ss:$8 sps:$4 sm:$0xff]   ;;  %v2237_v5 = vld [vmem:[%s2767_s0 + $0xd0] ss:$8 sps:$4 sm:$0xff]  }
  0x16   :  { %693 = vmatpush1.bf16.msra.mxu0 %v2150_v8  ;;  %2138 = vmatpush1.bf16.msra.mxu1 %v2150_v8  ;;  %v2235_v4 = vld [vmem:[%s2767_s0 + $0x1d4] ss:$8 sps:$4 sm:$0xff]   ;;  %v2238_v6 = vld [vmem:[%s2767_s0 + $0x1d0] ss:$8 sps:$4 sm:$0xff]   ;;  %v2239_v7 = vld [vmem:[%s2767_s0 + $0xe4] ss:$8 sps:$4 sm:$0xff]  }
  0x17   :  { %694 = vmatprep.subr.bf16.mxu0 %v2251_v0  ;;  %2129 = vmatprep.subr.bf16.mxu1 %v2251_v0  ;;  %v2241_v8 = vld [vmem:[%s2767_s0 + $0x1e4] ss:$8 sps:$4 sm:$0xff]   ;;  %v2245_v11 = vld [vmem:[%s2767_s0 + $0xf4] ss:$8 sps:$4 sm:$0xff]   ;;  %v2250_v14 = vld [vmem:[%s2767_s0 + $0x1f0] ss:$8 sps:$4 sm:$0xff]  }
  0x18   :  { %v2247_v12 = vld [vmem:[%s2767_s0 + $0x1f4] ss:$8 sps:$4 sm:$0xff]   ;;  %v2535_v15 = vld [vmem:[%s2768_s2] ss:$0 sm:$0xff] }
  0x1a   :  { %695 = vmatpush1.bf16.msra.mxu0 %v2151_v9  ;;  %2139 = vmatpush1.bf16.msra.mxu1 %v2151_v9  ;;  %v2243_v9 = vld [vmem:[%s2767_s0 + $0xe0] ss:$8 sps:$4 sm:$0xff]  }
  0x1b   :  { %696 = vmatprep.subr.bf16.mxu0 %v2251_v0  ;;  %2130 = vmatprep.subr.bf16.mxu1 %v2251_v0 }
  0x1e   :  { %697 = vmatpush1.bf16.msra.mxu0 %v2152_v10  ;;  %2140 = vmatpush1.bf16.msra.mxu1 %v2152_v10  ;;  %v2244_v10 = vld [vmem:[%s2767_s0 + $0x1e0] ss:$8 sps:$4 sm:$0xff]  }
  0x1f   :  { %698 = vmatprep.subr.bf16.mxu0 %v2251_v0  ;;  %2131 = vmatprep.subr.bf16.mxu1 %v2251_v0 }
  0x22   :  { %699 = vmatpush1.bf16.msra.mxu0 %v2153_v13  ;;  %2141 = vmatpush1.bf16.msra.mxu1 %v2153_v13  ;;  %v2249_v13 = vld [vmem:[%s2767_s0 + $0xf0] ss:$8 sps:$4 sm:$0xff]  }
  0x23   :  { %700 = vmatprep.subr.bf16.mxu0 %v2251_v0  ;;  %2132 = vmatprep.subr.bf16.mxu1 %v2251_v0  ;;  %v2229_v0 = vld [vmem:[%s2767_s0 + $0x1c4] ss:$8 sps:$4 sm:$0xff]  }
  0x26   :  { %701 = vmatpush1.bf16.msra.mxu0 %v680_v16  ;;  %2142 = vmatpush1.bf16.msra.mxu1 %v680_v16 }
  0x29   :  { %715 = vmatmul.mubr.bf16.vlgmr.msra.gmra.mrb[0].mxu0 %v2155_v17  ;;  %843 = vmatmul.mubr.bf16.vlgmr.msra.gmra.mrb[0].mxu1 %v2158_v18  ;;  %v2540_v17 = vld [vmem:[%s2769_s3] ss:$0 sm:$0xff] }
  0x2a   :  { %1771 = vmatprep.mubr.msk.bf16.mxu0 %vm578_vm0, %v2161_v19  ;;  %1787 = vmatprep.mubr.msk.bf16.mxu1 %vm578_vm0, %v2163_v20 }
  0x31   :  { %723 = vmatmul.mubr.bf16.gmra.mrb[4].mxu0 %v2165_v21  ;;  %851 = vmatmul.mubr.bf16.gmra.mrb[4].mxu1 %v2166_v22 }
  0x32   :  { %1772 = vmatprep.mubr.msk.bf16.mxu0 %vm578_vm0, %v2167_v23  ;;  %1788 = vmatprep.mubr.msk.bf16.mxu1 %vm578_vm0, %v2169_v24 }
  0x39   :  { %731 = vmatmul.mubr.bf16.gmra.mrb[8].mxu0 %v2171_v25  ;;  %859 = vmatmul.mubr.bf16.gmra.mrb[8].mxu1 %v2172_v26 }
  0x3a   :  { %1773 = vmatprep.mubr.msk.bf16.mxu0 %vm578_vm0, %v2173_v27  ;;  %1789 = vmatprep.mubr.msk.bf16.mxu1 %vm578_vm0, %v2175_v28 }
  0x41   :  { %739 = vmatmul.mubr.bf16.gmra.mrb[12].mxu0 %v2177_v29  ;;  %867 = vmatmul.mubr.bf16.gmra.mrb[12].mxu1 %v2178_v30 }
  0x42   :  { %1774 = vmatprep.mubr.msk.bf16.mxu0 %vm578_vm0, %v2179_v31  ;;  %1790 = vmatprep.mubr.msk.bf16.mxu1 %vm578_vm0, %v2181_v32 }
  0x49   :  { %747 = vmatmul.mubr.bf16.gmra.mrb[16].mxu0 %v2183_v33  ;;  %875 = vmatmul.mubr.bf16.gmra.mrb[16].mxu1 %v2184_v34 }
  0x4a   :  { %1775 = vmatprep.mubr.msk.bf16.mxu0 %vm578_vm0, %v2185_v35  ;;  %1791 = vmatprep.mubr.msk.bf16.mxu1 %vm578_vm0, %v2187_v36 }
  0x51   :  { %755 = vmatmul.mubr.bf16.gmra.mrb[20].mxu0 %v2189_v37  ;;  %883 = vmatmul.mubr.bf16.gmra.mrb[20].mxu1 %v2190_v38 }
  0x52   :  { %1776 = vmatprep.mubr.msk.bf16.mxu0 %vm578_vm0, %v2191_v39  ;;  %1792 = vmatprep.mubr.msk.bf16.mxu1 %vm578_vm0, %v2193_v40 }
  0x59   :  { %763 = vmatmul.mubr.bf16.gmra.mrb[24].mxu0 %v2195_v41  ;;  %891 = vmatmul.mubr.bf16.gmra.mrb[24].mxu1 %v2196_v42 }
  0x5a   :  { %1777 = vmatprep.mubr.msk.bf16.mxu0 %vm578_vm0, %v2197_v43  ;;  %1793 = vmatprep.mubr.msk.bf16.mxu1 %vm578_vm0, %v2199_v44 }
  0x61   :  { %771 = vmatmul.mubr.bf16.gmra.mrb[28].mxu0 %v2201_v45  ;;  %899 = vmatmul.mubr.bf16.gmra.mrb[28].mxu1 %v2202_v46 }
  0x62   :  { %1778 = vmatprep.mubr.msk.bf16.mxu0 %vm578_vm0, %v2203_v47  ;;  %1794 = vmatprep.mubr.msk.bf16.mxu1 %vm578_vm0, %v2205_v48 }
  0x69   :  { %779 = vmatmul.mubr.bf16.gmra.mrb[32].mxu0 %v2207_v49  ;;  %907 = vmatmul.mubr.bf16.gmra.mrb[32].mxu1 %v2208_v50 }
  0x6a   :  { %1779 = vmatprep.mubr.msk.bf16.mxu0 %vm578_vm0, %v2209_v51  ;;  %1795 = vmatprep.mubr.msk.bf16.mxu1 %vm578_vm0, %v2211_v52 }
  0x71   :  { %787 = vmatmul.mubr.bf16.gmra.mrb[36].mxu0 %v2213_v53  ;;  %915 = vmatmul.mubr.bf16.gmra.mrb[36].mxu1 %v2214_v54 }
  0x72   :  { %1780 = vmatprep.mubr.msk.bf16.mxu0 %vm578_vm0, %v2215_v55  ;;  %1796 = vmatprep.mubr.msk.bf16.mxu1 %vm578_vm0, %v2217_v56 }
  0x79   :  { %795 = vmatmul.mubr.bf16.gmra.mrb[40].mxu0 %v2219_v57  ;;  %923 = vmatmul.mubr.bf16.gmra.mrb[40].mxu1 %v2220_v58 }
  0x7a   :  { %1781 = vmatprep.mubr.msk.bf16.mxu0 %vm578_vm0, %v2221_v59  ;;  %1797 = vmatprep.mubr.msk.bf16.mxu1 %vm578_vm0, %v2223_v60 }
  0x81   :  { %803 = vmatmul.mubr.bf16.gmra.mrb[44].mxu0 %v2225_v61  ;;  %931 = vmatmul.mubr.bf16.gmra.mrb[44].mxu1 %v2226_v62 }
  0x82   :  { %1782 = vmatprep.mubr.msk.bf16.mxu0 %vm578_vm0, %v2227_v63  ;;  %1798 = vmatprep.mubr.msk.bf16.mxu1 %vm578_vm0, %v2229_v0 }
  0x89   :  { %811 = vmatmul.mubr.bf16.gmra.mrb[48].mxu0 %v2231_v1  ;;  %939 = vmatmul.mubr.bf16.gmra.mrb[48].mxu1 %v2232_v2 }
  0x8a   :  { %1783 = vmatprep.mubr.msk.bf16.mxu0 %vm578_vm0, %v2233_v3  ;;  %1799 = vmatprep.mubr.msk.bf16.mxu1 %vm578_vm0, %v2235_v4 }
  0x91   :  { %819 = vmatmul.mubr.bf16.gmra.mrb[52].mxu0 %v2237_v5  ;;  %947 = vmatmul.mubr.bf16.gmra.mrb[52].mxu1 %v2238_v6 }
  0x92   :  { %1784 = vmatprep.mubr.msk.bf16.mxu0 %vm578_vm0, %v2239_v7  ;;  %1800 = vmatprep.mubr.msk.bf16.mxu1 %vm578_vm0, %v2241_v8 }
  0x99   :  { %827 = vmatmul.mubr.bf16.gmra.mrb[56].mxu0 %v2243_v9  ;;  %955 = vmatmul.mubr.bf16.gmra.mrb[56].mxu1 %v2244_v10 }
  0x9a   :  { %1785 = vmatprep.mubr.msk.bf16.mxu0 %vm578_vm0, %v2245_v11  ;;  %1801 = vmatprep.mubr.msk.bf16.mxu1 %vm578_vm0, %v2247_v12 }
  0xa1   :  { %835 = vmatmul.mubr.bf16.gmra.mrb[60].mxu0 %v2249_v13  ;;  %963 = vmatmul.mubr.bf16.gmra.mrb[60].mxu1 %v2250_v14 }
  0xfc   :  { %v716_v16 = vpop.f32.mrb[0].mxu0  ;;  %v844_v18 = vpop.f32.mrb[0].mxu1 }
  0xfd   :  { %v1173_v19 = vmul.f32 %v2535_v15, %v716_v16  ;;  %v1205_v20 = vmul.f32 %v2535_v15, %v844_v18  ;;  %v718_v21 = vpop.f32.mrb[1].mxu0  ;;  %v846_v22 = vpop.f32.mrb[1].mxu1 }
  0xfe   :  { %v719_v23 = vpop.f32.mrb[2].mxu0  ;;  %v847_v24 = vpop.f32.mrb[2].mxu1 }
  0xff   :  { %v1244_v25 = vadd.f32 %v2540_v17, %v1173_v19  ;;  %v1276_v26 = vadd.f32 %v2540_v17, %v1205_v20  ;;  %v1174_v27 = vmul.f32 %v2535_v15, %v719_v23  ;;  %v1206_v28 = vmul.f32 %v2535_v15, %v847_v24  ;;  %v721_v29 = vpop.f32.mrb[3].mxu0  ;;  %v849_v30 = vpop.f32.mrb[3].mxu1 }
 0x101   :  { %v1245_v31 = vadd.f32 %v2540_v17, %v1174_v27  ;;  %v1277_v32 = vadd.f32 %v2540_v17, %v1206_v28  ;;  %v1308_v33 = vmax.f32 %v1244_v25, 0.0  ;;  %v1340_v34 = vmax.f32 %v1276_v26, 0.0 }
 0x103   :  { %v1309_v35 = vmax.f32 %v1245_v31, 0.0  ;;  %v1341_v36 = vmax.f32 %v1277_v32, 0.0 }
 0x104   :  { %v724_v37 = vpop.f32.mrb[4].mxu0  ;;  %v852_v38 = vpop.f32.mrb[4].mxu1 }
 0x105   :  { %v1935_v39 = vpack.c.bf16 %v1309_v35, %v1308_v33  ;;  %v2015_v40 = vpack.c.bf16 %v1341_v36, %v1340_v34  ;;  %v1175_v41 = vmul.f32 %v2535_v15, %v724_v37  ;;  %v1207_v42 = vmul.f32 %v2535_v15, %v852_v38  ;;  %v726_v43 = vpop.f32.mrb[5].mxu0  ;;  %v854_v44 = vpop.f32.mrb[5].mxu1 }
 0x106   :  { %v727_v45 = vpop.f32.mrb[6].mxu0  ;;  %v855_v46 = vpop.f32.mrb[6].mxu1 }
 0x107   :  { %1936 = vst [vmem:[%s2770_s4] sm:$0xff] %v1935_v39   ;;  %2107 = vst [vmem:[%s2770_s4 + $0x80] sm:$0xff] %v2015_v40   ;;  %v1246_v47 = vadd.f32 %v2540_v17, %v1175_v41  ;;  %v1278_v48 = vadd.f32 %v2540_v17, %v1207_v42  ;;  %v1176_v49 = vmul.f32 %v2535_v15, %v727_v45  ;;  %v729_v51 = vpop.f32.mrb[7].mxu0  ;;  %v857_v52 = vpop.f32.mrb[7].mxu1 }
 0x108   :  { %v1208_v50 = vmul.f32 %v2535_v15, %v855_v46 }
 0x109   :  { %v1247_v53 = vadd.f32 %v2540_v17, %v1176_v49  ;;  %v1310_v55 = vmax.f32 %v1246_v47, 0.0  ;;  %v1342_v56 = vmax.f32 %v1278_v48, 0.0 }
 0x10a   :  { %v1279_v54 = vadd.f32 %v2540_v17, %v1208_v50 }
 0x10b   :  { %v1311_v57 = vmax.f32 %v1247_v53, 0.0 }
 0x10c   :  { %v1343_v58 = vmax.f32 %v1279_v54, 0.0  ;;  %v732_v59 = vpop.f32.mrb[8].mxu0  ;;  %v860_v60 = vpop.f32.mrb[8].mxu1 }
 0x10d   :  { %v1940_v61 = vpack.c.bf16 %v1311_v57, %v1310_v55  ;;  %v1177_v63 = vmul.f32 %v2535_v15, %v732_v59  ;;  %v1209_v0 = vmul.f32 %v2535_v15, %v860_v60  ;;  %v734_v1 = vpop.f32.mrb[9].mxu0  ;;  %v862_v2 = vpop.f32.mrb[9].mxu1 }
 0x10e   :  { %v2020_v62 = vpack.c.bf16 %v1343_v58, %v1342_v56  ;;  %v735_v3 = vpop.f32.mrb[10].mxu0  ;;  %v863_v4 = vpop.f32.mrb[10].mxu1 }
 0x10f   :  { %2092 = vst [vmem:[%s2770_s4 + $0x8] sm:$0xff] %v1940_v61   ;;  %v1248_v5 = vadd.f32 %v2540_v17, %v1177_v63  ;;  %v1280_v6 = vadd.f32 %v2540_v17, %v1209_v0  ;;  %v1178_v7 = vmul.f32 %v2535_v15, %v735_v3  ;;  %v1210_v8 = vmul.f32 %v2535_v15, %v863_v4  ;;  %v737_v9 = vpop.f32.mrb[11].mxu0  ;;  %v865_v10 = vpop.f32.mrb[11].mxu1 }
 0x110   :  { %2108 = vst [vmem:[%s2770_s4 + $0x88] sm:$0xff] %v2020_v62  }
 0x111   :  { %v1249_v11 = vadd.f32 %v2540_v17, %v1178_v7  ;;  %v1281_v12 = vadd.f32 %v2540_v17, %v1210_v8  ;;  %v1312_v13 = vmax.f32 %v1248_v5, 0.0  ;;  %v1344_v14 = vmax.f32 %v1280_v6, 0.0 }
 0x113   :  { %v1313_v16 = vmax.f32 %v1249_v11, 0.0  ;;  %v1345_v18 = vmax.f32 %v1281_v12, 0.0 }
 0x114   :  { %v740_v19 = vpop.f32.mrb[12].mxu0  ;;  %v868_v20 = vpop.f32.mrb[12].mxu1 }
 0x115   :  { %v1945_v21 = vpack.c.bf16 %v1313_v16, %v1312_v13  ;;  %v2025_v22 = vpack.c.bf16 %v1345_v18, %v1344_v14  ;;  %v1179_v23 = vmul.f32 %v2535_v15, %v740_v19  ;;  %v1211_v24 = vmul.f32 %v2535_v15, %v868_v20  ;;  %v742_v25 = vpop.f32.mrb[13].mxu0  ;;  %v870_v26 = vpop.f32.mrb[13].mxu1 }
 0x116   :  { %v743_v27 = vpop.f32.mrb[14].mxu0  ;;  %v871_v28 = vpop.f32.mrb[14].mxu1 }
 0x117   :  { %2093 = vst [vmem:[%s2770_s4 + $0x10] sm:$0xff] %v1945_v21   ;;  %2109 = vst [vmem:[%s2770_s4 + $0x90] sm:$0xff] %v2025_v22   ;;  %v1250_v29 = vadd.f32 %v2540_v17, %v1179_v23  ;;  %v1282_v30 = vadd.f32 %v2540_v17, %v1211_v24  ;;  %v1180_v31 = vmul.f32 %v2535_v15, %v743_v27  ;;  %v745_v33 = vpop.f32.mrb[15].mxu0  ;;  %v873_v34 = vpop.f32.mrb[15].mxu1 }
 0x118   :  { %v1212_v32 = vmul.f32 %v2535_v15, %v871_v28 }
 0x119   :  { %v1251_v35 = vadd.f32 %v2540_v17, %v1180_v31  ;;  %v1314_v37 = vmax.f32 %v1250_v29, 0.0  ;;  %v1346_v38 = vmax.f32 %v1282_v30, 0.0 }
 0x11a   :  { %v1283_v36 = vadd.f32 %v2540_v17, %v1212_v32 }
 0x11b   :  { %v1315_v39 = vmax.f32 %v1251_v35, 0.0 }
 0x11c   :  { %v1347_v40 = vmax.f32 %v1283_v36, 0.0  ;;  %v748_v41 = vpop.f32.mrb[16].mxu0  ;;  %v876_v42 = vpop.f32.mrb[16].mxu1 }
 0x11d   :  { %v1950_v43 = vpack.c.bf16 %v1315_v39, %v1314_v37  ;;  %v1181_v45 = vmul.f32 %v2535_v15, %v748_v41  ;;  %v1213_v46 = vmul.f32 %v2535_v15, %v876_v42  ;;  %v750_v47 = vpop.f32.mrb[17].mxu0  ;;  %v878_v48 = vpop.f32.mrb[17].mxu1 }
 0x11e   :  { %v2030_v44 = vpack.c.bf16 %v1347_v40, %v1346_v38  ;;  %v751_v49 = vpop.f32.mrb[18].mxu0  ;;  %v879_v50 = vpop.f32.mrb[18].mxu1 }
 0x11f   :  { %2094 = vst [vmem:[%s2770_s4 + $0x18] sm:$0xff] %v1950_v43   ;;  %v1252_v51 = vadd.f32 %v2540_v17, %v1181_v45  ;;  %v1284_v52 = vadd.f32 %v2540_v17, %v1213_v46  ;;  %v1182_v53 = vmul.f32 %v2535_v15, %v751_v49  ;;  %v1214_v54 = vmul.f32 %v2535_v15, %v879_v50  ;;  %v753_v55 = vpop.f32.mrb[19].mxu0  ;;  %v881_v56 = vpop.f32.mrb[19].mxu1 }
 0x120   :  { %2110 = vst [vmem:[%s2770_s4 + $0x98] sm:$0xff] %v2030_v44  }
 0x121   :  { %v1253_v57 = vadd.f32 %v2540_v17, %v1182_v53  ;;  %v1285_v58 = vadd.f32 %v2540_v17, %v1214_v54  ;;  %v1316_v59 = vmax.f32 %v1252_v51, 0.0  ;;  %v1348_v60 = vmax.f32 %v1284_v52, 0.0 }
 0x123   :  { %v1317_v61 = vmax.f32 %v1253_v57, 0.0  ;;  %v1349_v62 = vmax.f32 %v1285_v58, 0.0 }
 0x124   :  { %v756_v63 = vpop.f32.mrb[20].mxu0  ;;  %v884_v0 = vpop.f32.mrb[20].mxu1 }
 0x125   :  { %v1955_v1 = vpack.c.bf16 %v1317_v61, %v1316_v59  ;;  %v2035_v2 = vpack.c.bf16 %v1349_v62, %v1348_v60  ;;  %v1183_v3 = vmul.f32 %v2535_v15, %v756_v63  ;;  %v1215_v4 = vmul.f32 %v2535_v15, %v884_v0  ;;  %v758_v5 = vpop.f32.mrb[21].mxu0  ;;  %v886_v6 = vpop.f32.mrb[21].mxu1 }
 0x126   :  { %v759_v7 = vpop.f32.mrb[22].mxu0  ;;  %v887_v8 = vpop.f32.mrb[22].mxu1 }
 0x127   :  { %2095 = vst [vmem:[%s2770_s4 + $0x20] sm:$0xff] %v1955_v1   ;;  %2111 = vst [vmem:[%s2770_s4 + $0xa0] sm:$0xff] %v2035_v2   ;;  %v1254_v9 = vadd.f32 %v2540_v17, %v1183_v3  ;;  %v1286_v10 = vadd.f32 %v2540_v17, %v1215_v4  ;;  %v1184_v11 = vmul.f32 %v2535_v15, %v759_v7  ;;  %v761_v13 = vpop.f32.mrb[23].mxu0  ;;  %v889_v14 = vpop.f32.mrb[23].mxu1 }
 0x128   :  { %v1216_v12 = vmul.f32 %v2535_v15, %v887_v8 }
 0x129   :  { %v1255_v16 = vadd.f32 %v2540_v17, %v1184_v11  ;;  %v1318_v19 = vmax.f32 %v1254_v9, 0.0  ;;  %v1350_v20 = vmax.f32 %v1286_v10, 0.0 }
 0x12a   :  { %v1287_v18 = vadd.f32 %v2540_v17, %v1216_v12 }
 0x12b   :  { %v1319_v21 = vmax.f32 %v1255_v16, 0.0 }
 0x12c   :  { %v1351_v22 = vmax.f32 %v1287_v18, 0.0  ;;  %v764_v23 = vpop.f32.mrb[24].mxu0  ;;  %v892_v24 = vpop.f32.mrb[24].mxu1 }
 0x12d   :  { %v1960_v25 = vpack.c.bf16 %v1319_v21, %v1318_v19  ;;  %v1185_v27 = vmul.f32 %v2535_v15, %v764_v23  ;;  %v1217_v28 = vmul.f32 %v2535_v15, %v892_v24  ;;  %v766_v29 = vpop.f32.mrb[25].mxu0  ;;  %v894_v30 = vpop.f32.mrb[25].mxu1 }
 0x12e   :  { %v2040_v26 = vpack.c.bf16 %v1351_v22, %v1350_v20  ;;  %v767_v31 = vpop.f32.mrb[26].mxu0  ;;  %v895_v32 = vpop.f32.mrb[26].mxu1 }
 0x12f   :  { %2096 = vst [vmem:[%s2770_s4 + $0x28] sm:$0xff] %v1960_v25   ;;  %v1256_v33 = vadd.f32 %v2540_v17, %v1185_v27  ;;  %v1288_v34 = vadd.f32 %v2540_v17, %v1217_v28  ;;  %v1186_v35 = vmul.f32 %v2535_v15, %v767_v31  ;;  %v1218_v36 = vmul.f32 %v2535_v15, %v895_v32  ;;  %v769_v37 = vpop.f32.mrb[27].mxu0  ;;  %v897_v38 = vpop.f32.mrb[27].mxu1 }
 0x130   :  { %2112 = vst [vmem:[%s2770_s4 + $0xa8] sm:$0xff] %v2040_v26  }
 0x131   :  { %v1257_v39 = vadd.f32 %v2540_v17, %v1186_v35  ;;  %v1289_v40 = vadd.f32 %v2540_v17, %v1218_v36  ;;  %v1320_v41 = vmax.f32 %v1256_v33, 0.0  ;;  %v1352_v42 = vmax.f32 %v1288_v34, 0.0 }
 0x133   :  { %v1321_v43 = vmax.f32 %v1257_v39, 0.0  ;;  %v1353_v44 = vmax.f32 %v1289_v40, 0.0 }
 0x134   :  { %v772_v45 = vpop.f32.mrb[28].mxu0  ;;  %v900_v46 = vpop.f32.mrb[28].mxu1 }
 0x135   :  { %v1965_v47 = vpack.c.bf16 %v1321_v43, %v1320_v41  ;;  %v2045_v48 = vpack.c.bf16 %v1353_v44, %v1352_v42  ;;  %v1187_v49 = vmul.f32 %v2535_v15, %v772_v45  ;;  %v1219_v50 = vmul.f32 %v2535_v15, %v900_v46  ;;  %v774_v51 = vpop.f32.mrb[29].mxu0  ;;  %v902_v52 = vpop.f32.mrb[29].mxu1 }
 0x136   :  { %v775_v53 = vpop.f32.mrb[30].mxu0  ;;  %v903_v54 = vpop.f32.mrb[30].mxu1 }
 0x137   :  { %2097 = vst [vmem:[%s2770_s4 + $0x30] sm:$0xff] %v1965_v47   ;;  %2113 = vst [vmem:[%s2770_s4 + $0xb0] sm:$0xff] %v2045_v48   ;;  %v1258_v55 = vadd.f32 %v2540_v17, %v1187_v49  ;;  %v1290_v56 = vadd.f32 %v2540_v17, %v1219_v50  ;;  %v1188_v57 = vmul.f32 %v2535_v15, %v775_v53  ;;  %v777_v59 = vpop.f32.mrb[31].mxu0  ;;  %v905_v60 = vpop.f32.mrb[31].mxu1 }
 0x138   :  { %v1220_v58 = vmul.f32 %v2535_v15, %v903_v54 }
 0x139   :  { %v1259_v61 = vadd.f32 %v2540_v17, %v1188_v57  ;;  %v1322_v63 = vmax.f32 %v1258_v55, 0.0  ;;  %v1354_v0 = vmax.f32 %v1290_v56, 0.0 }
 0x13a   :  { %v1291_v62 = vadd.f32 %v2540_v17, %v1220_v58 }
 0x13b   :  { %v1323_v1 = vmax.f32 %v1259_v61, 0.0 }
 0x13c   :  { %v1355_v2 = vmax.f32 %v1291_v62, 0.0  ;;  %v780_v3 = vpop.f32.mrb[32].mxu0  ;;  %v908_v4 = vpop.f32.mrb[32].mxu1 }
 0x13d   :  { %v1970_v5 = vpack.c.bf16 %v1323_v1, %v1322_v63  ;;  %v1189_v7 = vmul.f32 %v2535_v15, %v780_v3  ;;  %v1221_v8 = vmul.f32 %v2535_v15, %v908_v4  ;;  %v782_v9 = vpop.f32.mrb[33].mxu0  ;;  %v910_v10 = vpop.f32.mrb[33].mxu1 }
 0x13e   :  { %v2050_v6 = vpack.c.bf16 %v1355_v2, %v1354_v0  ;;  %v783_v11 = vpop.f32.mrb[34].mxu0  ;;  %v911_v12 = vpop.f32.mrb[34].mxu1 }
 0x13f   :  { %2098 = vst [vmem:[%s2770_s4 + $0x38] sm:$0xff] %v1970_v5   ;;  %v1260_v13 = vadd.f32 %v2540_v17, %v1189_v7  ;;  %v1292_v14 = vadd.f32 %v2540_v17, %v1221_v8  ;;  %v1190_v16 = vmul.f32 %v2535_v15, %v783_v11  ;;  %v1222_v18 = vmul.f32 %v2535_v15, %v911_v12  ;;  %v785_v19 = vpop.f32.mrb[35].mxu0  ;;  %v913_v20 = vpop.f32.mrb[35].mxu1 }
 0x140   :  { %2114 = vst [vmem:[%s2770_s4 + $0xb8] sm:$0xff] %v2050_v6  }
 0x141   :  { %v1261_v21 = vadd.f32 %v2540_v17, %v1190_v16  ;;  %v1293_v22 = vadd.f32 %v2540_v17, %v1222_v18  ;;  %v1324_v23 = vmax.f32 %v1260_v13, 0.0  ;;  %v1356_v24 = vmax.f32 %v1292_v14, 0.0 }
 0x143   :  { %v1325_v25 = vmax.f32 %v1261_v21, 0.0  ;;  %v1357_v26 = vmax.f32 %v1293_v22, 0.0 }
 0x144   :  { %v788_v27 = vpop.f32.mrb[36].mxu0  ;;  %v916_v28 = vpop.f32.mrb[36].mxu1 }
 0x145   :  { %v1975_v29 = vpack.c.bf16 %v1325_v25, %v1324_v23  ;;  %v2055_v30 = vpack.c.bf16 %v1357_v26, %v1356_v24  ;;  %v1191_v31 = vmul.f32 %v2535_v15, %v788_v27  ;;  %v1223_v32 = vmul.f32 %v2535_v15, %v916_v28  ;;  %v790_v33 = vpop.f32.mrb[37].mxu0  ;;  %v918_v34 = vpop.f32.mrb[37].mxu1 }
 0x146   :  { %v791_v35 = vpop.f32.mrb[38].mxu0  ;;  %v919_v36 = vpop.f32.mrb[38].mxu1 }
 0x147   :  { %2099 = vst [vmem:[%s2770_s4 + $0x40] sm:$0xff] %v1975_v29   ;;  %2115 = vst [vmem:[%s2770_s4 + $0xc0] sm:$0xff] %v2055_v30   ;;  %v1262_v37 = vadd.f32 %v2540_v17, %v1191_v31  ;;  %v1294_v38 = vadd.f32 %v2540_v17, %v1223_v32  ;;  %v1192_v39 = vmul.f32 %v2535_v15, %v791_v35  ;;  %v793_v41 = vpop.f32.mrb[39].mxu0  ;;  %v921_v42 = vpop.f32.mrb[39].mxu1 }
 0x148   :  { %v1224_v40 = vmul.f32 %v2535_v15, %v919_v36 }
 0x149   :  { %v1263_v43 = vadd.f32 %v2540_v17, %v1192_v39  ;;  %v1326_v45 = vmax.f32 %v1262_v37, 0.0  ;;  %v1358_v46 = vmax.f32 %v1294_v38, 0.0 }
 0x14a   :  { %v1295_v44 = vadd.f32 %v2540_v17, %v1224_v40 }
 0x14b   :  { %v1327_v47 = vmax.f32 %v1263_v43, 0.0 }
 0x14c   :  { %v1359_v48 = vmax.f32 %v1295_v44, 0.0  ;;  %v796_v49 = vpop.f32.mrb[40].mxu0  ;;  %v924_v50 = vpop.f32.mrb[40].mxu1 }
 0x14d   :  { %v1980_v51 = vpack.c.bf16 %v1327_v47, %v1326_v45  ;;  %v1193_v53 = vmul.f32 %v2535_v15, %v796_v49  ;;  %v1225_v54 = vmul.f32 %v2535_v15, %v924_v50  ;;  %v798_v55 = vpop.f32.mrb[41].mxu0  ;;  %v926_v56 = vpop.f32.mrb[41].mxu1 }
 0x14e   :  { %v2060_v52 = vpack.c.bf16 %v1359_v48, %v1358_v46  ;;  %v799_v57 = vpop.f32.mrb[42].mxu0  ;;  %v927_v58 = vpop.f32.mrb[42].mxu1 }
 0x14f   :  { %2100 = vst [vmem:[%s2770_s4 + $0x48] sm:$0xff] %v1980_v51   ;;  %v1264_v59 = vadd.f32 %v2540_v17, %v1193_v53  ;;  %v1296_v60 = vadd.f32 %v2540_v17, %v1225_v54  ;;  %v1194_v61 = vmul.f32 %v2535_v15, %v799_v57  ;;  %v1226_v62 = vmul.f32 %v2535_v15, %v927_v58  ;;  %v801_v63 = vpop.f32.mrb[43].mxu0  ;;  %v929_v0 = vpop.f32.mrb[43].mxu1 }
 0x150   :  { %2116 = vst [vmem:[%s2770_s4 + $0xc8] sm:$0xff] %v2060_v52  }
 0x151   :  { %v1265_v1 = vadd.f32 %v2540_v17, %v1194_v61  ;;  %v1297_v2 = vadd.f32 %v2540_v17, %v1226_v62  ;;  %v1328_v3 = vmax.f32 %v1264_v59, 0.0  ;;  %v1360_v4 = vmax.f32 %v1296_v60, 0.0 }
 0x153   :  { %v1329_v5 = vmax.f32 %v1265_v1, 0.0  ;;  %v1361_v6 = vmax.f32 %v1297_v2, 0.0 }
 0x154   :  { %v804_v7 = vpop.f32.mrb[44].mxu0  ;;  %v932_v8 = vpop.f32.mrb[44].mxu1 }
 0x155   :  { %v1985_v9 = vpack.c.bf16 %v1329_v5, %v1328_v3  ;;  %v2065_v10 = vpack.c.bf16 %v1361_v6, %v1360_v4  ;;  %v1195_v11 = vmul.f32 %v2535_v15, %v804_v7  ;;  %v1227_v12 = vmul.f32 %v2535_v15, %v932_v8  ;;  %v806_v13 = vpop.f32.mrb[45].mxu0  ;;  %v934_v14 = vpop.f32.mrb[45].mxu1 }
 0x156   :  { %v807_v16 = vpop.f32.mrb[46].mxu0  ;;  %v935_v18 = vpop.f32.mrb[46].mxu1 }
 0x157   :  { %2101 = vst [vmem:[%s2770_s4 + $0x50] sm:$0xff] %v1985_v9   ;;  %2117 = vst [vmem:[%s2770_s4 + $0xd0] sm:$0xff] %v2065_v10   ;;  %v1266_v19 = vadd.f32 %v2540_v17, %v1195_v11  ;;  %v1298_v20 = vadd.f32 %v2540_v17, %v1227_v12  ;;  %v1196_v21 = vmul.f32 %v2535_v15, %v807_v16  ;;  %v809_v23 = vpop.f32.mrb[47].mxu0  ;;  %v937_v24 = vpop.f32.mrb[47].mxu1 }
 0x158   :  { %v1228_v22 = vmul.f32 %v2535_v15, %v935_v18 }
 0x159   :  { %v1267_v25 = vadd.f32 %v2540_v17, %v1196_v21  ;;  %v1330_v27 = vmax.f32 %v1266_v19, 0.0  ;;  %v1362_v28 = vmax.f32 %v1298_v20, 0.0 }
 0x15a   :  { %v1299_v26 = vadd.f32 %v2540_v17, %v1228_v22 }
 0x15b   :  { %v1331_v29 = vmax.f32 %v1267_v25, 0.0 }
 0x15c   :  { %v1363_v30 = vmax.f32 %v1299_v26, 0.0  ;;  %v812_v31 = vpop.f32.mrb[48].mxu0  ;;  %v940_v32 = vpop.f32.mrb[48].mxu1 }
 0x15d   :  { %v1990_v33 = vpack.c.bf16 %v1331_v29, %v1330_v27  ;;  %v1197_v35 = vmul.f32 %v2535_v15, %v812_v31  ;;  %v1229_v36 = vmul.f32 %v2535_v15, %v940_v32  ;;  %v814_v37 = vpop.f32.mrb[49].mxu0  ;;  %v942_v38 = vpop.f32.mrb[49].mxu1 }
 0x15e   :  { %v2070_v34 = vpack.c.bf16 %v1363_v30, %v1362_v28  ;;  %v815_v39 = vpop.f32.mrb[50].mxu0  ;;  %v943_v40 = vpop.f32.mrb[50].mxu1 }
 0x15f   :  { %2102 = vst [vmem:[%s2770_s4 + $0x58] sm:$0xff] %v1990_v33   ;;  %v1268_v41 = vadd.f32 %v2540_v17, %v1197_v35  ;;  %v1300_v42 = vadd.f32 %v2540_v17, %v1229_v36  ;;  %v1198_v43 = vmul.f32 %v2535_v15, %v815_v39  ;;  %v1230_v44 = vmul.f32 %v2535_v15, %v943_v40  ;;  %v817_v45 = vpop.f32.mrb[51].mxu0  ;;  %v945_v46 = vpop.f32.mrb[51].mxu1 }
 0x160   :  { %2118 = vst [vmem:[%s2770_s4 + $0xd8] sm:$0xff] %v2070_v34  }
 0x161   :  { %v1269_v47 = vadd.f32 %v2540_v17, %v1198_v43  ;;  %v1301_v48 = vadd.f32 %v2540_v17, %v1230_v44  ;;  %v1332_v49 = vmax.f32 %v1268_v41, 0.0  ;;  %v1364_v50 = vmax.f32 %v1300_v42, 0.0 }
 0x163   :  { %v1333_v51 = vmax.f32 %v1269_v47, 0.0  ;;  %v1365_v52 = vmax.f32 %v1301_v48, 0.0 }
 0x164   :  { %v820_v53 = vpop.f32.mrb[52].mxu0  ;;  %v948_v54 = vpop.f32.mrb[52].mxu1 }
 0x165   :  { %v1995_v55 = vpack.c.bf16 %v1333_v51, %v1332_v49  ;;  %v2075_v56 = vpack.c.bf16 %v1365_v52, %v1364_v50  ;;  %v1199_v57 = vmul.f32 %v2535_v15, %v820_v53  ;;  %v1231_v58 = vmul.f32 %v2535_v15, %v948_v54  ;;  %v822_v59 = vpop.f32.mrb[53].mxu0  ;;  %v950_v60 = vpop.f32.mrb[53].mxu1 }
 0x166   :  { %v823_v61 = vpop.f32.mrb[54].mxu0  ;;  %v951_v62 = vpop.f32.mrb[54].mxu1 }
 0x167   :  { %2103 = vst [vmem:[%s2770_s4 + $0x60] sm:$0xff] %v1995_v55   ;;  %2119 = vst [vmem:[%s2770_s4 + $0xe0] sm:$0xff] %v2075_v56   ;;  %v1270_v63 = vadd.f32 %v2540_v17, %v1199_v57  ;;  %v1302_v0 = vadd.f32 %v2540_v17, %v1231_v58  ;;  %v1200_v1 = vmul.f32 %v2535_v15, %v823_v61  ;;  %v825_v3 = vpop.f32.mrb[55].mxu0  ;;  %v953_v4 = vpop.f32.mrb[55].mxu1 }
 0x168   :  { %v1232_v2 = vmul.f32 %v2535_v15, %v951_v62 }
 0x169   :  { %v1271_v5 = vadd.f32 %v2540_v17, %v1200_v1  ;;  %v1334_v7 = vmax.f32 %v1270_v63, 0.0  ;;  %v1366_v8 = vmax.f32 %v1302_v0, 0.0 }
 0x16a   :  { %v1303_v6 = vadd.f32 %v2540_v17, %v1232_v2 }
 0x16b   :  { %v1335_v9 = vmax.f32 %v1271_v5, 0.0 }
 0x16c   :  { %v1367_v10 = vmax.f32 %v1303_v6, 0.0  ;;  %v828_v11 = vpop.f32.mrb[56].mxu0  ;;  %v956_v12 = vpop.f32.mrb[56].mxu1 }
 0x16d   :  { %v2000_v13 = vpack.c.bf16 %v1335_v9, %v1334_v7  ;;  %v1201_v16 = vmul.f32 %v2535_v15, %v828_v11  ;;  %v1233_v18 = vmul.f32 %v2535_v15, %v956_v12  ;;  %v830_v19 = vpop.f32.mrb[57].mxu0  ;;  %v958_v20 = vpop.f32.mrb[57].mxu1 }
 0x16e   :  { %v2080_v14 = vpack.c.bf16 %v1367_v10, %v1366_v8  ;;  %v831_v21 = vpop.f32.mrb[58].mxu0  ;;  %v959_v22 = vpop.f32.mrb[58].mxu1 }
 0x16f   :  { %2104 = vst [vmem:[%s2770_s4 + $0x68] sm:$0xff] %v2000_v13   ;;  %v1272_v23 = vadd.f32 %v2540_v17, %v1201_v16  ;;  %v1304_v24 = vadd.f32 %v2540_v17, %v1233_v18  ;;  %v1202_v25 = vmul.f32 %v2535_v15, %v831_v21  ;;  %v1234_v26 = vmul.f32 %v2535_v15, %v959_v22  ;;  %v833_v27 = vpop.f32.mrb[59].mxu0  ;;  %v961_v28 = vpop.f32.mrb[59].mxu1 }
 0x170   :  { %2120 = vst [vmem:[%s2770_s4 + $0xe8] sm:$0xff] %v2080_v14  }
 0x171   :  { %v1273_v29 = vadd.f32 %v2540_v17, %v1202_v25  ;;  %v1305_v30 = vadd.f32 %v2540_v17, %v1234_v26  ;;  %v1336_v31 = vmax.f32 %v1272_v23, 0.0  ;;  %v1368_v32 = vmax.f32 %v1304_v24, 0.0 }
 0x173   :  { %v1337_v33 = vmax.f32 %v1273_v29, 0.0  ;;  %v1369_v34 = vmax.f32 %v1305_v30, 0.0 }
 0x174   :  { %v836_v35 = vpop.f32.mrb[60].mxu0  ;;  %v964_v36 = vpop.f32.mrb[60].mxu1 }
 0x175   :  { %v2005_v37 = vpack.c.bf16 %v1337_v33, %v1336_v31  ;;  %v2085_v38 = vpack.c.bf16 %v1369_v34, %v1368_v32  ;;  %v1203_v39 = vmul.f32 %v2535_v15, %v836_v35  ;;  %v1235_v40 = vmul.f32 %v2535_v15, %v964_v36  ;;  %v838_v41 = vpop.f32.mrb[61].mxu0  ;;  %v966_v42 = vpop.f32.mrb[61].mxu1 }
 0x176   :  { %v839_v43 = vpop.f32.mrb[62].mxu0  ;;  %v967_v44 = vpop.f32.mrb[62].mxu1 }
 0x177   :  { %2105 = vst [vmem:[%s2770_s4 + $0x70] sm:$0xff] %v2005_v37   ;;  %2121 = vst [vmem:[%s2770_s4 + $0xf0] sm:$0xff] %v2085_v38   ;;  %v1274_v45 = vadd.f32 %v2540_v17, %v1203_v39  ;;  %v1306_v46 = vadd.f32 %v2540_v17, %v1235_v40  ;;  %v1204_v47 = vmul.f32 %v2535_v15, %v839_v43  ;;  %v841_v49 = vpop.f32.mrb[63].mxu0  ;;  %v969_v50 = vpop.f32.mrb[63].mxu1 }
 0x178   :  { %v1236_v48 = vmul.f32 %v2535_v15, %v967_v44 }
 0x179   :  { %v1275_v51 = vadd.f32 %v2540_v17, %v1204_v47  ;;  %v1338_v53 = vmax.f32 %v1274_v45, 0.0  ;;  %v1370_v54 = vmax.f32 %v1306_v46, 0.0 }
 0x17a   :  { %v1307_v52 = vadd.f32 %v2540_v17, %v1236_v48 }
 0x17b   :  { %v1339_v55 = vmax.f32 %v1275_v51, 0.0 }
 0x17c   :  { %v1371_v56 = vmax.f32 %v1307_v52, 0.0 }
 0x17d   :  { %v2010_v57 = vpack.c.bf16 %v1339_v55, %v1338_v53 }
 0x17e   :  { %v2090_v58 = vpack.c.bf16 %v1371_v56, %v1370_v54 }
 0x17f   :  { %2106 = vst [vmem:[%s2770_s4 + $0x78] sm:$0xff] %v2010_v57  }
 0x180   :  { %2122 = vst [vmem:[%s2770_s4 + $0xf8] sm:$0xff] %v2090_v58  }

// kernel: pretrained_cnn_forward.22
= control target key start
LH: loop header
LB: loop body
LE: loop exit
PB: predicated region body
PF: predicated region fallthrough
CT: control target
= control target key end

     0   :  { %vm590_vm0 = vcmask 523264   ;;  %s1895_s1 = inlined_call_operand.vmem [shape: bf16[576,128], index: 1, kind: input, shape index: {}]   ;;  %s1896_s0 = inlined_call_operand.vmem [shape: bf16[128,576], index: 0, kind: input, shape index: {}]   ;;  %s1897_s2 = inlined_call_operand.vmem [shape: f32[1,128], index: 2, kind: input, shape index: {}]   ;;  %s1898_s3 = inlined_call_operand.vmem [shape: f32[1,128], index: 3, kind: input, shape index: {}]   ;;  %s1899_s4 = inlined_call_operand.vmem [shape: bf16[128,128], index: 4, kind: output, shape index: {}]  }
   0x1   :  { %v1440_v0 = vld [vmem:[%s1895_s1 + $0x40] sm:$0xff]   ;;  %v1444_v4 = vld [vmem:[%s1895_s1 + $0x48] sm:$0xff]   ;;  %v1448_v8 = vld [vmem:[%s1895_s1 + $0x50] sm:$0xff]  }
   0x2   :  { %v1441_v1 = vld [vmem:[%s1895_s1 + $0xc0] sm:$0xff]   ;;  %1268 = vmatprep.subr.bf16.mxu0 %v1440_v0  ;;  %v1445_v5 = vld [vmem:[%s1895_s1 + $0xc8] sm:$0xff]   ;;  %v1449_v9 = vld [vmem:[%s1895_s1 + $0xd0] sm:$0xff]  }
   0x3   :  { %v1442_v2 = vld [vmem:[%s1895_s1] sm:$0xff]   ;;  %1332 = vmatprep.subr.bf16.mxu1 %v1441_v1  ;;  %v1446_v6 = vld [vmem:[%s1895_s1 + $0x8] sm:$0xff]   ;;  %v1450_v10 = vld [vmem:[%s1895_s1 + $0x10] sm:$0xff]  }
   0x4   :  { %v1443_v3 = vld [vmem:[%s1895_s1 + $0x80] sm:$0xff]   ;;  %1269 = vmatpush3.bf16.msra.mxu0 %v1442_v2  ;;  %v1447_v7 = vld [vmem:[%s1895_s1 + $0x88] sm:$0xff]   ;;  %v1451_v11 = vld [vmem:[%s1895_s1 + $0x90] sm:$0xff]  }
   0x5   :  { %1333 = vmatpush3.bf16.msra.mxu1 %v1443_v3  ;;  %1270 = vmatprep.subr.bf16.mxu0 %v1444_v4  ;;  %v1452_v12 = vld [vmem:[%s1895_s1 + $0x58] sm:$0xff]   ;;  %v1456_v16 = vld [vmem:[%s1895_s1 + $0x60] sm:$0xff]   ;;  %v1460_v20 = vld [vmem:[%s1895_s1 + $0x68] sm:$0xff]  }
   0x6   :  { %1334 = vmatprep.subr.bf16.mxu1 %v1445_v5  ;;  %v1453_v13 = vld [vmem:[%s1895_s1 + $0xd8] sm:$0xff]   ;;  %v1457_v17 = vld [vmem:[%s1895_s1 + $0xe0] sm:$0xff]   ;;  %v1461_v21 = vld [vmem:[%s1895_s1 + $0xe8] sm:$0xff]  }
   0x7   :  { %v1454_v14 = vld [vmem:[%s1895_s1 + $0x18] sm:$0xff]   ;;  %v1458_v18 = vld [vmem:[%s1895_s1 + $0x20] sm:$0xff]   ;;  %v1462_v22 = vld [vmem:[%s1895_s1 + $0x28] sm:$0xff]  }
   0x8   :  { %1271 = vmatpush3.bf16.msra.mxu0 %v1446_v6  ;;  %v1455_v15 = vld [vmem:[%s1895_s1 + $0x98] sm:$0xff]   ;;  %v1459_v19 = vld [vmem:[%s1895_s1 + $0xa0] sm:$0xff]   ;;  %v1463_v23 = vld [vmem:[%s1895_s1 + $0xa8] sm:$0xff]  }
   0x9   :  { %1335 = vmatpush3.bf16.msra.mxu1 %v1447_v7  ;;  %1272 = vmatprep.subr.bf16.mxu0 %v1448_v8  ;;  %v1464_v24 = vld [vmem:[%s1895_s1 + $0x70] sm:$0xff]   ;;  %v1468_v28 = vld [vmem:[%s1895_s1 + $0x78] sm:$0xff]   ;;  %v1477_v35 = vld [vmem:[%s1896_s0 + $0xc] ss:$20 sps:$4 sm:$0xff]  }
   0xa   :  { %1336 = vmatprep.subr.bf16.mxu1 %v1449_v9  ;;  %v1465_v25 = vld [vmem:[%s1895_s1 + $0xf0] sm:$0xff]   ;;  %v1469_v29 = vld [vmem:[%s1895_s1 + $0xf8] sm:$0xff]   ;;  %v1478_v36 = vld [vmem:[%s1895_s1 + $0x100] sm:$0xff]   ;;  %744 = vmatprep.mubr.bf16.mxu1 %v1477_v35 }
   0xb   :  { %v1466_v26 = vld [vmem:[%s1895_s1 + $0x30] sm:$0xff]   ;;  %v1470_v30 = vld [vmem:[%s1895_s1 + $0x38] sm:$0xff]   ;;  %v1479_v37 = vld [vmem:[%s1896_s0 + $0x2c] ss:$20 sps:$4 sm:$0xff]  }
   0xc   :  { %1273 = vmatpush3.bf16.msra.mxu0 %v1450_v10  ;;  %v1467_v27 = vld [vmem:[%s1895_s1 + $0xb0] sm:$0xff]   ;;  %v1471_v31 = vld [vmem:[%s1895_s1 + $0xb8] sm:$0xff]   ;;  %v1491_v42 = vld [vmem:[%s1895_s1 + $0x108] sm:$0xff]  }
   0xd   :  { %1337 = vmatpush3.bf16.msra.mxu1 %v1451_v11  ;;  %1274 = vmatprep.subr.bf16.mxu0 %v1452_v12  ;;  %v1472_v32 = vld [vmem:[%s1896_s0] ss:$20 sps:$4 sm:$0xff]   ;;  %v1474_v33 = vld [vmem:[%s1896_s0 + $0x4] ss:$20 sps:$4 sm:$0xff]   ;;  %v1475_v34 = vld [vmem:[%s1896_s0 + $0x8] ss:$20 sps:$4 sm:$0xff]  }
   0xe   :  { %1338 = vmatprep.subr.bf16.mxu1 %v1453_v13  ;;  %647 = vmatprep.mubr.bf16.mxu0 %v1474_v33  ;;  %v1481_v38 = vld [vmem:[%s1896_s0 + $0x34] ss:$20 sps:$4 sm:$0xff]   ;;  %v1484_v40 = vld [vmem:[%s1896_s0 + $0x30] ss:$20 sps:$4 sm:$0xff]   ;;  %v1490_v45 = vld [vmem:[%s1896_s0 + $0x58] ss:$20 sps:$4 sm:$0xff]  }
   0xf   :  { %v1483_v39 = vld [vmem:[%s1896_s0 + $0x28] ss:$20 sps:$4 sm:$0xff]   ;;  %v1489_v44 = vld [vmem:[%s1896_s0 + $0x50] ss:$20 sps:$4 sm:$0xff]   ;;  %v1496_v50 = vld [vmem:[%s1896_s0 + $0x78] ss:$20 sps:$4 sm:$0xff]  }
  0x10   :  { %1275 = vmatpush3.bf16.msra.mxu0 %v1454_v14  ;;  %v1485_v41 = vld [vmem:[%s1896_s0 + $0x54] ss:$20 sps:$4 sm:$0xff]   ;;  %v1487_v43 = vld [vmem:[%s1896_s0 + $0x5c] ss:$20 sps:$4 sm:$0xff]   ;;  %v1494_v48 = vld [vmem:[%s1896_s0 + $0x84] ss:$20 sps:$4 sm:$0xff]  }
  0x11   :  { %1339 = vmatpush3.bf16.msra.mxu1 %v1455_v15  ;;  %1276 = vmatprep.subr.bf16.mxu0 %v1456_v16  ;;  %v1504_v46 = vld [vmem:[%s1895_s1 + $0x110] sm:$0xff]   ;;  %v1517_v49 = vld [vmem:[%s1895_s1 + $0x118] sm:$0xff]   ;;  %v1500_v53 = vld [vmem:[%s1896_s0 + $0xac] ss:$20 sps:$4 sm:$0xff]  }
  0x12   :  { %1340 = vmatprep.subr.bf16.mxu1 %v1457_v17  ;;  %v1492_v47 = vld [vmem:[%s1896_s0 + $0x7c] ss:$20 sps:$4 sm:$0xff]   ;;  %v1497_v51 = vld [vmem:[%s1896_s0 + $0x80] ss:$20 sps:$4 sm:$0xff]   ;;  %v1498_v52 = vld [vmem:[%s1896_s0 + $0xa4] ss:$20 sps:$4 sm:$0xff]  }
  0x13   :  { %v1502_v54 = vld [vmem:[%s1896_s0 + $0xa0] ss:$20 sps:$4 sm:$0xff]   ;;  %v1503_v55 = vld [vmem:[%s1896_s0 + $0xa8] ss:$20 sps:$4 sm:$0xff]   ;;  %v1510_v59 = vld [vmem:[%s1896_s0 + $0xd0] ss:$20 sps:$4 sm:$0xff]  }
  0x14   :  { %1277 = vmatpush3.bf16.msra.mxu0 %v1458_v18  ;;  %v1505_v56 = vld [vmem:[%s1896_s0 + $0xcc] ss:$20 sps:$4 sm:$0xff]   ;;  %v1507_v57 = vld [vmem:[%s1896_s0 + $0xd4] ss:$20 sps:$4 sm:$0xff]   ;;  %v1513_v61 = vld [vmem:[%s1896_s0 + $0xfc] ss:$20 sps:$4 sm:$0xff]  }
  0x15   :  { %1341 = vmatpush3.bf16.msra.mxu1 %v1459_v19  ;;  %1278 = vmatprep.subr.bf16.mxu0 %v1460_v20  ;;  %v1509_v58 = vld [vmem:[%s1896_s0 + $0xc8] ss:$20 sps:$4 sm:$0xff]   ;;  %v1515_v62 = vld [vmem:[%s1896_s0 + $0xf0] ss:$20 sps:$4 sm:$0xff]   ;;  %v1516_v63 = vld [vmem:[%s1896_s0 + $0xf8] ss:$20 sps:$4 sm:$0xff]  }
  0x16   :  { %1342 = vmatprep.subr.bf16.mxu1 %v1461_v21  ;;  %v1511_v60 = vld [vmem:[%s1896_s0 + $0xf4] ss:$20 sps:$4 sm:$0xff]   ;;  %v1518_v0 = vld [vmem:[%s1896_s0 + $0x11c] ss:$20 sps:$4 sm:$0xff]   ;;  %v1520_v1 = vld [vmem:[%s1896_s0 + $0x124] ss:$20 sps:$4 sm:$0xff]  }
  0x17   :  { %v1522_v2 = vld [vmem:[%s1896_s0 + $0x118] ss:$20 sps:$4 sm:$0xff]   ;;  %v1523_v3 = vld [vmem:[%s1896_s0 + $0x120] ss:$20 sps:$4 sm:$0xff]   ;;  %v1524_v4 = vld [vmem:[%s1896_s0 + $0x10] ss:$20 sps:$4 sm:$0xff]  }
  0x18   :  { %1279 = vmatpush3.bf16.msra.mxu0 %v1462_v22  ;;  %v1525_v5 = vld [vmem:[%s1896_s0 + $0xb0] ss:$20 sps:$4 sm:$0xff]   ;;  %v1526_v6 = vld [vmem:[%s1896_s0 + $0x38] ss:$20 sps:$4 sm:$0xff]   ;;  %v1528_v8 = vld [vmem:[%s1896_s0 + $0x60] ss:$20 sps:$4 sm:$0xff]  }
  0x19   :  { %1343 = vmatpush3.bf16.msra.mxu1 %v1463_v23  ;;  %1280 = vmatprep.subr.bf16.mxu0 %v1464_v24  ;;  %v1527_v7 = vld [vmem:[%s1896_s0 + $0xd8] ss:$20 sps:$4 sm:$0xff]   ;;  %v1529_v9 = vld [vmem:[%s1896_s0 + $0x100] ss:$20 sps:$4 sm:$0xff]   ;;  %v1530_v10 = vld [vmem:[%s1896_s0 + $0x88] ss:$20 sps:$4 sm:$0xff]  }
  0x1a   :  { %1344 = vmatprep.subr.bf16.mxu1 %v1465_v25  ;;  %v1531_v11 = vld [vmem:[%s1896_s0 + $0x128] ss:$20 sps:$4 sm:$0xff]  }
  0x1c   :  { %1281 = vmatpush3.bf16.msra.mxu0 %v1466_v26 }
  0x1d   :  { %1345 = vmatpush3.bf16.msra.mxu1 %v1467_v27  ;;  %1282 = vmatprep.subr.bf16.mxu0 %v1468_v28 }
  0x1e   :  { %1346 = vmatprep.subr.bf16.mxu1 %v1469_v29 }
  0x20   :  { %1283 = vmatpush3.bf16.msra.mxu0 %v1470_v30 }
  0x21   :  { %1347 = vmatpush3.bf16.msra.mxu1 %v1471_v31  ;;  %1408 = vmatprep.subr.bf16.mxu0 %v1478_v36 }
  0x22   :  { %1432 = vmatprep.subr.bf16.mxu1 %v1478_v36 }
  0x23   :  { %648 = vmatmul.mubr.bf16.vlgmr.msra.gmra.mrb[0].mxu0 %v1472_v32 }
  0x24   :  { %745 = vmatmul.mubr.bf16.vlgmr.msra.gmra.mrb[0].mxu1 %v1475_v34  ;;  %1409 = vmatpush3.bf16.msra.mxu0 %v1478_v36 }
  0x25   :  { %1436 = vmatpush3.bf16.msra.mxu1 %v1478_v36  ;;  %655 = vmatprep.mubr.bf16.mxu0 %v1479_v37 }
  0x26   :  { %752 = vmatprep.mubr.bf16.mxu1 %v1481_v38  ;;  %1410 = vmatprep.subr.bf16.mxu0 %v1491_v42 }
  0x27   :  { %1433 = vmatprep.subr.bf16.mxu1 %v1491_v42 }
  0x28   :  { %1411 = vmatpush3.bf16.msra.mxu0 %v1491_v42 }
  0x29   :  { %1437 = vmatpush3.bf16.msra.mxu1 %v1491_v42  ;;  %1412 = vmatprep.subr.bf16.mxu0 %v1504_v46 }
  0x2a   :  { %1434 = vmatprep.subr.bf16.mxu1 %v1504_v46 }
  0x2b   :  { %656 = vmatmul.mubr.bf16.gmra.mrb[4].mxu0 %v1483_v39 }
  0x2c   :  { %753 = vmatmul.mubr.bf16.gmra.mrb[4].mxu1 %v1484_v40  ;;  %663 = vmatprep.mubr.bf16.mxu0 %v1485_v41 }
  0x2d   :  { %760 = vmatprep.mubr.bf16.mxu1 %v1487_v43  ;;  %1413 = vmatpush3.bf16.msra.mxu0 %v1504_v46 }
  0x2e   :  { %1438 = vmatpush3.bf16.msra.mxu1 %v1504_v46  ;;  %1414 = vmatprep.subr.bf16.mxu0 %v1517_v49 }
  0x2f   :  { %1435 = vmatprep.subr.bf16.mxu1 %v1517_v49 }
  0x31   :  { %1415 = vmatpush3.bf16.msra.mxu0 %v1517_v49 }
  0x32   :  { %1439 = vmatpush3.bf16.msra.mxu1 %v1517_v49 }
  0x33   :  { %664 = vmatmul.mubr.bf16.gmra.mrb[8].mxu0 %v1489_v44 }
  0x34   :  { %761 = vmatmul.mubr.bf16.gmra.mrb[8].mxu1 %v1490_v45  ;;  %671 = vmatprep.mubr.bf16.mxu0 %v1492_v47 }
  0x35   :  { %768 = vmatprep.mubr.bf16.mxu1 %v1494_v48 }
  0x3b   :  { %672 = vmatmul.mubr.bf16.gmra.mrb[12].mxu0 %v1496_v50 }
  0x3c   :  { %769 = vmatmul.mubr.bf16.gmra.mrb[12].mxu1 %v1497_v51  ;;  %679 = vmatprep.mubr.bf16.mxu0 %v1498_v52 }
  0x3d   :  { %776 = vmatprep.mubr.bf16.mxu1 %v1500_v53 }
  0x43   :  { %680 = vmatmul.mubr.bf16.gmra.mrb[16].mxu0 %v1502_v54 }
  0x44   :  { %777 = vmatmul.mubr.bf16.gmra.mrb[16].mxu1 %v1503_v55  ;;  %687 = vmatprep.mubr.bf16.mxu0 %v1505_v56 }
  0x45   :  { %784 = vmatprep.mubr.bf16.mxu1 %v1507_v57 }
  0x4b   :  { %688 = vmatmul.mubr.bf16.gmra.mrb[20].mxu0 %v1509_v58 }
  0x4c   :  { %785 = vmatmul.mubr.bf16.gmra.mrb[20].mxu1 %v1510_v59  ;;  %695 = vmatprep.mubr.bf16.mxu0 %v1511_v60 }
  0x4d   :  { %792 = vmatprep.mubr.bf16.mxu1 %v1513_v61 }
  0x53   :  { %696 = vmatmul.mubr.bf16.gmra.mrb[24].mxu0 %v1515_v62 }
  0x54   :  { %793 = vmatmul.mubr.bf16.gmra.mrb[24].mxu1 %v1516_v63  ;;  %703 = vmatprep.mubr.bf16.mxu0 %v1518_v0 }
  0x55   :  { %800 = vmatprep.mubr.bf16.mxu1 %v1520_v1 }
  0x5b   :  { %704 = vmatmul.mubr.bf16.gmra.mrb[28].mxu0 %v1522_v2 }
  0x5c   :  { %801 = vmatmul.mubr.bf16.gmra.mrb[28].mxu1 %v1523_v3  ;;  %1416 = vmatprep.mubr.msk.bf16.mxu0 %vm590_vm0, %v1524_v4 }
  0x5d   :  { %1424 = vmatprep.mubr.msk.bf16.mxu1 %vm590_vm0, %v1525_v5 }
  0x63   :  { %1417 = vmatmul.mubr.msk.bf16.vlgmr.msra.gmra.mrb[32].mxu0 %vm590_vm0, %v1526_v6 }
  0x64   :  { %1425 = vmatmul.mubr.msk.bf16.vlgmr.msra.gmra.mrb[32].mxu1 %vm590_vm0, %v1527_v7  ;;  %1420 = vmatprep.mubr.msk.bf16.mxu0 %vm590_vm0, %v1528_v8 }
  0x65   :  { %1428 = vmatprep.mubr.msk.bf16.mxu1 %vm590_vm0, %v1529_v9 }
  0x6b   :  { %1421 = vmatmul.mubr.msk.bf16.gmra.mrb[36].mxu0 %vm590_vm0, %v1530_v10 }
  0x6c   :  { %1429 = vmatmul.mubr.msk.bf16.gmra.mrb[36].mxu1 %vm590_vm0, %v1531_v11 }
  0xf6   :  { %v1284_v12 = vpop.f32.mrb[0].mxu0 }
  0xf7   :  { %v1348_v13 = vpop.f32.mrb[0].mxu1  ;;  %v1285_v14 = vpop.f32.mrb[1].mxu0 }
  0xf8   :  { %v1286_v15 = vadd.f32 %v1285_v14, %v1284_v12  ;;  %v1349_v16 = vpop.f32.mrb[1].mxu1  ;;  %v1287_v17 = vpop.f32.mrb[2].mxu0 }
  0xf9   :  { %v1350_v18 = vadd.f32 %v1349_v16, %v1348_v13  ;;  %v1351_v19 = vpop.f32.mrb[2].mxu1  ;;  %v1288_v20 = vpop.f32.mrb[3].mxu0 }
  0xfa   :  { %v1289_v21 = vadd.f32 %v1288_v20, %v1287_v17  ;;  %v1352_v22 = vpop.f32.mrb[3].mxu1 }
  0xfb   :  { %v1353_v23 = vadd.f32 %v1352_v22, %v1351_v19  ;;  %v1793_v24 = vadd.f32 %v1350_v18, %v1286_v15 }
  0xfd   :  { %v1795_v25 = vadd.f32 %v1353_v23, %v1289_v21 }
  0xfe   :  { %v1290_v26 = vpop.f32.mrb[4].mxu0 }
  0xff   :  { %v1354_v27 = vpop.f32.mrb[4].mxu1  ;;  %v1291_v28 = vpop.f32.mrb[5].mxu0 }
 0x100   :  { %v1292_v29 = vadd.f32 %v1291_v28, %v1290_v26  ;;  %v1355_v30 = vpop.f32.mrb[5].mxu1  ;;  %v1293_v31 = vpop.f32.mrb[6].mxu0 }
 0x101   :  { %v1356_v32 = vadd.f32 %v1355_v30, %v1354_v27  ;;  %v1357_v33 = vpop.f32.mrb[6].mxu1  ;;  %v1294_v34 = vpop.f32.mrb[7].mxu0 }
 0x102   :  { %v1295_v35 = vadd.f32 %v1294_v34, %v1293_v31  ;;  %v1358_v36 = vpop.f32.mrb[7].mxu1 }
 0x103   :  { %v1359_v37 = vadd.f32 %v1358_v36, %v1357_v33  ;;  %v1797_v38 = vadd.f32 %v1356_v32, %v1292_v29 }
 0x105   :  { %v1799_v39 = vadd.f32 %v1359_v37, %v1295_v35 }
 0x106   :  { %v1296_v40 = vpop.f32.mrb[8].mxu0 }
 0x107   :  { %v1360_v41 = vpop.f32.mrb[8].mxu1  ;;  %v1297_v42 = vpop.f32.mrb[9].mxu0 }
 0x108   :  { %v1298_v43 = vadd.f32 %v1297_v42, %v1296_v40  ;;  %v1361_v44 = vpop.f32.mrb[9].mxu1  ;;  %v1299_v45 = vpop.f32.mrb[10].mxu0 }
 0x109   :  { %v1362_v46 = vadd.f32 %v1361_v44, %v1360_v41  ;;  %v1363_v47 = vpop.f32.mrb[10].mxu1  ;;  %v1300_v48 = vpop.f32.mrb[11].mxu0 }
 0x10a   :  { %v1301_v49 = vadd.f32 %v1300_v48, %v1299_v45  ;;  %v1364_v50 = vpop.f32.mrb[11].mxu1 }
 0x10b   :  { %v1365_v51 = vadd.f32 %v1364_v50, %v1363_v47  ;;  %v1801_v52 = vadd.f32 %v1362_v46, %v1298_v43 }
 0x10d   :  { %v1803_v53 = vadd.f32 %v1365_v51, %v1301_v49 }
 0x10e   :  { %v1302_v54 = vpop.f32.mrb[12].mxu0 }
 0x10f   :  { %v1366_v55 = vpop.f32.mrb[12].mxu1  ;;  %v1303_v56 = vpop.f32.mrb[13].mxu0 }
 0x110   :  { %v1304_v57 = vadd.f32 %v1303_v56, %v1302_v54  ;;  %v1367_v58 = vpop.f32.mrb[13].mxu1  ;;  %v1305_v59 = vpop.f32.mrb[14].mxu0 }
 0x111   :  { %v1368_v60 = vadd.f32 %v1367_v58, %v1366_v55  ;;  %v1369_v61 = vpop.f32.mrb[14].mxu1  ;;  %v1306_v62 = vpop.f32.mrb[15].mxu0 }
 0x112   :  { %v1307_v63 = vadd.f32 %v1306_v62, %v1305_v59  ;;  %v1370_v0 = vpop.f32.mrb[15].mxu1 }
 0x113   :  { %v1371_v1 = vadd.f32 %v1370_v0, %v1369_v61  ;;  %v1805_v2 = vadd.f32 %v1368_v60, %v1304_v57 }
 0x115   :  { %v1807_v3 = vadd.f32 %v1371_v1, %v1307_v63 }
 0x116   :  { %v1308_v4 = vpop.f32.mrb[16].mxu0 }
 0x117   :  { %v1372_v5 = vpop.f32.mrb[16].mxu1  ;;  %v1309_v6 = vpop.f32.mrb[17].mxu0 }
 0x118   :  { %v1310_v7 = vadd.f32 %v1309_v6, %v1308_v4  ;;  %v1373_v8 = vpop.f32.mrb[17].mxu1  ;;  %v1311_v9 = vpop.f32.mrb[18].mxu0 }
 0x119   :  { %v1374_v10 = vadd.f32 %v1373_v8, %v1372_v5  ;;  %v1375_v11 = vpop.f32.mrb[18].mxu1  ;;  %v1312_v12 = vpop.f32.mrb[19].mxu0  ;;  %v1820_v5 = vld [vmem:[%s1897_s2] ss:$0 sm:$0xff] }
 0x11a   :  { %v1313_v13 = vadd.f32 %v1312_v12, %v1311_v9  ;;  %v1376_v14 = vpop.f32.mrb[19].mxu1  ;;  %v1826_v9 = vld [vmem:[%s1898_s3] ss:$0 sm:$0xff] }
 0x11b   :  { %v1377_v15 = vadd.f32 %v1376_v14, %v1375_v11  ;;  %v779_v16 = vadd.f32 %v1374_v10, %v1310_v7 }
 0x11d   :  { %v1809_v17 = vadd.f32 %v1377_v15, %v1313_v13 }
 0x11e   :  { %v1314_v18 = vpop.f32.mrb[20].mxu0 }
 0x11f   :  { %v1378_v19 = vpop.f32.mrb[20].mxu1  ;;  %v1315_v20 = vpop.f32.mrb[21].mxu0 }
 0x120   :  { %v1316_v21 = vadd.f32 %v1315_v20, %v1314_v18  ;;  %v1379_v22 = vpop.f32.mrb[21].mxu1  ;;  %v1317_v23 = vpop.f32.mrb[22].mxu0 }
 0x121   :  { %v1380_v26 = vadd.f32 %v1379_v22, %v1378_v19  ;;  %v1381_v27 = vpop.f32.mrb[22].mxu1  ;;  %v1318_v28 = vpop.f32.mrb[23].mxu0 }
 0x122   :  { %v1319_v29 = vadd.f32 %v1318_v28, %v1317_v23  ;;  %v1382_v30 = vpop.f32.mrb[23].mxu1 }
 0x123   :  { %v1383_v31 = vadd.f32 %v1382_v30, %v1381_v27  ;;  %v787_v32 = vadd.f32 %v1380_v26, %v1316_v21 }
 0x125   :  { %v790_v33 = vadd.f32 %v1383_v31, %v1319_v29 }
 0x126   :  { %v1320_v34 = vpop.f32.mrb[24].mxu0 }
 0x127   :  { %v1384_v35 = vpop.f32.mrb[24].mxu1  ;;  %v1321_v36 = vpop.f32.mrb[25].mxu0 }
 0x128   :  { %v1322_v37 = vadd.f32 %v1321_v36, %v1320_v34  ;;  %v1385_v40 = vpop.f32.mrb[25].mxu1  ;;  %v1323_v41 = vpop.f32.mrb[26].mxu0 }
 0x129   :  { %v1386_v42 = vadd.f32 %v1385_v40, %v1384_v35  ;;  %v1387_v43 = vpop.f32.mrb[26].mxu1  ;;  %v1324_v44 = vpop.f32.mrb[27].mxu0 }
 0x12a   :  { %v1325_v45 = vadd.f32 %v1324_v44, %v1323_v41  ;;  %v1388_v46 = vpop.f32.mrb[27].mxu1 }
 0x12b   :  { %v1389_v47 = vadd.f32 %v1388_v46, %v1387_v43  ;;  %v1811_v48 = vadd.f32 %v1386_v42, %v1322_v37 }
 0x12d   :  { %v1813_v49 = vadd.f32 %v1389_v47, %v1325_v45 }
 0x12e   :  { %v1326_v50 = vpop.f32.mrb[28].mxu0 }
 0x12f   :  { %v1390_v51 = vpop.f32.mrb[28].mxu1  ;;  %v1327_v54 = vpop.f32.mrb[29].mxu0 }
 0x130   :  { %v1328_v55 = vadd.f32 %v1327_v54, %v1326_v50  ;;  %v1391_v56 = vpop.f32.mrb[29].mxu1  ;;  %v1329_v57 = vpop.f32.mrb[30].mxu0 }
 0x131   :  { %v1392_v58 = vadd.f32 %v1391_v56, %v1390_v51  ;;  %v1393_v59 = vpop.f32.mrb[30].mxu1  ;;  %v1330_v60 = vpop.f32.mrb[31].mxu0 }
 0x132   :  { %v1331_v61 = vadd.f32 %v1330_v60, %v1329_v57  ;;  %v1394_v62 = vpop.f32.mrb[31].mxu1 }
 0x133   :  { %v1395_v63 = vadd.f32 %v1394_v62, %v1393_v59  ;;  %v803_v0 = vadd.f32 %v1392_v58, %v1328_v55 }
 0x135   :  { %v1815_v1 = vadd.f32 %v1395_v63, %v1331_v61 }
 0x136   :  { %v1418_v4 = vpop.f32.mrb[32].mxu0 }
 0x137   :  { %v852_v6 = vadd.f32 %v1418_v4, %v1797_v38  ;;  %v1426_v7 = vpop.f32.mrb[32].mxu1  ;;  %v843_v8 = vpop.f32.mrb[33].mxu0 }
 0x138   :  { %v884_v10 = vadd.f32 %v1426_v7, %v787_v32  ;;  %v844_v11 = vadd.f32 %v843_v8, %v1793_v24  ;;  %v875_v12 = vpop.f32.mrb[33].mxu1  ;;  %v1419_v13 = vpop.f32.mrb[34].mxu0 }
 0x139   :  { %v966_v14 = vmul.f32 %v1820_v5, %v852_v6  ;;  %v876_v15 = vadd.f32 %v875_v12, %v779_v16  ;;  %v855_v18 = vadd.f32 %v1419_v13, %v1799_v39  ;;  %v1427_v19 = vpop.f32.mrb[34].mxu1  ;;  %v846_v20 = vpop.f32.mrb[35].mxu0 }
 0x13a   :  { %v974_v38 = vmul.f32 %v1820_v5, %v884_v10  ;;  %v964_v21 = vmul.f32 %v1820_v5, %v844_v11  ;;  %v887_v22 = vadd.f32 %v1427_v19, %v790_v33  ;;  %v847_v23 = vadd.f32 %v846_v20, %v1795_v25  ;;  %v878_v26 = vpop.f32.mrb[35].mxu1 }
 0x13b   :  { %v989_v27 = vadd.f32 %v1826_v9, %v966_v14  ;;  %v972_v24 = vmul.f32 %v1820_v5, %v876_v15  ;;  %v967_v28 = vmul.f32 %v1820_v5, %v855_v18  ;;  %v879_v16 = vadd.f32 %v878_v26, %v1809_v17 }
 0x13c   :  { %v997_v39 = vadd.f32 %v1826_v9, %v974_v38  ;;  %v987_v29 = vadd.f32 %v1826_v9, %v964_v21  ;;  %v975_v30 = vmul.f32 %v1820_v5, %v887_v22  ;;  %v965_v31 = vmul.f32 %v1820_v5, %v847_v23 }
 0x13d   :  { %v1005_v32 = vmax.f32 %v989_v27, 0.0  ;;  %v995_v25 = vadd.f32 %v1826_v9, %v972_v24  ;;  %v990_v33 = vadd.f32 %v1826_v9, %v967_v28  ;;  %v973_v34 = vmul.f32 %v1820_v5, %v879_v16 }
 0x13e   :  { %v1013_v35 = vmax.f32 %v997_v39, 0.0  ;;  %v1003_v36 = vmax.f32 %v987_v29, 0.0  ;;  %v998_v37 = vadd.f32 %v1826_v9, %v975_v30  ;;  %v988_v17 = vadd.f32 %v1826_v9, %v965_v31  ;;  %v1422_v40 = vpop.f32.mrb[36].mxu0 }
 0x13f   :  { %v1011_v41 = vmax.f32 %v995_v25, 0.0  ;;  %v1006_v42 = vmax.f32 %v990_v33, 0.0  ;;  %v996_v43 = vadd.f32 %v1826_v9, %v973_v34  ;;  %v868_v44 = vadd.f32 %v1422_v40, %v1805_v2  ;;  %v1430_v45 = vpop.f32.mrb[36].mxu1  ;;  %v859_v46 = vpop.f32.mrb[37].mxu0 }
 0x140   :  { %v1014_v47 = vmax.f32 %v998_v37, 0.0  ;;  %v1004_v50 = vmax.f32 %v988_v17, 0.0  ;;  %v900_v51 = vadd.f32 %v1430_v45, %v803_v0  ;;  %v860_v54 = vadd.f32 %v859_v46, %v1801_v52  ;;  %v891_v55 = vpop.f32.mrb[37].mxu1  ;;  %v1423_v56 = vpop.f32.mrb[38].mxu0 }
 0x141   :  { %v1229_v57 = vpack.c.bf16 %v1006_v42, %v1005_v32  ;;  %v1012_v58 = vmax.f32 %v996_v43, 0.0  ;;  %v970_v59 = vmul.f32 %v1820_v5, %v868_v44  ;;  %v892_v60 = vadd.f32 %v891_v55, %v1811_v48  ;;  %v1431_v61 = vpop.f32.mrb[38].mxu1  ;;  %v862_v62 = vpop.f32.mrb[39].mxu0 }
 0x142   :  { %v1249_v63 = vpack.c.bf16 %v1014_v47, %v1013_v35  ;;  %v1224_v4 = vpack.c.bf16 %v1004_v50, %v1003_v36  ;;  %v978_v2 = vmul.f32 %v1820_v5, %v900_v51  ;;  %v968_v6 = vmul.f32 %v1820_v5, %v860_v54  ;;  %v894_v7 = vpop.f32.mrb[39].mxu1 }
 0x143   :  { %1261 = vst [vmem:[%s1899_s4 + $0x8] sm:$0xff] %v1229_v57   ;;  %v1244_v52 = vpack.c.bf16 %v1012_v58, %v1011_v41  ;;  %v976_v0 = vmul.f32 %v1820_v5, %v892_v60  ;;  %v871_v8 = vadd.f32 %v1423_v56, %v1807_v3  ;;  %v903_v48 = vadd.f32 %v1431_v61, %v1815_v1 }
 0x144   :  { %1265 = vst [vmem:[%s1899_s4 + $0x28] sm:$0xff] %v1249_v63   ;;  %1225 = vst [vmem:[%s1899_s4] sm:$0xff] %v1224_v4   ;;  %v863_v10 = vadd.f32 %v862_v62, %v1803_v53  ;;  %v993_v11 = vadd.f32 %v1826_v9, %v970_v59  ;;  %v895_v12 = vadd.f32 %v894_v7, %v1813_v49 }
 0x145   :  { %1264 = vst [vmem:[%s1899_s4 + $0x20] sm:$0xff] %v1244_v52   ;;  %v971_v3 = vmul.f32 %v1820_v5, %v871_v8  ;;  %v1001_v13 = vadd.f32 %v1826_v9, %v978_v2  ;;  %v991_v14 = vadd.f32 %v1826_v9, %v968_v6  ;;  %v979_v15 = vmul.f32 %v1820_v5, %v903_v48 }
 0x146   :  { %v969_v1 = vmul.f32 %v1820_v5, %v863_v10  ;;  %v999_v53 = vadd.f32 %v1826_v9, %v976_v0  ;;  %v977_v19 = vmul.f32 %v1820_v5, %v895_v12  ;;  %v1009_v21 = vmax.f32 %v993_v11, 0.0 }
 0x147   :  { %v994_v18 = vadd.f32 %v1826_v9, %v971_v3  ;;  %v1002_v20 = vadd.f32 %v1826_v9, %v979_v15  ;;  %v1017_v23 = vmax.f32 %v1001_v13, 0.0  ;;  %v1007_v26 = vmax.f32 %v991_v14, 0.0 }
 0x148   :  { %v992_v38 = vadd.f32 %v1826_v9, %v969_v1  ;;  %v1000_v22 = vadd.f32 %v1826_v9, %v977_v19  ;;  %v1015_v28 = vmax.f32 %v999_v53, 0.0 }
 0x149   :  { %v1010_v49 = vmax.f32 %v994_v18, 0.0  ;;  %v1018_v27 = vmax.f32 %v1002_v20, 0.0 }
 0x14a   :  { %v1008_v24 = vmax.f32 %v992_v38, 0.0  ;;  %v1016_v39 = vmax.f32 %v1000_v22, 0.0 }
 0x14b   :  { %v1239_v16 = vpack.c.bf16 %v1010_v49, %v1009_v21  ;;  %v1259_v29 = vpack.c.bf16 %v1018_v27, %v1017_v23 }
 0x14c   :  { %v1234_v30 = vpack.c.bf16 %v1008_v24, %v1007_v26  ;;  %v1254_v5 = vpack.c.bf16 %v1016_v39, %v1015_v28 }
 0x14d   :  { %1263 = vst [vmem:[%s1899_s4 + $0x18] sm:$0xff] %v1239_v16   ;;  %1267 = vst [vmem:[%s1899_s4 + $0x38] sm:$0xff] %v1259_v29  }
 0x14e   :  { %1262 = vst [vmem:[%s1899_s4 + $0x10] sm:$0xff] %v1234_v30   ;;  %1266 = vst [vmem:[%s1899_s4 + $0x30] sm:$0xff] %v1254_v5  }

// kernel: pretrained_cnn_forward.23
= control target key start
LH: loop header
LB: loop body
LE: loop exit
PB: predicated region body
PF: predicated region fallthrough
CT: control target
= control target key end

     0   :  { %vm593_vm0 = vcmask 523264   ;;  %s2063_s1 = inlined_call_operand.vmem [shape: bf16[576,128], index: 1, kind: input, shape index: {}]   ;;  %s2064_s0 = inlined_call_operand.vmem [shape: bf16[128,576], index: 0, kind: input, shape index: {}]   ;;  %s2065_s4 = inlined_call_operand.vmem [shape: bf16[128,128], index: 4, kind: input, shape index: {}]   ;;  %s2066_s2 = inlined_call_operand.vmem [shape: f32[1,128], index: 2, kind: input, shape index: {}]   ;;  %s2067_s3 = inlined_call_operand.vmem [shape: f32[1,128], index: 3, kind: input, shape index: {}]   ;;  %s2068_s5 = inlined_call_operand.vmem [shape: bf16[128,128], index: 5, kind: output, shape index: {}]  }
   0x1   :  { %v1530_v0 = vld [vmem:[%s2063_s1 + $0x40] sm:$0xff]   ;;  %v1534_v4 = vld [vmem:[%s2063_s1 + $0x48] sm:$0xff]   ;;  %v1538_v8 = vld [vmem:[%s2063_s1 + $0x50] sm:$0xff]  }
   0x2   :  { %v1531_v1 = vld [vmem:[%s2063_s1 + $0xc0] sm:$0xff]   ;;  %1358 = vmatprep.subr.bf16.mxu0 %v1530_v0  ;;  %v1535_v5 = vld [vmem:[%s2063_s1 + $0xc8] sm:$0xff]   ;;  %v1539_v9 = vld [vmem:[%s2063_s1 + $0xd0] sm:$0xff]  }
   0x3   :  { %v1532_v2 = vld [vmem:[%s2063_s1] sm:$0xff]   ;;  %1422 = vmatprep.subr.bf16.mxu1 %v1531_v1  ;;  %v1536_v6 = vld [vmem:[%s2063_s1 + $0x8] sm:$0xff]   ;;  %v1540_v10 = vld [vmem:[%s2063_s1 + $0x10] sm:$0xff]  }
   0x4   :  { %v1533_v3 = vld [vmem:[%s2063_s1 + $0x80] sm:$0xff]   ;;  %1359 = vmatpush3.bf16.msra.mxu0 %v1532_v2  ;;  %v1537_v7 = vld [vmem:[%s2063_s1 + $0x88] sm:$0xff]   ;;  %v1541_v11 = vld [vmem:[%s2063_s1 + $0x90] sm:$0xff]  }
   0x5   :  { %1423 = vmatpush3.bf16.msra.mxu1 %v1533_v3  ;;  %1360 = vmatprep.subr.bf16.mxu0 %v1534_v4  ;;  %v1542_v12 = vld [vmem:[%s2063_s1 + $0x58] sm:$0xff]   ;;  %v1546_v16 = vld [vmem:[%s2063_s1 + $0x60] sm:$0xff]   ;;  %v1550_v20 = vld [vmem:[%s2063_s1 + $0x68] sm:$0xff]  }
   0x6   :  { %1424 = vmatprep.subr.bf16.mxu1 %v1535_v5  ;;  %v1543_v13 = vld [vmem:[%s2063_s1 + $0xd8] sm:$0xff]   ;;  %v1547_v17 = vld [vmem:[%s2063_s1 + $0xe0] sm:$0xff]   ;;  %v1551_v21 = vld [vmem:[%s2063_s1 + $0xe8] sm:$0xff]  }
   0x7   :  { %v1544_v14 = vld [vmem:[%s2063_s1 + $0x18] sm:$0xff]   ;;  %v1548_v18 = vld [vmem:[%s2063_s1 + $0x20] sm:$0xff]   ;;  %v1552_v22 = vld [vmem:[%s2063_s1 + $0x28] sm:$0xff]  }
   0x8   :  { %1361 = vmatpush3.bf16.msra.mxu0 %v1536_v6  ;;  %v1545_v15 = vld [vmem:[%s2063_s1 + $0x98] sm:$0xff]   ;;  %v1549_v19 = vld [vmem:[%s2063_s1 + $0xa0] sm:$0xff]   ;;  %v1553_v23 = vld [vmem:[%s2063_s1 + $0xa8] sm:$0xff]  }
   0x9   :  { %1425 = vmatpush3.bf16.msra.mxu1 %v1537_v7  ;;  %1362 = vmatprep.subr.bf16.mxu0 %v1538_v8  ;;  %v1554_v24 = vld [vmem:[%s2063_s1 + $0x70] sm:$0xff]   ;;  %v1558_v28 = vld [vmem:[%s2063_s1 + $0x78] sm:$0xff]   ;;  %v1567_v35 = vld [vmem:[%s2064_s0 + $0xc] ss:$20 sps:$4 sm:$0xff]  }
   0xa   :  { %1426 = vmatprep.subr.bf16.mxu1 %v1539_v9  ;;  %v1555_v25 = vld [vmem:[%s2063_s1 + $0xf0] sm:$0xff]   ;;  %v1559_v29 = vld [vmem:[%s2063_s1 + $0xf8] sm:$0xff]   ;;  %v1568_v36 = vld [vmem:[%s2063_s1 + $0x100] sm:$0xff]   ;;  %747 = vmatprep.mubr.bf16.mxu1 %v1567_v35 }
   0xb   :  { %v1556_v26 = vld [vmem:[%s2063_s1 + $0x30] sm:$0xff]   ;;  %v1560_v30 = vld [vmem:[%s2063_s1 + $0x38] sm:$0xff]   ;;  %v1569_v37 = vld [vmem:[%s2064_s0 + $0x2c] ss:$20 sps:$4 sm:$0xff]  }
   0xc   :  { %1363 = vmatpush3.bf16.msra.mxu0 %v1540_v10  ;;  %v1557_v27 = vld [vmem:[%s2063_s1 + $0xb0] sm:$0xff]   ;;  %v1561_v31 = vld [vmem:[%s2063_s1 + $0xb8] sm:$0xff]   ;;  %v1581_v42 = vld [vmem:[%s2063_s1 + $0x108] sm:$0xff]  }
   0xd   :  { %1427 = vmatpush3.bf16.msra.mxu1 %v1541_v11  ;;  %1364 = vmatprep.subr.bf16.mxu0 %v1542_v12  ;;  %v1562_v32 = vld [vmem:[%s2064_s0] ss:$20 sps:$4 sm:$0xff]   ;;  %v1564_v33 = vld [vmem:[%s2064_s0 + $0x4] ss:$20 sps:$4 sm:$0xff]   ;;  %v1565_v34 = vld [vmem:[%s2064_s0 + $0x8] ss:$20 sps:$4 sm:$0xff]  }
   0xe   :  { %1428 = vmatprep.subr.bf16.mxu1 %v1543_v13  ;;  %650 = vmatprep.mubr.bf16.mxu0 %v1564_v33  ;;  %v1571_v38 = vld [vmem:[%s2064_s0 + $0x34] ss:$20 sps:$4 sm:$0xff]   ;;  %v1574_v40 = vld [vmem:[%s2064_s0 + $0x30] ss:$20 sps:$4 sm:$0xff]   ;;  %v1580_v45 = vld [vmem:[%s2064_s0 + $0x58] ss:$20 sps:$4 sm:$0xff]  }
   0xf   :  { %v1573_v39 = vld [vmem:[%s2064_s0 + $0x28] ss:$20 sps:$4 sm:$0xff]   ;;  %v1579_v44 = vld [vmem:[%s2064_s0 + $0x50] ss:$20 sps:$4 sm:$0xff]   ;;  %v1586_v50 = vld [vmem:[%s2064_s0 + $0x78] ss:$20 sps:$4 sm:$0xff]  }
  0x10   :  { %1365 = vmatpush3.bf16.msra.mxu0 %v1544_v14  ;;  %v1575_v41 = vld [vmem:[%s2064_s0 + $0x54] ss:$20 sps:$4 sm:$0xff]   ;;  %v1577_v43 = vld [vmem:[%s2064_s0 + $0x5c] ss:$20 sps:$4 sm:$0xff]   ;;  %v1584_v48 = vld [vmem:[%s2064_s0 + $0x84] ss:$20 sps:$4 sm:$0xff]  }
  0x11   :  { %1429 = vmatpush3.bf16.msra.mxu1 %v1545_v15  ;;  %1366 = vmatprep.subr.bf16.mxu0 %v1546_v16  ;;  %v1594_v46 = vld [vmem:[%s2063_s1 + $0x110] sm:$0xff]   ;;  %v1607_v49 = vld [vmem:[%s2063_s1 + $0x118] sm:$0xff]   ;;  %v1590_v53 = vld [vmem:[%s2064_s0 + $0xac] ss:$20 sps:$4 sm:$0xff]  }
  0x12   :  { %1430 = vmatprep.subr.bf16.mxu1 %v1547_v17  ;;  %v1582_v47 = vld [vmem:[%s2064_s0 + $0x7c] ss:$20 sps:$4 sm:$0xff]   ;;  %v1587_v51 = vld [vmem:[%s2064_s0 + $0x80] ss:$20 sps:$4 sm:$0xff]   ;;  %v1588_v52 = vld [vmem:[%s2064_s0 + $0xa4] ss:$20 sps:$4 sm:$0xff]  }
  0x13   :  { %v1592_v54 = vld [vmem:[%s2064_s0 + $0xa0] ss:$20 sps:$4 sm:$0xff]   ;;  %v1593_v55 = vld [vmem:[%s2064_s0 + $0xa8] ss:$20 sps:$4 sm:$0xff]   ;;  %v1600_v59 = vld [vmem:[%s2064_s0 + $0xd0] ss:$20 sps:$4 sm:$0xff]  }
  0x14   :  { %1367 = vmatpush3.bf16.msra.mxu0 %v1548_v18  ;;  %v1595_v56 = vld [vmem:[%s2064_s0 + $0xcc] ss:$20 sps:$4 sm:$0xff]   ;;  %v1597_v57 = vld [vmem:[%s2064_s0 + $0xd4] ss:$20 sps:$4 sm:$0xff]   ;;  %v1603_v61 = vld [vmem:[%s2064_s0 + $0xfc] ss:$20 sps:$4 sm:$0xff]  }
  0x15   :  { %1431 = vmatpush3.bf16.msra.mxu1 %v1549_v19  ;;  %1368 = vmatprep.subr.bf16.mxu0 %v1550_v20  ;;  %v1599_v58 = vld [vmem:[%s2064_s0 + $0xc8] ss:$20 sps:$4 sm:$0xff]   ;;  %v1605_v62 = vld [vmem:[%s2064_s0 + $0xf0] ss:$20 sps:$4 sm:$0xff]   ;;  %v1606_v63 = vld [vmem:[%s2064_s0 + $0xf8] ss:$20 sps:$4 sm:$0xff]  }
  0x16   :  { %1432 = vmatprep.subr.bf16.mxu1 %v1551_v21  ;;  %v1601_v60 = vld [vmem:[%s2064_s0 + $0xf4] ss:$20 sps:$4 sm:$0xff]   ;;  %v1608_v0 = vld [vmem:[%s2064_s0 + $0x11c] ss:$20 sps:$4 sm:$0xff]   ;;  %v1610_v1 = vld [vmem:[%s2064_s0 + $0x124] ss:$20 sps:$4 sm:$0xff]  }
  0x17   :  { %v1612_v2 = vld [vmem:[%s2064_s0 + $0x118] ss:$20 sps:$4 sm:$0xff]   ;;  %v1613_v3 = vld [vmem:[%s2064_s0 + $0x120] ss:$20 sps:$4 sm:$0xff]   ;;  %v1614_v4 = vld [vmem:[%s2064_s0 + $0x10] ss:$20 sps:$4 sm:$0xff]  }
  0x18   :  { %1369 = vmatpush3.bf16.msra.mxu0 %v1552_v22  ;;  %v1615_v5 = vld [vmem:[%s2064_s0 + $0xb0] ss:$20 sps:$4 sm:$0xff]   ;;  %v1616_v6 = vld [vmem:[%s2064_s0 + $0x38] ss:$20 sps:$4 sm:$0xff]   ;;  %v1618_v8 = vld [vmem:[%s2064_s0 + $0x60] ss:$20 sps:$4 sm:$0xff]  }
  0x19   :  { %1433 = vmatpush3.bf16.msra.mxu1 %v1553_v23  ;;  %1370 = vmatprep.subr.bf16.mxu0 %v1554_v24  ;;  %v1617_v7 = vld [vmem:[%s2064_s0 + $0xd8] ss:$20 sps:$4 sm:$0xff]   ;;  %v1619_v9 = vld [vmem:[%s2064_s0 + $0x100] ss:$20 sps:$4 sm:$0xff]   ;;  %v1620_v10 = vld [vmem:[%s2064_s0 + $0x88] ss:$20 sps:$4 sm:$0xff]  }
  0x1a   :  { %1434 = vmatprep.subr.bf16.mxu1 %v1555_v25  ;;  %v1621_v11 = vld [vmem:[%s2064_s0 + $0x128] ss:$20 sps:$4 sm:$0xff]  }
  0x1c   :  { %1371 = vmatpush3.bf16.msra.mxu0 %v1556_v26 }
  0x1d   :  { %1435 = vmatpush3.bf16.msra.mxu1 %v1557_v27  ;;  %1372 = vmatprep.subr.bf16.mxu0 %v1558_v28 }
  0x1e   :  { %1436 = vmatprep.subr.bf16.mxu1 %v1559_v29 }
  0x20   :  { %1373 = vmatpush3.bf16.msra.mxu0 %v1560_v30 }
  0x21   :  { %1437 = vmatpush3.bf16.msra.mxu1 %v1561_v31  ;;  %1498 = vmatprep.subr.bf16.mxu0 %v1568_v36 }
  0x22   :  { %1522 = vmatprep.subr.bf16.mxu1 %v1568_v36 }
  0x23   :  { %651 = vmatmul.mubr.bf16.vlgmr.msra.gmra.mrb[0].mxu0 %v1562_v32 }
  0x24   :  { %748 = vmatmul.mubr.bf16.vlgmr.msra.gmra.mrb[0].mxu1 %v1565_v34  ;;  %1499 = vmatpush3.bf16.msra.mxu0 %v1568_v36 }
  0x25   :  { %1526 = vmatpush3.bf16.msra.mxu1 %v1568_v36  ;;  %658 = vmatprep.mubr.bf16.mxu0 %v1569_v37 }
  0x26   :  { %755 = vmatprep.mubr.bf16.mxu1 %v1571_v38  ;;  %1500 = vmatprep.subr.bf16.mxu0 %v1581_v42 }
  0x27   :  { %1523 = vmatprep.subr.bf16.mxu1 %v1581_v42 }
  0x28   :  { %1501 = vmatpush3.bf16.msra.mxu0 %v1581_v42 }
  0x29   :  { %1527 = vmatpush3.bf16.msra.mxu1 %v1581_v42  ;;  %1502 = vmatprep.subr.bf16.mxu0 %v1594_v46 }
  0x2a   :  { %1524 = vmatprep.subr.bf16.mxu1 %v1594_v46 }
  0x2b   :  { %659 = vmatmul.mubr.bf16.gmra.mrb[4].mxu0 %v1573_v39 }
  0x2c   :  { %756 = vmatmul.mubr.bf16.gmra.mrb[4].mxu1 %v1574_v40  ;;  %666 = vmatprep.mubr.bf16.mxu0 %v1575_v41 }
  0x2d   :  { %763 = vmatprep.mubr.bf16.mxu1 %v1577_v43  ;;  %1503 = vmatpush3.bf16.msra.mxu0 %v1594_v46 }
  0x2e   :  { %1528 = vmatpush3.bf16.msra.mxu1 %v1594_v46  ;;  %1504 = vmatprep.subr.bf16.mxu0 %v1607_v49 }
  0x2f   :  { %1525 = vmatprep.subr.bf16.mxu1 %v1607_v49 }
  0x31   :  { %1505 = vmatpush3.bf16.msra.mxu0 %v1607_v49 }
  0x32   :  { %1529 = vmatpush3.bf16.msra.mxu1 %v1607_v49 }
  0x33   :  { %667 = vmatmul.mubr.bf16.gmra.mrb[8].mxu0 %v1579_v44 }
  0x34   :  { %764 = vmatmul.mubr.bf16.gmra.mrb[8].mxu1 %v1580_v45  ;;  %674 = vmatprep.mubr.bf16.mxu0 %v1582_v47 }
  0x35   :  { %771 = vmatprep.mubr.bf16.mxu1 %v1584_v48 }
  0x3b   :  { %675 = vmatmul.mubr.bf16.gmra.mrb[12].mxu0 %v1586_v50 }
  0x3c   :  { %772 = vmatmul.mubr.bf16.gmra.mrb[12].mxu1 %v1587_v51  ;;  %682 = vmatprep.mubr.bf16.mxu0 %v1588_v52 }
  0x3d   :  { %779 = vmatprep.mubr.bf16.mxu1 %v1590_v53 }
  0x43   :  { %683 = vmatmul.mubr.bf16.gmra.mrb[16].mxu0 %v1592_v54 }
  0x44   :  { %780 = vmatmul.mubr.bf16.gmra.mrb[16].mxu1 %v1593_v55  ;;  %690 = vmatprep.mubr.bf16.mxu0 %v1595_v56 }
  0x45   :  { %787 = vmatprep.mubr.bf16.mxu1 %v1597_v57 }
  0x4b   :  { %691 = vmatmul.mubr.bf16.gmra.mrb[20].mxu0 %v1599_v58 }
  0x4c   :  { %788 = vmatmul.mubr.bf16.gmra.mrb[20].mxu1 %v1600_v59  ;;  %698 = vmatprep.mubr.bf16.mxu0 %v1601_v60 }
  0x4d   :  { %795 = vmatprep.mubr.bf16.mxu1 %v1603_v61 }
  0x53   :  { %699 = vmatmul.mubr.bf16.gmra.mrb[24].mxu0 %v1605_v62 }
  0x54   :  { %796 = vmatmul.mubr.bf16.gmra.mrb[24].mxu1 %v1606_v63  ;;  %706 = vmatprep.mubr.bf16.mxu0 %v1608_v0 }
  0x55   :  { %803 = vmatprep.mubr.bf16.mxu1 %v1610_v1 }
  0x5b   :  { %707 = vmatmul.mubr.bf16.gmra.mrb[28].mxu0 %v1612_v2 }
  0x5c   :  { %804 = vmatmul.mubr.bf16.gmra.mrb[28].mxu1 %v1613_v3  ;;  %1506 = vmatprep.mubr.msk.bf16.mxu0 %vm593_vm0, %v1614_v4 }
  0x5d   :  { %1514 = vmatprep.mubr.msk.bf16.mxu1 %vm593_vm0, %v1615_v5 }
  0x63   :  { %1507 = vmatmul.mubr.msk.bf16.vlgmr.msra.gmra.mrb[32].mxu0 %vm593_vm0, %v1616_v6 }
  0x64   :  { %1515 = vmatmul.mubr.msk.bf16.vlgmr.msra.gmra.mrb[32].mxu1 %vm593_vm0, %v1617_v7  ;;  %1510 = vmatprep.mubr.msk.bf16.mxu0 %vm593_vm0, %v1618_v8 }
  0x65   :  { %1518 = vmatprep.mubr.msk.bf16.mxu1 %vm593_vm0, %v1619_v9 }
  0x6b   :  { %1511 = vmatmul.mubr.msk.bf16.gmra.mrb[36].mxu0 %vm593_vm0, %v1620_v10 }
  0x6c   :  { %1519 = vmatmul.mubr.msk.bf16.gmra.mrb[36].mxu1 %vm593_vm0, %v1621_v11 }
  0xf6   :  { %v1374_v12 = vpop.f32.mrb[0].mxu0 }
  0xf7   :  { %v1438_v13 = vpop.f32.mrb[0].mxu1  ;;  %v1375_v14 = vpop.f32.mrb[1].mxu0 }
  0xf8   :  { %v1376_v15 = vadd.f32 %v1375_v14, %v1374_v12  ;;  %v1439_v16 = vpop.f32.mrb[1].mxu1  ;;  %v1377_v17 = vpop.f32.mrb[2].mxu0 }
  0xf9   :  { %v1440_v18 = vadd.f32 %v1439_v16, %v1438_v13  ;;  %v1441_v19 = vpop.f32.mrb[2].mxu1  ;;  %v1378_v20 = vpop.f32.mrb[3].mxu0 }
  0xfa   :  { %v1379_v21 = vadd.f32 %v1378_v20, %v1377_v17  ;;  %v1442_v22 = vpop.f32.mrb[3].mxu1 }
  0xfb   :  { %v1443_v23 = vadd.f32 %v1442_v22, %v1441_v19  ;;  %v1888_v24 = vadd.f32 %v1440_v18, %v1376_v15 }
  0xfd   :  { %v1890_v25 = vadd.f32 %v1443_v23, %v1379_v21 }
  0xfe   :  { %v1380_v26 = vpop.f32.mrb[4].mxu0 }
  0xff   :  { %v1444_v27 = vpop.f32.mrb[4].mxu1  ;;  %v1381_v28 = vpop.f32.mrb[5].mxu0 }
 0x100   :  { %v1382_v29 = vadd.f32 %v1381_v28, %v1380_v26  ;;  %v1445_v30 = vpop.f32.mrb[5].mxu1  ;;  %v1383_v31 = vpop.f32.mrb[6].mxu0 }
 0x101   :  { %v1446_v32 = vadd.f32 %v1445_v30, %v1444_v27  ;;  %v1447_v33 = vpop.f32.mrb[6].mxu1  ;;  %v1384_v34 = vpop.f32.mrb[7].mxu0 }
 0x102   :  { %v1385_v35 = vadd.f32 %v1384_v34, %v1383_v31  ;;  %v1448_v36 = vpop.f32.mrb[7].mxu1 }
 0x103   :  { %v1449_v37 = vadd.f32 %v1448_v36, %v1447_v33  ;;  %v1892_v38 = vadd.f32 %v1446_v32, %v1382_v29 }
 0x105   :  { %v1894_v39 = vadd.f32 %v1449_v37, %v1385_v35 }
 0x106   :  { %v1386_v40 = vpop.f32.mrb[8].mxu0 }
 0x107   :  { %v1450_v41 = vpop.f32.mrb[8].mxu1  ;;  %v1387_v42 = vpop.f32.mrb[9].mxu0 }
 0x108   :  { %v1388_v43 = vadd.f32 %v1387_v42, %v1386_v40  ;;  %v1451_v44 = vpop.f32.mrb[9].mxu1  ;;  %v1389_v45 = vpop.f32.mrb[10].mxu0 }
 0x109   :  { %v1452_v46 = vadd.f32 %v1451_v44, %v1450_v41  ;;  %v1453_v47 = vpop.f32.mrb[10].mxu1  ;;  %v1390_v48 = vpop.f32.mrb[11].mxu0 }
 0x10a   :  { %v1391_v49 = vadd.f32 %v1390_v48, %v1389_v45  ;;  %v1454_v50 = vpop.f32.mrb[11].mxu1 }
 0x10b   :  { %v1455_v51 = vadd.f32 %v1454_v50, %v1453_v47  ;;  %v1896_v52 = vadd.f32 %v1452_v46, %v1388_v43 }
 0x10d   :  { %v1898_v53 = vadd.f32 %v1455_v51, %v1391_v49 }
 0x10e   :  { %v1392_v54 = vpop.f32.mrb[12].mxu0 }
 0x10f   :  { %v1456_v55 = vpop.f32.mrb[12].mxu1  ;;  %v1393_v56 = vpop.f32.mrb[13].mxu0 }
 0x110   :  { %v1394_v57 = vadd.f32 %v1393_v56, %v1392_v54  ;;  %v1457_v58 = vpop.f32.mrb[13].mxu1  ;;  %v1395_v59 = vpop.f32.mrb[14].mxu0 }
 0x111   :  { %v1458_v60 = vadd.f32 %v1457_v58, %v1456_v55  ;;  %v1459_v61 = vpop.f32.mrb[14].mxu1  ;;  %v1396_v62 = vpop.f32.mrb[15].mxu0 }
 0x112   :  { %v1397_v63 = vadd.f32 %v1396_v62, %v1395_v59  ;;  %v1460_v0 = vpop.f32.mrb[15].mxu1 }
 0x113   :  { %v1461_v1 = vadd.f32 %v1460_v0, %v1459_v61  ;;  %v1900_v2 = vadd.f32 %v1458_v60, %v1394_v57  ;;  %v1922_v0 = vld [vmem:[%s2065_s4 + $0x28] sm:$0xff]  }
 0x115   :  { %v1902_v3 = vadd.f32 %v1461_v1, %v1397_v63  ;;  %v1917_v63 = vld [vmem:[%s2065_s4 + $0x8] sm:$0xff]  }
 0x116   :  { %v1398_v4 = vpop.f32.mrb[16].mxu0 }
 0x117   :  { %v1462_v5 = vpop.f32.mrb[16].mxu1  ;;  %v1399_v6 = vpop.f32.mrb[17].mxu0 }
 0x118   :  { %v1400_v7 = vadd.f32 %v1399_v6, %v1398_v4  ;;  %v1463_v8 = vpop.f32.mrb[17].mxu1  ;;  %v1401_v9 = vpop.f32.mrb[18].mxu0  ;;  %v1927_v4 = vld [vmem:[%s2065_s4] sm:$0xff]  }
 0x119   :  { %v1464_v10 = vadd.f32 %v1463_v8, %v1462_v5  ;;  %v1465_v11 = vpop.f32.mrb[18].mxu1  ;;  %v1402_v12 = vpop.f32.mrb[19].mxu0  ;;  %v1932_v5 = vld [vmem:[%s2065_s4 + $0x20] sm:$0xff]   ;;  %v1278_v8 = vunpack.c.l.bf16 %v1917_v63 }
 0x11a   :  { %v1403_v13 = vadd.f32 %v1402_v12, %v1401_v9  ;;  %v1466_v14 = vpop.f32.mrb[19].mxu1  ;;  %v1294_v9 = vunpack.c.l.bf16 %v1922_v0 }
 0x11b   :  { %v1467_v15 = vadd.f32 %v1466_v14, %v1465_v11  ;;  %v1904_v16 = vadd.f32 %v1464_v10, %v1400_v7  ;;  %v1939_v7 = vld [vmem:[%s2065_s4 + $0x18] sm:$0xff]   ;;  %v1951_v11 = vld [vmem:[%s2065_s4 + $0x10] sm:$0xff]   ;;  %v1958_v14 = vld [vmem:[%s2066_s2] ss:$0 sm:$0xff] }
 0x11c   :  { %v1946_v10 = vld [vmem:[%s2065_s4 + $0x38] sm:$0xff]  }
 0x11d   :  { %v1906_v17 = vadd.f32 %v1467_v15, %v1403_v13  ;;  %v1274_v15 = vunpack.c.l.bf16 %v1927_v4 }
 0x11e   :  { %v1404_v18 = vpop.f32.mrb[20].mxu0 }
 0x11f   :  { %v1468_v19 = vpop.f32.mrb[20].mxu1  ;;  %v1405_v20 = vpop.f32.mrb[21].mxu0 }
 0x120   :  { %v1406_v21 = vadd.f32 %v1405_v20, %v1404_v18  ;;  %v1469_v22 = vpop.f32.mrb[21].mxu1  ;;  %v1407_v23 = vpop.f32.mrb[22].mxu0  ;;  %v1290_v18 = vunpack.c.l.bf16 %v1932_v5  ;;  %v1295_v20 = vunpack.c.h.bf16 %v1922_v0 }
 0x121   :  { %v1470_v26 = vadd.f32 %v1469_v22, %v1468_v19  ;;  %v1471_v27 = vpop.f32.mrb[22].mxu1  ;;  %v1408_v28 = vpop.f32.mrb[23].mxu0  ;;  %v1279_v19 = vunpack.c.h.bf16 %v1917_v63 }
 0x122   :  { %v1409_v29 = vadd.f32 %v1408_v28, %v1407_v23  ;;  %v1472_v30 = vpop.f32.mrb[23].mxu1  ;;  %v1291_v28 = vunpack.c.h.bf16 %v1932_v5 }
 0x123   :  { %v1473_v31 = vadd.f32 %v1472_v30, %v1471_v27  ;;  %v790_v32 = vadd.f32 %v1470_v26, %v1406_v21  ;;  %v1967_v21 = vld [vmem:[%s2065_s4 + $0x30] sm:$0xff]   ;;  %v1275_v27 = vunpack.c.h.bf16 %v1927_v4  ;;  %v1976_v30 = vld [vmem:[%s2067_s3] ss:$0 sm:$0xff] }
 0x125   :  { %v1908_v33 = vadd.f32 %v1473_v31, %v1409_v29  ;;  %v1286_v29 = vunpack.c.l.bf16 %v1939_v7 }
 0x126   :  { %v1410_v34 = vpop.f32.mrb[24].mxu0 }
 0x127   :  { %v1474_v35 = vpop.f32.mrb[24].mxu1  ;;  %v1411_v36 = vpop.f32.mrb[25].mxu0 }
 0x128   :  { %v1412_v37 = vadd.f32 %v1411_v36, %v1410_v34  ;;  %v1475_v40 = vpop.f32.mrb[25].mxu1  ;;  %v1413_v41 = vpop.f32.mrb[26].mxu0 }
 0x129   :  { %v1476_v42 = vadd.f32 %v1475_v40, %v1474_v35  ;;  %v1477_v43 = vpop.f32.mrb[26].mxu1  ;;  %v1414_v44 = vpop.f32.mrb[27].mxu0 }
 0x12a   :  { %v1415_v45 = vadd.f32 %v1414_v44, %v1413_v41  ;;  %v1478_v46 = vpop.f32.mrb[27].mxu1 }
 0x12b   :  { %v1479_v47 = vadd.f32 %v1478_v46, %v1477_v43  ;;  %v1910_v48 = vadd.f32 %v1476_v42, %v1412_v37  ;;  %v1282_v37 = vunpack.c.l.bf16 %v1951_v11 }
 0x12d   :  { %v1912_v49 = vadd.f32 %v1479_v47, %v1415_v45  ;;  %v1298_v45 = vunpack.c.l.bf16 %v1967_v21 }
 0x12e   :  { %v1416_v50 = vpop.f32.mrb[28].mxu0 }
 0x12f   :  { %v1480_v51 = vpop.f32.mrb[28].mxu1  ;;  %v1417_v54 = vpop.f32.mrb[29].mxu0 }
 0x130   :  { %v1418_v55 = vadd.f32 %v1417_v54, %v1416_v50  ;;  %v1481_v56 = vpop.f32.mrb[29].mxu1  ;;  %v1419_v57 = vpop.f32.mrb[30].mxu0 }
 0x131   :  { %v1482_v58 = vadd.f32 %v1481_v56, %v1480_v51  ;;  %v1483_v59 = vpop.f32.mrb[30].mxu1  ;;  %v1420_v60 = vpop.f32.mrb[31].mxu0 }
 0x132   :  { %v1421_v61 = vadd.f32 %v1420_v60, %v1419_v57  ;;  %v1484_v62 = vpop.f32.mrb[31].mxu1 }
 0x133   :  { %v1485_v1 = vadd.f32 %v1484_v62, %v1483_v59  ;;  %v1934_v6 = vadd.f32 %v1482_v58, %v1418_v55 }
 0x135   :  { %v1953_v12 = vadd.f32 %v1485_v1, %v1421_v61 }
 0x136   :  { %v1508_v13 = vpop.f32.mrb[32].mxu0 }
 0x137   :  { %v855_v22 = vadd.f32 %v1508_v13, %v1892_v38  ;;  %v1516_v23 = vpop.f32.mrb[32].mxu1  ;;  %v846_v26 = vpop.f32.mrb[33].mxu0  ;;  %v1302_v38 = vunpack.c.l.bf16 %v1946_v10 }
 0x138   :  { %v887_v31 = vadd.f32 %v1516_v23, %v790_v32  ;;  %v847_v34 = vadd.f32 %v846_v26, %v1888_v24  ;;  %v878_v35 = vpop.f32.mrb[33].mxu1  ;;  %v1509_v36 = vpop.f32.mrb[34].mxu0 }
 0x139   :  { %v969_v40 = vmul.f32 %v1958_v14, %v855_v22  ;;  %v879_v41 = vadd.f32 %v878_v35, %v1904_v16  ;;  %v858_v42 = vadd.f32 %v1509_v36, %v1894_v39  ;;  %v1517_v43 = vpop.f32.mrb[34].mxu1  ;;  %v849_v44 = vpop.f32.mrb[35].mxu0 }
 0x13a   :  { %v977_v32 = vmul.f32 %v1958_v14, %v887_v31  ;;  %v967_v24 = vmul.f32 %v1958_v14, %v847_v34  ;;  %v890_v46 = vadd.f32 %v1517_v43, %v1908_v33  ;;  %v850_v47 = vadd.f32 %v849_v44, %v1890_v25  ;;  %v881_v50 = vpop.f32.mrb[35].mxu1 }
 0x13b   :  { %v992_v51 = vadd.f32 %v1976_v30, %v969_v40  ;;  %v975_v54 = vmul.f32 %v1958_v14, %v879_v41  ;;  %v970_v16 = vmul.f32 %v1958_v14, %v858_v42  ;;  %v882_v39 = vadd.f32 %v881_v50, %v1906_v17 }
 0x13c   :  { %v1000_v55 = vadd.f32 %v1976_v30, %v977_v32  ;;  %v990_v56 = vadd.f32 %v1976_v30, %v967_v24  ;;  %v978_v57 = vmul.f32 %v1958_v14, %v890_v46  ;;  %v968_v58 = vmul.f32 %v1958_v14, %v850_v47 }
 0x13d   :  { %v1040_v33 = vadd.f32 %v1278_v8, %v992_v51  ;;  %v998_v25 = vadd.f32 %v1976_v30, %v975_v54  ;;  %v993_v59 = vadd.f32 %v1976_v30, %v970_v16  ;;  %v976_v60 = vmul.f32 %v1958_v14, %v882_v39 }
 0x13e   :  { %v1048_v61 = vadd.f32 %v1294_v9, %v1000_v55  ;;  %v1038_v62 = vadd.f32 %v1274_v15, %v990_v56  ;;  %v1001_v63 = vadd.f32 %v1976_v30, %v978_v57  ;;  %v991_v17 = vadd.f32 %v1976_v30, %v968_v58  ;;  %v1512_v0 = vpop.f32.mrb[36].mxu0 }
 0x13f   :  { %v1056_v1 = vmax.f32 %v1040_v33, 0.0  ;;  %v1046_v4 = vadd.f32 %v1290_v18, %v998_v25  ;;  %v1041_v5 = vadd.f32 %v1279_v19, %v993_v59  ;;  %v999_v13 = vadd.f32 %v1976_v30, %v976_v60  ;;  %v1520_v22 = vpop.f32.mrb[36].mxu1  ;;  %v862_v8 = vpop.f32.mrb[37].mxu0 }
 0x140   :  { %v1064_v23 = vmax.f32 %v1048_v61, 0.0  ;;  %v1054_v26 = vmax.f32 %v1038_v62, 0.0  ;;  %v1049_v31 = vadd.f32 %v1295_v20, %v1001_v63  ;;  %v1039_v34 = vadd.f32 %v1275_v27, %v991_v17  ;;  %v894_v35 = vpop.f32.mrb[37].mxu1  ;;  %v1513_v36 = vpop.f32.mrb[38].mxu0 }
 0x141   :  { %v1062_v9 = vmax.f32 %v1046_v4, 0.0  ;;  %v1057_v15 = vmax.f32 %v1041_v5, 0.0  ;;  %v1047_v40 = vadd.f32 %v1291_v28, %v999_v13  ;;  %v871_v41 = vadd.f32 %v1512_v0, %v1900_v2  ;;  %v1521_v42 = vpop.f32.mrb[38].mxu1  ;;  %v865_v43 = vpop.f32.mrb[39].mxu0 }
 0x142   :  { %v1065_v44 = vmax.f32 %v1049_v31, 0.0  ;;  %v1055_v18 = vmax.f32 %v1039_v34, 0.0  ;;  %v903_v19 = vadd.f32 %v1520_v22, %v1934_v6  ;;  %v863_v32 = vadd.f32 %v862_v8, %v1896_v52  ;;  %v897_v24 = vpop.f32.mrb[39].mxu1 }
 0x143   :  { %v1312_v46 = vpack.c.bf16 %v1057_v15, %v1056_v1  ;;  %v1063_v47 = vmax.f32 %v1047_v40, 0.0  ;;  %v973_v20 = vmul.f32 %v1958_v14, %v871_v41  ;;  %v895_v27 = vadd.f32 %v894_v35, %v1910_v48 }
 0x144   :  { %v1332_v50 = vpack.c.bf16 %v1065_v44, %v1064_v23  ;;  %v1307_v51 = vpack.c.bf16 %v1055_v18, %v1054_v26  ;;  %v981_v28 = vmul.f32 %v1958_v14, %v903_v19  ;;  %v971_v2 = vmul.f32 %v1958_v14, %v863_v32 }
 0x145   :  { %1351 = vst [vmem:[%s2068_s5 + $0x8] sm:$0xff] %v1312_v46   ;;  %v1327_v6 = vpack.c.bf16 %v1063_v47, %v1062_v9  ;;  %v996_v52 = vadd.f32 %v1976_v30, %v973_v20  ;;  %v979_v54 = vmul.f32 %v1958_v14, %v895_v27  ;;  %v874_v16 = vadd.f32 %v1513_v36, %v1902_v3 }
 0x146   :  { %1355 = vst [vmem:[%s2068_s5 + $0x28] sm:$0xff] %v1332_v50   ;;  %1308 = vst [vmem:[%s2068_s5] sm:$0xff] %v1307_v51   ;;  %v1004_v48 = vadd.f32 %v1976_v30, %v981_v28  ;;  %v994_v39 = vadd.f32 %v1976_v30, %v971_v2  ;;  %v906_v55 = vadd.f32 %v1521_v42, %v1953_v12  ;;  %v1287_v58 = vunpack.c.h.bf16 %v1939_v7 }
 0x147   :  { %v866_v56 = vadd.f32 %v865_v43, %v1898_v53  ;;  %1354 = vst [vmem:[%s2068_s5 + $0x20] sm:$0xff] %v1327_v6   ;;  %v1002_v3 = vadd.f32 %v1976_v30, %v979_v54  ;;  %v974_v57 = vmul.f32 %v1958_v14, %v874_v16  ;;  %v898_v33 = vadd.f32 %v897_v24, %v1912_v49 }
 0x148   :  { %v982_v25 = vmul.f32 %v1958_v14, %v906_v55  ;;  %v1303_v59 = vunpack.c.h.bf16 %v1946_v10  ;;  %v1283_v53 = vunpack.c.h.bf16 %v1951_v11  ;;  %v1044_v60 = vadd.f32 %v1286_v29, %v996_v52 }
 0x149   :  { %v972_v12 = vmul.f32 %v1958_v14, %v866_v56  ;;  %v997_v61 = vadd.f32 %v1976_v30, %v974_v57  ;;  %v980_v62 = vmul.f32 %v1958_v14, %v898_v33  ;;  %v1299_v63 = vunpack.c.h.bf16 %v1967_v21 }
 0x14a   :  { %v1052_v49 = vadd.f32 %v1302_v38, %v1004_v48  ;;  %v1042_v17 = vadd.f32 %v1282_v37, %v994_v39  ;;  %v1005_v0 = vadd.f32 %v1976_v30, %v982_v25  ;;  %v1050_v7 = vadd.f32 %v1298_v45, %v1002_v3 }
 0x14b   :  { %v995_v1 = vadd.f32 %v1976_v30, %v972_v12  ;;  %v1045_v29 = vadd.f32 %v1287_v58, %v997_v61  ;;  %v1003_v4 = vadd.f32 %v1976_v30, %v980_v62  ;;  %v1060_v13 = vmax.f32 %v1044_v60, 0.0 }
 0x14c   :  { %v1053_v5 = vadd.f32 %v1303_v59, %v1005_v0  ;;  %v1068_v10 = vmax.f32 %v1052_v49, 0.0  ;;  %v1058_v38 = vmax.f32 %v1042_v17, 0.0  ;;  %v1066_v37 = vmax.f32 %v1050_v7, 0.0 }
 0x14d   :  { %v1043_v14 = vadd.f32 %v1283_v53, %v995_v1  ;;  %v1061_v22 = vmax.f32 %v1045_v29, 0.0  ;;  %v1051_v8 = vadd.f32 %v1299_v63, %v1003_v4 }
 0x14e   :  { %v1069_v23 = vmax.f32 %v1053_v5, 0.0 }
 0x14f   :  { %v1059_v11 = vmax.f32 %v1043_v14, 0.0  ;;  %v1322_v26 = vpack.c.bf16 %v1061_v22, %v1060_v13  ;;  %v1067_v31 = vmax.f32 %v1051_v8, 0.0 }
 0x150   :  { %v1342_v34 = vpack.c.bf16 %v1069_v23, %v1068_v10 }
 0x151   :  { %v1317_v35 = vpack.c.bf16 %v1059_v11, %v1058_v38  ;;  %1353 = vst [vmem:[%s2068_s5 + $0x18] sm:$0xff] %v1322_v26   ;;  %v1337_v21 = vpack.c.bf16 %v1067_v31, %v1066_v37 }
 0x152   :  { %1357 = vst [vmem:[%s2068_s5 + $0x38] sm:$0xff] %v1342_v34  }
 0x153   :  { %1352 = vst [vmem:[%s2068_s5 + $0x10] sm:$0xff] %v1317_v35   ;;  %1356 = vst [vmem:[%s2068_s5 + $0x30] sm:$0xff] %v1337_v21  }

// kernel: pretrained_cnn_forward.27
= control target key start
LH: loop header
LB: loop body
LE: loop exit
PB: predicated region body
PF: predicated region fallthrough
CT: control target
= control target key end

     0   :  { %vm380_vm0 = vcmask 523264   ;;  %s967_s1 = inlined_call_operand.vmem [shape: bf16[576,128], index: 1, kind: input, shape index: {}]   ;;  %s968_s0 = inlined_call_operand.vmem [shape: bf16[32,576], index: 0, kind: input, shape index: {}]   ;;  %s969_s2 = inlined_call_operand.vmem [shape: f32[1,128], index: 2, kind: input, shape index: {}]   ;;  %s970_s3 = inlined_call_operand.vmem [shape: f32[1,128], index: 3, kind: input, shape index: {}]   ;;  %s971_s4 = inlined_call_operand.vmem [shape: bf16[32,128], index: 4, kind: output, shape index: {}]  }
   0x1   :  { %v742_v0 = vld [vmem:[%s967_s1 + $0x40] sm:$0xff]   ;;  %v746_v4 = vld [vmem:[%s967_s1 + $0x48] sm:$0xff]   ;;  %v750_v8 = vld [vmem:[%s967_s1 + $0x50] sm:$0xff]  }
   0x2   :  { %v743_v1 = vld [vmem:[%s967_s1 + $0xc0] sm:$0xff]   ;;  %668 = vmatprep.subr.bf16.mxu0 %v742_v0  ;;  %v747_v5 = vld [vmem:[%s967_s1 + $0xc8] sm:$0xff]   ;;  %v751_v9 = vld [vmem:[%s967_s1 + $0xd0] sm:$0xff]  }
   0x3   :  { %v744_v2 = vld [vmem:[%s967_s1] sm:$0xff]   ;;  %696 = vmatprep.subr.bf16.mxu1 %v743_v1  ;;  %v748_v6 = vld [vmem:[%s967_s1 + $0x8] sm:$0xff]   ;;  %v752_v10 = vld [vmem:[%s967_s1 + $0x10] sm:$0xff]  }
   0x4   :  { %v745_v3 = vld [vmem:[%s967_s1 + $0x80] sm:$0xff]   ;;  %669 = vmatpush3.bf16.msra.mxu0 %v744_v2  ;;  %v749_v7 = vld [vmem:[%s967_s1 + $0x88] sm:$0xff]   ;;  %v753_v11 = vld [vmem:[%s967_s1 + $0x90] sm:$0xff]  }
   0x5   :  { %697 = vmatpush3.bf16.msra.mxu1 %v745_v3  ;;  %670 = vmatprep.subr.bf16.mxu0 %v746_v4  ;;  %v754_v12 = vld [vmem:[%s967_s1 + $0x58] sm:$0xff]   ;;  %v758_v16 = vld [vmem:[%s967_s1 + $0x60] sm:$0xff]   ;;  %v762_v20 = vld [vmem:[%s967_s1 + $0x68] sm:$0xff]  }
   0x6   :  { %698 = vmatprep.subr.bf16.mxu1 %v747_v5  ;;  %v755_v13 = vld [vmem:[%s967_s1 + $0xd8] sm:$0xff]   ;;  %v759_v17 = vld [vmem:[%s967_s1 + $0xe0] sm:$0xff]   ;;  %v763_v21 = vld [vmem:[%s967_s1 + $0xe8] sm:$0xff]  }
   0x7   :  { %v756_v14 = vld [vmem:[%s967_s1 + $0x18] sm:$0xff]   ;;  %v760_v18 = vld [vmem:[%s967_s1 + $0x20] sm:$0xff]   ;;  %v764_v22 = vld [vmem:[%s967_s1 + $0x28] sm:$0xff]  }
   0x8   :  { %671 = vmatpush3.bf16.msra.mxu0 %v748_v6  ;;  %v757_v15 = vld [vmem:[%s967_s1 + $0x98] sm:$0xff]   ;;  %v761_v19 = vld [vmem:[%s967_s1 + $0xa0] sm:$0xff]   ;;  %v765_v23 = vld [vmem:[%s967_s1 + $0xa8] sm:$0xff]  }
   0x9   :  { %699 = vmatpush3.bf16.msra.mxu1 %v749_v7  ;;  %672 = vmatprep.subr.bf16.mxu0 %v750_v8  ;;  %v766_v24 = vld [vmem:[%s967_s1 + $0x70] sm:$0xff]   ;;  %v770_v28 = vld [vmem:[%s967_s1 + $0x78] sm:$0xff]   ;;  %v779_v35 = vld [vmem:[%s968_s0 + $0xc] ss:$20 sps:$4 sm:$0xff]  }
   0xa   :  { %700 = vmatprep.subr.bf16.mxu1 %v751_v9  ;;  %v767_v25 = vld [vmem:[%s967_s1 + $0xf0] sm:$0xff]   ;;  %v771_v29 = vld [vmem:[%s967_s1 + $0xf8] sm:$0xff]   ;;  %v780_v36 = vld [vmem:[%s967_s1 + $0x100] sm:$0xff]   ;;  %468 = vmatprep.mubr.bf16.mxu1 %v779_v35 }
   0xb   :  { %v768_v26 = vld [vmem:[%s967_s1 + $0x30] sm:$0xff]   ;;  %v772_v30 = vld [vmem:[%s967_s1 + $0x38] sm:$0xff]   ;;  %v781_v37 = vld [vmem:[%s967_s1 + $0x108] sm:$0xff]  }
   0xc   :  { %673 = vmatpush3.bf16.msra.mxu0 %v752_v10  ;;  %v769_v27 = vld [vmem:[%s967_s1 + $0xb0] sm:$0xff]   ;;  %v773_v31 = vld [vmem:[%s967_s1 + $0xb8] sm:$0xff]   ;;  %v782_v38 = vld [vmem:[%s968_s0 + $0x2c] ss:$20 sps:$4 sm:$0xff]  }
   0xd   :  { %701 = vmatpush3.bf16.msra.mxu1 %v753_v11  ;;  %674 = vmatprep.subr.bf16.mxu0 %v754_v12  ;;  %v774_v32 = vld [vmem:[%s968_s0] ss:$20 sps:$4 sm:$0xff]   ;;  %v776_v33 = vld [vmem:[%s968_s0 + $0x4] ss:$20 sps:$4 sm:$0xff]   ;;  %v777_v34 = vld [vmem:[%s968_s0 + $0x8] ss:$20 sps:$4 sm:$0xff]  }
   0xe   :  { %702 = vmatprep.subr.bf16.mxu1 %v755_v13  ;;  %419 = vmatprep.mubr.bf16.mxu0 %v776_v33  ;;  %v784_v39 = vld [vmem:[%s968_s0 + $0x34] ss:$20 sps:$4 sm:$0xff]   ;;  %v787_v42 = vld [vmem:[%s968_s0 + $0x30] ss:$20 sps:$4 sm:$0xff]   ;;  %v789_v44 = vld [vmem:[%s967_s1 + $0x118] sm:$0xff]  }
   0xf   :  { %v786_v40 = vld [vmem:[%s968_s0 + $0x28] ss:$20 sps:$4 sm:$0xff]   ;;  %v788_v41 = vld [vmem:[%s967_s1 + $0x110] sm:$0xff]   ;;  %v791_v45 = vld [vmem:[%s968_s0 + $0x38] ss:$20 sps:$4 sm:$0xff]  }
  0x10   :  { %675 = vmatpush3.bf16.msra.mxu0 %v756_v14  ;;  %v790_v43 = vld [vmem:[%s968_s0 + $0x10] ss:$20 sps:$4 sm:$0xff]   ;;  %v647_v11 = vld [vmem:[%s969_s2] ss:$0 sm:$0xff] }
  0x11   :  { %703 = vmatpush3.bf16.msra.mxu1 %v757_v15  ;;  %676 = vmatprep.subr.bf16.mxu0 %v758_v16  ;;  %v648_v14 = vld [vmem:[%s970_s3] ss:$0 sm:$0xff] }
  0x12   :  { %704 = vmatprep.subr.bf16.mxu1 %v759_v17 }
  0x14   :  { %677 = vmatpush3.bf16.msra.mxu0 %v760_v18 }
  0x15   :  { %705 = vmatpush3.bf16.msra.mxu1 %v761_v19  ;;  %678 = vmatprep.subr.bf16.mxu0 %v762_v20 }
  0x16   :  { %706 = vmatprep.subr.bf16.mxu1 %v763_v21 }
  0x18   :  { %679 = vmatpush3.bf16.msra.mxu0 %v764_v22 }
  0x19   :  { %707 = vmatpush3.bf16.msra.mxu1 %v765_v23  ;;  %680 = vmatprep.subr.bf16.mxu0 %v766_v24 }
  0x1a   :  { %708 = vmatprep.subr.bf16.mxu1 %v767_v25 }
  0x1c   :  { %681 = vmatpush3.bf16.msra.mxu0 %v768_v26 }
  0x1d   :  { %709 = vmatpush3.bf16.msra.mxu1 %v769_v27  ;;  %682 = vmatprep.subr.bf16.mxu0 %v770_v28 }
  0x1e   :  { %710 = vmatprep.subr.bf16.mxu1 %v771_v29 }
  0x20   :  { %683 = vmatpush3.bf16.msra.mxu0 %v772_v30 }
  0x21   :  { %711 = vmatpush3.bf16.msra.mxu1 %v773_v31  ;;  %730 = vmatprep.subr.bf16.mxu0 %v780_v36 }
  0x23   :  { %420 = vmatmul.mubr.bf16.vlgmr.msra.gmra.mrb[0].mxu0 %v774_v32 }
  0x24   :  { %469 = vmatmul.mubr.bf16.vlgmr.msra.gmra.mrb[0].mxu1 %v777_v34  ;;  %731 = vmatpush3.bf16.msra.mxu0 %v780_v36 }
  0x25   :  { %732 = vmatprep.subr.bf16.mxu0 %v781_v37  ;;  %427 = vmatprep.mubr.bf16.mxu0 %v782_v38 }
  0x26   :  { %476 = vmatprep.mubr.bf16.mxu1 %v784_v39 }
  0x28   :  { %733 = vmatpush3.bf16.msra.mxu0 %v781_v37 }
  0x29   :  { %734 = vmatprep.subr.bf16.mxu0 %v788_v41 }
  0x2b   :  { %428 = vmatmul.mubr.bf16.gmra.mrb[4].mxu0 %v786_v40 }
  0x2c   :  { %477 = vmatmul.mubr.bf16.gmra.mrb[4].mxu1 %v787_v42  ;;  %738 = vmatprep.mubr.msk.bf16.mxu0 %vm380_vm0, %v790_v43 }
  0x2d   :  { %735 = vmatpush3.bf16.msra.mxu0 %v788_v41 }
  0x2e   :  { %736 = vmatprep.subr.bf16.mxu0 %v789_v44 }
  0x31   :  { %737 = vmatpush3.bf16.msra.mxu0 %v789_v44 }
  0x34   :  { %739 = vmatmul.mubr.msk.bf16.vlgmr.msra.gmra.mrb[8].mxu0 %vm380_vm0, %v791_v45 }
  0xf6   :  { %v684_v46 = vpop.f32.mrb[0].mxu0 }
  0xf7   :  { %v712_v47 = vpop.f32.mrb[0].mxu1  ;;  %v685_v48 = vpop.f32.mrb[1].mxu0 }
  0xf8   :  { %v686_v49 = vadd.f32 %v685_v48, %v684_v46  ;;  %v713_v50 = vpop.f32.mrb[1].mxu1  ;;  %v687_v51 = vpop.f32.mrb[2].mxu0 }
  0xf9   :  { %v714_v52 = vadd.f32 %v713_v50, %v712_v47  ;;  %v715_v53 = vpop.f32.mrb[2].mxu1  ;;  %v688_v54 = vpop.f32.mrb[3].mxu0 }
  0xfa   :  { %v689_v55 = vadd.f32 %v688_v54, %v687_v51  ;;  %v716_v56 = vpop.f32.mrb[3].mxu1 }
  0xfb   :  { %v717_v57 = vadd.f32 %v716_v56, %v715_v53  ;;  %v471_v58 = vadd.f32 %v714_v52, %v686_v49 }
  0xfd   :  { %v474_v59 = vadd.f32 %v717_v57, %v689_v55 }
  0xfe   :  { %v690_v60 = vpop.f32.mrb[4].mxu0 }
  0xff   :  { %v718_v61 = vpop.f32.mrb[4].mxu1  ;;  %v691_v62 = vpop.f32.mrb[5].mxu0 }
 0x100   :  { %v692_v63 = vadd.f32 %v691_v62, %v690_v60  ;;  %v719_v0 = vpop.f32.mrb[5].mxu1  ;;  %v693_v1 = vpop.f32.mrb[6].mxu0 }
 0x101   :  { %v720_v2 = vadd.f32 %v719_v0, %v718_v61  ;;  %v721_v3 = vpop.f32.mrb[6].mxu1  ;;  %v694_v4 = vpop.f32.mrb[7].mxu0 }
 0x102   :  { %v695_v5 = vadd.f32 %v694_v4, %v693_v1  ;;  %v722_v6 = vpop.f32.mrb[7].mxu1 }
 0x103   :  { %v723_v7 = vadd.f32 %v722_v6, %v721_v3  ;;  %v479_v8 = vadd.f32 %v720_v2, %v692_v63 }
 0x105   :  { %v482_v9 = vadd.f32 %v723_v7, %v695_v5 }
 0x107   :  { %v740_v10 = vpop.f32.mrb[8].mxu0 }
 0x108   :  { %v528_v12 = vadd.f32 %v740_v10, %v479_v8  ;;  %v519_v13 = vpop.f32.mrb[9].mxu0 }
 0x109   :  { %v520_v15 = vadd.f32 %v519_v13, %v471_v58  ;;  %v741_v16 = vpop.f32.mrb[10].mxu0 }
 0x10a   :  { %v558_v17 = vmul.f32 %v647_v11, %v528_v12  ;;  %v531_v18 = vadd.f32 %v741_v16, %v482_v9  ;;  %v522_v19 = vpop.f32.mrb[11].mxu0 }
 0x10b   :  { %v556_v20 = vmul.f32 %v647_v11, %v520_v15  ;;  %v523_v21 = vadd.f32 %v522_v19, %v474_v59 }
 0x10c   :  { %v569_v22 = vadd.f32 %v648_v14, %v558_v17  ;;  %v559_v23 = vmul.f32 %v647_v11, %v531_v18 }
 0x10d   :  { %v567_v24 = vadd.f32 %v648_v14, %v556_v20  ;;  %v557_v25 = vmul.f32 %v647_v11, %v523_v21 }
 0x10e   :  { %v570_v26 = vadd.f32 %v648_v14, %v559_v23  ;;  %v573_v28 = vmax.f32 %v569_v22, 0.0 }
 0x10f   :  { %v568_v27 = vadd.f32 %v648_v14, %v557_v25  ;;  %v571_v30 = vmax.f32 %v567_v24, 0.0 }
 0x110   :  { %v574_v29 = vmax.f32 %v570_v26, 0.0 }
 0x111   :  { %v572_v31 = vmax.f32 %v568_v27, 0.0 }
 0x112   :  { %v665_v32 = vpack.c.bf16 %v574_v29, %v573_v28 }
 0x113   :  { %v660_v33 = vpack.c.bf16 %v572_v31, %v571_v30 }
 0x114   :  { %667 = vst [vmem:[%s971_s4 + $0x8] sm:$0xff] %v665_v32  }
 0x115   :  { %661 = vst [vmem:[%s971_s4] sm:$0xff] %v660_v33  }

// kernel: pretrained_cnn_forward.26
= control target key start
LH: loop header
LB: loop body
LE: loop exit
PB: predicated region body
PF: predicated region fallthrough
CT: control target
= control target key end

     0   :  { %vm76_vm0 = vcmask 523264   ;;  %s301_s1 = inlined_call_operand.vmem [shape: bf16[64,128], index: 1, kind: input, shape index: {}]   ;;  %s302_s0 = inlined_call_operand.vmem [shape: bf16[32,64], index: 0, kind: input, shape index: {}]   ;;  %s303_s2 = inlined_call_operand.vmem [shape: f32[1,128], index: 2, kind: input, shape index: {}]   ;;  %s304_s3 = inlined_call_operand.vmem [shape: f32[1,128], index: 3, kind: input, shape index: {}]   ;;  %s305_s4 = inlined_call_operand.vmem [shape: bf16[32,128], index: 4, kind: output, shape index: {}]  }
   0x1   :  { %v240_v0 = vld [vmem:[%s301_s1] sm:$0xff]   ;;  %v241_v1 = vld [vmem:[%s301_s1 + $0x8] sm:$0xff]   ;;  %v242_v2 = vld [vmem:[%s301_s1 + $0x10] sm:$0xff]  }
   0x2   :  { %228 = vmatprep.subr.bf16.mxu0 %v240_v0  ;;  %v244_v3 = vld [vmem:[%s302_s0] sm:$0xff]   ;;  %v243_v4 = vld [vmem:[%s301_s1 + $0x18] sm:$0xff]   ;;  %v245_v5 = vld [vmem:[%s302_s0 + $0x8] sm:$0xff]  }
   0x3   :  { %229 = vmatpush3.bf16.msra.mxu0 %v240_v0  ;;  %236 = vmatprep.mubr.msk.bf16.mxu0 %vm76_vm0, %v244_v3  ;;  %v201_v6 = vld [vmem:[%s303_s2] ss:$0 sm:$0xff] }
   0x4   :  { %230 = vmatprep.subr.bf16.mxu0 %v241_v1  ;;  %v202_v10 = vld [vmem:[%s304_s3] ss:$0 sm:$0xff] }
   0x7   :  { %231 = vmatpush3.bf16.msra.mxu0 %v241_v1 }
   0x8   :  { %232 = vmatprep.subr.bf16.mxu0 %v242_v2 }
   0xb   :  { %233 = vmatpush3.bf16.msra.mxu0 %v242_v2 }
   0xc   :  { %234 = vmatprep.subr.bf16.mxu0 %v243_v4 }
   0xf   :  { %235 = vmatpush3.bf16.msra.mxu0 %v243_v4 }
  0x12   :  { %237 = vmatmul.mubr.msk.bf16.vlgmr.msra.gmra.mrb[0].mxu0 %vm76_vm0, %v245_v5 }
  0xe5   :  { %v238_v7 = vpop.f32.mrb[0].mxu0 }
  0xe6   :  { %v156_v8 = vmul.f32 %v238_v7, %v201_v6  ;;  %v117_v9 = vpop.f32.mrb[1].mxu0 }
  0xe7   :  { %v154_v11 = vmul.f32 %v201_v6, %v117_v9  ;;  %v239_v12 = vpop.f32.mrb[2].mxu0 }
  0xe8   :  { %v157_v13 = vmul.f32 %v239_v12, %v201_v6  ;;  %v120_v14 = vpop.f32.mrb[3].mxu0  ;;  %v167_v16 = vadd.f32 %v202_v10, %v156_v8 }
  0xe9   :  { %v155_v15 = vmul.f32 %v201_v6, %v120_v14  ;;  %v165_v18 = vadd.f32 %v202_v10, %v154_v11 }
  0xea   :  { %v168_v17 = vadd.f32 %v202_v10, %v157_v13 }
  0xeb   :  { %v166_v19 = vadd.f32 %v202_v10, %v155_v15 }
  0xec   :  { %v219_v20 = vpack.c.bf16 %v168_v17, %v167_v16 }
  0xed   :  { %v214_v21 = vpack.c.bf16 %v166_v19, %v165_v18 }
  0xee   :  { %221 = vst [vmem:[%s305_s4 + $0x8] sm:$0xff] %v219_v20  }
  0xef   :  { %215 = vst [vmem:[%s305_s4] sm:$0xff] %v214_v21  }

// kernel: pretrained_cnn_forward.28
= control target key start
LH: loop header
LB: loop body
LE: loop exit
PB: predicated region body
PF: predicated region fallthrough
CT: control target
= control target key end

     0   :  { %s972_s18 = smov 0   ;;  %s974_s19 = smov 0   ;;  %s1074_s0 = inlined_call_operand.vmem [shape: bf16[32,1152], index: 0, kind: input, shape index: {}]   ;;  %s1075_s1 = inlined_call_operand.vmem [shape: bf16[1152,128], index: 1, kind: input, shape index: {}]   ;;  %s1076_s2 = inlined_call_operand.vmem [shape: f32[1,128], index: 2, kind: input, shape index: {}]   ;;  %s1077_s3 = inlined_call_operand.vmem [shape: f32[1,128], index: 3, kind: input, shape index: {}]   ;;  %s1078_s4 = inlined_call_operand.vmem [shape: bf16[32,128], index: 4, kind: input, shape index: {}]   ;;  %s1079_s5 = inlined_call_operand.vmem [shape: bf16[32,128], index: 5, kind: output, shape index: {}]  }
   0x1   :  { %s976_s20 = smov 0   ;;  %s978_s21 = smov 0  }
   0x2   :  { %s980_s22 = smov 0  }
   0x3 LB: > { %s27_s23 = sadd.s32 1, %s935_s21  ;;  %p50_p1 = scmp.ne.s32.totalorder %s927_s19, %s923_s18  ;;  %s939_s22 = sphi %s980_s22, %s15_s22   ;;  %s935_s21 = sphi %s978_s21, %s1083_s21   ;;  %s931_s20 = sphi %s976_s20, %s1082_s20   ;;  %s927_s19 = sphi %s974_s19, %s1081_s19   ;;  %s923_s18 = sphi %s972_s18, %s1080_s18  }
   0x4   : > { %p28_p0 = scmp.ge.s32.totalorder %s27_s23, 9  ;;  %p51_p2 = scmp.eq.s32.totalorder %s939_s22, 0 }
   0x5   : > { %s43_s25 = sadd.s32 1, %s927_s19  ;;  %p767_p5 = scmp.ge.s32.totalorder %s939_s22, 9 }
   0x6   : > { %s1085_s23 = smov (%p28_p0, %s27_s23), 0  ;;  %p52_p3 = por %p51_p2, %p50_p1 }
   0x7   : > { %s39_s24 = ssub.s32 %s935_s21, %s1085_s23  ;;  %236 = sbr.rel (%p767_p5) target bundleno = 21 (0x15), region = 28 }
   0x8   : > { %p41_p4 = scmp.eq.s32.totalorder %s39_s24, 0 }
   0xa   : > { %s1007_s26 = scalar_select %p41_p4, %s927_s19, %s43_s25  }
   0xe   : > { %239 = sbr.rel (!%p52_p3) target bundleno = 21 (0x15), region = 32  ;;  %s241_s27 = sand.u32 (%p52_p3), 1, %s927_s19  }
   0xf   : > { %s769_s28 = sshll.u32 (%p52_p3), %s935_s21, 2  ;;  %s768_s29 = sshll.u32 (%p52_p3), %s241_s27, 4 }
  0x10   : > { %s248_s7 = scalar_lea.vmem (%p52_p3), %s1074_s0, %s769_s28  ;;  %s243_s8 = scalar_lea.vmem (%p52_p3), [#allocation3], %s768_s29 }
  0x11   : > { %v264_v0 = vld [vmem:[%s248_s7] sm:$0xf] (%p52_p3)  ;;  %v266_v1 = vld [vmem:[%s248_s7 + $0x24] sm:$0xf] (%p52_p3)  ;;  %v268_v2 = vld [vmem:[%s248_s7 + $0x48] sm:$0xf] (%p52_p3) }
  0x12   : > { %265 = vst [vmem:[%s243_s8] sm:$0xf] (%p52_p3), %v264_v0  ;;  %267 = vst [vmem:[%s243_s8 + $0x4] sm:$0xf] (%p52_p3), %v266_v1  ;;  %v270_v3 = vld [vmem:[%s248_s7 + $0x6c] sm:$0xf] (%p52_p3) }
  0x13   : > { %269 = vst [vmem:[%s243_s8 + $0x8] sm:$0xf] (%p52_p3), %v268_v2  ;;  %271 = vst [vmem:[%s243_s8 + $0xc] sm:$0xf] (%p52_p3), %v270_v3 }
  0x15 PF: > { %p770_p6 = scmp.ge.s32.totalorder %s939_s22, 1  ;;  %p313_p7 = scmp.lt.s32.totalorder %s939_s22, 10 }
  0x17   : > { %p314_p8 = pnand %p770_p6, %p313_p7 }
  0x18   : > { %s320_s9 = sand.u32 (!%p314_p8), 1, %s923_s18   ;;  %s772_s10 = sshll.u32 (!%p314_p8), %s931_s20, 4 }
  0x19   : > { %317 = sbr.rel (%p314_p8) target bundleno = 308 (0x134), region = 77  ;;  %s1019_s11 = sshll.u32 (!%p314_p8), %s320_s9, 4 }
  0x1a   : > { %p374_p9 = scmp.lt.s32.totalorder (!%p314_p8), %s772_s10, 143  ;;  %s322_s16 = scalar_lea.vmem (!%p314_p8), [#allocation3], %s1019_s11 }
  0x1b   : > { %p774_p10 = scmp.ne.s32.totalorder (!%p314_p8), %s931_s20, 0 }
  0x20   : > { %s1087_s10 = smov (!%p374_p9, %s772_s10), 143  ;;  %410 = sbr.rel (%p774_p10) target bundleno = 39 (0x27), region = 85 }
  0x21   : > { %s773_s12 = sshll.u32 %s1087_s10, 2  ;;  %v941_v4 = vmov (!%p774_p10), 0.0  }
  0x22   : > { %s1024_s15 = scalar_lea.vmem %s1075_s1, %s773_s12  ;;  %411 = vst [vmem:[#allocation2] sm:$0xff] (!%p774_p10), %v941_v4  ;;  %412 = vst [vmem:[#allocation2 + $0x8] sm:$0xff] (!%p774_p10), %v941_v4 }
  0x23   : > { %413 = vst [vmem:[#allocation2 + $0x10] sm:$0xff] (!%p774_p10), %v941_v4  ;;  %414 = vst [vmem:[#allocation2 + $0x18] sm:$0xff] (!%p774_p10), %v941_v4 }
  0x27 PF: > { %v891_v5 = vld [vmem:[%s1024_s15] sm:$0xff]   ;;  %v892_v6 = vld [vmem:[%s1024_s15 + $0x8] sm:$0xff]   ;;  %v893_v7 = vld [vmem:[%s1024_s15 + $0x10] sm:$0xff]   ;;  %p785_p11 = scmp.ne.s32.totalorder %s931_s20, 8 }
  0x28   : > { %830 = vmatprep.subr.bf16.mxu0 %v891_v5  ;;  %v894_v8 = vld [vmem:[%s1024_s15 + $0x18] sm:$0xff]   ;;  %v899_v9 = vld [vmem:[%s322_s16] sm:$0xff]   ;;  %v896_v11 = vld [vmem:[%s1024_s15 + $0x28] sm:$0xff]  }
  0x29   : > { %831 = vmatpush3.bf16.msra.mxu0 %v891_v5  ;;  %846 = vmatprep.mubr.bf16.mxu0 %v899_v9  ;;  %v895_v10 = vld [vmem:[%s1024_s15 + $0x20] sm:$0xff]   ;;  %v897_v12 = vld [vmem:[%s1024_s15 + $0x30] sm:$0xff]   ;;  %v898_v13 = vld [vmem:[%s1024_s15 + $0x38] sm:$0xff]  }
  0x2a   : > { %832 = vmatprep.subr.bf16.mxu0 %v892_v6  ;;  %v900_v14 = vld [vmem:[%s322_s16 + $0x8] sm:$0xff]   ;;  %v417_v15 = vld [vmem:[#allocation2 + $0x10] sm:$0xff]  ;;  %v415_v16 = vld [vmem:[#allocation2] sm:$0xff] }
  0x2b   : > { %v418_v18 = vld [vmem:[#allocation2 + $0x18] sm:$0xff]  ;;  %v416_v21 = vld [vmem:[#allocation2 + $0x8] sm:$0xff]  ;;  %v786_v29 = vld [vmem:[%s1076_s2] ss:$0 sm:$0xff] (!%p785_p11) }
  0x2c   : > { %v787_v32 = vld [vmem:[%s1077_s3] ss:$0 sm:$0xff] (!%p785_p11)  ;;  %v818_v39 = vld [vmem:[%s1078_s4 + $0x8] sm:$0xff] (!%p785_p11)  }
  0x2d   : > { %833 = vmatpush3.bf16.msra.mxu0 %v892_v6  ;;  %v801_v33 = vld [vmem:[%s1078_s4] sm:$0xff] (!%p785_p11)   ;;  %v806_v43 = vunpack.c.l.bf16 (!%p785_p11), %v818_v39  ;;  %v807_v45 = vunpack.c.h.bf16 (!%p785_p11), %v818_v39 }
  0x2e   : > { %834 = vmatprep.subr.bf16.mxu0 %v893_v7  ;;  %v802_v35 = vunpack.c.l.bf16 (!%p785_p11), %v801_v33  ;;  %v803_v36 = vunpack.c.h.bf16 (!%p785_p11), %v801_v33 }
  0x31   : > { %835 = vmatpush3.bf16.msra.mxu0 %v893_v7 }
  0x32   : > { %836 = vmatprep.subr.bf16.mxu0 %v894_v8 }
  0x35   : > { %837 = vmatpush3.bf16.msra.mxu0 %v894_v8 }
  0x36   : > { %838 = vmatprep.subr.bf16.mxu0 %v895_v10 }
  0x39   : > { %839 = vmatpush3.bf16.msra.mxu0 %v895_v10 }
  0x3a   : > { %840 = vmatprep.subr.bf16.mxu0 %v896_v11 }
  0x3d   : > { %841 = vmatpush3.bf16.msra.mxu0 %v896_v11 }
  0x3e   : > { %842 = vmatprep.subr.bf16.mxu0 %v897_v12 }
  0x41   : > { %843 = vmatpush3.bf16.msra.mxu0 %v897_v12 }
  0x42   : > { %844 = vmatprep.subr.bf16.mxu0 %v898_v13 }
  0x45   : > { %845 = vmatpush3.bf16.msra.mxu0 %v898_v13 }
  0x48   : > { %847 = vmatmul.mubr.bf16.vlgmr.msra.gmra.mrb[0].mxu0 %v900_v14 }
 0x11b   : > { %v848_v17 = vpop.f32.mrb[0].mxu0  ;;  %559 = sbr.rel (%p785_p11) target bundleno = 308 (0x134), region = 89 }
 0x11c   : > { %v550_v19 = vadd.f32 %v848_v17, %v417_v15  ;;  %v533_v20 = vpop.f32.mrb[1].mxu0 }
 0x11d   : > { %v548_v22 = vadd.f32 %v533_v20, %v415_v16  ;;  %v849_v23 = vpop.f32.mrb[2].mxu0 }
 0x11e   : > { %554 = vst [vmem:[#allocation2 + $0x10] sm:$0xff] %v550_v19  ;;  %v551_v24 = vadd.f32 %v849_v23, %v418_v18  ;;  %v536_v25 = vpop.f32.mrb[3].mxu0 }
 0x11f   : > { %552 = vst [vmem:[#allocation2] sm:$0xff] %v548_v22  ;;  %v549_v26 = vadd.f32 %v536_v25, %v416_v21 }
 0x120   : > { %555 = vst [vmem:[#allocation2 + $0x18] sm:$0xff] %v551_v24 }
 0x121   : > { %553 = vst [vmem:[#allocation2 + $0x8] sm:$0xff] %v549_v26 }
 0x125   : > { %v562_v34 = vld [vmem:[#allocation2 + $0x10] sm:$0xff] }
 0x126   : > { %v560_v27 = vld [vmem:[#allocation2] sm:$0xff]  ;;  %v573_v38 = vmul.f32 %v786_v29, %v562_v34 }
 0x127   : > { %v571_v30 = vmul.f32 %v786_v29, %v560_v27  ;;  %v563_v37 = vld [vmem:[#allocation2 + $0x18] sm:$0xff] }
 0x128   : > { %v561_v28 = vld [vmem:[#allocation2 + $0x8] sm:$0xff]  ;;  %v574_v42 = vmul.f32 %v786_v29, %v563_v37  ;;  %v584_v44 = vadd.f32 %v787_v32, %v573_v38 }
 0x129   : > { %v572_v31 = vmul.f32 %v786_v29, %v561_v28  ;;  %v582_v40 = vadd.f32 %v787_v32, %v571_v30 }
 0x12a   : > { %v585_v48 = vadd.f32 %v787_v32, %v574_v42  ;;  %v596_v49 = vadd.f32 %v806_v43, %v584_v44 }
 0x12b   : > { %v583_v41 = vadd.f32 %v787_v32, %v572_v31  ;;  %v594_v46 = vadd.f32 %v802_v35, %v582_v40 }
 0x12c   : > { %v597_v52 = vadd.f32 %v807_v45, %v585_v48  ;;  %v600_v53 = vmax.f32 %v596_v49, 0.0 }
 0x12d   : > { %v595_v47 = vadd.f32 %v803_v36, %v583_v41  ;;  %v598_v50 = vmax.f32 %v594_v46, 0.0 }
 0x12e   : > { %v601_v55 = vmax.f32 %v597_v52, 0.0 }
 0x12f   : > { %v599_v51 = vmax.f32 %v595_v47, 0.0 }
 0x130   : > { %v816_v56 = vpack.c.bf16 %v601_v55, %v600_v53 }
 0x131   : > { %v811_v54 = vpack.c.bf16 %v599_v51, %v598_v50 }
 0x132   : > { %819 = vst [vmem:[%s1079_s5 + $0x8] sm:$0xff] %v816_v56  }
 0x133   : > { %812 = vst [vmem:[%s1079_s5] sm:$0xff] %v811_v54  }
 0x134 PF: > { %s15_s22 = sadd.s32 1, %s939_s22   ;;  %s1080_s18 = smov %s927_s19 }
 0x135   : > { %p12_p12 = scmp.ge.s32.totalorder %s15_s22, 11   ;;  %s1081_s19 = smov %s1007_s26 }
 0x136   : > { %s1082_s20 = smov %s935_s21  ;;  %s1083_s21 = smov %s1085_s23 }
 0x137   :  { %14 = sbr.rel (!%p12_p12) target bundleno = 3 (0x3), region = 136 }

// kernel: pretrained_cnn_forward.29
= control target key start
LH: loop header
LB: loop body
LE: loop exit
PB: predicated region body
PF: predicated region fallthrough
CT: control target
= control target key end

     0   :  { %s867_s15 = smov 0   ;;  %s869_s16 = smov 0   ;;  %s963_s0 = inlined_call_operand.vmem [shape: bf16[32,1152], index: 0, kind: input, shape index: {}]   ;;  %s964_s1 = inlined_call_operand.vmem [shape: bf16[1152,128], index: 1, kind: input, shape index: {}]   ;;  %s965_s2 = inlined_call_operand.vmem [shape: f32[1,128], index: 2, kind: input, shape index: {}]   ;;  %s966_s3 = inlined_call_operand.vmem [shape: f32[1,128], index: 3, kind: input, shape index: {}]   ;;  %s967_s4 = inlined_call_operand.vmem [shape: bf16[32,128], index: 4, kind: output, shape index: {}]  }
   0x1   :  { %s871_s17 = smov 0   ;;  %s873_s18 = smov 0  }
   0x2   :  { %s875_s19 = smov 0  }
   0x3 LB: > { %s26_s20 = sadd.s32 1, %s835_s18  ;;  %p49_p1 = scmp.ne.s32.totalorder %s827_s16, %s823_s15  ;;  %s839_s19 = sphi %s875_s19, %s14_s19   ;;  %s835_s18 = sphi %s873_s18, %s971_s18   ;;  %s831_s17 = sphi %s871_s17, %s970_s17   ;;  %s827_s16 = sphi %s869_s16, %s969_s16   ;;  %s823_s15 = sphi %s867_s15, %s968_s15  }
   0x4   : > { %p27_p0 = scmp.ge.s32.totalorder %s26_s20, 9  ;;  %p50_p2 = scmp.eq.s32.totalorder %s839_s19, 0 }
   0x5   : > { %s42_s22 = sadd.s32 1, %s827_s16  ;;  %p676_p5 = scmp.ge.s32.totalorder %s839_s19, 9 }
   0x6   : > { %s973_s20 = smov (%p27_p0, %s26_s20), 0  ;;  %p51_p3 = por %p50_p2, %p49_p1 }
   0x7   : > { %s38_s21 = ssub.s32 %s835_s18, %s973_s20  ;;  %195 = sbr.rel (%p676_p5) target bundleno = 21 (0x15), region = 24 }
   0x8   : > { %p40_p4 = scmp.eq.s32.totalorder %s38_s21, 0 }
   0xa   : > { %s902_s23 = scalar_select %p40_p4, %s827_s16, %s42_s22  }
   0xe   : > { %198 = sbr.rel (!%p51_p3) target bundleno = 21 (0x15), region = 28  ;;  %s200_s24 = sand.u32 (%p51_p3), 1, %s827_s16  }
   0xf   : > { %s678_s25 = sshll.u32 (%p51_p3), %s835_s18, 2  ;;  %s677_s26 = sshll.u32 (%p51_p3), %s200_s24, 4 }
  0x10   : > { %s207_s29 = scalar_lea.vmem (%p51_p3), %s963_s0, %s678_s25  ;;  %s202_s30 = scalar_lea.vmem (%p51_p3), [#allocation3], %s677_s26 }
  0x11   : > { %v223_v0 = vld [vmem:[%s207_s29] sm:$0xf] (%p51_p3)  ;;  %v225_v1 = vld [vmem:[%s207_s29 + $0x24] sm:$0xf] (%p51_p3)  ;;  %v227_v2 = vld [vmem:[%s207_s29 + $0x48] sm:$0xf] (%p51_p3) }
  0x12   : > { %224 = vst [vmem:[%s202_s30] sm:$0xf] (%p51_p3), %v223_v0  ;;  %226 = vst [vmem:[%s202_s30 + $0x4] sm:$0xf] (%p51_p3), %v225_v1  ;;  %v229_v3 = vld [vmem:[%s207_s29 + $0x6c] sm:$0xf] (%p51_p3) }
  0x13   : > { %228 = vst [vmem:[%s202_s30 + $0x8] sm:$0xf] (%p51_p3), %v227_v2  ;;  %230 = vst [vmem:[%s202_s30 + $0xc] sm:$0xf] (%p51_p3), %v229_v3 }
  0x15 PF: > { %p679_p6 = scmp.ge.s32.totalorder %s839_s19, 1  ;;  %p272_p7 = scmp.lt.s32.totalorder %s839_s19, 10 }
  0x17   : > { %p273_p8 = pnand %p679_p6, %p272_p7 }
  0x18   : > { %s279_s5 = sand.u32 (!%p273_p8), 1, %s823_s15   ;;  %s681_s6 = sshll.u32 (!%p273_p8), %s831_s17, 4 }
  0x19   : > { %276 = sbr.rel (%p273_p8) target bundleno = 306 (0x132), region = 73  ;;  %s914_s7 = sshll.u32 (!%p273_p8), %s279_s5, 4 }
  0x1a   : > { %p323_p9 = scmp.lt.s32.totalorder (!%p273_p8), %s681_s6, 143  ;;  %s281_s12 = scalar_lea.vmem (!%p273_p8), [#allocation3], %s914_s7 }
  0x1b   : > { %p683_p10 = scmp.ne.s32.totalorder (!%p273_p8), %s831_s17, 0 }
  0x20   : > { %s975_s6 = smov (!%p323_p9, %s681_s6), 143  ;;  %350 = sbr.rel (%p683_p10) target bundleno = 39 (0x27), region = 81 }
  0x21   : > { %s682_s8 = sshll.u32 %s975_s6, 2  ;;  %v841_v4 = vmov (!%p683_p10), 0.0  }
  0x22   : > { %s919_s11 = scalar_lea.vmem %s964_s1, %s682_s8  ;;  %351 = vst [vmem:[#allocation2] sm:$0xff] (!%p683_p10), %v841_v4  ;;  %352 = vst [vmem:[#allocation2 + $0x8] sm:$0xff] (!%p683_p10), %v841_v4 }
  0x23   : > { %353 = vst [vmem:[#allocation2 + $0x10] sm:$0xff] (!%p683_p10), %v841_v4  ;;  %354 = vst [vmem:[#allocation2 + $0x18] sm:$0xff] (!%p683_p10), %v841_v4 }
  0x27 PF: > { %v791_v5 = vld [vmem:[%s919_s11] sm:$0xff]   ;;  %v792_v6 = vld [vmem:[%s919_s11 + $0x8] sm:$0xff]   ;;  %v793_v7 = vld [vmem:[%s919_s11 + $0x10] sm:$0xff]   ;;  %p694_p11 = scmp.ne.s32.totalorder %s831_s17, 8 }
  0x28   : > { %730 = vmatprep.subr.bf16.mxu0 %v791_v5  ;;  %v794_v8 = vld [vmem:[%s919_s11 + $0x18] sm:$0xff]   ;;  %v799_v9 = vld [vmem:[%s281_s12] sm:$0xff]   ;;  %v796_v11 = vld [vmem:[%s919_s11 + $0x28] sm:$0xff]  }
  0x29   : > { %731 = vmatpush3.bf16.msra.mxu0 %v791_v5  ;;  %746 = vmatprep.mubr.bf16.mxu0 %v799_v9  ;;  %v795_v10 = vld [vmem:[%s919_s11 + $0x20] sm:$0xff]   ;;  %v797_v12 = vld [vmem:[%s919_s11 + $0x30] sm:$0xff]   ;;  %v798_v13 = vld [vmem:[%s919_s11 + $0x38] sm:$0xff]  }
  0x2a   : > { %732 = vmatprep.subr.bf16.mxu0 %v792_v6  ;;  %v800_v14 = vld [vmem:[%s281_s12 + $0x8] sm:$0xff]   ;;  %v357_v15 = vld [vmem:[#allocation2 + $0x10] sm:$0xff]  ;;  %v355_v16 = vld [vmem:[#allocation2] sm:$0xff] }
  0x2b   : > { %v358_v18 = vld [vmem:[#allocation2 + $0x18] sm:$0xff]  ;;  %v356_v21 = vld [vmem:[#allocation2 + $0x8] sm:$0xff]  ;;  %v695_v29 = vld [vmem:[%s965_s2] ss:$0 sm:$0xff] (!%p694_p11) }
  0x2c   : > { %v696_v32 = vld [vmem:[%s966_s3] ss:$0 sm:$0xff] (!%p694_p11) }
  0x2d   : > { %733 = vmatpush3.bf16.msra.mxu0 %v792_v6 }
  0x2e   : > { %734 = vmatprep.subr.bf16.mxu0 %v793_v7 }
  0x31   : > { %735 = vmatpush3.bf16.msra.mxu0 %v793_v7 }
  0x32   : > { %736 = vmatprep.subr.bf16.mxu0 %v794_v8 }
  0x35   : > { %737 = vmatpush3.bf16.msra.mxu0 %v794_v8 }
  0x36   : > { %738 = vmatprep.subr.bf16.mxu0 %v795_v10 }
  0x39   : > { %739 = vmatpush3.bf16.msra.mxu0 %v795_v10 }
  0x3a   : > { %740 = vmatprep.subr.bf16.mxu0 %v796_v11 }
  0x3d   : > { %741 = vmatpush3.bf16.msra.mxu0 %v796_v11 }
  0x3e   : > { %742 = vmatprep.subr.bf16.mxu0 %v797_v12 }
  0x41   : > { %743 = vmatpush3.bf16.msra.mxu0 %v797_v12 }
  0x42   : > { %744 = vmatprep.subr.bf16.mxu0 %v798_v13 }
  0x45   : > { %745 = vmatpush3.bf16.msra.mxu0 %v798_v13 }
  0x48   : > { %747 = vmatmul.mubr.bf16.vlgmr.msra.gmra.mrb[0].mxu0 %v800_v14 }
 0x11b   : > { %v748_v17 = vpop.f32.mrb[0].mxu0  ;;  %499 = sbr.rel (%p694_p11) target bundleno = 306 (0x132), region = 85 }
 0x11c   : > { %v490_v19 = vadd.f32 %v748_v17, %v357_v15  ;;  %v473_v20 = vpop.f32.mrb[1].mxu0 }
 0x11d   : > { %v488_v22 = vadd.f32 %v473_v20, %v355_v16  ;;  %v749_v23 = vpop.f32.mrb[2].mxu0 }
 0x11e   : > { %494 = vst [vmem:[#allocation2 + $0x10] sm:$0xff] %v490_v19  ;;  %v491_v24 = vadd.f32 %v749_v23, %v358_v18  ;;  %v476_v25 = vpop.f32.mrb[3].mxu0 }
 0x11f   : > { %492 = vst [vmem:[#allocation2] sm:$0xff] %v488_v22  ;;  %v489_v26 = vadd.f32 %v476_v25, %v356_v21 }
 0x120   : > { %495 = vst [vmem:[#allocation2 + $0x18] sm:$0xff] %v491_v24 }
 0x121   : > { %493 = vst [vmem:[#allocation2 + $0x8] sm:$0xff] %v489_v26 }
 0x125   : > { %v502_v33 = vld [vmem:[#allocation2 + $0x10] sm:$0xff] }
 0x126   : > { %v500_v27 = vld [vmem:[#allocation2] sm:$0xff]  ;;  %v513_v35 = vmul.f32 %v695_v29, %v502_v33 }
 0x127   : > { %v511_v30 = vmul.f32 %v695_v29, %v500_v27  ;;  %v503_v34 = vld [vmem:[#allocation2 + $0x18] sm:$0xff] }
 0x128   : > { %v501_v28 = vld [vmem:[#allocation2 + $0x8] sm:$0xff]  ;;  %v514_v36 = vmul.f32 %v695_v29, %v503_v34  ;;  %v524_v39 = vadd.f32 %v696_v32, %v513_v35 }
 0x129   : > { %v512_v31 = vmul.f32 %v695_v29, %v501_v28  ;;  %v522_v37 = vadd.f32 %v696_v32, %v511_v30 }
 0x12a   : > { %v525_v40 = vadd.f32 %v696_v32, %v514_v36  ;;  %v528_v43 = vmax.f32 %v524_v39, 0.0 }
 0x12b   : > { %v523_v38 = vadd.f32 %v696_v32, %v512_v31  ;;  %v526_v41 = vmax.f32 %v522_v37, 0.0 }
 0x12c   : > { %v529_v44 = vmax.f32 %v525_v40, 0.0 }
 0x12d   : > { %v527_v42 = vmax.f32 %v523_v38, 0.0 }
 0x12e   : > { %v717_v46 = vpack.c.bf16 %v529_v44, %v528_v43 }
 0x12f   : > { %v712_v45 = vpack.c.bf16 %v527_v42, %v526_v41 }
 0x130   : > { %719 = vst [vmem:[%s967_s4 + $0x8] sm:$0xff] %v717_v46  }
 0x131   : > { %713 = vst [vmem:[%s967_s4] sm:$0xff] %v712_v45  }
 0x132 PF: > { %s14_s19 = sadd.s32 1, %s839_s19   ;;  %s968_s15 = smov %s827_s16 }
 0x133   : > { %p11_p12 = scmp.ge.s32.totalorder %s14_s19, 11   ;;  %s969_s16 = smov %s902_s23 }
 0x134   : > { %s970_s17 = smov %s835_s18  ;;  %s971_s18 = smov %s973_s20 }
 0x135   :  { %13 = sbr.rel (!%p11_p12) target bundleno = 3 (0x3), region = 129 }

// kernel: pretrained_cnn_forward.32
= control target key start
LH: loop header
LB: loop body
LE: loop exit
PB: predicated region body
PF: predicated region fallthrough
CT: control target
= control target key end

     0   :  { %s779_s15 = smov 0   ;;  %s781_s16 = smov 0   ;;  %s849_s0 = inlined_call_operand.vmem [shape: bf16[8,1152], index: 0, kind: input, shape index: {}]   ;;  %s850_s1 = inlined_call_operand.vmem [shape: bf16[1152,256], index: 1, kind: input, shape index: {}]   ;;  %s851_s2 = inlined_call_operand.vmem [shape: f32[1,256], index: 2, kind: input, shape index: {}]   ;;  %s852_s3 = inlined_call_operand.vmem [shape: f32[1,256], index: 3, kind: input, shape index: {}]   ;;  %s853_s4 = inlined_call_operand.vmem [shape: bf16[8,256], index: 4, kind: output, shape index: {}]  }
   0x1   :  { %s783_s17 = smov 0  }
   0x2 LB: > { %s26_s18 = sadd.s32 1, %s746_s16  ;;  %p648_p0 = scmp.ge.s32.totalorder %s750_s17, 1  ;;  %s750_s17 = sphi %s783_s17, %s14_s17   ;;  %s746_s16 = sphi %s781_s16, %s855_s16   ;;  %s742_s15 = sphi %s779_s15, %s854_s15  }
   0x3   : > { %p27_p1 = scmp.ge.s32.totalorder %s26_s18, 9  ;;  %p227_p2 = scmp.lt.s32.totalorder %s750_s17, 10 }
   0x5   : > { %s857_s18 = smov (%p27_p1, %s26_s18), 0  ;;  %p228_p3 = pnand %p648_p0, %p227_p2 }
   0x6   : > { %p280_p4 = scmp.lt.s32.totalorder (!%p228_p3), %s742_s15, 8  ;;  %s650_s19 = sshll.u32 (!%p228_p3), %s742_s15, 4 }
   0x7   : > { %231 = sbr.rel (%p228_p3) target bundleno = 287 (0x11f), region = 36  ;;  %p288_p5 = scmp.lt.s32.totalorder (!%p228_p3), %s650_s19, 143 }
   0x8   : > { %p653_p6 = scmp.ne.s32.totalorder (!%p228_p3), %s742_s15, 0 }
   0xe   : > { %s281_s20 = scalar_select %p280_p4, %s742_s15, 8 }
   0xf   : > { %s859_s19 = smov (!%p288_p5, %s650_s19), 143  ;;  %322 = sbr.rel (%p653_p6) target bundleno = 22 (0x16), region = 40 }
  0x10   : > { %s649_s21 = sshll.u32 %s281_s20, 2  ;;  %s676_s25 = sshll.u32 %s859_s19, 3  ;;  %v752_v0 = vmov (!%p653_p6), 0.0  }
  0x11   : > { %s805_s24 = scalar_lea.vmem %s849_s0, %s649_s21  ;;  %s810_s28 = scalar_lea.vmem %s850_s1, %s676_s25  ;;  %323 = vst [vmem:[#allocation2] sm:$0xff] (!%p653_p6), %v752_v0  ;;  %324 = vst [vmem:[#allocation2 + $0x8] sm:$0xff] (!%p653_p6), %v752_v0 }
  0x16 PF: > { %v704_v1 = vld [vmem:[%s810_s28 + $0x4] ss:$8 sps:$4 sm:$0xff]   ;;  %v706_v2 = vld [vmem:[%s810_s28] ss:$8 sps:$4 sm:$0xff]   ;;  %v753_v3 = vmov 0   ;;  %p670_p7 = scmp.ne.s32.totalorder %s742_s15, 8 }
  0x17   : > { %456 = vmatprep.mubr.bf16.mxu0 %v753_v3  ;;  %424 = vmatprep.subr.bf16.mxu0 %v704_v1  ;;  %v707_v4 = vld [vmem:[%s810_s28 + $0x14] ss:$8 sps:$4 sm:$0xff]   ;;  %v709_v5 = vld [vmem:[%s810_s28 + $0x10] ss:$8 sps:$4 sm:$0xff]   ;;  %v710_v6 = vld [vmem:[%s810_s28 + $0x24] ss:$8 sps:$4 sm:$0xff]   ;;  %v477_v27 = vlaneseq (!%p670_p7) }
  0x18   : > { %425 = vmatpush1.bf16.msra.mxu0 %v706_v2  ;;  %v712_v7 = vld [vmem:[%s810_s28 + $0x20] ss:$8 sps:$4 sm:$0xff]   ;;  %v713_v8 = vld [vmem:[%s810_s28 + $0x34] ss:$8 sps:$4 sm:$0xff]   ;;  %v715_v9 = vld [vmem:[%s810_s28 + $0x30] ss:$8 sps:$4 sm:$0xff]  }
  0x19   : > { %426 = vmatprep.subr.bf16.mxu0 %v707_v4  ;;  %v716_v10 = vld [vmem:[%s810_s28 + $0x44] ss:$8 sps:$4 sm:$0xff]   ;;  %v718_v11 = vld [vmem:[%s810_s28 + $0x40] ss:$8 sps:$4 sm:$0xff]   ;;  %v719_v12 = vld [vmem:[%s810_s28 + $0x54] ss:$8 sps:$4 sm:$0xff]  }
  0x1a   : > { %v721_v13 = vld [vmem:[%s810_s28 + $0x50] ss:$8 sps:$4 sm:$0xff]   ;;  %v722_v14 = vld [vmem:[%s810_s28 + $0x64] ss:$8 sps:$4 sm:$0xff]   ;;  %v724_v15 = vld [vmem:[%s810_s28 + $0x60] ss:$8 sps:$4 sm:$0xff]  }
  0x1b   : > { %v725_v16 = vld [vmem:[%s810_s28 + $0x74] ss:$8 sps:$4 sm:$0xff]   ;;  %v727_v17 = vld [vmem:[%s810_s28 + $0x70] ss:$8 sps:$4 sm:$0xff]   ;;  %v327_v18 = vld [vmem:[%s805_s24] sm:$0xf] }
  0x1c   : > { %427 = vmatpush1.bf16.msra.mxu0 %v709_v5  ;;  %v325_v19 = vld [vmem:[#allocation2] sm:$0xff]  ;;  %v326_v20 = vld [vmem:[#allocation2 + $0x8] sm:$0xff]  ;;  %v478_v28 = vshrl.u32 (!%p670_p7), %v477_v27, 7 }
  0x1d   : > { %428 = vmatprep.subr.bf16.mxu0 %v710_v6  ;;  %v475_v29 = vld [vmem:[%s851_s2] sm:$0x3] (!%p670_p7) }
  0x1e   : > { %v489_v30 = vld [vmem:[%s852_s3] sm:$0x3] (!%p670_p7)  ;;  %v479_v31 = vsub.s32 (!%p670_p7), 0, %v478_v28  ;;  %v483_v32 = vsub.s32 (!%p670_p7), 1, %v478_v28 }
  0x20   : > { %429 = vmatpush1.bf16.msra.mxu0 %v712_v7  ;;  %v480_v35 = vrot.slane (!%p670_p7), %v475_v29, %v479_v31  ;;  %v484_v36 = vrot.slane (!%p670_p7), %v475_v29, %v483_v32  ;;  %v494_v37 = vrot.slane (!%p670_p7), %v489_v30, %v479_v31  ;;  %v498_v38 = vrot.slane (!%p670_p7), %v489_v30, %v483_v32 }
  0x21   : > { %430 = vmatprep.subr.bf16.mxu0 %v713_v8 }
  0x24   : > { %431 = vmatpush1.bf16.msra.mxu0 %v715_v9 }
  0x25   : > { %432 = vmatprep.subr.bf16.mxu0 %v716_v10 }
  0x28   : > { %433 = vmatpush1.bf16.msra.mxu0 %v718_v11 }
  0x29   : > { %434 = vmatprep.subr.bf16.mxu0 %v719_v12 }
  0x2c   : > { %435 = vmatpush1.bf16.msra.mxu0 %v721_v13 }
  0x2d   : > { %436 = vmatprep.subr.bf16.mxu0 %v722_v14 }
  0x30   : > { %437 = vmatpush1.bf16.msra.mxu0 %v724_v15 }
  0x31   : > { %438 = vmatprep.subr.bf16.mxu0 %v725_v16 }
  0x34   : > { %439 = vmatpush1.bf16.msra.mxu0 %v727_v17 }
  0x37   : > { %457 = vmatmul.mubr.bf16.vlgmr.msra.gmra.mrb[0].mxu0 %v327_v18 }
 0x108   : > { %472 = sbr.rel (%p670_p7) target bundleno = 287 (0x11f), region = 44 }
 0x10a   : > { %v458_v21 = vpop.f32.mrb[0].mxu0 }
 0x10b   : > { %v465_v22 = vadd.f32 %v458_v21, %v325_v19  ;;  %v460_v23 = vpop.f32.mrb[1].mxu0 }
 0x10c   : > { %v466_v24 = vadd.f32 %v460_v23, %v326_v20  ;;  %v462_v25 = vpop.f32.mrb[2].mxu0 }
 0x10d   : > { %467 = vst [vmem:[#allocation2] sm:$0xff] %v465_v22  ;;  %v463_v26 = vpop.f32.mrb[3].mxu0 }
 0x10e   : > { %468 = vst [vmem:[#allocation2 + $0x8] sm:$0xff] %v466_v24 }
 0x114   : > { %v473_v33 = vld [vmem:[#allocation2] sm:$0xff] }
 0x115   : > { %v474_v34 = vld [vmem:[#allocation2 + $0x8] sm:$0xff]  ;;  %v487_v39 = vmul.f32 %v480_v35, %v473_v33 }
 0x116   : > { %v488_v40 = vmul.f32 %v484_v36, %v474_v34 }
 0x117   : > { %v501_v41 = vadd.f32 %v494_v37, %v487_v39 }
 0x118   : > { %v502_v42 = vadd.f32 %v498_v38, %v488_v40 }
 0x119   : > { %v503_v43 = vmax.f32 %v501_v41, 0.0 }
 0x11a   : > { %v504_v44 = vmax.f32 %v502_v42, 0.0 }
 0x11c   : > { %v677_v45 = vpack.c.bf16 %v504_v44, %v503_v43 }
 0x11e   : > { %513 = vst [vmem:[%s853_s4] sm:$0xff] %v677_v45 }
 0x11f PF: > { %s14_s17 = sadd.s32 1, %s750_s17   ;;  %s854_s15 = smov %s746_s16 }
 0x120   : > { %p11_p8 = scmp.ge.s32.totalorder %s14_s17, 11   ;;  %s855_s16 = smov %s857_s18 }
 0x122   :  { %13 = sbr.rel (!%p11_p8) target bundleno = 2 (0x2), region = 83 }

// kernel: pretrained_cnn_forward.31
= control target key start
LH: loop header
LB: loop body
LE: loop exit
PB: predicated region body
PF: predicated region fallthrough
CT: control target
= control target key end

     0   :  { %v257_v1 = vmov 0   ;;  %v175_v18 = vlaneseq  ;;  %s343_s1 = inlined_call_operand.vmem [shape: bf16[128,256], index: 1, kind: input, shape index: {}]   ;;  %s344_s0 = inlined_call_operand.vmem [shape: bf16[8,128], index: 0, kind: input, shape index: {}]   ;;  %s345_s2 = inlined_call_operand.vmem [shape: f32[1,256], index: 2, kind: input, shape index: {}]   ;;  %s346_s3 = inlined_call_operand.vmem [shape: f32[1,256], index: 3, kind: input, shape index: {}]   ;;  %s347_s4 = inlined_call_operand.vmem [shape: bf16[8,256], index: 4, kind: output, shape index: {}]  }
   0x1   :  { %v233_v0 = vld [vmem:[%s343_s1 + $0x4] ss:$8 sps:$4 sm:$0xff]   ;;  %155 = vmatprep.mubr.bf16.mxu0 %v257_v1  ;;  %v235_v2 = vld [vmem:[%s343_s1] ss:$8 sps:$4 sm:$0xff]   ;;  %v236_v3 = vld [vmem:[%s343_s1 + $0x14] ss:$8 sps:$4 sm:$0xff]  }
   0x2   :  { %123 = vmatprep.subr.bf16.mxu0 %v233_v0  ;;  %v238_v4 = vld [vmem:[%s343_s1 + $0x10] ss:$8 sps:$4 sm:$0xff]   ;;  %v239_v5 = vld [vmem:[%s343_s1 + $0x24] ss:$8 sps:$4 sm:$0xff]   ;;  %v241_v6 = vld [vmem:[%s343_s1 + $0x20] ss:$8 sps:$4 sm:$0xff]  }
   0x3   :  { %124 = vmatpush1.bf16.msra.mxu0 %v235_v2  ;;  %v242_v7 = vld [vmem:[%s343_s1 + $0x34] ss:$8 sps:$4 sm:$0xff]   ;;  %v244_v8 = vld [vmem:[%s343_s1 + $0x30] ss:$8 sps:$4 sm:$0xff]   ;;  %v245_v9 = vld [vmem:[%s343_s1 + $0x44] ss:$8 sps:$4 sm:$0xff]  }
   0x4   :  { %125 = vmatprep.subr.bf16.mxu0 %v236_v3  ;;  %v247_v10 = vld [vmem:[%s343_s1 + $0x40] ss:$8 sps:$4 sm:$0xff]   ;;  %v248_v11 = vld [vmem:[%s343_s1 + $0x54] ss:$8 sps:$4 sm:$0xff]   ;;  %v250_v12 = vld [vmem:[%s343_s1 + $0x50] ss:$8 sps:$4 sm:$0xff]  }
   0x5   :  { %v251_v13 = vld [vmem:[%s343_s1 + $0x64] ss:$8 sps:$4 sm:$0xff]   ;;  %v253_v14 = vld [vmem:[%s343_s1 + $0x60] ss:$8 sps:$4 sm:$0xff]   ;;  %v254_v15 = vld [vmem:[%s343_s1 + $0x74] ss:$8 sps:$4 sm:$0xff]  }
   0x6   :  { %v256_v16 = vld [vmem:[%s343_s1 + $0x70] ss:$8 sps:$4 sm:$0xff]   ;;  %v26_v17 = vld [vmem:[%s344_s0] sm:$0xf]  ;;  %v176_v19 = vshrl.u32 %v175_v18, 7 }
   0x7   :  { %126 = vmatpush1.bf16.msra.mxu0 %v238_v4  ;;  %v173_v21 = vld [vmem:[%s345_s2] sm:$0x3] }
   0x8   :  { %127 = vmatprep.subr.bf16.mxu0 %v239_v5  ;;  %v177_v20 = vsub.s32 0, %v176_v19  ;;  %v181_v22 = vsub.s32 1, %v176_v19  ;;  %v187_v23 = vld [vmem:[%s346_s3] sm:$0x3] }
   0xa   :  { %v178_v24 = vrot.slane %v173_v21, %v177_v20  ;;  %v182_v25 = vrot.slane %v173_v21, %v181_v22  ;;  %v192_v26 = vrot.slane %v187_v23, %v177_v20  ;;  %v196_v28 = vrot.slane %v187_v23, %v181_v22 }
   0xb   :  { %128 = vmatpush1.bf16.msra.mxu0 %v241_v6 }
   0xc   :  { %129 = vmatprep.subr.bf16.mxu0 %v242_v7 }
   0xf   :  { %130 = vmatpush1.bf16.msra.mxu0 %v244_v8 }
  0x10   :  { %131 = vmatprep.subr.bf16.mxu0 %v245_v9 }
  0x13   :  { %132 = vmatpush1.bf16.msra.mxu0 %v247_v10 }
  0x14   :  { %133 = vmatprep.subr.bf16.mxu0 %v248_v11 }
  0x17   :  { %134 = vmatpush1.bf16.msra.mxu0 %v250_v12 }
  0x18   :  { %135 = vmatprep.subr.bf16.mxu0 %v251_v13 }
  0x1b   :  { %136 = vmatpush1.bf16.msra.mxu0 %v253_v14 }
  0x1c   :  { %137 = vmatprep.subr.bf16.mxu0 %v254_v15 }
  0x1f   :  { %138 = vmatpush1.bf16.msra.mxu0 %v256_v16 }
  0x22   :  { %156 = vmatmul.mubr.bf16.vlgmr.msra.gmra.mrb[0].mxu0 %v26_v17 }
  0xf5   :  { %v157_v27 = vpop.f32.mrb[0].mxu0 }
  0xf6   :  { %v185_v29 = vmul.f32 %v178_v24, %v157_v27  ;;  %v159_v30 = vpop.f32.mrb[1].mxu0 }
  0xf7   :  { %v186_v31 = vmul.f32 %v182_v25, %v159_v30  ;;  %v161_v32 = vpop.f32.mrb[2].mxu0 }
  0xf8   :  { %v199_v33 = vadd.f32 %v192_v26, %v185_v29  ;;  %v162_v34 = vpop.f32.mrb[3].mxu0 }
  0xf9   :  { %v200_v35 = vadd.f32 %v196_v28, %v186_v31 }
  0xfb   :  { %v231_v36 = vpack.c.bf16 %v200_v35, %v199_v33 }
  0xfd   :  { %209 = vst [vmem:[%s347_s4] sm:$0xff] %v231_v36 }

// kernel: pretrained_cnn_forward.33
= control target key start
LH: loop header
LB: loop body
LE: loop exit
PB: predicated region body
PF: predicated region fallthrough
CT: control target
= control target key end

     0   :  { %s1024_s18 = smov 0   ;;  %s1026_s19 = smov 0   ;;  %s1112_s0 = inlined_call_operand.vmem [shape: bf16[8,2304], index: 0, kind: input, shape index: {}]   ;;  %s1113_s1 = inlined_call_operand.vmem [shape: bf16[2304,256], index: 1, kind: input, shape index: {}]   ;;  %s1114_s2 = inlined_call_operand.vmem [shape: f32[1,256], index: 2, kind: input, shape index: {}]   ;;  %s1115_s3 = inlined_call_operand.vmem [shape: f32[1,256], index: 3, kind: input, shape index: {}]   ;;  %s1116_s4 = inlined_call_operand.vmem [shape: bf16[8,256], index: 4, kind: input, shape index: {}]   ;;  %s1117_s5 = inlined_call_operand.vmem [shape: bf16[8,256], index: 5, kind: output, shape index: {}]  }
   0x1   :  { %s1028_s20 = smov 0  }
   0x2 LB: > { %s27_s21 = sadd.s32 1, %s987_s19  ;;  %p845_p0 = scmp.ge.s32.totalorder %s991_s20, 1  ;;  %s991_s20 = sphi %s1028_s20, %s15_s20   ;;  %s987_s19 = sphi %s1026_s19, %s1119_s19   ;;  %s983_s18 = sphi %s1024_s18, %s1118_s18  }
   0x3   : > { %p28_p1 = scmp.ge.s32.totalorder %s27_s21, 9  ;;  %p271_p2 = scmp.lt.s32.totalorder %s991_s20, 10 }
   0x5   : > { %s1121_s21 = smov (%p28_p1, %s27_s21), 0  ;;  %p272_p3 = pnand %p845_p0, %p271_p2 }
   0x6   : > { %s846_s22 = sshll.u32 (!%p272_p3), %s983_s18, 1  ;;  %s848_s23 = sshll.u32 (!%p272_p3), %s983_s18, 5 }
   0x7   : > { %275 = sbr.rel (%p272_p3) target bundleno = 323 (0x143), region = 40  ;;  %p337_p4 = scmp.lt.s32.totalorder (!%p272_p3), %s846_s22, 17 }
   0x8   : > { %p346_p5 = scmp.lt.s32.totalorder (!%p272_p3), %s848_s23, 287  ;;  %p851_p6 = scmp.ne.s32.totalorder (!%p272_p3), %s983_s18, 0 }
   0xe   : > { %s1123_s22 = smov (!%p337_p4, %s846_s22), 17  ;;  %s1125_s23 = smov (!%p346_p5, %s848_s23), 287 }
   0xf   : > { %s847_s24 = sshll.u32 %s1123_s22, 2  ;;  %s892_s28 = sshll.u32 %s1125_s23, 3  ;;  %v993_v0 = vmov (!%p851_p6), 0.0  }
  0x10   : > { %s1049_s27 = scalar_lea.vmem %s1112_s0, %s847_s24  ;;  %s1054_s6 = scalar_lea.vmem %s1113_s1, %s892_s28  ;;  %390 = vst [vmem:[#allocation2] sm:$0xff] (!%p851_p6), %v993_v0  ;;  %391 = vst [vmem:[#allocation2 + $0x8] sm:$0xff] (!%p851_p6), %v993_v0 }
  0x11   : > { %389 = sbr.rel (%p851_p6) target bundleno = 24 (0x18), region = 44 }
  0x18 PF: > { %v919_v1 = vld [vmem:[%s1054_s6 + $0x4] ss:$8 sps:$4 sm:$0xff]   ;;  %v921_v2 = vld [vmem:[%s1054_s6] ss:$8 sps:$4 sm:$0xff]   ;;  %v922_v3 = vld [vmem:[%s1054_s6 + $0x14] ss:$8 sps:$4 sm:$0xff]  }
  0x19   : > { %594 = vmatprep.subr.bf16.mxu0 %v919_v1  ;;  %v924_v4 = vld [vmem:[%s1054_s6 + $0x10] ss:$8 sps:$4 sm:$0xff]   ;;  %v925_v5 = vld [vmem:[%s1054_s6 + $0x24] ss:$8 sps:$4 sm:$0xff]   ;;  %v927_v6 = vld [vmem:[%s1054_s6 + $0x20] ss:$8 sps:$4 sm:$0xff]  }
  0x1a   : > { %595 = vmatpush1.bf16.msra.mxu0 %v921_v2  ;;  %v928_v7 = vld [vmem:[%s1054_s6 + $0x34] ss:$8 sps:$4 sm:$0xff]   ;;  %v930_v8 = vld [vmem:[%s1054_s6 + $0x30] ss:$8 sps:$4 sm:$0xff]   ;;  %v931_v9 = vld [vmem:[%s1054_s6 + $0x44] ss:$8 sps:$4 sm:$0xff]  }
  0x1b   : > { %596 = vmatprep.subr.bf16.mxu0 %v922_v3  ;;  %v933_v10 = vld [vmem:[%s1054_s6 + $0x40] ss:$8 sps:$4 sm:$0xff]   ;;  %v934_v11 = vld [vmem:[%s1054_s6 + $0x54] ss:$8 sps:$4 sm:$0xff]   ;;  %v936_v12 = vld [vmem:[%s1054_s6 + $0x50] ss:$8 sps:$4 sm:$0xff]  }
  0x1c   : > { %v937_v13 = vld [vmem:[%s1054_s6 + $0x64] ss:$8 sps:$4 sm:$0xff]   ;;  %v939_v16 = vld [vmem:[%s1054_s6 + $0x60] ss:$8 sps:$4 sm:$0xff]   ;;  %v940_v17 = vld [vmem:[%s1054_s6 + $0x74] ss:$8 sps:$4 sm:$0xff]  }
  0x1d   : > { %v394_v14 = vld [vmem:[%s1049_s27] sm:$0xff]  ;;  %v942_v18 = vld [vmem:[%s1054_s6 + $0x70] ss:$8 sps:$4 sm:$0xff]   ;;  %v946_v21 = vld [vmem:[%s1054_s6 + $0x94] ss:$8 sps:$4 sm:$0xff]   ;;  %p886_p7 = scmp.ne.s32.totalorder %s983_s18, 8 }
  0x1e   : > { %597 = vmatpush1.bf16.msra.mxu0 %v924_v4  ;;  %v853_v15 = vcombine.high %v394_v14, %v394_v14  ;;  %v943_v19 = vld [vmem:[%s1054_s6 + $0x84] ss:$8 sps:$4 sm:$0xff]   ;;  %v945_v20 = vld [vmem:[%s1054_s6 + $0x80] ss:$8 sps:$4 sm:$0xff]   ;;  %v948_v22 = vld [vmem:[%s1054_s6 + $0x90] ss:$8 sps:$4 sm:$0xff]   ;;  %v852_v35 = vcombine.low %v394_v14, %v394_v14  ;;  %v647_v44 = vlaneseq (!%p886_p7) }
  0x1f   : > { %598 = vmatprep.subr.bf16.mxu0 %v925_v5  ;;  %v949_v23 = vld [vmem:[%s1054_s6 + $0xa4] ss:$8 sps:$4 sm:$0xff]   ;;  %v951_v24 = vld [vmem:[%s1054_s6 + $0xa0] ss:$8 sps:$4 sm:$0xff]   ;;  %v952_v25 = vld [vmem:[%s1054_s6 + $0xb4] ss:$8 sps:$4 sm:$0xff]  }
  0x20   : > { %626 = vmatprep.mubr.bf16.mxu0 %v853_v15  ;;  %v954_v26 = vld [vmem:[%s1054_s6 + $0xb0] ss:$8 sps:$4 sm:$0xff]   ;;  %v955_v27 = vld [vmem:[%s1054_s6 + $0xc4] ss:$8 sps:$4 sm:$0xff]   ;;  %v957_v28 = vld [vmem:[%s1054_s6 + $0xc0] ss:$8 sps:$4 sm:$0xff]  }
  0x21   : > { %v958_v29 = vld [vmem:[%s1054_s6 + $0xd4] ss:$8 sps:$4 sm:$0xff]   ;;  %v960_v30 = vld [vmem:[%s1054_s6 + $0xd0] ss:$8 sps:$4 sm:$0xff]   ;;  %v961_v31 = vld [vmem:[%s1054_s6 + $0xe4] ss:$8 sps:$4 sm:$0xff]  }
  0x22   : > { %599 = vmatpush1.bf16.msra.mxu0 %v927_v6  ;;  %v963_v32 = vld [vmem:[%s1054_s6 + $0xe0] ss:$8 sps:$4 sm:$0xff]   ;;  %v964_v33 = vld [vmem:[%s1054_s6 + $0xf4] ss:$8 sps:$4 sm:$0xff]   ;;  %v966_v34 = vld [vmem:[%s1054_s6 + $0xf0] ss:$8 sps:$4 sm:$0xff]  }
  0x23   : > { %600 = vmatprep.subr.bf16.mxu0 %v928_v7  ;;  %v392_v36 = vld [vmem:[#allocation2] sm:$0xff]  ;;  %v393_v37 = vld [vmem:[#allocation2 + $0x8] sm:$0xff]  ;;  %v648_v45 = vshrl.u32 (!%p886_p7), %v647_v44, 7 }
  0x24   : > { %v645_v46 = vld [vmem:[%s1114_s2] sm:$0x3] (!%p886_p7) }
  0x25   : > { %v659_v47 = vld [vmem:[%s1115_s3] sm:$0x3] (!%p886_p7)  ;;  %v649_v48 = vsub.s32 (!%p886_p7), 0, %v648_v45  ;;  %v653_v49 = vsub.s32 (!%p886_p7), 1, %v648_v45 }
  0x26   : > { %601 = vmatpush1.bf16.msra.mxu0 %v930_v8  ;;  %v673_v52 = vld [vmem:[%s1116_s4] sm:$0xff] (!%p886_p7) }
  0x27   : > { %602 = vmatprep.subr.bf16.mxu0 %v931_v9  ;;  %v650_v53 = vrot.slane (!%p886_p7), %v645_v46, %v649_v48  ;;  %v654_v54 = vrot.slane (!%p886_p7), %v645_v46, %v653_v49  ;;  %v664_v55 = vrot.slane (!%p886_p7), %v659_v47, %v649_v48  ;;  %v668_v56 = vrot.slane (!%p886_p7), %v659_v47, %v653_v49 }
  0x28   : > { %v674_v59 = vunpack.c.l.bf16 (!%p886_p7), %v673_v52  ;;  %v675_v60 = vunpack.c.h.bf16 (!%p886_p7), %v673_v52 }
  0x2a   : > { %603 = vmatpush1.bf16.msra.mxu0 %v933_v10 }
  0x2b   : > { %604 = vmatprep.subr.bf16.mxu0 %v934_v11 }
  0x2e   : > { %605 = vmatpush1.bf16.msra.mxu0 %v936_v12 }
  0x2f   : > { %606 = vmatprep.subr.bf16.mxu0 %v937_v13 }
  0x32   : > { %607 = vmatpush1.bf16.msra.mxu0 %v939_v16 }
  0x33   : > { %608 = vmatprep.subr.bf16.mxu0 %v940_v17 }
  0x36   : > { %609 = vmatpush1.bf16.msra.mxu0 %v942_v18 }
  0x37   : > { %610 = vmatprep.subr.bf16.mxu0 %v943_v19 }
  0x3a   : > { %611 = vmatpush1.bf16.msra.mxu0 %v945_v20 }
  0x3b   : > { %612 = vmatprep.subr.bf16.mxu0 %v946_v21 }
  0x3e   : > { %613 = vmatpush1.bf16.msra.mxu0 %v948_v22 }
  0x3f   : > { %614 = vmatprep.subr.bf16.mxu0 %v949_v23 }
  0x42   : > { %615 = vmatpush1.bf16.msra.mxu0 %v951_v24 }
  0x43   : > { %616 = vmatprep.subr.bf16.mxu0 %v952_v25 }
  0x46   : > { %617 = vmatpush1.bf16.msra.mxu0 %v954_v26 }
  0x47   : > { %618 = vmatprep.subr.bf16.mxu0 %v955_v27 }
  0x4a   : > { %619 = vmatpush1.bf16.msra.mxu0 %v957_v28 }
  0x4b   : > { %620 = vmatprep.subr.bf16.mxu0 %v958_v29 }
  0x4e   : > { %621 = vmatpush1.bf16.msra.mxu0 %v960_v30 }
  0x4f   : > { %622 = vmatprep.subr.bf16.mxu0 %v961_v31 }
  0x52   : > { %623 = vmatpush1.bf16.msra.mxu0 %v963_v32 }
  0x53   : > { %624 = vmatprep.subr.bf16.mxu0 %v964_v33 }
  0x56   : > { %625 = vmatpush1.bf16.msra.mxu0 %v966_v34 }
  0x59   : > { %627 = vmatmul.mubr.bf16.vlgmr.msra.gmra.mrb[0].mxu0 %v852_v35 }
 0x12a   : > { %642 = sbr.rel (%p886_p7) target bundleno = 323 (0x143), region = 48 }
 0x12c   : > { %v628_v38 = vpop.f32.mrb[0].mxu0 }
 0x12d   : > { %v635_v39 = vadd.f32 %v628_v38, %v392_v36  ;;  %v630_v40 = vpop.f32.mrb[1].mxu0 }
 0x12e   : > { %v636_v41 = vadd.f32 %v630_v40, %v393_v37  ;;  %v632_v42 = vpop.f32.mrb[2].mxu0 }
 0x12f   : > { %637 = vst [vmem:[#allocation2] sm:$0xff] %v635_v39  ;;  %v633_v43 = vpop.f32.mrb[3].mxu0 }
 0x130   : > { %638 = vst [vmem:[#allocation2 + $0x8] sm:$0xff] %v636_v41 }
 0x136   : > { %v643_v50 = vld [vmem:[#allocation2] sm:$0xff] }
 0x137   : > { %v644_v51 = vld [vmem:[#allocation2 + $0x8] sm:$0xff]  ;;  %v657_v57 = vmul.f32 %v650_v53, %v643_v50 }
 0x138   : > { %v658_v58 = vmul.f32 %v654_v54, %v644_v51 }
 0x139   : > { %v671_v61 = vadd.f32 %v664_v55, %v657_v57 }
 0x13a   : > { %v672_v62 = vadd.f32 %v668_v56, %v658_v58 }
 0x13b   : > { %v676_v63 = vadd.f32 %v674_v59, %v671_v61 }
 0x13c   : > { %v677_v0 = vadd.f32 %v675_v60, %v672_v62 }
 0x13d   : > { %v678_v1 = vmax.f32 %v676_v63, 0.0 }
 0x13e   : > { %v679_v2 = vmax.f32 %v677_v0, 0.0 }
 0x140   : > { %v893_v3 = vpack.c.bf16 %v679_v2, %v678_v1 }
 0x142   : > { %688 = vst [vmem:[%s1117_s5] sm:$0xff] %v893_v3 }
 0x143 PF: > { %s15_s20 = sadd.s32 1, %s991_s20   ;;  %s1118_s18 = smov %s987_s19 }
 0x144   : > { %p12_p8 = scmp.ge.s32.totalorder %s15_s20, 11   ;;  %s1119_s19 = smov %s1121_s21 }
 0x146   :  { %14 = sbr.rel (!%p12_p8) target bundleno = 2 (0x2), region = 90 }

// kernel: pretrained_cnn_forward.34
= control target key start
LH: loop header
LB: loop body
LE: loop exit
PB: predicated region body
PF: predicated region fallthrough
CT: control target
= control target key end

     0   :  { %s929_s15 = smov 0   ;;  %s931_s16 = smov 0   ;;  %s1014_s0 = inlined_call_operand.vmem [shape: bf16[8,2304], index: 0, kind: input, shape index: {}]   ;;  %s1015_s1 = inlined_call_operand.vmem [shape: bf16[2304,256], index: 1, kind: input, shape index: {}]   ;;  %s1016_s2 = inlined_call_operand.vmem [shape: f32[1,256], index: 2, kind: input, shape index: {}]   ;;  %s1017_s3 = inlined_call_operand.vmem [shape: f32[1,256], index: 3, kind: input, shape index: {}]   ;;  %s1018_s4 = inlined_call_operand.vmem [shape: bf16[8,256], index: 4, kind: output, shape index: {}]  }
   0x1   :  { %s933_s17 = smov 0  }
   0x2 LB: > { %s26_s18 = sadd.s32 1, %s897_s16  ;;  %p755_p0 = scmp.ge.s32.totalorder %s901_s17, 1  ;;  %s901_s17 = sphi %s933_s17, %s14_s17   ;;  %s897_s16 = sphi %s931_s16, %s1020_s16   ;;  %s893_s15 = sphi %s929_s15, %s1019_s15  }
   0x3   : > { %p27_p1 = scmp.ge.s32.totalorder %s26_s18, 9  ;;  %p229_p2 = scmp.lt.s32.totalorder %s901_s17, 10 }
   0x5   : > { %s1022_s18 = smov (%p27_p1, %s26_s18), 0  ;;  %p230_p3 = pnand %p755_p0, %p229_p2 }
   0x6   : > { %s756_s19 = sshll.u32 (!%p230_p3), %s893_s15, 1  ;;  %s758_s20 = sshll.u32 (!%p230_p3), %s893_s15, 5 }
   0x7   : > { %233 = sbr.rel (%p230_p3) target bundleno = 321 (0x141), region = 36  ;;  %p284_p4 = scmp.lt.s32.totalorder (!%p230_p3), %s756_s19, 17 }
   0x8   : > { %p293_p5 = scmp.lt.s32.totalorder (!%p230_p3), %s758_s20, 287  ;;  %p761_p6 = scmp.ne.s32.totalorder (!%p230_p3), %s893_s15, 0 }
   0xe   : > { %s1024_s19 = smov (!%p284_p4, %s756_s19), 17  ;;  %s1026_s20 = smov (!%p293_p5, %s758_s20), 287 }
   0xf   : > { %s757_s21 = sshll.u32 %s1024_s19, 2  ;;  %s802_s25 = sshll.u32 %s1026_s20, 3  ;;  %v903_v0 = vmov (!%p761_p6), 0.0  }
  0x10   : > { %s954_s24 = scalar_lea.vmem %s1014_s0, %s757_s21  ;;  %s959_s28 = scalar_lea.vmem %s1015_s1, %s802_s25  ;;  %327 = vst [vmem:[#allocation2] sm:$0xff] (!%p761_p6), %v903_v0  ;;  %328 = vst [vmem:[#allocation2 + $0x8] sm:$0xff] (!%p761_p6), %v903_v0 }
  0x11   : > { %326 = sbr.rel (%p761_p6) target bundleno = 24 (0x18), region = 40 }
  0x18 PF: > { %v829_v1 = vld [vmem:[%s959_s28 + $0x4] ss:$8 sps:$4 sm:$0xff]   ;;  %v831_v2 = vld [vmem:[%s959_s28] ss:$8 sps:$4 sm:$0xff]   ;;  %v832_v3 = vld [vmem:[%s959_s28 + $0x14] ss:$8 sps:$4 sm:$0xff]  }
  0x19   : > { %531 = vmatprep.subr.bf16.mxu0 %v829_v1  ;;  %v834_v4 = vld [vmem:[%s959_s28 + $0x10] ss:$8 sps:$4 sm:$0xff]   ;;  %v835_v5 = vld [vmem:[%s959_s28 + $0x24] ss:$8 sps:$4 sm:$0xff]   ;;  %v837_v6 = vld [vmem:[%s959_s28 + $0x20] ss:$8 sps:$4 sm:$0xff]  }
  0x1a   : > { %532 = vmatpush1.bf16.msra.mxu0 %v831_v2  ;;  %v838_v7 = vld [vmem:[%s959_s28 + $0x34] ss:$8 sps:$4 sm:$0xff]   ;;  %v840_v8 = vld [vmem:[%s959_s28 + $0x30] ss:$8 sps:$4 sm:$0xff]   ;;  %v841_v9 = vld [vmem:[%s959_s28 + $0x44] ss:$8 sps:$4 sm:$0xff]  }
  0x1b   : > { %533 = vmatprep.subr.bf16.mxu0 %v832_v3  ;;  %v843_v10 = vld [vmem:[%s959_s28 + $0x40] ss:$8 sps:$4 sm:$0xff]   ;;  %v844_v11 = vld [vmem:[%s959_s28 + $0x54] ss:$8 sps:$4 sm:$0xff]   ;;  %v846_v12 = vld [vmem:[%s959_s28 + $0x50] ss:$8 sps:$4 sm:$0xff]  }
  0x1c   : > { %v847_v13 = vld [vmem:[%s959_s28 + $0x64] ss:$8 sps:$4 sm:$0xff]   ;;  %v849_v16 = vld [vmem:[%s959_s28 + $0x60] ss:$8 sps:$4 sm:$0xff]   ;;  %v850_v17 = vld [vmem:[%s959_s28 + $0x74] ss:$8 sps:$4 sm:$0xff]  }
  0x1d   : > { %v331_v14 = vld [vmem:[%s954_s24] sm:$0xff]  ;;  %v852_v18 = vld [vmem:[%s959_s28 + $0x70] ss:$8 sps:$4 sm:$0xff]   ;;  %v856_v21 = vld [vmem:[%s959_s28 + $0x94] ss:$8 sps:$4 sm:$0xff]   ;;  %p796_p7 = scmp.ne.s32.totalorder %s893_s15, 8 }
  0x1e   : > { %534 = vmatpush1.bf16.msra.mxu0 %v834_v4  ;;  %v763_v15 = vcombine.high %v331_v14, %v331_v14  ;;  %v853_v19 = vld [vmem:[%s959_s28 + $0x84] ss:$8 sps:$4 sm:$0xff]   ;;  %v855_v20 = vld [vmem:[%s959_s28 + $0x80] ss:$8 sps:$4 sm:$0xff]   ;;  %v858_v22 = vld [vmem:[%s959_s28 + $0x90] ss:$8 sps:$4 sm:$0xff]   ;;  %v762_v35 = vcombine.low %v331_v14, %v331_v14  ;;  %v584_v44 = vlaneseq (!%p796_p7) }
  0x1f   : > { %535 = vmatprep.subr.bf16.mxu0 %v835_v5  ;;  %v859_v23 = vld [vmem:[%s959_s28 + $0xa4] ss:$8 sps:$4 sm:$0xff]   ;;  %v861_v24 = vld [vmem:[%s959_s28 + $0xa0] ss:$8 sps:$4 sm:$0xff]   ;;  %v862_v25 = vld [vmem:[%s959_s28 + $0xb4] ss:$8 sps:$4 sm:$0xff]  }
  0x20   : > { %563 = vmatprep.mubr.bf16.mxu0 %v763_v15  ;;  %v864_v26 = vld [vmem:[%s959_s28 + $0xb0] ss:$8 sps:$4 sm:$0xff]   ;;  %v865_v27 = vld [vmem:[%s959_s28 + $0xc4] ss:$8 sps:$4 sm:$0xff]   ;;  %v867_v28 = vld [vmem:[%s959_s28 + $0xc0] ss:$8 sps:$4 sm:$0xff]  }
  0x21   : > { %v868_v29 = vld [vmem:[%s959_s28 + $0xd4] ss:$8 sps:$4 sm:$0xff]   ;;  %v870_v30 = vld [vmem:[%s959_s28 + $0xd0] ss:$8 sps:$4 sm:$0xff]   ;;  %v871_v31 = vld [vmem:[%s959_s28 + $0xe4] ss:$8 sps:$4 sm:$0xff]  }
  0x22   : > { %536 = vmatpush1.bf16.msra.mxu0 %v837_v6  ;;  %v873_v32 = vld [vmem:[%s959_s28 + $0xe0] ss:$8 sps:$4 sm:$0xff]   ;;  %v874_v33 = vld [vmem:[%s959_s28 + $0xf4] ss:$8 sps:$4 sm:$0xff]   ;;  %v876_v34 = vld [vmem:[%s959_s28 + $0xf0] ss:$8 sps:$4 sm:$0xff]  }
  0x23   : > { %537 = vmatprep.subr.bf16.mxu0 %v838_v7  ;;  %v329_v36 = vld [vmem:[#allocation2] sm:$0xff]  ;;  %v330_v37 = vld [vmem:[#allocation2 + $0x8] sm:$0xff]  ;;  %v585_v45 = vshrl.u32 (!%p796_p7), %v584_v44, 7 }
  0x24   : > { %v582_v46 = vld [vmem:[%s1016_s2] sm:$0x3] (!%p796_p7) }
  0x25   : > { %v596_v47 = vld [vmem:[%s1017_s3] sm:$0x3] (!%p796_p7)  ;;  %v586_v48 = vsub.s32 (!%p796_p7), 0, %v585_v45  ;;  %v590_v49 = vsub.s32 (!%p796_p7), 1, %v585_v45 }
  0x26   : > { %538 = vmatpush1.bf16.msra.mxu0 %v840_v8 }
  0x27   : > { %539 = vmatprep.subr.bf16.mxu0 %v841_v9  ;;  %v587_v52 = vrot.slane (!%p796_p7), %v582_v46, %v586_v48  ;;  %v591_v53 = vrot.slane (!%p796_p7), %v582_v46, %v590_v49  ;;  %v601_v54 = vrot.slane (!%p796_p7), %v596_v47, %v586_v48  ;;  %v605_v55 = vrot.slane (!%p796_p7), %v596_v47, %v590_v49 }
  0x2a   : > { %540 = vmatpush1.bf16.msra.mxu0 %v843_v10 }
  0x2b   : > { %541 = vmatprep.subr.bf16.mxu0 %v844_v11 }
  0x2e   : > { %542 = vmatpush1.bf16.msra.mxu0 %v846_v12 }
  0x2f   : > { %543 = vmatprep.subr.bf16.mxu0 %v847_v13 }
  0x32   : > { %544 = vmatpush1.bf16.msra.mxu0 %v849_v16 }
  0x33   : > { %545 = vmatprep.subr.bf16.mxu0 %v850_v17 }
  0x36   : > { %546 = vmatpush1.bf16.msra.mxu0 %v852_v18 }
  0x37   : > { %547 = vmatprep.subr.bf16.mxu0 %v853_v19 }
  0x3a   : > { %548 = vmatpush1.bf16.msra.mxu0 %v855_v20 }
  0x3b   : > { %549 = vmatprep.subr.bf16.mxu0 %v856_v21 }
  0x3e   : > { %550 = vmatpush1.bf16.msra.mxu0 %v858_v22 }
  0x3f   : > { %551 = vmatprep.subr.bf16.mxu0 %v859_v23 }
  0x42   : > { %552 = vmatpush1.bf16.msra.mxu0 %v861_v24 }
  0x43   : > { %553 = vmatprep.subr.bf16.mxu0 %v862_v25 }
  0x46   : > { %554 = vmatpush1.bf16.msra.mxu0 %v864_v26 }
  0x47   : > { %555 = vmatprep.subr.bf16.mxu0 %v865_v27 }
  0x4a   : > { %556 = vmatpush1.bf16.msra.mxu0 %v867_v28 }
  0x4b   : > { %557 = vmatprep.subr.bf16.mxu0 %v868_v29 }
  0x4e   : > { %558 = vmatpush1.bf16.msra.mxu0 %v870_v30 }
  0x4f   : > { %559 = vmatprep.subr.bf16.mxu0 %v871_v31 }
  0x52   : > { %560 = vmatpush1.bf16.msra.mxu0 %v873_v32 }
  0x53   : > { %561 = vmatprep.subr.bf16.mxu0 %v874_v33 }
  0x56   : > { %562 = vmatpush1.bf16.msra.mxu0 %v876_v34 }
  0x59   : > { %564 = vmatmul.mubr.bf16.vlgmr.msra.gmra.mrb[0].mxu0 %v762_v35 }
 0x12a   : > { %579 = sbr.rel (%p796_p7) target bundleno = 321 (0x141), region = 44 }
 0x12c   : > { %v565_v38 = vpop.f32.mrb[0].mxu0 }
 0x12d   : > { %v572_v39 = vadd.f32 %v565_v38, %v329_v36  ;;  %v567_v40 = vpop.f32.mrb[1].mxu0 }
 0x12e   : > { %v573_v41 = vadd.f32 %v567_v40, %v330_v37  ;;  %v569_v42 = vpop.f32.mrb[2].mxu0 }
 0x12f   : > { %574 = vst [vmem:[#allocation2] sm:$0xff] %v572_v39  ;;  %v570_v43 = vpop.f32.mrb[3].mxu0 }
 0x130   : > { %575 = vst [vmem:[#allocation2 + $0x8] sm:$0xff] %v573_v41 }
 0x136   : > { %v580_v50 = vld [vmem:[#allocation2] sm:$0xff] }
 0x137   : > { %v581_v51 = vld [vmem:[#allocation2 + $0x8] sm:$0xff]  ;;  %v594_v56 = vmul.f32 %v587_v52, %v580_v50 }
 0x138   : > { %v595_v57 = vmul.f32 %v591_v53, %v581_v51 }
 0x139   : > { %v608_v58 = vadd.f32 %v601_v54, %v594_v56 }
 0x13a   : > { %v609_v59 = vadd.f32 %v605_v55, %v595_v57 }
 0x13b   : > { %v610_v60 = vmax.f32 %v608_v58, 0.0 }
 0x13c   : > { %v611_v61 = vmax.f32 %v609_v59, 0.0 }
 0x13e   : > { %v803_v62 = vpack.c.bf16 %v611_v61, %v610_v60 }
 0x140   : > { %620 = vst [vmem:[%s1018_s4] sm:$0xff] %v803_v62 }
 0x141 PF: > { %s14_s17 = sadd.s32 1, %s901_s17   ;;  %s1019_s15 = smov %s897_s16 }
 0x142   : > { %p11_p8 = scmp.ge.s32.totalorder %s14_s17, 11   ;;  %s1020_s16 = smov %s1022_s18 }
 0x144   :  { %13 = sbr.rel (!%p11_p8) target bundleno = 2 (0x2), region = 83 }

// kernel: pretrained_cnn_forward.37
= control target key start
LH: loop header
LB: loop body
LE: loop exit
PB: predicated region body
PF: predicated region fallthrough
CT: control target
= control target key end

     0   :  { %s1145_s15 = smov 0   ;;  %s1147_s16 = smov 0   ;;  %s1368_s0 = inlined_call_operand.vmem [shape: bf16[8,2304], index: 0, kind: input, shape index: {}]   ;;  %s1369_s1 = inlined_call_operand.vmem [shape: bf16[2304,512], index: 1, kind: input, shape index: {}]   ;;  %s1370_s2 = inlined_call_operand.vmem [shape: f32[1,512], index: 2, kind: input, shape index: {}]   ;;  %s1371_s3 = inlined_call_operand.vmem [shape: f32[1,512], index: 3, kind: input, shape index: {}]   ;;  %s1372_s4 = inlined_call_operand.vmem [shape: bf16[8,512], index: 4, kind: output, shape index: {}]  }
   0x1   :  { %s1149_s17 = smov 0   ;;  %s1151_s18 = smov 0  }
   0x2   :  { %s1153_s19 = smov 0   ;;  %s1155_s20 = smov 0  }
   0x3   :  { %s1157_s21 = smov 0  }
   0x4 LB: > { %s26_s22 = sadd.s32 1, %s1109_s19  ;;  %s29_s23 = sadd.s32 1, %s1113_s20  ;;  %s1117_s21 = sphi %s1157_s21, %s14_s21   ;;  %s1113_s20 = sphi %s1155_s20, %s1378_s20   ;;  %s1109_s19 = sphi %s1153_s19, %s1377_s19   ;;  %s1105_s18 = sphi %s1151_s18, %s1376_s18   ;;  %s1101_s17 = sphi %s1149_s17, %s1375_s17   ;;  %s1097_s16 = sphi %s1147_s16, %s1374_s16   ;;  %s1093_s15 = sphi %s1145_s15, %s1373_s15  }
   0x5   : > { %p27_p0 = scmp.ge.s32.totalorder %s26_s22, 9  ;;  %p77_p1 = scmp.ne.s32.totalorder %s1097_s16, %s1093_s15 }
   0x6   : > { %p78_p2 = scmp.eq.s32.totalorder %s1117_s21, 0  ;;  %s70_s27 = sadd.s32 1, %s1097_s16 }
   0x7   : > { %s1380_s22 = smov (%p27_p0, %s26_s22), 0  ;;  %s1382_s23 = smov (!%p27_p0, %s29_s23), %s1113_s20 }
   0x8   : > { %p79_p3 = por %p78_p2, %p77_p1  ;;  %p31_p4 = scmp.ge.s32.totalorder %s1382_s23, 2 }
   0x9   : > { %s65_s24 = ssub.s32 %s1109_s19, %s1380_s22  ;;  %p901_p6 = scmp.ge.s32.totalorder %s1117_s21, 18 }
   0xa   : > { %s1384_s23 = smov (%p31_p4, %s1382_s23), 0 }
   0xb   : > { %s66_s25 = ssub.s32 %s1113_s20, %s1384_s23  ;;  %183 = sbr.rel (%p901_p6) target bundleno = 41 (0x29), region = 16 }
   0xc   : > { %s67_s26 = sor.u32 %s66_s25, %s65_s24 }
   0xd   : > { %p68_p5 = scmp.eq.s32.totalorder %s67_s26, 0 }
   0xf   : > { %s1196_s28 = scalar_select %p68_p5, %s1097_s16, %s70_s27  }
  0x12   : > { %199 = sbr.rel (!%p79_p3) target bundleno = 41 (0x29), region = 24  ;;  %s201_s29 = sand.u32 (%p79_p3), 1, %s1097_s16  }
  0x13   : > { %s904_s30 = sshll.u32 (%p79_p3), %s1113_s20, 1  ;;  %s902_s5 = sshll.u32 (%p79_p3), %s201_s29, 8 }
  0x14   : > { %s954_s6 = sshll.u32 (%p79_p3), %s1109_s19, 7  ;;  %s1210_s12 = scalar_lea.vmem (%p79_p3), [#allocation3], %s902_s5 }
  0x15   : > { %s207_s7 = sadd.s32 (%p79_p3), %s954_s6, %s904_s30 }
  0x16   : > { %s906_s8 = sshll.u32 (%p79_p3), %s207_s7, 2 }
  0x17   : > { %s1205_s11 = scalar_lea.vmem (%p79_p3), %s1369_s1, %s906_s8 }
  0x18   : > { %v299_v0 = vld [vmem:[%s1205_s11] sm:$0xff] (%p79_p3)  ;;  %v301_v1 = vld [vmem:[%s1205_s11 + $0x10] sm:$0xff] (%p79_p3) }
  0x19   : > { %v303_v2 = vld [vmem:[%s1205_s11 + $0x20] sm:$0xff]  ;;  %300 = vst [vmem:[%s1210_s12] sm:$0xff] %v299_v0  ;;  %302 = vst [vmem:[%s1210_s12 + $0x8] sm:$0xff] %v301_v1  ;;  %v305_v3 = vld [vmem:[%s1205_s11 + $0x30] sm:$0xff] }
  0x1a   : > { %304 = vst [vmem:[%s1210_s12 + $0x10] sm:$0xff] %v303_v2  ;;  %v307_v4 = vld [vmem:[%s1205_s11 + $0x40] sm:$0xff]  ;;  %v309_v5 = vld [vmem:[%s1205_s11 + $0x50] sm:$0xff]  ;;  %306 = vst [vmem:[%s1210_s12 + $0x18] sm:$0xff] %v305_v3 }
  0x1b   : > { %308 = vst [vmem:[%s1210_s12 + $0x20] sm:$0xff] %v307_v4  ;;  %310 = vst [vmem:[%s1210_s12 + $0x28] sm:$0xff] %v309_v5  ;;  %v311_v6 = vld [vmem:[%s1205_s11 + $0x60] sm:$0xff]  ;;  %v313_v7 = vld [vmem:[%s1205_s11 + $0x70] sm:$0xff] }
  0x1c   : > { %v315_v8 = vld [vmem:[%s1205_s11 + $0x80] sm:$0xff]  ;;  %312 = vst [vmem:[%s1210_s12 + $0x30] sm:$0xff] %v311_v6  ;;  %314 = vst [vmem:[%s1210_s12 + $0x38] sm:$0xff] %v313_v7  ;;  %v317_v9 = vld [vmem:[%s1205_s11 + $0x90] sm:$0xff] }
  0x1d   : > { %316 = vst [vmem:[%s1210_s12 + $0x40] sm:$0xff] %v315_v8  ;;  %v319_v10 = vld [vmem:[%s1205_s11 + $0xa0] sm:$0xff]  ;;  %v321_v11 = vld [vmem:[%s1205_s11 + $0xb0] sm:$0xff]  ;;  %318 = vst [vmem:[%s1210_s12 + $0x48] sm:$0xff] %v317_v9 }
  0x1e   : > { %320 = vst [vmem:[%s1210_s12 + $0x50] sm:$0xff] %v319_v10  ;;  %322 = vst [vmem:[%s1210_s12 + $0x58] sm:$0xff] %v321_v11  ;;  %v323_v12 = vld [vmem:[%s1205_s11 + $0xc0] sm:$0xff]  ;;  %v325_v13 = vld [vmem:[%s1205_s11 + $0xd0] sm:$0xff] }
  0x1f   : > { %v327_v14 = vld [vmem:[%s1205_s11 + $0xe0] sm:$0xff]  ;;  %324 = vst [vmem:[%s1210_s12 + $0x60] sm:$0xff] %v323_v12  ;;  %326 = vst [vmem:[%s1210_s12 + $0x68] sm:$0xff] %v325_v13  ;;  %v329_v15 = vld [vmem:[%s1205_s11 + $0xf0] sm:$0xff] }
  0x20   : > { %328 = vst [vmem:[%s1210_s12 + $0x70] sm:$0xff] %v327_v14  ;;  %v331_v16 = vld [vmem:[%s1205_s11 + $0x100] sm:$0xff]  ;;  %v333_v17 = vld [vmem:[%s1205_s11 + $0x110] sm:$0xff]  ;;  %330 = vst [vmem:[%s1210_s12 + $0x78] sm:$0xff] %v329_v15 }
  0x21   : > { %332 = vst [vmem:[%s1210_s12 + $0x80] sm:$0xff] %v331_v16  ;;  %334 = vst [vmem:[%s1210_s12 + $0x88] sm:$0xff] %v333_v17  ;;  %v335_v18 = vld [vmem:[%s1205_s11 + $0x120] sm:$0xff]  ;;  %v337_v19 = vld [vmem:[%s1205_s11 + $0x130] sm:$0xff] }
  0x22   : > { %v339_v20 = vld [vmem:[%s1205_s11 + $0x140] sm:$0xff]  ;;  %336 = vst [vmem:[%s1210_s12 + $0x90] sm:$0xff] %v335_v18  ;;  %338 = vst [vmem:[%s1210_s12 + $0x98] sm:$0xff] %v337_v19  ;;  %v341_v21 = vld [vmem:[%s1205_s11 + $0x150] sm:$0xff] }
  0x23   : > { %340 = vst [vmem:[%s1210_s12 + $0xa0] sm:$0xff] %v339_v20  ;;  %v343_v22 = vld [vmem:[%s1205_s11 + $0x160] sm:$0xff]  ;;  %v345_v23 = vld [vmem:[%s1205_s11 + $0x170] sm:$0xff]  ;;  %342 = vst [vmem:[%s1210_s12 + $0xa8] sm:$0xff] %v341_v21 }
  0x24   : > { %344 = vst [vmem:[%s1210_s12 + $0xb0] sm:$0xff] %v343_v22  ;;  %346 = vst [vmem:[%s1210_s12 + $0xb8] sm:$0xff] %v345_v23  ;;  %v347_v24 = vld [vmem:[%s1205_s11 + $0x180] sm:$0xff]  ;;  %v349_v25 = vld [vmem:[%s1205_s11 + $0x190] sm:$0xff] }
  0x25   : > { %v351_v26 = vld [vmem:[%s1205_s11 + $0x1a0] sm:$0xff]  ;;  %348 = vst [vmem:[%s1210_s12 + $0xc0] sm:$0xff] %v347_v24  ;;  %350 = vst [vmem:[%s1210_s12 + $0xc8] sm:$0xff] %v349_v25  ;;  %v353_v27 = vld [vmem:[%s1205_s11 + $0x1b0] sm:$0xff] }
  0x26   : > { %352 = vst [vmem:[%s1210_s12 + $0xd0] sm:$0xff] %v351_v26  ;;  %v355_v28 = vld [vmem:[%s1205_s11 + $0x1c0] sm:$0xff]  ;;  %v357_v29 = vld [vmem:[%s1205_s11 + $0x1d0] sm:$0xff]  ;;  %354 = vst [vmem:[%s1210_s12 + $0xd8] sm:$0xff] %v353_v27 }
  0x27   : > { %356 = vst [vmem:[%s1210_s12 + $0xe0] sm:$0xff] %v355_v28  ;;  %358 = vst [vmem:[%s1210_s12 + $0xe8] sm:$0xff] %v357_v29  ;;  %v359_v30 = vld [vmem:[%s1205_s11 + $0x1e0] sm:$0xff]  ;;  %v361_v31 = vld [vmem:[%s1205_s11 + $0x1f0] sm:$0xff] }
  0x28   : > { %360 = vst [vmem:[%s1210_s12 + $0xf0] sm:$0xff] %v359_v30  ;;  %362 = vst [vmem:[%s1210_s12 + $0xf8] sm:$0xff] %v361_v31 }
  0x29 PF: > { %p907_p7 = scmp.ge.s32.totalorder %s1117_s21, 1  ;;  %p383_p8 = scmp.lt.s32.totalorder %s1117_s21, 19 }
  0x2b   : > { %p384_p9 = pnand %p907_p7, %p383_p8 }
  0x2c   : > { %s390_s13 = sand.u32 (!%p384_p9), 1, %s1093_s15   ;;  %s909_s14 = sshll.u32 (!%p384_p9), %s1101_s17, 1 }
  0x2d   : > { %387 = sbr.rel (%p384_p9) target bundleno = 359 (0x167), region = 70  ;;  %s908_s24 = sshll.u32 (!%p384_p9), %s390_s13, 8 }
  0x2e   : > { %p439_p10 = scmp.lt.s32.totalorder (!%p384_p9), %s909_s14, 17  ;;  %s911_s25 = sshll.u32 (!%p384_p9), %s1105_s18, 1 }
  0x2f   : > { %p449_p11 = scmp.lt.s32.totalorder (!%p384_p9), %s911_s25, 3  ;;  %s1299_s13 = scalar_lea.vmem (!%p384_p9), [#allocation3], %s908_s24 }
  0x30   : > { %p915_p12 = scmp.ne.s32.totalorder (!%p384_p9), %s1101_s17, 0 }
  0x34   : > { %s1386_s14 = smov (!%p439_p10, %s909_s14), 17  ;;  %s1388_s25 = smov (!%p449_p11, %s911_s25), 3 }
  0x35   : > { %s910_s26 = sshll.u32 %s1386_s14, 2  ;;  %s451_s15 = scalar_lea.vmem %s1370_s2, %s1388_s25  ;;  %v1119_v32 = vmov (!%p915_p12), 0.0  }
  0x36   : > { %s1281_s30 = scalar_lea.vmem %s1368_s0, %s910_s26  ;;  %s456_s18 = scalar_lea.vmem %s1371_s3, %s1388_s25  ;;  %472 = vst [vmem:[#allocation2] sm:$0xff] (!%p915_p12), %v1119_v32  ;;  %473 = vst [vmem:[#allocation2 + $0x8] sm:$0xff] (!%p915_p12), %v1119_v32 }
  0x37   : > { %s914_s9 = sshll.u32 %s1388_s25, 2  ;;  %471 = sbr.rel (%p915_p12) target bundleno = 62 (0x3e), region = 78 }
  0x38   : > { %s1297_s12 = scalar_lea.vmem %s1372_s4, %s914_s9 }
  0x3e PF: > { %v1013_v33 = vld [vmem:[%s1299_s13 + $0x4] ss:$8 sps:$4 sm:$0xff]   ;;  %v1015_v34 = vld [vmem:[%s1299_s13] ss:$8 sps:$4 sm:$0xff]   ;;  %v1016_v35 = vld [vmem:[%s1299_s13 + $0x14] ss:$8 sps:$4 sm:$0xff]  }
  0x3f   : > { %676 = vmatprep.subr.bf16.mxu0 %v1013_v33  ;;  %v1018_v36 = vld [vmem:[%s1299_s13 + $0x10] ss:$8 sps:$4 sm:$0xff]   ;;  %v1019_v37 = vld [vmem:[%s1299_s13 + $0x24] ss:$8 sps:$4 sm:$0xff]   ;;  %v1021_v38 = vld [vmem:[%s1299_s13 + $0x20] ss:$8 sps:$4 sm:$0xff]  }
  0x40   : > { %677 = vmatpush1.bf16.msra.mxu0 %v1015_v34  ;;  %v1022_v39 = vld [vmem:[%s1299_s13 + $0x34] ss:$8 sps:$4 sm:$0xff]   ;;  %v1024_v40 = vld [vmem:[%s1299_s13 + $0x30] ss:$8 sps:$4 sm:$0xff]   ;;  %v1025_v41 = vld [vmem:[%s1299_s13 + $0x44] ss:$8 sps:$4 sm:$0xff]  }
  0x41   : > { %678 = vmatprep.subr.bf16.mxu0 %v1016_v35  ;;  %v1027_v42 = vld [vmem:[%s1299_s13 + $0x40] ss:$8 sps:$4 sm:$0xff]   ;;  %v1028_v43 = vld [vmem:[%s1299_s13 + $0x54] ss:$8 sps:$4 sm:$0xff]   ;;  %v1030_v44 = vld [vmem:[%s1299_s13 + $0x50] ss:$8 sps:$4 sm:$0xff]  }
  0x42   : > { %v1031_v45 = vld [vmem:[%s1299_s13 + $0x64] ss:$8 sps:$4 sm:$0xff]   ;;  %v476_v46 = vld [vmem:[%s1281_s30] sm:$0xff]  ;;  %v1033_v48 = vld [vmem:[%s1299_s13 + $0x60] ss:$8 sps:$4 sm:$0xff]   ;;  %p950_p13 = scmp.ne.s32.totalorder %s1101_s17, 8 }
  0x43   : > { %v917_v47 = vcombine.high %v476_v46, %v476_v46  ;;  %v1034_v49 = vld [vmem:[%s1299_s13 + $0x74] ss:$8 sps:$4 sm:$0xff]   ;;  %v1036_v50 = vld [vmem:[%s1299_s13 + $0x70] ss:$8 sps:$4 sm:$0xff]   ;;  %v1037_v51 = vld [vmem:[%s1299_s13 + $0x84] ss:$8 sps:$4 sm:$0xff]   ;;  %v916_v3 = vcombine.low %v476_v46, %v476_v46  ;;  %v729_v12 = vlaneseq (!%p950_p13) }
  0x44   : > { %679 = vmatpush1.bf16.msra.mxu0 %v1018_v36  ;;  %v1039_v52 = vld [vmem:[%s1299_s13 + $0x80] ss:$8 sps:$4 sm:$0xff]   ;;  %v1040_v53 = vld [vmem:[%s1299_s13 + $0x94] ss:$8 sps:$4 sm:$0xff]   ;;  %v1042_v54 = vld [vmem:[%s1299_s13 + $0x90] ss:$8 sps:$4 sm:$0xff]  }
  0x45   : > { %680 = vmatprep.subr.bf16.mxu0 %v1019_v37  ;;  %708 = vmatprep.mubr.bf16.mxu0 %v917_v47  ;;  %v1043_v55 = vld [vmem:[%s1299_s13 + $0xa4] ss:$8 sps:$4 sm:$0xff]   ;;  %v1045_v56 = vld [vmem:[%s1299_s13 + $0xa0] ss:$8 sps:$4 sm:$0xff]   ;;  %v1046_v57 = vld [vmem:[%s1299_s13 + $0xb4] ss:$8 sps:$4 sm:$0xff]  }
  0x46   : > { %v1048_v58 = vld [vmem:[%s1299_s13 + $0xb0] ss:$8 sps:$4 sm:$0xff]   ;;  %v1049_v59 = vld [vmem:[%s1299_s13 + $0xc4] ss:$8 sps:$4 sm:$0xff]   ;;  %v1051_v60 = vld [vmem:[%s1299_s13 + $0xc0] ss:$8 sps:$4 sm:$0xff]  }
  0x47   : > { %v1052_v61 = vld [vmem:[%s1299_s13 + $0xd4] ss:$8 sps:$4 sm:$0xff]   ;;  %v1054_v62 = vld [vmem:[%s1299_s13 + $0xd0] ss:$8 sps:$4 sm:$0xff]   ;;  %v1055_v63 = vld [vmem:[%s1299_s13 + $0xe4] ss:$8 sps:$4 sm:$0xff]  }
  0x48   : > { %681 = vmatpush1.bf16.msra.mxu0 %v1021_v38  ;;  %v1057_v0 = vld [vmem:[%s1299_s13 + $0xe0] ss:$8 sps:$4 sm:$0xff]   ;;  %v1058_v1 = vld [vmem:[%s1299_s13 + $0xf4] ss:$8 sps:$4 sm:$0xff]   ;;  %v1060_v2 = vld [vmem:[%s1299_s13 + $0xf0] ss:$8 sps:$4 sm:$0xff]  }
  0x49   : > { %682 = vmatprep.subr.bf16.mxu0 %v1022_v39  ;;  %v474_v4 = vld [vmem:[#allocation2] sm:$0xff]  ;;  %v475_v5 = vld [vmem:[#allocation2 + $0x8] sm:$0xff]  ;;  %v730_v13 = vshrl.u32 (!%p950_p13), %v729_v12, 7 }
  0x4a   : > { %v727_v14 = vld [vmem:[%s451_s15] sm:$0x3] (!%p950_p13) }
  0x4b   : > { %v741_v15 = vld [vmem:[%s456_s18] sm:$0x3] (!%p950_p13)  ;;  %v731_v16 = vsub.s32 (!%p950_p13), 0, %v730_v13  ;;  %v735_v17 = vsub.s32 (!%p950_p13), 1, %v730_v13 }
  0x4c   : > { %683 = vmatpush1.bf16.msra.mxu0 %v1024_v40 }
  0x4d   : > { %684 = vmatprep.subr.bf16.mxu0 %v1025_v41  ;;  %v732_v20 = vrot.slane (!%p950_p13), %v727_v14, %v731_v16  ;;  %v736_v21 = vrot.slane (!%p950_p13), %v727_v14, %v735_v17  ;;  %v746_v22 = vrot.slane (!%p950_p13), %v741_v15, %v731_v16  ;;  %v750_v23 = vrot.slane (!%p950_p13), %v741_v15, %v735_v17 }
  0x50   : > { %685 = vmatpush1.bf16.msra.mxu0 %v1027_v42 }
  0x51   : > { %686 = vmatprep.subr.bf16.mxu0 %v1028_v43 }
  0x54   : > { %687 = vmatpush1.bf16.msra.mxu0 %v1030_v44 }
  0x55   : > { %688 = vmatprep.subr.bf16.mxu0 %v1031_v45 }
  0x58   : > { %689 = vmatpush1.bf16.msra.mxu0 %v1033_v48 }
  0x59   : > { %690 = vmatprep.subr.bf16.mxu0 %v1034_v49 }
  0x5c   : > { %691 = vmatpush1.bf16.msra.mxu0 %v1036_v50 }
  0x5d   : > { %692 = vmatprep.subr.bf16.mxu0 %v1037_v51 }
  0x60   : > { %693 = vmatpush1.bf16.msra.mxu0 %v1039_v52 }
  0x61   : > { %694 = vmatprep.subr.bf16.mxu0 %v1040_v53 }
  0x64   : > { %695 = vmatpush1.bf16.msra.mxu0 %v1042_v54 }
  0x65   : > { %696 = vmatprep.subr.bf16.mxu0 %v1043_v55 }
  0x68   : > { %697 = vmatpush1.bf16.msra.mxu0 %v1045_v56 }
  0x69   : > { %698 = vmatprep.subr.bf16.mxu0 %v1046_v57 }
  0x6c   : > { %699 = vmatpush1.bf16.msra.mxu0 %v1048_v58 }
  0x6d   : > { %700 = vmatprep.subr.bf16.mxu0 %v1049_v59 }
  0x70   : > { %701 = vmatpush1.bf16.msra.mxu0 %v1051_v60 }
  0x71   : > { %702 = vmatprep.subr.bf16.mxu0 %v1052_v61 }
  0x74   : > { %703 = vmatpush1.bf16.msra.mxu0 %v1054_v62 }
  0x75   : > { %704 = vmatprep.subr.bf16.mxu0 %v1055_v63 }
  0x78   : > { %705 = vmatpush1.bf16.msra.mxu0 %v1057_v0 }
  0x79   : > { %706 = vmatprep.subr.bf16.mxu0 %v1058_v1 }
  0x7c   : > { %707 = vmatpush1.bf16.msra.mxu0 %v1060_v2 }
  0x7f   : > { %709 = vmatmul.mubr.bf16.vlgmr.msra.gmra.mrb[0].mxu0 %v916_v3 }
 0x150   : > { %724 = sbr.rel (%p950_p13) target bundleno = 359 (0x167), region = 82 }
 0x152   : > { %v710_v6 = vpop.f32.mrb[0].mxu0 }
 0x153   : > { %v717_v7 = vadd.f32 %v710_v6, %v474_v4  ;;  %v712_v8 = vpop.f32.mrb[1].mxu0 }
 0x154   : > { %v718_v9 = vadd.f32 %v712_v8, %v475_v5  ;;  %v714_v10 = vpop.f32.mrb[2].mxu0 }
 0x155   : > { %719 = vst [vmem:[#allocation2] sm:$0xff] %v717_v7  ;;  %v715_v11 = vpop.f32.mrb[3].mxu0 }
 0x156   : > { %720 = vst [vmem:[#allocation2 + $0x8] sm:$0xff] %v718_v9 }
 0x15c   : > { %v725_v18 = vld [vmem:[#allocation2] sm:$0xff] }
 0x15d   : > { %v726_v19 = vld [vmem:[#allocation2 + $0x8] sm:$0xff]  ;;  %v739_v24 = vmul.f32 %v732_v20, %v725_v18 }
 0x15e   : > { %v740_v25 = vmul.f32 %v736_v21, %v726_v19 }
 0x15f   : > { %v753_v26 = vadd.f32 %v746_v22, %v739_v24 }
 0x160   : > { %v754_v27 = vadd.f32 %v750_v23, %v740_v25 }
 0x161   : > { %v755_v28 = vmax.f32 %v753_v26, 0.0 }
 0x162   : > { %v756_v29 = vmax.f32 %v754_v27, 0.0 }
 0x164   : > { %v955_v30 = vpack.c.bf16 %v756_v29, %v755_v28 }
 0x166   : > { %765 = vst [vmem:[%s1297_s12] sm:$0xff] %v955_v30 }
 0x167 PF: > { %s14_s21 = sadd.s32 1, %s1117_s21   ;;  %s1373_s15 = smov %s1097_s16 }
 0x168   : > { %p11_p0 = scmp.ge.s32.totalorder %s14_s21, 20   ;;  %s1374_s16 = smov %s1196_s28 }
 0x169   : > { %s1375_s17 = smov %s1109_s19  ;;  %s1376_s18 = smov %s1113_s20 }
 0x16a   : > { %s1377_s19 = smov %s1380_s22  ;;  %s1378_s20 = smov %s1384_s23 }
 0x16b   :  { %13 = sbr.rel (!%p11_p0) target bundleno = 4 (0x4), region = 126 }

// kernel: pretrained_cnn_forward.36
= control target key start
LH: loop header
LB: loop body
LE: loop exit
PB: predicated region body
PF: predicated region fallthrough
CT: control target
= control target key end

     0   :  { %s1103_s15 = smov 0   ;;  %s1105_s16 = smov 0   ;;  %s1285_s0 = inlined_call_operand.vmem [shape: bf16[8,256], index: 0, kind: input, shape index: {}]   ;;  %s1286_s1 = inlined_call_operand.vmem [shape: bf16[256,512], index: 1, kind: input, shape index: {}]   ;;  %s1287_s2 = inlined_call_operand.vmem [shape: f32[1,512], index: 2, kind: input, shape index: {}]   ;;  %s1288_s3 = inlined_call_operand.vmem [shape: f32[1,512], index: 3, kind: input, shape index: {}]   ;;  %s1289_s4 = inlined_call_operand.vmem [shape: bf16[8,512], index: 4, kind: output, shape index: {}]  }
   0x1   :  { %s1107_s17 = smov 0   ;;  %s1109_s18 = smov 0  }
   0x2   :  { %s1111_s19 = smov 0  }
   0x3 LB: > { %s29_s20 = sadd.s32 1, %s1072_s18  ;;  %p77_p1 = scmp.ne.s32.totalorder %s1064_s16, %s1060_s15  ;;  %s1076_s19 = sphi %s1111_s19, %s14_s19   ;;  %s1072_s18 = sphi %s1109_s18, %s1293_s18   ;;  %s1068_s17 = sphi %s1107_s17, %s1292_s17   ;;  %s1064_s16 = sphi %s1105_s16, %s1291_s16   ;;  %s1060_s15 = sphi %s1103_s15, %s1290_s15  }
   0x4   : > { %p31_p0 = scmp.ge.s32.totalorder %s29_s20, 2  ;;  %p78_p2 = scmp.eq.s32.totalorder %s1076_s19, 0 }
   0x5   : > { %s70_s22 = sadd.s32 1, %s1064_s16  ;;  %p899_p5 = scmp.ge.s32.totalorder %s1076_s19, 2 }
   0x6   : > { %s1295_s20 = smov (%p31_p0, %s29_s20), 0  ;;  %p79_p3 = por %p78_p2, %p77_p1 }
   0x7   : > { %s66_s21 = ssub.s32 %s1072_s18, %s1295_s20  ;;  %196 = sbr.rel (%p899_p5) target bundleno = 34 (0x22), region = 20 }
   0x8   : > { %p68_p4 = scmp.eq.s32.totalorder %s66_s21, 0 }
   0xa   : > { %s1138_s23 = scalar_select %p68_p4, %s1064_s16, %s70_s22  }
   0xe   : > { %199 = sbr.rel (!%p79_p3) target bundleno = 34 (0x22), region = 24  ;;  %s201_s24 = sand.u32 (%p79_p3), 1, %s1064_s16  }
   0xf   : > { %s946_s25 = sshll.u32 (%p79_p3), %s1072_s18, 3  ;;  %s900_s26 = sshll.u32 (%p79_p3), %s201_s24, 8 }
  0x10   : > { %s1146_s29 = scalar_lea.vmem (%p79_p3), %s1286_s1, %s946_s25  ;;  %s1151_s30 = scalar_lea.vmem (%p79_p3), [#allocation3], %s900_s26 }
  0x11   : > { %v299_v0 = vld [vmem:[%s1146_s29] sm:$0xff] (%p79_p3)  ;;  %v301_v1 = vld [vmem:[%s1146_s29 + $0x10] sm:$0xff] (%p79_p3) }
  0x12   : > { %v303_v2 = vld [vmem:[%s1146_s29 + $0x20] sm:$0xff] (%p79_p3)  ;;  %300 = vst [vmem:[%s1151_s30] sm:$0xff] (%p79_p3), %v299_v0  ;;  %302 = vst [vmem:[%s1151_s30 + $0x8] sm:$0xff] (%p79_p3), %v301_v1  ;;  %v305_v3 = vld [vmem:[%s1146_s29 + $0x30] sm:$0xff] (%p79_p3) }
  0x13   : > { %304 = vst [vmem:[%s1151_s30 + $0x10] sm:$0xff] (%p79_p3), %v303_v2  ;;  %v307_v4 = vld [vmem:[%s1146_s29 + $0x40] sm:$0xff] (%p79_p3)  ;;  %v309_v5 = vld [vmem:[%s1146_s29 + $0x50] sm:$0xff] (%p79_p3)  ;;  %306 = vst [vmem:[%s1151_s30 + $0x18] sm:$0xff] (%p79_p3), %v305_v3 }
  0x14   : > { %308 = vst [vmem:[%s1151_s30 + $0x20] sm:$0xff] (%p79_p3), %v307_v4  ;;  %310 = vst [vmem:[%s1151_s30 + $0x28] sm:$0xff] (%p79_p3), %v309_v5  ;;  %v311_v6 = vld [vmem:[%s1146_s29 + $0x60] sm:$0xff] (%p79_p3)  ;;  %v313_v7 = vld [vmem:[%s1146_s29 + $0x70] sm:$0xff] (%p79_p3) }
  0x15   : > { %v315_v8 = vld [vmem:[%s1146_s29 + $0x80] sm:$0xff]  ;;  %312 = vst [vmem:[%s1151_s30 + $0x30] sm:$0xff] %v311_v6  ;;  %314 = vst [vmem:[%s1151_s30 + $0x38] sm:$0xff] %v313_v7  ;;  %v317_v9 = vld [vmem:[%s1146_s29 + $0x90] sm:$0xff] }
  0x16   : > { %316 = vst [vmem:[%s1151_s30 + $0x40] sm:$0xff] %v315_v8  ;;  %v319_v10 = vld [vmem:[%s1146_s29 + $0xa0] sm:$0xff]  ;;  %v321_v11 = vld [vmem:[%s1146_s29 + $0xb0] sm:$0xff]  ;;  %318 = vst [vmem:[%s1151_s30 + $0x48] sm:$0xff] %v317_v9 }
  0x17   : > { %320 = vst [vmem:[%s1151_s30 + $0x50] sm:$0xff] %v319_v10  ;;  %322 = vst [vmem:[%s1151_s30 + $0x58] sm:$0xff] %v321_v11  ;;  %v323_v12 = vld [vmem:[%s1146_s29 + $0xc0] sm:$0xff]  ;;  %v325_v13 = vld [vmem:[%s1146_s29 + $0xd0] sm:$0xff] }
  0x18   : > { %v327_v14 = vld [vmem:[%s1146_s29 + $0xe0] sm:$0xff]  ;;  %324 = vst [vmem:[%s1151_s30 + $0x60] sm:$0xff] %v323_v12  ;;  %326 = vst [vmem:[%s1151_s30 + $0x68] sm:$0xff] %v325_v13  ;;  %v329_v15 = vld [vmem:[%s1146_s29 + $0xf0] sm:$0xff] }
  0x19   : > { %328 = vst [vmem:[%s1151_s30 + $0x70] sm:$0xff] %v327_v14  ;;  %v331_v16 = vld [vmem:[%s1146_s29 + $0x100] sm:$0xff]  ;;  %v333_v17 = vld [vmem:[%s1146_s29 + $0x110] sm:$0xff]  ;;  %330 = vst [vmem:[%s1151_s30 + $0x78] sm:$0xff] %v329_v15 }
  0x1a   : > { %332 = vst [vmem:[%s1151_s30 + $0x80] sm:$0xff] %v331_v16  ;;  %334 = vst [vmem:[%s1151_s30 + $0x88] sm:$0xff] %v333_v17  ;;  %v335_v18 = vld [vmem:[%s1146_s29 + $0x120] sm:$0xff]  ;;  %v337_v19 = vld [vmem:[%s1146_s29 + $0x130] sm:$0xff] }
  0x1b   : > { %v339_v20 = vld [vmem:[%s1146_s29 + $0x140] sm:$0xff]  ;;  %336 = vst [vmem:[%s1151_s30 + $0x90] sm:$0xff] %v335_v18  ;;  %338 = vst [vmem:[%s1151_s30 + $0x98] sm:$0xff] %v337_v19  ;;  %v341_v21 = vld [vmem:[%s1146_s29 + $0x150] sm:$0xff] }
  0x1c   : > { %340 = vst [vmem:[%s1151_s30 + $0xa0] sm:$0xff] %v339_v20  ;;  %v343_v22 = vld [vmem:[%s1146_s29 + $0x160] sm:$0xff]  ;;  %v345_v23 = vld [vmem:[%s1146_s29 + $0x170] sm:$0xff]  ;;  %342 = vst [vmem:[%s1151_s30 + $0xa8] sm:$0xff] %v341_v21 }
  0x1d   : > { %344 = vst [vmem:[%s1151_s30 + $0xb0] sm:$0xff] %v343_v22  ;;  %346 = vst [vmem:[%s1151_s30 + $0xb8] sm:$0xff] %v345_v23  ;;  %v347_v24 = vld [vmem:[%s1146_s29 + $0x180] sm:$0xff]  ;;  %v349_v25 = vld [vmem:[%s1146_s29 + $0x190] sm:$0xff] }
  0x1e   : > { %v351_v26 = vld [vmem:[%s1146_s29 + $0x1a0] sm:$0xff]  ;;  %348 = vst [vmem:[%s1151_s30 + $0xc0] sm:$0xff] %v347_v24  ;;  %350 = vst [vmem:[%s1151_s30 + $0xc8] sm:$0xff] %v349_v25  ;;  %v353_v27 = vld [vmem:[%s1146_s29 + $0x1b0] sm:$0xff] }
  0x1f   : > { %352 = vst [vmem:[%s1151_s30 + $0xd0] sm:$0xff] %v351_v26  ;;  %v355_v28 = vld [vmem:[%s1146_s29 + $0x1c0] sm:$0xff]  ;;  %v357_v29 = vld [vmem:[%s1146_s29 + $0x1d0] sm:$0xff]  ;;  %354 = vst [vmem:[%s1151_s30 + $0xd8] sm:$0xff] %v353_v27 }
  0x20   : > { %356 = vst [vmem:[%s1151_s30 + $0xe0] sm:$0xff] %v355_v28  ;;  %358 = vst [vmem:[%s1151_s30 + $0xe8] sm:$0xff] %v357_v29  ;;  %v359_v30 = vld [vmem:[%s1146_s29 + $0x1e0] sm:$0xff]  ;;  %v361_v31 = vld [vmem:[%s1146_s29 + $0x1f0] sm:$0xff] }
  0x21   : > { %360 = vst [vmem:[%s1151_s30 + $0xf0] sm:$0xff] %v359_v30  ;;  %362 = vst [vmem:[%s1151_s30 + $0xf8] sm:$0xff] %v361_v31 }
  0x22 PF: > { %p903_p6 = scmp.ge.s32.totalorder %s1076_s19, 1  ;;  %p383_p7 = scmp.lt.s32.totalorder %s1076_s19, 3 }
  0x24   : > { %p384_p8 = pnand %p903_p6, %p383_p7 }
  0x25   : > { %s390_s5 = sand.u32 (!%p384_p8), 1, %s1060_s15   ;;  %v1220_v32 = vld [vmem:[%s1285_s0] sm:$0xff] (!%p384_p8)  ;;  %s905_s10 = sshll.u32 (!%p384_p8), %s1068_s17, 1  ;;  %v728_v3 = vlaneseq (!%p384_p8) }
  0x26   : > { %387 = sbr.rel (%p384_p8) target bundleno = 325 (0x145), region = 70  ;;  %s904_s8 = sshll.u32 (!%p384_p8), %s390_s5, 8  ;;  %v910_v33 = vcombine.high (!%p384_p8), %v1220_v32, %v1220_v32  ;;  %v909_v2 = vcombine.low (!%p384_p8), %v1220_v32, %v1220_v32 }
  0x27   : > { %s1224_s9 = scalar_lea.vmem (!%p384_p8), [#allocation3], %s904_s8  ;;  %p449_p9 = scmp.lt.s32.totalorder (!%p384_p8), %s905_s10, 3  ;;  %v729_v4 = vshrl.u32 (!%p384_p8), %v728_v3, 7 }
  0x28   : > { %v988_v34 = vld [vmem:[%s1224_s9 + $0x4] ss:$8 sps:$4 sm:$0xff] (!%p384_p8)   ;;  %708 = vmatprep.mubr.bf16.mxu0 (!%p384_p8), %v910_v33  ;;  %v990_v35 = vld [vmem:[%s1224_s9] ss:$8 sps:$4 sm:$0xff] (!%p384_p8)   ;;  %v991_v36 = vld [vmem:[%s1224_s9 + $0x14] ss:$8 sps:$4 sm:$0xff] (!%p384_p8)  }
  0x29   : > { %676 = vmatprep.subr.bf16.mxu0 (!%p384_p8), %v988_v34  ;;  %v993_v37 = vld [vmem:[%s1224_s9 + $0x10] ss:$8 sps:$4 sm:$0xff] (!%p384_p8)   ;;  %v994_v38 = vld [vmem:[%s1224_s9 + $0x24] ss:$8 sps:$4 sm:$0xff] (!%p384_p8)   ;;  %v996_v39 = vld [vmem:[%s1224_s9 + $0x20] ss:$8 sps:$4 sm:$0xff] (!%p384_p8)  }
  0x2a   : > { %677 = vmatpush1.bf16.msra.mxu0 (!%p384_p8), %v990_v35  ;;  %v997_v40 = vld [vmem:[%s1224_s9 + $0x34] ss:$8 sps:$4 sm:$0xff] (!%p384_p8)   ;;  %v999_v41 = vld [vmem:[%s1224_s9 + $0x30] ss:$8 sps:$4 sm:$0xff] (!%p384_p8)   ;;  %v1000_v42 = vld [vmem:[%s1224_s9 + $0x44] ss:$8 sps:$4 sm:$0xff] (!%p384_p8)  }
  0x2b   : > { %678 = vmatprep.subr.bf16.mxu0 (!%p384_p8), %v991_v36  ;;  %v1002_v43 = vld [vmem:[%s1224_s9 + $0x40] ss:$8 sps:$4 sm:$0xff] (!%p384_p8)   ;;  %v1003_v44 = vld [vmem:[%s1224_s9 + $0x54] ss:$8 sps:$4 sm:$0xff] (!%p384_p8)   ;;  %v1005_v45 = vld [vmem:[%s1224_s9 + $0x50] ss:$8 sps:$4 sm:$0xff] (!%p384_p8)  }
  0x2c   : > { %v1006_v46 = vld [vmem:[%s1224_s9 + $0x64] ss:$8 sps:$4 sm:$0xff] (!%p384_p8)   ;;  %v1008_v47 = vld [vmem:[%s1224_s9 + $0x60] ss:$8 sps:$4 sm:$0xff] (!%p384_p8)   ;;  %v1009_v48 = vld [vmem:[%s1224_s9 + $0x74] ss:$8 sps:$4 sm:$0xff] (!%p384_p8)  }
  0x2d   : > { %v1011_v49 = vld [vmem:[%s1224_s9 + $0x70] ss:$8 sps:$4 sm:$0xff]   ;;  %v1012_v50 = vld [vmem:[%s1224_s9 + $0x84] ss:$8 sps:$4 sm:$0xff]   ;;  %v1014_v51 = vld [vmem:[%s1224_s9 + $0x80] ss:$8 sps:$4 sm:$0xff]  }
  0x2e   : > { %679 = vmatpush1.bf16.msra.mxu0 %v993_v37  ;;  %v1015_v52 = vld [vmem:[%s1224_s9 + $0x94] ss:$8 sps:$4 sm:$0xff]   ;;  %v1017_v53 = vld [vmem:[%s1224_s9 + $0x90] ss:$8 sps:$4 sm:$0xff]   ;;  %v1018_v54 = vld [vmem:[%s1224_s9 + $0xa4] ss:$8 sps:$4 sm:$0xff]  }
  0x2f   : > { %680 = vmatprep.subr.bf16.mxu0 %v994_v38  ;;  %v1020_v55 = vld [vmem:[%s1224_s9 + $0xa0] ss:$8 sps:$4 sm:$0xff]   ;;  %v1021_v56 = vld [vmem:[%s1224_s9 + $0xb4] ss:$8 sps:$4 sm:$0xff]   ;;  %v1023_v57 = vld [vmem:[%s1224_s9 + $0xb0] ss:$8 sps:$4 sm:$0xff]  }
  0x30   : > { %v1024_v58 = vld [vmem:[%s1224_s9 + $0xc4] ss:$8 sps:$4 sm:$0xff]   ;;  %v1026_v59 = vld [vmem:[%s1224_s9 + $0xc0] ss:$8 sps:$4 sm:$0xff]   ;;  %v1027_v60 = vld [vmem:[%s1224_s9 + $0xd4] ss:$8 sps:$4 sm:$0xff]  }
  0x31   : > { %v1029_v61 = vld [vmem:[%s1224_s9 + $0xd0] ss:$8 sps:$4 sm:$0xff]   ;;  %v1030_v62 = vld [vmem:[%s1224_s9 + $0xe4] ss:$8 sps:$4 sm:$0xff]   ;;  %v1032_v63 = vld [vmem:[%s1224_s9 + $0xe0] ss:$8 sps:$4 sm:$0xff]  }
  0x32   : > { %681 = vmatpush1.bf16.msra.mxu0 %v996_v39  ;;  %v1033_v0 = vld [vmem:[%s1224_s9 + $0xf4] ss:$8 sps:$4 sm:$0xff]   ;;  %v1035_v1 = vld [vmem:[%s1224_s9 + $0xf0] ss:$8 sps:$4 sm:$0xff]   ;;  %s1297_s10 = smov (!%p449_p9, %s905_s10), 3  ;;  %v730_v5 = vsub.s32 0, %v729_v4 }
  0x33   : > { %682 = vmatprep.subr.bf16.mxu0 %v997_v40  ;;  %s451_s13 = scalar_lea.vmem %s1287_s2, %s1297_s10  ;;  %s456_s21 = scalar_lea.vmem %s1288_s3, %s1297_s10  ;;  %v734_v7 = vsub.s32 1, %v729_v4 }
  0x34   : > { %v726_v6 = vld [vmem:[%s451_s13] sm:$0x3]  ;;  %s908_s17 = sshll.u32 %s1297_s10, 2 }
  0x35   : > { %v740_v8 = vld [vmem:[%s456_s21] sm:$0x3]  ;;  %v731_v9 = vrot.slane %v726_v6, %v730_v5  ;;  %v735_v10 = vrot.slane %v726_v6, %v734_v7  ;;  %s466_s25 = scalar_lea.vmem %s1289_s4, %s908_s17 }
  0x36   : > { %683 = vmatpush1.bf16.msra.mxu0 %v999_v41  ;;  %v745_v11 = vrot.slane %v740_v8, %v730_v5  ;;  %v749_v13 = vrot.slane %v740_v8, %v734_v7 }
  0x37   : > { %684 = vmatprep.subr.bf16.mxu0 %v1000_v42 }
  0x3a   : > { %685 = vmatpush1.bf16.msra.mxu0 %v1002_v43 }
  0x3b   : > { %686 = vmatprep.subr.bf16.mxu0 %v1003_v44 }
  0x3e   : > { %687 = vmatpush1.bf16.msra.mxu0 %v1005_v45 }
  0x3f   : > { %688 = vmatprep.subr.bf16.mxu0 %v1006_v46 }
  0x42   : > { %689 = vmatpush1.bf16.msra.mxu0 %v1008_v47 }
  0x43   : > { %690 = vmatprep.subr.bf16.mxu0 %v1009_v48 }
  0x46   : > { %691 = vmatpush1.bf16.msra.mxu0 %v1011_v49 }
  0x47   : > { %692 = vmatprep.subr.bf16.mxu0 %v1012_v50 }
  0x4a   : > { %693 = vmatpush1.bf16.msra.mxu0 %v1014_v51 }
  0x4b   : > { %694 = vmatprep.subr.bf16.mxu0 %v1015_v52 }
  0x4e   : > { %695 = vmatpush1.bf16.msra.mxu0 %v1017_v53 }
  0x4f   : > { %696 = vmatprep.subr.bf16.mxu0 %v1018_v54 }
  0x52   : > { %697 = vmatpush1.bf16.msra.mxu0 %v1020_v55 }
  0x53   : > { %698 = vmatprep.subr.bf16.mxu0 %v1021_v56 }
  0x56   : > { %699 = vmatpush1.bf16.msra.mxu0 %v1023_v57 }
  0x57   : > { %700 = vmatprep.subr.bf16.mxu0 %v1024_v58 }
  0x5a   : > { %701 = vmatpush1.bf16.msra.mxu0 %v1026_v59 }
  0x5b   : > { %702 = vmatprep.subr.bf16.mxu0 %v1027_v60 }
  0x5e   : > { %703 = vmatpush1.bf16.msra.mxu0 %v1029_v61 }
  0x5f   : > { %704 = vmatprep.subr.bf16.mxu0 %v1030_v62 }
  0x62   : > { %705 = vmatpush1.bf16.msra.mxu0 %v1032_v63 }
  0x63   : > { %706 = vmatprep.subr.bf16.mxu0 %v1033_v0 }
  0x66   : > { %707 = vmatpush1.bf16.msra.mxu0 %v1035_v1 }
  0x69   : > { %709 = vmatmul.mubr.bf16.vlgmr.msra.gmra.mrb[0].mxu0 %v909_v2 }
 0x13c   : > { %v710_v12 = vpop.f32.mrb[0].mxu0 }
 0x13d   : > { %v738_v14 = vmul.f32 %v731_v9, %v710_v12  ;;  %v712_v15 = vpop.f32.mrb[1].mxu0 }
 0x13e   : > { %v739_v16 = vmul.f32 %v735_v10, %v712_v15  ;;  %v714_v17 = vpop.f32.mrb[2].mxu0 }
 0x13f   : > { %v752_v18 = vadd.f32 %v745_v11, %v738_v14  ;;  %v715_v19 = vpop.f32.mrb[3].mxu0 }
 0x140   : > { %v753_v20 = vadd.f32 %v749_v13, %v739_v16 }
 0x142   : > { %v947_v21 = vpack.c.bf16 %v753_v20, %v752_v18 }
 0x144   : > { %762 = vst [vmem:[%s466_s25] sm:$0xff] %v947_v21 }
 0x145 PF: > { %s14_s19 = sadd.s32 1, %s1076_s19   ;;  %s1290_s15 = smov %s1064_s16 }
 0x146   : > { %p11_p10 = scmp.ge.s32.totalorder %s14_s19, 4   ;;  %s1291_s16 = smov %s1138_s23 }
 0x147   : > { %s1292_s17 = smov %s1072_s18  ;;  %s1293_s18 = smov %s1295_s20 }
 0x148   :  { %13 = sbr.rel (!%p11_p10) target bundleno = 3 (0x3), region = 126 }

// kernel: pretrained_cnn_forward.38
= control target key start
LH: loop header
LB: loop body
LE: loop exit
PB: predicated region body
PF: predicated region fallthrough
CT: control target
= control target key end

     0   :  { %s1238_s18 = smov 0   ;;  %s1240_s19 = smov 0   ;;  %s1467_s0 = inlined_call_operand.vmem [shape: bf16[8,4608], index: 0, kind: input, shape index: {}]   ;;  %s1468_s1 = inlined_call_operand.vmem [shape: bf16[4608,512], index: 1, kind: input, shape index: {}]   ;;  %s1469_s2 = inlined_call_operand.vmem [shape: f32[1,512], index: 2, kind: input, shape index: {}]   ;;  %s1470_s3 = inlined_call_operand.vmem [shape: f32[1,512], index: 3, kind: input, shape index: {}]   ;;  %s1471_s4 = inlined_call_operand.vmem [shape: bf16[8,512], index: 4, kind: input, shape index: {}]   ;;  %s1472_s5 = inlined_call_operand.vmem [shape: bf16[8,512], index: 5, kind: output, shape index: {}]  }
   0x1   :  { %s1242_s20 = smov 0   ;;  %s1244_s21 = smov 0  }
   0x2   :  { %s1246_s22 = smov 0   ;;  %s1248_s23 = smov 0  }
   0x3   :  { %s1250_s24 = smov 0  }
   0x4 LB: > { %s27_s25 = sadd.s32 1, %s1197_s22  ;;  %s30_s26 = sadd.s32 1, %s1201_s23  ;;  %s1205_s24 = sphi %s1250_s24, %s15_s24   ;;  %s1201_s23 = sphi %s1248_s23, %s1478_s23   ;;  %s1197_s22 = sphi %s1246_s22, %s1477_s22   ;;  %s1193_s21 = sphi %s1244_s21, %s1476_s21   ;;  %s1189_s20 = sphi %s1242_s20, %s1475_s20   ;;  %s1185_s19 = sphi %s1240_s19, %s1474_s19   ;;  %s1181_s18 = sphi %s1238_s18, %s1473_s18  }
   0x5   : > { %p28_p0 = scmp.ge.s32.totalorder %s27_s25, 18  ;;  %p78_p1 = scmp.ne.s32.totalorder %s1185_s19, %s1181_s18 }
   0x6   : > { %p79_p2 = scmp.eq.s32.totalorder %s1205_s24, 0  ;;  %s71_s30 = sadd.s32 1, %s1185_s19 }
   0x7   : > { %s1480_s25 = smov (%p28_p0, %s27_s25), 0  ;;  %s1482_s26 = smov (!%p28_p0, %s30_s26), %s1201_s23 }
   0x8   : > { %p80_p3 = por %p79_p2, %p78_p1  ;;  %p32_p4 = scmp.ge.s32.totalorder %s1482_s26, 2 }
   0x9   : > { %s66_s27 = ssub.s32 %s1197_s22, %s1480_s25  ;;  %p987_p6 = scmp.ge.s32.totalorder %s1205_s24, 36 }
   0xa   : > { %s1484_s26 = smov (%p32_p4, %s1482_s26), 0 }
   0xb   : > { %s67_s28 = ssub.s32 %s1201_s23, %s1484_s26  ;;  %212 = sbr.rel (%p987_p6) target bundleno = 41 (0x29), region = 16 }
   0xc   : > { %s68_s29 = sor.u32 %s67_s28, %s66_s27 }
   0xd   : > { %p69_p5 = scmp.eq.s32.totalorder %s68_s29, 0 }
   0xf   : > { %s1289_s6 = scalar_select %p69_p5, %s1185_s19, %s71_s30  }
  0x12   : > { %228 = sbr.rel (!%p80_p3) target bundleno = 41 (0x29), region = 24  ;;  %s230_s7 = sand.u32 (%p80_p3), 1, %s1185_s19  }
  0x13   : > { %s990_s8 = sshll.u32 (%p80_p3), %s1201_s23, 1  ;;  %s988_s9 = sshll.u32 (%p80_p3), %s230_s7, 8 }
  0x14   : > { %s1042_s10 = sshll.u32 (%p80_p3), %s1197_s22, 7  ;;  %s1303_s16 = scalar_lea.vmem (%p80_p3), [#allocation3], %s988_s9 }
  0x15   : > { %s236_s11 = sadd.s32 (%p80_p3), %s1042_s10, %s990_s8 }
  0x16   : > { %s992_s12 = sshll.u32 (%p80_p3), %s236_s11, 2 }
  0x17   : > { %s1298_s15 = scalar_lea.vmem (%p80_p3), %s1468_s1, %s992_s12 }
  0x18   : > { %v328_v0 = vld [vmem:[%s1298_s15] sm:$0xff] (%p80_p3)  ;;  %v330_v1 = vld [vmem:[%s1298_s15 + $0x10] sm:$0xff] (%p80_p3) }
  0x19   : > { %v332_v2 = vld [vmem:[%s1298_s15 + $0x20] sm:$0xff]  ;;  %329 = vst [vmem:[%s1303_s16] sm:$0xff] %v328_v0  ;;  %331 = vst [vmem:[%s1303_s16 + $0x8] sm:$0xff] %v330_v1  ;;  %v334_v3 = vld [vmem:[%s1298_s15 + $0x30] sm:$0xff] }
  0x1a   : > { %333 = vst [vmem:[%s1303_s16 + $0x10] sm:$0xff] %v332_v2  ;;  %v336_v4 = vld [vmem:[%s1298_s15 + $0x40] sm:$0xff]  ;;  %v338_v5 = vld [vmem:[%s1298_s15 + $0x50] sm:$0xff]  ;;  %335 = vst [vmem:[%s1303_s16 + $0x18] sm:$0xff] %v334_v3 }
  0x1b   : > { %337 = vst [vmem:[%s1303_s16 + $0x20] sm:$0xff] %v336_v4  ;;  %339 = vst [vmem:[%s1303_s16 + $0x28] sm:$0xff] %v338_v5  ;;  %v340_v6 = vld [vmem:[%s1298_s15 + $0x60] sm:$0xff]  ;;  %v342_v7 = vld [vmem:[%s1298_s15 + $0x70] sm:$0xff] }
  0x1c   : > { %v344_v8 = vld [vmem:[%s1298_s15 + $0x80] sm:$0xff]  ;;  %341 = vst [vmem:[%s1303_s16 + $0x30] sm:$0xff] %v340_v6  ;;  %343 = vst [vmem:[%s1303_s16 + $0x38] sm:$0xff] %v342_v7  ;;  %v346_v9 = vld [vmem:[%s1298_s15 + $0x90] sm:$0xff] }
  0x1d   : > { %345 = vst [vmem:[%s1303_s16 + $0x40] sm:$0xff] %v344_v8  ;;  %v348_v10 = vld [vmem:[%s1298_s15 + $0xa0] sm:$0xff]  ;;  %v350_v11 = vld [vmem:[%s1298_s15 + $0xb0] sm:$0xff]  ;;  %347 = vst [vmem:[%s1303_s16 + $0x48] sm:$0xff] %v346_v9 }
  0x1e   : > { %349 = vst [vmem:[%s1303_s16 + $0x50] sm:$0xff] %v348_v10  ;;  %351 = vst [vmem:[%s1303_s16 + $0x58] sm:$0xff] %v350_v11  ;;  %v352_v12 = vld [vmem:[%s1298_s15 + $0xc0] sm:$0xff]  ;;  %v354_v13 = vld [vmem:[%s1298_s15 + $0xd0] sm:$0xff] }
  0x1f   : > { %v356_v14 = vld [vmem:[%s1298_s15 + $0xe0] sm:$0xff]  ;;  %353 = vst [vmem:[%s1303_s16 + $0x60] sm:$0xff] %v352_v12  ;;  %355 = vst [vmem:[%s1303_s16 + $0x68] sm:$0xff] %v354_v13  ;;  %v358_v15 = vld [vmem:[%s1298_s15 + $0xf0] sm:$0xff] }
  0x20   : > { %357 = vst [vmem:[%s1303_s16 + $0x70] sm:$0xff] %v356_v14  ;;  %v360_v16 = vld [vmem:[%s1298_s15 + $0x100] sm:$0xff]  ;;  %v362_v17 = vld [vmem:[%s1298_s15 + $0x110] sm:$0xff]  ;;  %359 = vst [vmem:[%s1303_s16 + $0x78] sm:$0xff] %v358_v15 }
  0x21   : > { %361 = vst [vmem:[%s1303_s16 + $0x80] sm:$0xff] %v360_v16  ;;  %363 = vst [vmem:[%s1303_s16 + $0x88] sm:$0xff] %v362_v17  ;;  %v364_v18 = vld [vmem:[%s1298_s15 + $0x120] sm:$0xff]  ;;  %v366_v19 = vld [vmem:[%s1298_s15 + $0x130] sm:$0xff] }
  0x22   : > { %v368_v20 = vld [vmem:[%s1298_s15 + $0x140] sm:$0xff]  ;;  %365 = vst [vmem:[%s1303_s16 + $0x90] sm:$0xff] %v364_v18  ;;  %367 = vst [vmem:[%s1303_s16 + $0x98] sm:$0xff] %v366_v19  ;;  %v370_v21 = vld [vmem:[%s1298_s15 + $0x150] sm:$0xff] }
  0x23   : > { %369 = vst [vmem:[%s1303_s16 + $0xa0] sm:$0xff] %v368_v20  ;;  %v372_v22 = vld [vmem:[%s1298_s15 + $0x160] sm:$0xff]  ;;  %v374_v23 = vld [vmem:[%s1298_s15 + $0x170] sm:$0xff]  ;;  %371 = vst [vmem:[%s1303_s16 + $0xa8] sm:$0xff] %v370_v21 }
  0x24   : > { %373 = vst [vmem:[%s1303_s16 + $0xb0] sm:$0xff] %v372_v22  ;;  %375 = vst [vmem:[%s1303_s16 + $0xb8] sm:$0xff] %v374_v23  ;;  %v376_v24 = vld [vmem:[%s1298_s15 + $0x180] sm:$0xff]  ;;  %v378_v25 = vld [vmem:[%s1298_s15 + $0x190] sm:$0xff] }
  0x25   : > { %v380_v26 = vld [vmem:[%s1298_s15 + $0x1a0] sm:$0xff]  ;;  %377 = vst [vmem:[%s1303_s16 + $0xc0] sm:$0xff] %v376_v24  ;;  %379 = vst [vmem:[%s1303_s16 + $0xc8] sm:$0xff] %v378_v25  ;;  %v382_v27 = vld [vmem:[%s1298_s15 + $0x1b0] sm:$0xff] }
  0x26   : > { %381 = vst [vmem:[%s1303_s16 + $0xd0] sm:$0xff] %v380_v26  ;;  %v384_v28 = vld [vmem:[%s1298_s15 + $0x1c0] sm:$0xff]  ;;  %v386_v29 = vld [vmem:[%s1298_s15 + $0x1d0] sm:$0xff]  ;;  %383 = vst [vmem:[%s1303_s16 + $0xd8] sm:$0xff] %v382_v27 }
  0x27   : > { %385 = vst [vmem:[%s1303_s16 + $0xe0] sm:$0xff] %v384_v28  ;;  %387 = vst [vmem:[%s1303_s16 + $0xe8] sm:$0xff] %v386_v29  ;;  %v388_v30 = vld [vmem:[%s1298_s15 + $0x1e0] sm:$0xff]  ;;  %v390_v31 = vld [vmem:[%s1298_s15 + $0x1f0] sm:$0xff] }
  0x28   : > { %389 = vst [vmem:[%s1303_s16 + $0xf0] sm:$0xff] %v388_v30  ;;  %391 = vst [vmem:[%s1303_s16 + $0xf8] sm:$0xff] %v390_v31 }
  0x29 PF: > { %p993_p7 = scmp.ge.s32.totalorder %s1205_s24, 1  ;;  %p425_p8 = scmp.lt.s32.totalorder %s1205_s24, 37 }
  0x2b   : > { %p426_p9 = pnand %p993_p7, %p425_p8 }
  0x2c   : > { %s432_s17 = sand.u32 (!%p426_p9), 1, %s1181_s18   ;;  %s995_s27 = sshll.u32 (!%p426_p9), %s1189_s20, 1 }
  0x2d   : > { %429 = sbr.rel (%p426_p9) target bundleno = 361 (0x169), region = 74  ;;  %s994_s28 = sshll.u32 (!%p426_p9), %s432_s17, 8 }
  0x2e   : > { %p492_p10 = scmp.lt.s32.totalorder (!%p426_p9), %s995_s27, 35  ;;  %s997_s29 = sshll.u32 (!%p426_p9), %s1193_s21, 1 }
  0x2f   : > { %p502_p11 = scmp.lt.s32.totalorder (!%p426_p9), %s997_s29, 3  ;;  %s1397_s8 = scalar_lea.vmem (!%p426_p9), [#allocation3], %s994_s28 }
  0x30   : > { %p1003_p12 = scmp.ne.s32.totalorder (!%p426_p9), %s1189_s20, 0 }
  0x34   : > { %s1486_s27 = smov (!%p492_p10, %s995_s27), 35  ;;  %s1488_s29 = smov (!%p502_p11, %s997_s29), 3 }
  0x35   : > { %s996_s30 = sshll.u32 %s1486_s27, 2  ;;  %s504_s18 = scalar_lea.vmem %s1469_s2, %s1488_s29  ;;  %v1207_v32 = vmov (!%p1003_p12), 0.0  }
  0x36   : > { %s1374_s9 = scalar_lea.vmem %s1467_s0, %s996_s30  ;;  %s509_s21 = scalar_lea.vmem %s1470_s3, %s1488_s29  ;;  %535 = vst [vmem:[#allocation2] sm:$0xff] (!%p1003_p12), %v1207_v32  ;;  %536 = vst [vmem:[#allocation2 + $0x8] sm:$0xff] (!%p1003_p12), %v1207_v32 }
  0x37   : > { %s1000_s14 = sshll.u32 %s1488_s29, 2  ;;  %534 = sbr.rel (%p1003_p12) target bundleno = 62 (0x3e), region = 82 }
  0x38   : > { %s1390_s17 = scalar_lea.vmem %s1471_s4, %s1000_s14  ;;  %s1395_s7 = scalar_lea.vmem %s1472_s5, %s1000_s14 }
  0x3e PF: > { %v1101_v33 = vld [vmem:[%s1397_s8 + $0x4] ss:$8 sps:$4 sm:$0xff]   ;;  %v1103_v34 = vld [vmem:[%s1397_s8] ss:$8 sps:$4 sm:$0xff]   ;;  %v1104_v35 = vld [vmem:[%s1397_s8 + $0x14] ss:$8 sps:$4 sm:$0xff]  }
  0x3f   : > { %739 = vmatprep.subr.bf16.mxu0 %v1101_v33  ;;  %v1106_v36 = vld [vmem:[%s1397_s8 + $0x10] ss:$8 sps:$4 sm:$0xff]   ;;  %v1107_v37 = vld [vmem:[%s1397_s8 + $0x24] ss:$8 sps:$4 sm:$0xff]   ;;  %v1109_v38 = vld [vmem:[%s1397_s8 + $0x20] ss:$8 sps:$4 sm:$0xff]  }
  0x40   : > { %740 = vmatpush1.bf16.msra.mxu0 %v1103_v34  ;;  %v1110_v39 = vld [vmem:[%s1397_s8 + $0x34] ss:$8 sps:$4 sm:$0xff]   ;;  %v1112_v40 = vld [vmem:[%s1397_s8 + $0x30] ss:$8 sps:$4 sm:$0xff]   ;;  %v1113_v41 = vld [vmem:[%s1397_s8 + $0x44] ss:$8 sps:$4 sm:$0xff]  }
  0x41   : > { %741 = vmatprep.subr.bf16.mxu0 %v1104_v35  ;;  %v1115_v42 = vld [vmem:[%s1397_s8 + $0x40] ss:$8 sps:$4 sm:$0xff]   ;;  %v1116_v43 = vld [vmem:[%s1397_s8 + $0x54] ss:$8 sps:$4 sm:$0xff]   ;;  %v1118_v44 = vld [vmem:[%s1397_s8 + $0x50] ss:$8 sps:$4 sm:$0xff]  }
  0x42   : > { %v1119_v45 = vld [vmem:[%s1397_s8 + $0x64] ss:$8 sps:$4 sm:$0xff]   ;;  %v539_v46 = vld [vmem:[%s1374_s9] sm:$0xff]  ;;  %v1121_v48 = vld [vmem:[%s1397_s8 + $0x60] ss:$8 sps:$4 sm:$0xff]   ;;  %p1038_p13 = scmp.ne.s32.totalorder %s1189_s20, 17 }
  0x43   : > { %v1005_v47 = vcombine.high %v539_v46, %v539_v46  ;;  %v1122_v49 = vld [vmem:[%s1397_s8 + $0x74] ss:$8 sps:$4 sm:$0xff]   ;;  %v1124_v50 = vld [vmem:[%s1397_s8 + $0x70] ss:$8 sps:$4 sm:$0xff]   ;;  %v1125_v51 = vld [vmem:[%s1397_s8 + $0x84] ss:$8 sps:$4 sm:$0xff]   ;;  %v1004_v3 = vcombine.low %v539_v46, %v539_v46  ;;  %v792_v12 = vlaneseq (!%p1038_p13) }
  0x44   : > { %742 = vmatpush1.bf16.msra.mxu0 %v1106_v36  ;;  %v1127_v52 = vld [vmem:[%s1397_s8 + $0x80] ss:$8 sps:$4 sm:$0xff]   ;;  %v1128_v53 = vld [vmem:[%s1397_s8 + $0x94] ss:$8 sps:$4 sm:$0xff]   ;;  %v1130_v54 = vld [vmem:[%s1397_s8 + $0x90] ss:$8 sps:$4 sm:$0xff]  }
  0x45   : > { %743 = vmatprep.subr.bf16.mxu0 %v1107_v37  ;;  %771 = vmatprep.mubr.bf16.mxu0 %v1005_v47  ;;  %v1131_v55 = vld [vmem:[%s1397_s8 + $0xa4] ss:$8 sps:$4 sm:$0xff]   ;;  %v1133_v56 = vld [vmem:[%s1397_s8 + $0xa0] ss:$8 sps:$4 sm:$0xff]   ;;  %v1134_v57 = vld [vmem:[%s1397_s8 + $0xb4] ss:$8 sps:$4 sm:$0xff]  }
  0x46   : > { %v1136_v58 = vld [vmem:[%s1397_s8 + $0xb0] ss:$8 sps:$4 sm:$0xff]   ;;  %v1137_v59 = vld [vmem:[%s1397_s8 + $0xc4] ss:$8 sps:$4 sm:$0xff]   ;;  %v1139_v60 = vld [vmem:[%s1397_s8 + $0xc0] ss:$8 sps:$4 sm:$0xff]  }
  0x47   : > { %v1140_v61 = vld [vmem:[%s1397_s8 + $0xd4] ss:$8 sps:$4 sm:$0xff]   ;;  %v1142_v62 = vld [vmem:[%s1397_s8 + $0xd0] ss:$8 sps:$4 sm:$0xff]   ;;  %v1143_v63 = vld [vmem:[%s1397_s8 + $0xe4] ss:$8 sps:$4 sm:$0xff]  }
  0x48   : > { %744 = vmatpush1.bf16.msra.mxu0 %v1109_v38  ;;  %v1145_v0 = vld [vmem:[%s1397_s8 + $0xe0] ss:$8 sps:$4 sm:$0xff]   ;;  %v1146_v1 = vld [vmem:[%s1397_s8 + $0xf4] ss:$8 sps:$4 sm:$0xff]   ;;  %v1148_v2 = vld [vmem:[%s1397_s8 + $0xf0] ss:$8 sps:$4 sm:$0xff]  }
  0x49   : > { %745 = vmatprep.subr.bf16.mxu0 %v1110_v39  ;;  %v537_v4 = vld [vmem:[#allocation2] sm:$0xff]  ;;  %v538_v5 = vld [vmem:[#allocation2 + $0x8] sm:$0xff]  ;;  %v793_v13 = vshrl.u32 (!%p1038_p13), %v792_v12, 7 }
  0x4a   : > { %v790_v14 = vld [vmem:[%s504_s18] sm:$0x3] (!%p1038_p13) }
  0x4b   : > { %v804_v15 = vld [vmem:[%s509_s21] sm:$0x3] (!%p1038_p13)  ;;  %v794_v16 = vsub.s32 (!%p1038_p13), 0, %v793_v13  ;;  %v798_v17 = vsub.s32 (!%p1038_p13), 1, %v793_v13 }
  0x4c   : > { %746 = vmatpush1.bf16.msra.mxu0 %v1112_v40  ;;  %v818_v20 = vld [vmem:[%s1390_s17] sm:$0xff] (!%p1038_p13) }
  0x4d   : > { %747 = vmatprep.subr.bf16.mxu0 %v1113_v41  ;;  %v795_v21 = vrot.slane (!%p1038_p13), %v790_v14, %v794_v16  ;;  %v799_v22 = vrot.slane (!%p1038_p13), %v790_v14, %v798_v17  ;;  %v809_v23 = vrot.slane (!%p1038_p13), %v804_v15, %v794_v16  ;;  %v813_v24 = vrot.slane (!%p1038_p13), %v804_v15, %v798_v17 }
  0x4e   : > { %v819_v27 = vunpack.c.l.bf16 (!%p1038_p13), %v818_v20  ;;  %v820_v28 = vunpack.c.h.bf16 (!%p1038_p13), %v818_v20 }
  0x50   : > { %748 = vmatpush1.bf16.msra.mxu0 %v1115_v42 }
  0x51   : > { %749 = vmatprep.subr.bf16.mxu0 %v1116_v43 }
  0x54   : > { %750 = vmatpush1.bf16.msra.mxu0 %v1118_v44 }
  0x55   : > { %751 = vmatprep.subr.bf16.mxu0 %v1119_v45 }
  0x58   : > { %752 = vmatpush1.bf16.msra.mxu0 %v1121_v48 }
  0x59   : > { %753 = vmatprep.subr.bf16.mxu0 %v1122_v49 }
  0x5c   : > { %754 = vmatpush1.bf16.msra.mxu0 %v1124_v50 }
  0x5d   : > { %755 = vmatprep.subr.bf16.mxu0 %v1125_v51 }
  0x60   : > { %756 = vmatpush1.bf16.msra.mxu0 %v1127_v52 }
  0x61   : > { %757 = vmatprep.subr.bf16.mxu0 %v1128_v53 }
  0x64   : > { %758 = vmatpush1.bf16.msra.mxu0 %v1130_v54 }
  0x65   : > { %759 = vmatprep.subr.bf16.mxu0 %v1131_v55 }
  0x68   : > { %760 = vmatpush1.bf16.msra.mxu0 %v1133_v56 }
  0x69   : > { %761 = vmatprep.subr.bf16.mxu0 %v1134_v57 }
  0x6c   : > { %762 = vmatpush1.bf16.msra.mxu0 %v1136_v58 }
  0x6d   : > { %763 = vmatprep.subr.bf16.mxu0 %v1137_v59 }
  0x70   : > { %764 = vmatpush1.bf16.msra.mxu0 %v1139_v60 }
  0x71   : > { %765 = vmatprep.subr.bf16.mxu0 %v1140_v61 }
  0x74   : > { %766 = vmatpush1.bf16.msra.mxu0 %v1142_v62 }
  0x75   : > { %767 = vmatprep.subr.bf16.mxu0 %v1143_v63 }
  0x78   : > { %768 = vmatpush1.bf16.msra.mxu0 %v1145_v0 }
  0x79   : > { %769 = vmatprep.subr.bf16.mxu0 %v1146_v1 }
  0x7c   : > { %770 = vmatpush1.bf16.msra.mxu0 %v1148_v2 }
  0x7f   : > { %772 = vmatmul.mubr.bf16.vlgmr.msra.gmra.mrb[0].mxu0 %v1004_v3 }
 0x150   : > { %787 = sbr.rel (%p1038_p13) target bundleno = 361 (0x169), region = 86 }
 0x152   : > { %v773_v6 = vpop.f32.mrb[0].mxu0 }
 0x153   : > { %v780_v7 = vadd.f32 %v773_v6, %v537_v4  ;;  %v775_v8 = vpop.f32.mrb[1].mxu0 }
 0x154   : > { %v781_v9 = vadd.f32 %v775_v8, %v538_v5  ;;  %v777_v10 = vpop.f32.mrb[2].mxu0 }
 0x155   : > { %782 = vst [vmem:[#allocation2] sm:$0xff] %v780_v7  ;;  %v778_v11 = vpop.f32.mrb[3].mxu0 }
 0x156   : > { %783 = vst [vmem:[#allocation2 + $0x8] sm:$0xff] %v781_v9 }
 0x15c   : > { %v788_v18 = vld [vmem:[#allocation2] sm:$0xff] }
 0x15d   : > { %v789_v19 = vld [vmem:[#allocation2 + $0x8] sm:$0xff]  ;;  %v802_v25 = vmul.f32 %v795_v21, %v788_v18 }
 0x15e   : > { %v803_v26 = vmul.f32 %v799_v22, %v789_v19 }
 0x15f   : > { %v816_v29 = vadd.f32 %v809_v23, %v802_v25 }
 0x160   : > { %v817_v30 = vadd.f32 %v813_v24, %v803_v26 }
 0x161   : > { %v821_v31 = vadd.f32 %v819_v27, %v816_v29 }
 0x162   : > { %v822_v32 = vadd.f32 %v820_v28, %v817_v30 }
 0x163   : > { %v823_v33 = vmax.f32 %v821_v31, 0.0 }
 0x164   : > { %v824_v34 = vmax.f32 %v822_v32, 0.0 }
 0x166   : > { %v1043_v35 = vpack.c.bf16 %v824_v34, %v823_v33 }
 0x168   : > { %833 = vst [vmem:[%s1395_s7] sm:$0xff] %v1043_v35 }
 0x169 PF: > { %s15_s24 = sadd.s32 1, %s1205_s24   ;;  %s1473_s18 = smov %s1185_s19 }
 0x16a   : > { %p12_p0 = scmp.ge.s32.totalorder %s15_s24, 38   ;;  %s1474_s19 = smov %s1289_s6 }
 0x16b   : > { %s1475_s20 = smov %s1197_s22  ;;  %s1476_s21 = smov %s1201_s23 }
 0x16c   : > { %s1477_s22 = smov %s1480_s25  ;;  %s1478_s23 = smov %s1484_s26 }
 0x16d   :  { %14 = sbr.rel (!%p12_p0) target bundleno = 4 (0x4), region = 133 }

// kernel: pretrained_cnn_forward.39
= control target key start
LH: loop header
LB: loop body
LE: loop exit
PB: predicated region body
PF: predicated region fallthrough
CT: control target
= control target key end

     0   :  { %s1145_s15 = smov 0   ;;  %s1147_s16 = smov 0   ;;  %s1368_s0 = inlined_call_operand.vmem [shape: bf16[8,4608], index: 0, kind: input, shape index: {}]   ;;  %s1369_s1 = inlined_call_operand.vmem [shape: bf16[4608,512], index: 1, kind: input, shape index: {}]   ;;  %s1370_s2 = inlined_call_operand.vmem [shape: f32[1,512], index: 2, kind: input, shape index: {}]   ;;  %s1371_s3 = inlined_call_operand.vmem [shape: f32[1,512], index: 3, kind: input, shape index: {}]   ;;  %s1372_s4 = inlined_call_operand.vmem [shape: bf16[8,512], index: 4, kind: output, shape index: {}]  }
   0x1   :  { %s1149_s17 = smov 0   ;;  %s1151_s18 = smov 0  }
   0x2   :  { %s1153_s19 = smov 0   ;;  %s1155_s20 = smov 0  }
   0x3   :  { %s1157_s21 = smov 0  }
   0x4 LB: > { %s26_s22 = sadd.s32 1, %s1109_s19  ;;  %s29_s23 = sadd.s32 1, %s1113_s20  ;;  %s1117_s21 = sphi %s1157_s21, %s14_s21   ;;  %s1113_s20 = sphi %s1155_s20, %s1378_s20   ;;  %s1109_s19 = sphi %s1153_s19, %s1377_s19   ;;  %s1105_s18 = sphi %s1151_s18, %s1376_s18   ;;  %s1101_s17 = sphi %s1149_s17, %s1375_s17   ;;  %s1097_s16 = sphi %s1147_s16, %s1374_s16   ;;  %s1093_s15 = sphi %s1145_s15, %s1373_s15  }
   0x5   : > { %p27_p0 = scmp.ge.s32.totalorder %s26_s22, 18  ;;  %p77_p1 = scmp.ne.s32.totalorder %s1097_s16, %s1093_s15 }
   0x6   : > { %p78_p2 = scmp.eq.s32.totalorder %s1117_s21, 0  ;;  %s70_s27 = sadd.s32 1, %s1097_s16 }
   0x7   : > { %s1380_s22 = smov (%p27_p0, %s26_s22), 0  ;;  %s1382_s23 = smov (!%p27_p0, %s29_s23), %s1113_s20 }
   0x8   : > { %p79_p3 = por %p78_p2, %p77_p1  ;;  %p31_p4 = scmp.ge.s32.totalorder %s1382_s23, 2 }
   0x9   : > { %s65_s24 = ssub.s32 %s1109_s19, %s1380_s22  ;;  %p901_p6 = scmp.ge.s32.totalorder %s1117_s21, 36 }
   0xa   : > { %s1384_s23 = smov (%p31_p4, %s1382_s23), 0 }
   0xb   : > { %s66_s25 = ssub.s32 %s1113_s20, %s1384_s23  ;;  %183 = sbr.rel (%p901_p6) target bundleno = 41 (0x29), region = 16 }
   0xc   : > { %s67_s26 = sor.u32 %s66_s25, %s65_s24 }
   0xd   : > { %p68_p5 = scmp.eq.s32.totalorder %s67_s26, 0 }
   0xf   : > { %s1196_s28 = scalar_select %p68_p5, %s1097_s16, %s70_s27  }
  0x12   : > { %199 = sbr.rel (!%p79_p3) target bundleno = 41 (0x29), region = 24  ;;  %s201_s29 = sand.u32 (%p79_p3), 1, %s1097_s16  }
  0x13   : > { %s904_s30 = sshll.u32 (%p79_p3), %s1113_s20, 1  ;;  %s902_s5 = sshll.u32 (%p79_p3), %s201_s29, 8 }
  0x14   : > { %s954_s6 = sshll.u32 (%p79_p3), %s1109_s19, 7  ;;  %s1210_s12 = scalar_lea.vmem (%p79_p3), [#allocation3], %s902_s5 }
  0x15   : > { %s207_s7 = sadd.s32 (%p79_p3), %s954_s6, %s904_s30 }
  0x16   : > { %s906_s8 = sshll.u32 (%p79_p3), %s207_s7, 2 }
  0x17   : > { %s1205_s11 = scalar_lea.vmem (%p79_p3), %s1369_s1, %s906_s8 }
  0x18   : > { %v299_v0 = vld [vmem:[%s1205_s11] sm:$0xff] (%p79_p3)  ;;  %v301_v1 = vld [vmem:[%s1205_s11 + $0x10] sm:$0xff] (%p79_p3) }
  0x19   : > { %v303_v2 = vld [vmem:[%s1205_s11 + $0x20] sm:$0xff]  ;;  %300 = vst [vmem:[%s1210_s12] sm:$0xff] %v299_v0  ;;  %302 = vst [vmem:[%s1210_s12 + $0x8] sm:$0xff] %v301_v1  ;;  %v305_v3 = vld [vmem:[%s1205_s11 + $0x30] sm:$0xff] }
  0x1a   : > { %304 = vst [vmem:[%s1210_s12 + $0x10] sm:$0xff] %v303_v2  ;;  %v307_v4 = vld [vmem:[%s1205_s11 + $0x40] sm:$0xff]  ;;  %v309_v5 = vld [vmem:[%s1205_s11 + $0x50] sm:$0xff]  ;;  %306 = vst [vmem:[%s1210_s12 + $0x18] sm:$0xff] %v305_v3 }
  0x1b   : > { %308 = vst [vmem:[%s1210_s12 + $0x20] sm:$0xff] %v307_v4  ;;  %310 = vst [vmem:[%s1210_s12 + $0x28] sm:$0xff] %v309_v5  ;;  %v311_v6 = vld [vmem:[%s1205_s11 + $0x60] sm:$0xff]  ;;  %v313_v7 = vld [vmem:[%s1205_s11 + $0x70] sm:$0xff] }
  0x1c   : > { %v315_v8 = vld [vmem:[%s1205_s11 + $0x80] sm:$0xff]  ;;  %312 = vst [vmem:[%s1210_s12 + $0x30] sm:$0xff] %v311_v6  ;;  %314 = vst [vmem:[%s1210_s12 + $0x38] sm:$0xff] %v313_v7  ;;  %v317_v9 = vld [vmem:[%s1205_s11 + $0x90] sm:$0xff] }
  0x1d   : > { %316 = vst [vmem:[%s1210_s12 + $0x40] sm:$0xff] %v315_v8  ;;  %v319_v10 = vld [vmem:[%s1205_s11 + $0xa0] sm:$0xff]  ;;  %v321_v11 = vld [vmem:[%s1205_s11 + $0xb0] sm:$0xff]  ;;  %318 = vst [vmem:[%s1210_s12 + $0x48] sm:$0xff] %v317_v9 }
  0x1e   : > { %320 = vst [vmem:[%s1210_s12 + $0x50] sm:$0xff] %v319_v10  ;;  %322 = vst [vmem:[%s1210_s12 + $0x58] sm:$0xff] %v321_v11  ;;  %v323_v12 = vld [vmem:[%s1205_s11 + $0xc0] sm:$0xff]  ;;  %v325_v13 = vld [vmem:[%s1205_s11 + $0xd0] sm:$0xff] }
  0x1f   : > { %v327_v14 = vld [vmem:[%s1205_s11 + $0xe0] sm:$0xff]  ;;  %324 = vst [vmem:[%s1210_s12 + $0x60] sm:$0xff] %v323_v12  ;;  %326 = vst [vmem:[%s1210_s12 + $0x68] sm:$0xff] %v325_v13  ;;  %v329_v15 = vld [vmem:[%s1205_s11 + $0xf0] sm:$0xff] }
  0x20   : > { %328 = vst [vmem:[%s1210_s12 + $0x70] sm:$0xff] %v327_v14  ;;  %v331_v16 = vld [vmem:[%s1205_s11 + $0x100] sm:$0xff]  ;;  %v333_v17 = vld [vmem:[%s1205_s11 + $0x110] sm:$0xff]  ;;  %330 = vst [vmem:[%s1210_s12 + $0x78] sm:$0xff] %v329_v15 }
  0x21   : > { %332 = vst [vmem:[%s1210_s12 + $0x80] sm:$0xff] %v331_v16  ;;  %334 = vst [vmem:[%s1210_s12 + $0x88] sm:$0xff] %v333_v17  ;;  %v335_v18 = vld [vmem:[%s1205_s11 + $0x120] sm:$0xff]  ;;  %v337_v19 = vld [vmem:[%s1205_s11 + $0x130] sm:$0xff] }
  0x22   : > { %v339_v20 = vld [vmem:[%s1205_s11 + $0x140] sm:$0xff]  ;;  %336 = vst [vmem:[%s1210_s12 + $0x90] sm:$0xff] %v335_v18  ;;  %338 = vst [vmem:[%s1210_s12 + $0x98] sm:$0xff] %v337_v19  ;;  %v341_v21 = vld [vmem:[%s1205_s11 + $0x150] sm:$0xff] }
  0x23   : > { %340 = vst [vmem:[%s1210_s12 + $0xa0] sm:$0xff] %v339_v20  ;;  %v343_v22 = vld [vmem:[%s1205_s11 + $0x160] sm:$0xff]  ;;  %v345_v23 = vld [vmem:[%s1205_s11 + $0x170] sm:$0xff]  ;;  %342 = vst [vmem:[%s1210_s12 + $0xa8] sm:$0xff] %v341_v21 }
  0x24   : > { %344 = vst [vmem:[%s1210_s12 + $0xb0] sm:$0xff] %v343_v22  ;;  %346 = vst [vmem:[%s1210_s12 + $0xb8] sm:$0xff] %v345_v23  ;;  %v347_v24 = vld [vmem:[%s1205_s11 + $0x180] sm:$0xff]  ;;  %v349_v25 = vld [vmem:[%s1205_s11 + $0x190] sm:$0xff] }
  0x25   : > { %v351_v26 = vld [vmem:[%s1205_s11 + $0x1a0] sm:$0xff]  ;;  %348 = vst [vmem:[%s1210_s12 + $0xc0] sm:$0xff] %v347_v24  ;;  %350 = vst [vmem:[%s1210_s12 + $0xc8] sm:$0xff] %v349_v25  ;;  %v353_v27 = vld [vmem:[%s1205_s11 + $0x1b0] sm:$0xff] }
  0x26   : > { %352 = vst [vmem:[%s1210_s12 + $0xd0] sm:$0xff] %v351_v26  ;;  %v355_v28 = vld [vmem:[%s1205_s11 + $0x1c0] sm:$0xff]  ;;  %v357_v29 = vld [vmem:[%s1205_s11 + $0x1d0] sm:$0xff]  ;;  %354 = vst [vmem:[%s1210_s12 + $0xd8] sm:$0xff] %v353_v27 }
  0x27   : > { %356 = vst [vmem:[%s1210_s12 + $0xe0] sm:$0xff] %v355_v28  ;;  %358 = vst [vmem:[%s1210_s12 + $0xe8] sm:$0xff] %v357_v29  ;;  %v359_v30 = vld [vmem:[%s1205_s11 + $0x1e0] sm:$0xff]  ;;  %v361_v31 = vld [vmem:[%s1205_s11 + $0x1f0] sm:$0xff] }
  0x28   : > { %360 = vst [vmem:[%s1210_s12 + $0xf0] sm:$0xff] %v359_v30  ;;  %362 = vst [vmem:[%s1210_s12 + $0xf8] sm:$0xff] %v361_v31 }
  0x29 PF: > { %p907_p7 = scmp.ge.s32.totalorder %s1117_s21, 1  ;;  %p383_p8 = scmp.lt.s32.totalorder %s1117_s21, 37 }
  0x2b   : > { %p384_p9 = pnand %p907_p7, %p383_p8 }
  0x2c   : > { %s390_s13 = sand.u32 (!%p384_p9), 1, %s1093_s15   ;;  %s909_s14 = sshll.u32 (!%p384_p9), %s1101_s17, 1 }
  0x2d   : > { %387 = sbr.rel (%p384_p9) target bundleno = 359 (0x167), region = 70  ;;  %s908_s24 = sshll.u32 (!%p384_p9), %s390_s13, 8 }
  0x2e   : > { %p439_p10 = scmp.lt.s32.totalorder (!%p384_p9), %s909_s14, 35  ;;  %s911_s25 = sshll.u32 (!%p384_p9), %s1105_s18, 1 }
  0x2f   : > { %p449_p11 = scmp.lt.s32.totalorder (!%p384_p9), %s911_s25, 3  ;;  %s1299_s13 = scalar_lea.vmem (!%p384_p9), [#allocation3], %s908_s24 }
  0x30   : > { %p915_p12 = scmp.ne.s32.totalorder (!%p384_p9), %s1101_s17, 0 }
  0x34   : > { %s1386_s14 = smov (!%p439_p10, %s909_s14), 35  ;;  %s1388_s25 = smov (!%p449_p11, %s911_s25), 3 }
  0x35   : > { %s910_s26 = sshll.u32 %s1386_s14, 2  ;;  %s451_s15 = scalar_lea.vmem %s1370_s2, %s1388_s25  ;;  %v1119_v32 = vmov (!%p915_p12), 0.0  }
  0x36   : > { %s1281_s30 = scalar_lea.vmem %s1368_s0, %s910_s26  ;;  %s456_s18 = scalar_lea.vmem %s1371_s3, %s1388_s25  ;;  %472 = vst [vmem:[#allocation2] sm:$0xff] (!%p915_p12), %v1119_v32  ;;  %473 = vst [vmem:[#allocation2 + $0x8] sm:$0xff] (!%p915_p12), %v1119_v32 }
  0x37   : > { %s914_s9 = sshll.u32 %s1388_s25, 2  ;;  %471 = sbr.rel (%p915_p12) target bundleno = 62 (0x3e), region = 78 }
  0x38   : > { %s1297_s12 = scalar_lea.vmem %s1372_s4, %s914_s9 }
  0x3e PF: > { %v1013_v33 = vld [vmem:[%s1299_s13 + $0x4] ss:$8 sps:$4 sm:$0xff]   ;;  %v1015_v34 = vld [vmem:[%s1299_s13] ss:$8 sps:$4 sm:$0xff]   ;;  %v1016_v35 = vld [vmem:[%s1299_s13 + $0x14] ss:$8 sps:$4 sm:$0xff]  }
  0x3f   : > { %676 = vmatprep.subr.bf16.mxu0 %v1013_v33  ;;  %v1018_v36 = vld [vmem:[%s1299_s13 + $0x10] ss:$8 sps:$4 sm:$0xff]   ;;  %v1019_v37 = vld [vmem:[%s1299_s13 + $0x24] ss:$8 sps:$4 sm:$0xff]   ;;  %v1021_v38 = vld [vmem:[%s1299_s13 + $0x20] ss:$8 sps:$4 sm:$0xff]  }
  0x40   : > { %677 = vmatpush1.bf16.msra.mxu0 %v1015_v34  ;;  %v1022_v39 = vld [vmem:[%s1299_s13 + $0x34] ss:$8 sps:$4 sm:$0xff]   ;;  %v1024_v40 = vld [vmem:[%s1299_s13 + $0x30] ss:$8 sps:$4 sm:$0xff]   ;;  %v1025_v41 = vld [vmem:[%s1299_s13 + $0x44] ss:$8 sps:$4 sm:$0xff]  }
  0x41   : > { %678 = vmatprep.subr.bf16.mxu0 %v1016_v35  ;;  %v1027_v42 = vld [vmem:[%s1299_s13 + $0x40] ss:$8 sps:$4 sm:$0xff]   ;;  %v1028_v43 = vld [vmem:[%s1299_s13 + $0x54] ss:$8 sps:$4 sm:$0xff]   ;;  %v1030_v44 = vld [vmem:[%s1299_s13 + $0x50] ss:$8 sps:$4 sm:$0xff]  }
  0x42   : > { %v1031_v45 = vld [vmem:[%s1299_s13 + $0x64] ss:$8 sps:$4 sm:$0xff]   ;;  %v476_v46 = vld [vmem:[%s1281_s30] sm:$0xff]  ;;  %v1033_v48 = vld [vmem:[%s1299_s13 + $0x60] ss:$8 sps:$4 sm:$0xff]   ;;  %p950_p13 = scmp.ne.s32.totalorder %s1101_s17, 17 }
  0x43   : > { %v917_v47 = vcombine.high %v476_v46, %v476_v46  ;;  %v1034_v49 = vld [vmem:[%s1299_s13 + $0x74] ss:$8 sps:$4 sm:$0xff]   ;;  %v1036_v50 = vld [vmem:[%s1299_s13 + $0x70] ss:$8 sps:$4 sm:$0xff]   ;;  %v1037_v51 = vld [vmem:[%s1299_s13 + $0x84] ss:$8 sps:$4 sm:$0xff]   ;;  %v916_v3 = vcombine.low %v476_v46, %v476_v46  ;;  %v729_v12 = vlaneseq (!%p950_p13) }
  0x44   : > { %679 = vmatpush1.bf16.msra.mxu0 %v1018_v36  ;;  %v1039_v52 = vld [vmem:[%s1299_s13 + $0x80] ss:$8 sps:$4 sm:$0xff]   ;;  %v1040_v53 = vld [vmem:[%s1299_s13 + $0x94] ss:$8 sps:$4 sm:$0xff]   ;;  %v1042_v54 = vld [vmem:[%s1299_s13 + $0x90] ss:$8 sps:$4 sm:$0xff]  }
  0x45   : > { %680 = vmatprep.subr.bf16.mxu0 %v1019_v37  ;;  %708 = vmatprep.mubr.bf16.mxu0 %v917_v47  ;;  %v1043_v55 = vld [vmem:[%s1299_s13 + $0xa4] ss:$8 sps:$4 sm:$0xff]   ;;  %v1045_v56 = vld [vmem:[%s1299_s13 + $0xa0] ss:$8 sps:$4 sm:$0xff]   ;;  %v1046_v57 = vld [vmem:[%s1299_s13 + $0xb4] ss:$8 sps:$4 sm:$0xff]  }
  0x46   : > { %v1048_v58 = vld [vmem:[%s1299_s13 + $0xb0] ss:$8 sps:$4 sm:$0xff]   ;;  %v1049_v59 = vld [vmem:[%s1299_s13 + $0xc4] ss:$8 sps:$4 sm:$0xff]   ;;  %v1051_v60 = vld [vmem:[%s1299_s13 + $0xc0] ss:$8 sps:$4 sm:$0xff]  }
  0x47   : > { %v1052_v61 = vld [vmem:[%s1299_s13 + $0xd4] ss:$8 sps:$4 sm:$0xff]   ;;  %v1054_v62 = vld [vmem:[%s1299_s13 + $0xd0] ss:$8 sps:$4 sm:$0xff]   ;;  %v1055_v63 = vld [vmem:[%s1299_s13 + $0xe4] ss:$8 sps:$4 sm:$0xff]  }
  0x48   : > { %681 = vmatpush1.bf16.msra.mxu0 %v1021_v38  ;;  %v1057_v0 = vld [vmem:[%s1299_s13 + $0xe0] ss:$8 sps:$4 sm:$0xff]   ;;  %v1058_v1 = vld [vmem:[%s1299_s13 + $0xf4] ss:$8 sps:$4 sm:$0xff]   ;;  %v1060_v2 = vld [vmem:[%s1299_s13 + $0xf0] ss:$8 sps:$4 sm:$0xff]  }
  0x49   : > { %682 = vmatprep.subr.bf16.mxu0 %v1022_v39  ;;  %v474_v4 = vld [vmem:[#allocation2] sm:$0xff]  ;;  %v475_v5 = vld [vmem:[#allocation2 + $0x8] sm:$0xff]  ;;  %v730_v13 = vshrl.u32 (!%p950_p13), %v729_v12, 7 }
  0x4a   : > { %v727_v14 = vld [vmem:[%s451_s15] sm:$0x3] (!%p950_p13) }
  0x4b   : > { %v741_v15 = vld [vmem:[%s456_s18] sm:$0x3] (!%p950_p13)  ;;  %v731_v16 = vsub.s32 (!%p950_p13), 0, %v730_v13  ;;  %v735_v17 = vsub.s32 (!%p950_p13), 1, %v730_v13 }
  0x4c   : > { %683 = vmatpush1.bf16.msra.mxu0 %v1024_v40 }
  0x4d   : > { %684 = vmatprep.subr.bf16.mxu0 %v1025_v41  ;;  %v732_v20 = vrot.slane (!%p950_p13), %v727_v14, %v731_v16  ;;  %v736_v21 = vrot.slane (!%p950_p13), %v727_v14, %v735_v17  ;;  %v746_v22 = vrot.slane (!%p950_p13), %v741_v15, %v731_v16  ;;  %v750_v23 = vrot.slane (!%p950_p13), %v741_v15, %v735_v17 }
  0x50   : > { %685 = vmatpush1.bf16.msra.mxu0 %v1027_v42 }
  0x51   : > { %686 = vmatprep.subr.bf16.mxu0 %v1028_v43 }
  0x54   : > { %687 = vmatpush1.bf16.msra.mxu0 %v1030_v44 }
  0x55   : > { %688 = vmatprep.subr.bf16.mxu0 %v1031_v45 }
  0x58   : > { %689 = vmatpush1.bf16.msra.mxu0 %v1033_v48 }
  0x59   : > { %690 = vmatprep.subr.bf16.mxu0 %v1034_v49 }
  0x5c   : > { %691 = vmatpush1.bf16.msra.mxu0 %v1036_v50 }
  0x5d   : > { %692 = vmatprep.subr.bf16.mxu0 %v1037_v51 }
  0x60   : > { %693 = vmatpush1.bf16.msra.mxu0 %v1039_v52 }
  0x61   : > { %694 = vmatprep.subr.bf16.mxu0 %v1040_v53 }
  0x64   : > { %695 = vmatpush1.bf16.msra.mxu0 %v1042_v54 }
  0x65   : > { %696 = vmatprep.subr.bf16.mxu0 %v1043_v55 }
  0x68   : > { %697 = vmatpush1.bf16.msra.mxu0 %v1045_v56 }
  0x69   : > { %698 = vmatprep.subr.bf16.mxu0 %v1046_v57 }
  0x6c   : > { %699 = vmatpush1.bf16.msra.mxu0 %v1048_v58 }
  0x6d   : > { %700 = vmatprep.subr.bf16.mxu0 %v1049_v59 }
  0x70   : > { %701 = vmatpush1.bf16.msra.mxu0 %v1051_v60 }
  0x71   : > { %702 = vmatprep.subr.bf16.mxu0 %v1052_v61 }
  0x74   : > { %703 = vmatpush1.bf16.msra.mxu0 %v1054_v62 }
  0x75   : > { %704 = vmatprep.subr.bf16.mxu0 %v1055_v63 }
  0x78   : > { %705 = vmatpush1.bf16.msra.mxu0 %v1057_v0 }
  0x79   : > { %706 = vmatprep.subr.bf16.mxu0 %v1058_v1 }
  0x7c   : > { %707 = vmatpush1.bf16.msra.mxu0 %v1060_v2 }
  0x7f   : > { %709 = vmatmul.mubr.bf16.vlgmr.msra.gmra.mrb[0].mxu0 %v916_v3 }
 0x150   : > { %724 = sbr.rel (%p950_p13) target bundleno = 359 (0x167), region = 82 }
 0x152   : > { %v710_v6 = vpop.f32.mrb[0].mxu0 }
 0x153   : > { %v717_v7 = vadd.f32 %v710_v6, %v474_v4  ;;  %v712_v8 = vpop.f32.mrb[1].mxu0 }
 0x154   : > { %v718_v9 = vadd.f32 %v712_v8, %v475_v5  ;;  %v714_v10 = vpop.f32.mrb[2].mxu0 }
 0x155   : > { %719 = vst [vmem:[#allocation2] sm:$0xff] %v717_v7  ;;  %v715_v11 = vpop.f32.mrb[3].mxu0 }
 0x156   : > { %720 = vst [vmem:[#allocation2 + $0x8] sm:$0xff] %v718_v9 }
 0x15c   : > { %v725_v18 = vld [vmem:[#allocation2] sm:$0xff] }
 0x15d   : > { %v726_v19 = vld [vmem:[#allocation2 + $0x8] sm:$0xff]  ;;  %v739_v24 = vmul.f32 %v732_v20, %v725_v18 }
 0x15e   : > { %v740_v25 = vmul.f32 %v736_v21, %v726_v19 }
 0x15f   : > { %v753_v26 = vadd.f32 %v746_v22, %v739_v24 }
 0x160   : > { %v754_v27 = vadd.f32 %v750_v23, %v740_v25 }
 0x161   : > { %v755_v28 = vmax.f32 %v753_v26, 0.0 }
 0x162   : > { %v756_v29 = vmax.f32 %v754_v27, 0.0 }
 0x164   : > { %v955_v30 = vpack.c.bf16 %v756_v29, %v755_v28 }
 0x166   : > { %765 = vst [vmem:[%s1297_s12] sm:$0xff] %v955_v30 }
 0x167 PF: > { %s14_s21 = sadd.s32 1, %s1117_s21   ;;  %s1373_s15 = smov %s1097_s16 }
 0x168   : > { %p11_p0 = scmp.ge.s32.totalorder %s14_s21, 38   ;;  %s1374_s16 = smov %s1196_s28 }
 0x169   : > { %s1375_s17 = smov %s1109_s19  ;;  %s1376_s18 = smov %s1113_s20 }
 0x16a   : > { %s1377_s19 = smov %s1380_s22  ;;  %s1378_s20 = smov %s1384_s23 }
 0x16b   :  { %13 = sbr.rel (!%p11_p0) target bundleno = 4 (0x4), region = 126 }

// kernel: pretrained_cnn_forward.41
= control target key start
LH: loop header
LB: loop body
LE: loop exit
PB: predicated region body
PF: predicated region fallthrough
CT: control target
= control target key end

     0   :  { %s657_s1 = inlined_call_operand.vmem [shape: bf16[512,128], index: 1, kind: input, shape index: {}]   ;;  %s658_s0 = inlined_call_operand.vmem [shape: bf16[8,512], index: 0, kind: input, shape index: {}]   ;;  %s659_s2 = inlined_call_operand.vmem [shape: f32[1,128], index: 2, kind: input, shape index: {}]   ;;  %s660_s3 = inlined_call_operand.vmem [shape: f32[1,128], index: 3, kind: input, shape index: {}]   ;;  %s661_s4 = inlined_call_operand.vmem [shape: f32[8,128], index: 4, kind: output, shape index: {}]  }
   0x1   :  { %v485_v0 = vld [vmem:[%s657_s1 + $0x40] sm:$0xff]   ;;  %v489_v4 = vld [vmem:[%s657_s1 + $0x48] sm:$0xff]   ;;  %v493_v8 = vld [vmem:[%s657_s1 + $0x50] sm:$0xff]  }
   0x2   :  { %v486_v1 = vld [vmem:[%s657_s1 + $0xc0] sm:$0xff]   ;;  %441 = vmatprep.subr.bf16.mxu0 %v485_v0  ;;  %v490_v5 = vld [vmem:[%s657_s1 + $0xc8] sm:$0xff]   ;;  %v494_v9 = vld [vmem:[%s657_s1 + $0xd0] sm:$0xff]  }
   0x3   :  { %v487_v2 = vld [vmem:[%s657_s1] sm:$0xff]   ;;  %463 = vmatprep.subr.bf16.mxu1 %v486_v1  ;;  %v491_v6 = vld [vmem:[%s657_s1 + $0x8] sm:$0xff]   ;;  %v495_v10 = vld [vmem:[%s657_s1 + $0x10] sm:$0xff]  }
   0x4   :  { %v488_v3 = vld [vmem:[%s657_s1 + $0x80] sm:$0xff]   ;;  %442 = vmatpush3.bf16.msra.mxu0 %v487_v2  ;;  %v492_v7 = vld [vmem:[%s657_s1 + $0x88] sm:$0xff]   ;;  %v496_v11 = vld [vmem:[%s657_s1 + $0x90] sm:$0xff]  }
   0x5   :  { %464 = vmatpush3.bf16.msra.mxu1 %v488_v3  ;;  %443 = vmatprep.subr.bf16.mxu0 %v489_v4  ;;  %v497_v12 = vld [vmem:[%s657_s1 + $0x58] sm:$0xff]   ;;  %v501_v16 = vld [vmem:[%s657_s1 + $0x60] sm:$0xff]   ;;  %v505_v20 = vld [vmem:[%s657_s1 + $0x68] sm:$0xff]  }
   0x6   :  { %465 = vmatprep.subr.bf16.mxu1 %v490_v5  ;;  %v498_v13 = vld [vmem:[%s657_s1 + $0xd8] sm:$0xff]   ;;  %v502_v17 = vld [vmem:[%s657_s1 + $0xe0] sm:$0xff]   ;;  %v506_v21 = vld [vmem:[%s657_s1 + $0xe8] sm:$0xff]  }
   0x7   :  { %v499_v14 = vld [vmem:[%s657_s1 + $0x18] sm:$0xff]   ;;  %v503_v18 = vld [vmem:[%s657_s1 + $0x20] sm:$0xff]   ;;  %v507_v22 = vld [vmem:[%s657_s1 + $0x28] sm:$0xff]  }
   0x8   :  { %444 = vmatpush3.bf16.msra.mxu0 %v491_v6  ;;  %v500_v15 = vld [vmem:[%s657_s1 + $0x98] sm:$0xff]   ;;  %v504_v19 = vld [vmem:[%s657_s1 + $0xa0] sm:$0xff]   ;;  %v508_v23 = vld [vmem:[%s657_s1 + $0xa8] sm:$0xff]  }
   0x9   :  { %466 = vmatpush3.bf16.msra.mxu1 %v492_v7  ;;  %445 = vmatprep.subr.bf16.mxu0 %v493_v8  ;;  %v509_v24 = vld [vmem:[%s657_s1 + $0x70] sm:$0xff]   ;;  %v513_v28 = vld [vmem:[%s657_s1 + $0x78] sm:$0xff]   ;;  %v24_v32 = vld [vmem:[%s658_s0] sm:$0xff] }
   0xa   :  { %467 = vmatprep.subr.bf16.mxu1 %v494_v9  ;;  %v510_v25 = vld [vmem:[%s657_s1 + $0xf0] sm:$0xff]   ;;  %v514_v29 = vld [vmem:[%s657_s1 + $0xf8] sm:$0xff]   ;;  %v25_v33 = vld [vmem:[%s658_s0 + $0x8] sm:$0xff]  ;;  %v403_v34 = vcombine.low %v24_v32, %v24_v32  ;;  %v404_v35 = vcombine.high %v24_v32, %v24_v32 }
   0xb   :  { %v511_v26 = vld [vmem:[%s657_s1 + $0x30] sm:$0xff]   ;;  %v515_v30 = vld [vmem:[%s657_s1 + $0x38] sm:$0xff]   ;;  %v405_v36 = vcombine.low %v25_v33, %v25_v33  ;;  %v406_v37 = vcombine.high %v25_v33, %v25_v33  ;;  %v439_v46 = vld [vmem:[%s659_s2] ss:$0 sm:$0xff] }
   0xc   :  { %446 = vmatpush3.bf16.msra.mxu0 %v495_v10  ;;  %v512_v27 = vld [vmem:[%s657_s1 + $0xb0] sm:$0xff]   ;;  %v516_v31 = vld [vmem:[%s657_s1 + $0xb8] sm:$0xff]   ;;  %328 = vmatprep.mubr.bf16.mxu0 %v404_v35  ;;  %v440_v50 = vld [vmem:[%s660_s3] ss:$0 sm:$0xff] }
   0xd   :  { %468 = vmatpush3.bf16.msra.mxu1 %v496_v11  ;;  %447 = vmatprep.subr.bf16.mxu0 %v497_v12 }
   0xe   :  { %469 = vmatprep.subr.bf16.mxu1 %v498_v13  ;;  %368 = vmatprep.mubr.bf16.mxu1 %v406_v37 }
  0x10   :  { %448 = vmatpush3.bf16.msra.mxu0 %v499_v14 }
  0x11   :  { %470 = vmatpush3.bf16.msra.mxu1 %v500_v15  ;;  %449 = vmatprep.subr.bf16.mxu0 %v501_v16 }
  0x12   :  { %471 = vmatprep.subr.bf16.mxu1 %v502_v17 }
  0x14   :  { %450 = vmatpush3.bf16.msra.mxu0 %v503_v18 }
  0x15   :  { %472 = vmatpush3.bf16.msra.mxu1 %v504_v19  ;;  %451 = vmatprep.subr.bf16.mxu0 %v505_v20 }
  0x16   :  { %473 = vmatprep.subr.bf16.mxu1 %v506_v21 }
  0x18   :  { %452 = vmatpush3.bf16.msra.mxu0 %v507_v22 }
  0x19   :  { %474 = vmatpush3.bf16.msra.mxu1 %v508_v23  ;;  %453 = vmatprep.subr.bf16.mxu0 %v509_v24 }
  0x1a   :  { %475 = vmatprep.subr.bf16.mxu1 %v510_v25 }
  0x1c   :  { %454 = vmatpush3.bf16.msra.mxu0 %v511_v26 }
  0x1d   :  { %476 = vmatpush3.bf16.msra.mxu1 %v512_v27  ;;  %455 = vmatprep.subr.bf16.mxu0 %v513_v28 }
  0x1e   :  { %477 = vmatprep.subr.bf16.mxu1 %v514_v29 }
  0x20   :  { %456 = vmatpush3.bf16.msra.mxu0 %v515_v30 }
  0x21   :  { %478 = vmatpush3.bf16.msra.mxu1 %v516_v31 }
  0x23   :  { %329 = vmatmul.mubr.bf16.vlgmr.msra.gmra.mrb[0].mxu0 %v403_v34 }
  0x24   :  { %369 = vmatmul.mubr.bf16.vlgmr.msra.gmra.mrb[0].mxu1 %v405_v36 }
  0xf6   :  { %v457_v38 = vpop.f32.mrb[0].mxu0 }
  0xf7   :  { %v479_v39 = vpop.f32.mrb[0].mxu1  ;;  %v458_v40 = vpop.f32.mrb[1].mxu0 }
  0xf8   :  { %v480_v41 = vpop.f32.mrb[1].mxu1  ;;  %v459_v42 = vadd.f32 %v458_v40, %v457_v38  ;;  %v460_v44 = vpop.f32.mrb[2].mxu0 }
  0xf9   :  { %v481_v43 = vadd.f32 %v480_v41, %v479_v39  ;;  %v482_v45 = vpop.f32.mrb[2].mxu1  ;;  %v461_v47 = vpop.f32.mrb[3].mxu0 }
  0xfa   :  { %v483_v48 = vpop.f32.mrb[3].mxu1 }
  0xfb   :  { %v371_v49 = vadd.f32 %v481_v43, %v459_v42 }
  0xfd   :  { %v389_v51 = vmul.f32 %v439_v46, %v371_v49 }
  0xff   :  { %v397_v52 = vadd.f32 %v440_v50, %v389_v51 }
 0x101   :  { %398 = vst [vmem:[%s661_s4] sm:$0xff] %v397_v52 }

</bundles_post_ra>
